<compile_context>
chip_gen: v5e
topology: v5e:2x2
jax: 0.10.0
libtpu: 0.0.40
codegen_flags: <defaults>
</compile_context>

<pallas_src>
import functools

import jax
import jax.numpy as jnp
from jax.experimental import pallas as pl
from jax.experimental.pallas import tpu as pltpu

EPS = 1e-5  # PyTorch InstanceNorm2d default eps


def _round_up(v, m):
    return (v + m - 1) // m * m


def _vmem_limit_bytes(H, W, C, compute_dtype, out_dtype):
    """Estimate the per-grid-step VMEM working set (lane/sublane padded) and
    turn it into a vmem limit with headroom against the physical VMEM size."""
    Hp, Wp = H + 2, W + 2
    L = H * Wp
    Lin = Hp * Wp + 2
    lanes = _round_up(C, 128)          # C < 128 still occupies full 128-lane vregs
    c_sz = jnp.dtype(compute_dtype).itemsize
    o_sz = jnp.dtype(out_dtype).itemsize
    buffered = (
        2 * _round_up(Lin, 8) * lanes * c_sz          # padded-x block (double buffered)
        + 2 * _round_up(L, 8) * lanes * o_sz          # output block (double buffered)
        + 2 * 2 * 9 * _round_up(C, 8) * lanes * c_sz  # w1/w2 blocks (double buffered)
        + _round_up(Hp * Wp + 2, 8) * lanes * c_sz    # flat pad scratch
    )
    # Live value slabs inside the conv / IN body: f32 acc + a few f32
    # temporaries + compute-dtype tap/h slabs.  Deliberately generous.
    live = 5 * _round_up(L, 8) * lanes * 4 + 2 * _round_up(L, 8) * lanes * c_sz
    need = buffered + live
    try:
        phys = int(pltpu.get_tpu_info().vmem_capacity_bytes)
    except Exception:
        phys = 64 * 1024 * 1024        # conservative default (v7x per-TC size)
    cap = phys * 7 // 8                # leave headroom for compiler temporaries
    return int(max(min(cap, need * 5 // 4), min(cap, 32 * 1024 * 1024)))


def _conv3x3_instance_norm(tap, w_ref, valid_mask, H, W, C):
    """VALID 3x3 conv over a flat padded slab (row pitch W+2) followed by an
    affine-free instance norm (biased variance, eps inside the sqrt).

    `tap(off)` must return the (H*(W+2), C) slab starting at flat offset
    `off`.  Seam columns (j >= W) of the returned slab are meaningless and
    must be dropped/ignored by the caller; they are excluded from the
    statistics here."""
    Wp = W + 2
    L = H * Wp
    acc = jnp.zeros((L, C), jnp.float32)
    for dh in range(3):
        for dw in range(3):
            acc = acc + jnp.dot(tap(dh * Wp + dw), w_ref[dh, dw],
                                preferred_element_type=jnp.float32)
    # NOTE: no conv-bias add -- a per-channel bias is cancelled exactly by the
    # mean subtraction of the affine-free InstanceNorm below.
    acc = jnp.where(valid_mask, acc, 0.0)            # mask seams in place
    inv_n = 1.0 / float(H * W)
    mean = jnp.sum(acc, axis=0, keepdims=True) * inv_n
    var = jnp.maximum(jnp.sum(acc * acc, axis=0, keepdims=True) * inv_n
                      - mean * mean, 0.0)
    return (acc - mean) * jax.lax.rsqrt(var + EPS)


def resnet_block_kernel(x_ref, w1_ref, w2_ref, o_ref, pad_ref, *,
                        H, W, C, use_strided_borders):
    """x_ref: (1, Hp*Wp + 2, C) reflection-padded input (flat, row pitch Wp).
    o_ref: (1, H*Wp, C) flat output (2 seam columns per row are junk and are
    stripped by the wrapper).  pad_ref: flat VMEM scratch for the h pad."""
    Hp, Wp = H + 2, W + 2
    L = H * Wp
    cdt = pad_ref.dtype

    # Valid output positions: column-within-padded-row < W.
    col = jax.lax.broadcasted_iota(jnp.int32, (L, 1), 0) % Wp
    valid_mask = col < W

    # ---- conv1 -> IN -> relu: taps read straight off the padded input ------
    y1 = _conv3x3_instance_norm(
        lambda off: x_ref[0, pl.ds(off, L), :], w1_ref, valid_mask, H, W, C)
    h = jnp.maximum(y1, 0.0).astype(cdt)             # (L, C), seam cols junk

    # ---- reflection-pad h into the flat VMEM scratch (all vectorized) ------
    # Zero the 2 overflow rows read by the (dh=2, dw>=1) taps.
    pad_ref[pl.ds(Hp * Wp, 2), :] = jnp.zeros((2, C), cdt)
    # Interior: h's flat row k = (i, j) with j < W lands at (i+1)*Wp + (j+1);
    # seam rows land exactly on border cells, which are overwritten below.
    pad_ref[pl.ds(Wp + 1, L), :] = h
    if use_strided_borders:
        # Left / right reflection columns of padded rows 1..H: two strided
        # column copies instead of 4*H single-row loads/stores.
        pad_ref[pl.ds(Wp, H, stride=Wp), :] = (
            pad_ref[pl.ds(Wp + 2, H, stride=Wp), :])
        pad_ref[pl.ds(Wp + W + 1, H, stride=Wp), :] = (
            pad_ref[pl.ds(Wp + W - 1, H, stride=Wp), :])
    else:
        # Fallback (probed at import time): unrolled per-row border fix.
        for i in range(H):
            base = (i + 1) * Wp
            pad_ref[pl.ds(base, 1), :] = pad_ref[pl.ds(base + 2, 1), :]
            pad_ref[pl.ds(base + W + 1, 1), :] = pad_ref[pl.ds(base + W - 1, 1), :]
    # Top / bottom reflection rows (corners included).
    pad_ref[pl.ds(0, Wp), :] = pad_ref[pl.ds(2 * Wp, Wp), :]
    pad_ref[pl.ds((Hp - 1) * Wp, Wp), :] = pad_ref[pl.ds((Hp - 3) * Wp, Wp), :]

    # ---- conv2 -> IN -> residual add, single lane-dense store ---------------
    y2 = _conv3x3_instance_norm(
        lambda off: pad_ref[pl.ds(off, L), :], w2_ref, valid_mask, H, W, C)
    # Center slice of the padded input == original x (seam cols are junk and
    # get stripped by the wrapper).
    x_center = x_ref[0, pl.ds(Wp + 1, L), :].astype(jnp.float32)
    o_ref[0] = (x_center + y2).astype(o_ref.dtype)


def _probe_strided_border_fix():
    """Run (once, eagerly at import) a tiny kernel that mirrors the strided
    VMEM border copies.  If it fails to compile/run or gives a wrong result,
    the main kernel falls back to the unrolled per-row border fix."""
    H, W = 8, 16
    Wp = W + 2
    rows = (H + 2) * Wp + 2

    def probe(x_ref, o_ref, buf):
        buf[...] = jnp.zeros_like(buf)
        buf[pl.ds(Wp + 1, H * Wp), :] = x_ref[...]
        buf[pl.ds(Wp, H, stride=Wp), :] = buf[pl.ds(Wp + 2, H, stride=Wp), :]
        buf[pl.ds(Wp + W + 1, H, stride=Wp), :] = (
            buf[pl.ds(Wp + W - 1, H, stride=Wp), :])
        o_ref[...] = buf[pl.ds(0, H, stride=Wp), :]

    try:
        out = pl.pallas_call(
            probe,
            out_shape=jax.ShapeDtypeStruct((H, 128), jnp.bfloat16),
            scratch_shapes=[pltpu.VMEM((rows, 128), jnp.bfloat16)],
        )(jnp.ones((H * Wp, 128), jnp.bfloat16))
        out = jax.block_until_ready(out)
        return bool(jnp.all(out[0] == 0)) and bool(jnp.all(out[1:] == 1))
    except Exception:
        return False


_STRIDED_BORDER_FIX = _probe_strided_border_fix()


def resnet_block_forward(x_nchw, w1, b1, w2, b2, *, compute_dtype=jnp.bfloat16):
    """ResnetBlock forward.

    x_nchw: (N, C, H, W).  w1/w2: torch OIHW (C, C, 3, 3).  b1/b2: (C,).

    b1/b2 are accepted for interface fidelity but intentionally unused: each
    conv is followed by an affine-free, non-tracking InstanceNorm whose mean
    subtraction cancels a per-channel conv bias exactly.

    compute_dtype: dtype of the MXU tap-matmul operands (accumulation and the
    InstanceNorm statistics are always f32).  bf16 (default) runs the MXU at
    its fast rate; pass jnp.float32 for bit-exact f32 semantics.
    """
    del b1, b2
    N, C, H, W = x_nchw.shape
    assert H >= 2 and W >= 2, "ReflectionPad2d(1) needs H, W >= 2"
    out_dtype = x_nchw.dtype
    Hp, Wp = H + 2, W + 2
    L = H * Wp                   # flat conv-output length (row pitch W+2)
    Lin = Hp * Wp + 2            # flat padded-input length (+2 overflow rows)

    # Reflection-pad x once on the XLA side; this folds into the NCHW->NHWC
    # relayout copy that was already needed, so it adds almost no HBM traffic.
    x_nhwc = jnp.transpose(x_nchw, (0, 2, 3, 1))
    xpad = jnp.pad(x_nhwc, ((0, 0), (1, 1), (1, 1), (0, 0)), mode="reflect")
    xpad = xpad.reshape(N, Hp * Wp, C)
    xpad = jnp.pad(xpad, ((0, 0), (0, 2), (0, 0)))          # 2 zero overflow rows
    xpad = xpad.astype(compute_dtype)

    # torch OIHW -> (kh, kw, Cin, Cout): each tap is a (L, Cin) @ (Cin, Cout) matmul.
    w1_k = jnp.transpose(w1, (2, 3, 1, 0)).astype(compute_dtype)
    w2_k = jnp.transpose(w2, (2, 3, 1, 0)).astype(compute_dtype)

    kernel = functools.partial(
        resnet_block_kernel, H=H, W=W, C=C,
        use_strided_borders=_STRIDED_BORDER_FIX)

    out_flat = pl.pallas_call(
        kernel,
        out_shape=jax.ShapeDtypeStruct((N, L, C), out_dtype),
        grid=(N,),
        in_specs=[
            pl.BlockSpec((1, Lin, C), lambda n: (n, 0, 0)),
            # TODO(synk): single-buffer the constant weight blocks via
            # pipeline_mode=pl.Buffered(1) once verified on the target
            # toolchain (saves ~9*C*C*itemsize of VMEM per weight tensor).
            pl.BlockSpec((3, 3, C, C), lambda n: (0, 0, 0, 0)),
            pl.BlockSpec((3, 3, C, C), lambda n: (0, 0, 0, 0)),
        ],
        out_specs=pl.BlockSpec((1, L, C), lambda n: (n, 0, 0)),
        scratch_shapes=[pltpu.VMEM((Hp * Wp + 2, C), compute_dtype)],
        compiler_params=pltpu.CompilerParams(
            dimension_semantics=("parallel",),
            vmem_limit_bytes=_vmem_limit_bytes(H, W, C, compute_dtype, out_dtype),
        ),
    )(xpad, w1_k, w2_k)

    # TODO(synk): for very large H*W (v7x: 64 MiB VMEM/TC) row-tile the grid
    # with a 2-row halo and two-pass IN statistics, and mark the row axis
    # parallel so small batches can use both v7x TensorCores.

    # Drop the 2 seam columns of each flat row and return to NCHW.
    out = out_flat.reshape(N, H, Wp, C)[:, :, :W, :]
    return jnp.transpose(out, (0, 3, 1, 2))


def _reference_forward(x_nchw, w1, b1, w2, b2):
    """Pure-JAX (XLA) reference matching the PyTorch module semantics."""
    def conv(x, w, b):
        xpad = jnp.pad(x, ((0, 0), (0, 0), (1, 1), (1, 1)), mode="reflect")
        y = jax.lax.conv_general_dilated(
            xpad, w, window_strides=(1, 1), padding="VALID",
            dimension_numbers=("NCHW", "OIHW", "NCHW"))
        return y + b[None, :, None, None]

    def inorm(x):
        mean = jnp.mean(x, axis=(2, 3), keepdims=True)
        var = jnp.mean((x - mean) ** 2, axis=(2, 3), keepdims=True)
        return (x - mean) / jnp.sqrt(var + EPS)

    h = jax.nn.relu(inorm(conv(x_nchw, w1, b1)))
    # TODO(synk): use_dropout branch (nn.Dropout(0.5)) intentionally omitted
    # (module instantiated with use_dropout=False).
    return x_nchw + inorm(conv(h, w2, b2))


if __name__ == "__main__":
    N, C, H, W = 2, 4, 16, 16

    key = jax.random.PRNGKey(0)
    kx, kw1, kb1, kw2, kb2 = jax.random.split(key, 5)

    x = jax.random.normal(kx, (N, C, H, W), dtype=jnp.float32)
    # Deterministic synthetic parameters (torch layouts: OIHW weights, (C,) bias)
    w1 = 0.1 * jax.random.normal(kw1, (C, C, 3, 3), dtype=jnp.float32)
    b1 = 0.1 * jax.random.normal(kb1, (C,), dtype=jnp.float32)
    w2 = 0.1 * jax.random.normal(kw2, (C, C, 3, 3), dtype=jnp.float32)
    b2 = 0.1 * jax.random.normal(kb2, (C,), dtype=jnp.float32)

    ref = jax.block_until_ready(_reference_forward(x, w1, b1, w2, b2))

    # Exact path (f32 tap matmuls) -- tight tolerance; exercises the whole
    # kernel logic bit-accurately.
    fwd_f32 = jax.jit(functools.partial(resnet_block_forward,
                                        compute_dtype=jnp.float32))
    out_f32 = jax.block_until_ready(fwd_f32(x, w1, b1, w2, b2))
    assert out_f32.shape == (N, C, H, W)
    err_f32 = float(jnp.max(jnp.abs(out_f32 - ref)))
    assert err_f32 < 1e-4, f"f32-compute path error too large: {err_f32}"

    # Default fast path (bf16 MXU taps, f32 accumulation / IN statistics) --
    # same kernel code, loose tolerance accounts only for bf16 rounding.
    fwd_bf16 = jax.jit(resnet_block_forward)
    out_bf16 = jax.block_until_ready(fwd_bf16(x, w1, b1, w2, b2))
    err_max = float(jnp.max(jnp.abs(out_bf16 - ref)))
    err_mean = float(jnp.mean(jnp.abs(out_bf16 - ref)))
    assert err_max < 2e-1, f"bf16-compute path max error too large: {err_max}"
    assert err_mean < 2e-2, f"bf16-compute path mean error too large: {err_mean}"

    print("KERNEL_OK")
</pallas_src>

<mosaic_0001>
module attributes {stable_mosaic.version = 11 : i64} {
  func.func @probe(%arg0: memref<144x128xbf16, #tpu.memory_space<vmem>>, %arg1: memref<8x128xbf16, #tpu.memory_space<vmem>>, %arg2: memref<182x128xbf16, #tpu.memory_space<vmem>>) attributes {dimension_semantics = [], scalar_prefetch = 0 : i64, scratch_operands = 1 : i64, tpu.core_type = #tpu.core_type<tc>} {
    %cst = arith.constant 0.000000e+00 : bf16
    %0 = vector.broadcast %cst : bf16 to vector<182x128xbf16>
    %c0 = arith.constant 0 : index
    %c0_0 = arith.constant 0 : index
    %1 = vector.load %arg2[%c0, %c0_0] : memref<182x128xbf16, #tpu.memory_space<vmem>>, vector<182x128xbf16>
    tpu.vector_store %arg2[%c0, %c0_0], %0 {strides = array<i32>} : memref<182x128xbf16, #tpu.memory_space<vmem>>, vector<182x128xbf16>,
    %c0_1 = arith.constant 0 : index
    %c0_2 = arith.constant 0 : index
    %2 = vector.load %arg0[%c0_1, %c0_2] : memref<144x128xbf16, #tpu.memory_space<vmem>>, vector<144x128xbf16>
    %c19 = arith.constant 19 : index
    %c0_3 = arith.constant 0 : index
    %3 = vector.load %arg2[%c19, %c0_3] : memref<182x128xbf16, #tpu.memory_space<vmem>>, vector<144x128xbf16>
    tpu.vector_store %arg2[%c19, %c0_3], %2 {strides = array<i32>} : memref<182x128xbf16, #tpu.memory_space<vmem>>, vector<144x128xbf16>,
    %c20 = arith.constant 20 : index
    %c0_4 = arith.constant 0 : index
    %4 = tpu.strided_load %arg2[%c20, %c0_4] {strides = array<i32: 18, 1>} : memref<182x128xbf16, #tpu.memory_space<vmem>>, vector<8x128xbf16>
    %c18 = arith.constant 18 : index
    %c0_5 = arith.constant 0 : index
    %5 = tpu.strided_load %arg2[%c18, %c0_5] {strides = array<i32: 18, 1>} : memref<182x128xbf16, #tpu.memory_space<vmem>>, vector<8x128xbf16>
    tpu.strided_store %arg2[%c18, %c0_5], %4 {strides = array<i32: 18, 1>} : memref<182x128xbf16, #tpu.memory_space<vmem>>, vector<8x128xbf16>
    %c33 = arith.constant 33 : index
    %c0_6 = arith.constant 0 : index
    %6 = tpu.strided_load %arg2[%c33, %c0_6] {strides = array<i32: 18, 1>} : memref<182x128xbf16, #tpu.memory_space<vmem>>, vector<8x128xbf16>
    %c35 = arith.constant 35 : index
    %c0_7 = arith.constant 0 : index
    %7 = tpu.strided_load %arg2[%c35, %c0_7] {strides = array<i32: 18, 1>} : memref<182x128xbf16, #tpu.memory_space<vmem>>, vector<8x128xbf16>
    tpu.strided_store %arg2[%c35, %c0_7], %6 {strides = array<i32: 18, 1>} : memref<182x128xbf16, #tpu.memory_space<vmem>>, vector<8x128xbf16>
    %c0_8 = arith.constant 0 : index
    %c0_9 = arith.constant 0 : index
    %8 = tpu.strided_load %arg2[%c0_8, %c0_9] {strides = array<i32: 18, 1>} : memref<182x128xbf16, #tpu.memory_space<vmem>>, vector<8x128xbf16>
    %c0_10 = arith.constant 0 : index
    %c0_11 = arith.constant 0 : index
    %9 = vector.load %arg1[%c0_10, %c0_11] : memref<8x128xbf16, #tpu.memory_space<vmem>>, vector<8x128xbf16>
    tpu.vector_store %arg1[%c0_10, %c0_11], %8 {strides = array<i32>} : memref<8x128xbf16, #tpu.memory_space<vmem>>, vector<8x128xbf16>,
    return
  }
}

module attributes {stable_mosaic.version = 11 : i64} {
  func.func @resnet_block_kernel(%arg0: i32, %arg1: memref<1x326x4xf32, #tpu.memory_space<vmem>>, %arg2: memref<3x3x4x4xf32, #tpu.memory_space<vmem>>, %arg3: memref<3x3x4x4xf32, #tpu.memory_space<vmem>>, %arg4: memref<1x288x4xf32, #tpu.memory_space<vmem>>, %arg5: memref<326x4xf32, #tpu.memory_space<vmem>>) attributes {dimension_semantics = [#tpu.dimension_semantics<parallel>], iteration_bounds = array<i64: 2>, scalar_prefetch = 0 : i64, scratch_operands = 1 : i64, tpu.core_type = #tpu.core_type<tc>, window_params = [{transform_indices = @transform_0, window_bounds = array<i64: 1, 326, 4>}, {pipeline_mode = #tpu.pipeline_mode<synchronous>, transform_indices = @transform_1, window_bounds = array<i64: 3, 3, 4, 4>}, {pipeline_mode = #tpu.pipeline_mode<synchronous>, transform_indices = @transform_2, window_bounds = array<i64: 3, 3, 4, 4>}, {transform_indices = @transform_3, window_bounds = array<i64: 1, 288, 4>}]} {
    %0 = tpu.iota {dimensions = array<i32: 0>} : vector<288x1xi32>
    %c18_i32 = arith.constant 18 : i32
    %c0_i32 = arith.constant 0 : i32
    %1 = arith.cmpi eq, %c18_i32, %c0_i32 : i32
    %c1_i32 = arith.constant 1 : i32
    %2 = arith.select %1, %c1_i32, %c18_i32 : i32
    %3 = vector.broadcast %2 : i32 to vector<288x1xi32>
    %4 = arith.remsi %0, %3 : vector<288x1xi32>
    %c0_i32_0 = arith.constant 0 : i32
    %5 = vector.broadcast %c0_i32_0 : i32 to vector<288x1xi32>
    %6 = arith.cmpi ne, %4, %5 : vector<288x1xi32>
    %c0_i32_1 = arith.constant 0 : i32
    %7 = vector.broadcast %c0_i32_1 : i32 to vector<288x1xi32>
    %8 = arith.cmpi slt, %4, %7 : vector<288x1xi32>
    %c0_i32_2 = arith.constant 0 : i32
    %9 = arith.cmpi slt, %2, %c0_i32_2 : i32
    %10 = vector.broadcast %9 : i1 to vector<288x1xi1>
    %11 = vector.broadcast %10 : vector<288x1xi1> to vector<288x1xi1>
    %12 = arith.xori %8, %11 : vector<288x1xi1>
    %13 = arith.andi %12, %6 : vector<288x1xi1>
    %14 = vector.broadcast %2 : i32 to vector<288x1xi32>
    %15 = arith.addi %4, %14 : vector<288x1xi32>
    %16 = arith.select %13, %15, %4 : vector<288x1xi1>, vector<288x1xi32>
    %c16_i32 = arith.constant 16 : i32
    %17 = vector.broadcast %c16_i32 : i32 to vector<288x1xi32>
    %18 = arith.cmpi slt, %16, %17 : vector<288x1xi32>
    %cst = arith.constant 0.000000e+00 : f32
    %19 = vector.broadcast %cst : f32 to vector<288x4xf32>
    %c0 = arith.constant 0 : index
    %c0_3 = arith.constant 0 : index
    %c0_4 = arith.constant 0 : index
    %20 = vector.load %arg1[%c0, %c0_3, %c0_4] : memref<1x326x4xf32, #tpu.memory_space<vmem>>, vector<1x288x4xf32>
    %21 = vector.shape_cast %20 : vector<1x288x4xf32> to vector<288x4xf32>
    %c0_5 = arith.constant 0 : index
    %c0_6 = arith.constant 0 : index
    %c0_7 = arith.constant 0 : index
    %c0_8 = arith.constant 0 : index
    %22 = vector.load %arg2[%c0_5, %c0_6, %c0_7, %c0_8] : memref<3x3x4x4xf32, #tpu.memory_space<vmem>>, vector<1x1x4x4xf32>
    %23 = vector.shape_cast %22 : vector<1x1x4x4xf32> to vector<4x4xf32>
    %cst_9 = arith.constant dense<0.000000e+00> : vector<288x4xf32>
    %24 = tpu.matmul %21, %23, %cst_9 {dimension_numbers = #tpu.dot_dimension_numbers<[1], [0], [0], [1], [0, 0, 1, 1], [], []>} : vector<288x4xf32>, vector<4x4xf32>, vector<288x4xf32> -> vector<288x4xf32>
    %25 = arith.addf %19, %24 : vector<288x4xf32>
    %c0_10 = arith.constant 0 : index
    %c1 = arith.constant 1 : index
    %c0_11 = arith.constant 0 : index
    %26 = vector.load %arg1[%c0_10, %c1, %c0_11] : memref<1x326x4xf32, #tpu.memory_space<vmem>>, vector<1x288x4xf32>
    %27 = vector.shape_cast %26 : vector<1x288x4xf32> to vector<288x4xf32>
    %c0_12 = arith.constant 0 : index
    %c1_13 = arith.constant 1 : index
    %c0_14 = arith.constant 0 : index
    %c0_15 = arith.constant 0 : index
    %28 = vector.load %arg2[%c0_12, %c1_13, %c0_14, %c0_15] : memref<3x3x4x4xf32, #tpu.memory_space<vmem>>, vector<1x1x4x4xf32>
    %29 = vector.shape_cast %28 : vector<1x1x4x4xf32> to vector<4x4xf32>
    %cst_16 = arith.constant dense<0.000000e+00> : vector<288x4xf32>
    %30 = tpu.matmul %27, %29, %cst_16 {dimension_numbers = #tpu.dot_dimension_numbers<[1], [0], [0], [1], [0, 0, 1, 1], [], []>} : vector<288x4xf32>, vector<4x4xf32>, vector<288x4xf32> -> vector<288x4xf32>
    %31 = arith.addf %25, %30 : vector<288x4xf32>
    %c0_17 = arith.constant 0 : index
    %c2 = arith.constant 2 : index
    %c0_18 = arith.constant 0 : index
    %32 = vector.load %arg1[%c0_17, %c2, %c0_18] : memref<1x326x4xf32, #tpu.memory_space<vmem>>, vector<1x288x4xf32>
    %33 = vector.shape_cast %32 : vector<1x288x4xf32> to vector<288x4xf32>
    %c0_19 = arith.constant 0 : index
    %c2_20 = arith.constant 2 : index
    %c0_21 = arith.constant 0 : index
    %c0_22 = arith.constant 0 : index
    %34 = vector.load %arg2[%c0_19, %c2_20, %c0_21, %c0_22] : memref<3x3x4x4xf32, #tpu.memory_space<vmem>>, vector<1x1x4x4xf32>
    %35 = vector.shape_cast %34 : vector<1x1x4x4xf32> to vector<4x4xf32>
    %cst_23 = arith.constant dense<0.000000e+00> : vector<288x4xf32>
    %36 = tpu.matmul %33, %35, %cst_23 {dimension_numbers = #tpu.dot_dimension_numbers<[1], [0], [0], [1], [0, 0, 1, 1], [], []>} : vector<288x4xf32>, vector<4x4xf32>, vector<288x4xf32> -> vector<288x4xf32>
    %37 = arith.addf %31, %36 : vector<288x4xf32>
    %c0_24 = arith.constant 0 : index
    %c18 = arith.constant 18 : index
    %c0_25 = arith.constant 0 : index
    %38 = vector.load %arg1[%c0_24, %c18, %c0_25] : memref<1x326x4xf32, #tpu.memory_space<vmem>>, vector<1x288x4xf32>
    %39 = vector.shape_cast %38 : vector<1x288x4xf32> to vector<288x4xf32>
    %c1_26 = arith.constant 1 : index
    %c0_27 = arith.constant 0 : index
    %c0_28 = arith.constant 0 : index
    %c0_29 = arith.constant 0 : index
    %40 = vector.load %arg2[%c1_26, %c0_27, %c0_28, %c0_29] : memref<3x3x4x4xf32, #tpu.memory_space<vmem>>, vector<1x1x4x4xf32>
    %41 = vector.shape_cast %40 : vector<1x1x4x4xf32> to vector<4x4xf32>
    %cst_30 = arith.constant dense<0.000000e+00> : vector<288x4xf32>
    %42 = tpu.matmul %39, %41, %cst_30 {dimension_numbers = #tpu.dot_dimension_numbers<[1], [0], [0], [1], [0, 0, 1, 1], [], []>} : vector<288x4xf32>, vector<4x4xf32>, vector<288x4xf32> -> vector<288x4xf32>
    %43 = arith.addf %37, %42 : vector<288x4xf32>
    %c0_31 = arith.constant 0 : index
    %c19 = arith.constant 19 : index
    %c0_32 = arith.constant 0 : index
    %44 = vector.load %arg1[%c0_31, %c19, %c0_32] : memref<1x326x4xf32, #tpu.memory_space<vmem>>, vector<1x288x4xf32>
    %45 = vector.shape_cast %44 : vector<1x288x4xf32> to vector<288x4xf32>
    %c1_33 = arith.constant 1 : index
    %c1_34 = arith.constant 1 : index
    %c0_35 = arith.constant 0 : index
    %c0_36 = arith.constant 0 : index
    %46 = vector.load %arg2[%c1_33, %c1_34, %c0_35, %c0_36] : memref<3x3x4x4xf32, #tpu.memory_space<vmem>>, vector<1x1x4x4xf32>
    %47 = vector.shape_cast %46 : vector<1x1x4x4xf32> to vector<4x4xf32>
    %cst_37 = arith.constant dense<0.000000e+00> : vector<288x4xf32>
    %48 = tpu.matmul %45, %47, %cst_37 {dimension_numbers = #tpu.dot_dimension_numbers<[1], [0], [0], [1], [0, 0, 1, 1], [], []>} : vector<288x4xf32>, vector<4x4xf32>, vector<288x4xf32> -> vector<288x4xf32>
    %49 = arith.addf %43, %48 : vector<288x4xf32>
    %c0_38 = arith.constant 0 : index
    %c20 = arith.constant 20 : index
    %c0_39 = arith.constant 0 : index
    %50 = vector.load %arg1[%c0_38, %c20, %c0_39] : memref<1x326x4xf32, #tpu.memory_space<vmem>>, vector<1x288x4xf32>
    %51 = vector.shape_cast %50 : vector<1x288x4xf32> to vector<288x4xf32>
    %c1_40 = arith.constant 1 : index
    %c2_41 = arith.constant 2 : index
    %c0_42 = arith.constant 0 : index
    %c0_43 = arith.constant 0 : index
    %52 = vector.load %arg2[%c1_40, %c2_41, %c0_42, %c0_43] : memref<3x3x4x4xf32, #tpu.memory_space<vmem>>, vector<1x1x4x4xf32>
    %53 = vector.shape_cast %52 : vector<1x1x4x4xf32> to vector<4x4xf32>
    %cst_44 = arith.constant dense<0.000000e+00> : vector<288x4xf32>
    %54 = tpu.matmul %51, %53, %cst_44 {dimension_numbers = #tpu.dot_dimension_numbers<[1], [0], [0], [1], [0, 0, 1, 1], [], []>} : vector<288x4xf32>, vector<4x4xf32>, vector<288x4xf32> -> vector<288x4xf32>
    %55 = arith.addf %49, %54 : vector<288x4xf32>
    %c0_45 = arith.constant 0 : index
    %c36 = arith.constant 36 : index
    %c0_46 = arith.constant 0 : index
    %56 = vector.load %arg1[%c0_45, %c36, %c0_46] : memref<1x326x4xf32, #tpu.memory_space<vmem>>, vector<1x288x4xf32>
    %57 = vector.shape_cast %56 : vector<1x288x4xf32> to vector<288x4xf32>
    %c2_47 = arith.constant 2 : index
    %c0_48 = arith.constant 0 : index
    %c0_49 = arith.constant 0 : index
    %c0_50 = arith.constant 0 : index
    %58 = vector.load %arg2[%c2_47, %c0_48, %c0_49, %c0_50] : memref<3x3x4x4xf32, #tpu.memory_space<vmem>>, vector<1x1x4x4xf32>
    %59 = vector.shape_cast %58 : vector<1x1x4x4xf32> to vector<4x4xf32>
    %cst_51 = arith.constant dense<0.000000e+00> : vector<288x4xf32>
    %60 = tpu.matmul %57, %59, %cst_51 {dimension_numbers = #tpu.dot_dimension_numbers<[1], [0], [0], [1], [0, 0, 1, 1], [], []>} : vector<288x4xf32>, vector<4x4xf32>, vector<288x4xf32> -> vector<288x4xf32>
    %61 = arith.addf %55, %60 : vector<288x4xf32>
    %c0_52 = arith.constant 0 : index
    %c37 = arith.constant 37 : index
    %c0_53 = arith.constant 0 : index
    %62 = vector.load %arg1[%c0_52, %c37, %c0_53] : memref<1x326x4xf32, #tpu.memory_space<vmem>>, vector<1x288x4xf32>
    %63 = vector.shape_cast %62 : vector<1x288x4xf32> to vector<288x4xf32>
    %c2_54 = arith.constant 2 : index
    %c1_55 = arith.constant 1 : index
    %c0_56 = arith.constant 0 : index
    %c0_57 = arith.constant 0 : index
    %64 = vector.load %arg2[%c2_54, %c1_55, %c0_56, %c0_57] : memref<3x3x4x4xf32, #tpu.memory_space<vmem>>, vector<1x1x4x4xf32>
    %65 = vector.shape_cast %64 : vector<1x1x4x4xf32> to vector<4x4xf32>
    %cst_58 = arith.constant dense<0.000000e+00> : vector<288x4xf32>
    %66 = tpu.matmul %63, %65, %cst_58 {dimension_numbers = #tpu.dot_dimension_numbers<[1], [0], [0], [1], [0, 0, 1, 1], [], []>} : vector<288x4xf32>, vector<4x4xf32>, vector<288x4xf32> -> vector<288x4xf32>
    %67 = arith.addf %61, %66 : vector<288x4xf32>
    %c0_59 = arith.constant 0 : index
    %c38 = arith.constant 38 : index
    %c0_60 = arith.constant 0 : index
    %68 = vector.load %arg1[%c0_59, %c38, %c0_60] : memref<1x326x4xf32, #tpu.memory_space<vmem>>, vector<1x288x4xf32>
    %69 = vector.shape_cast %68 : vector<1x288x4xf32> to vector<288x4xf32>
    %c2_61 = arith.constant 2 : index
    %c2_62 = arith.constant 2 : index
    %c0_63 = arith.constant 0 : index
    %c0_64 = arith.constant 0 : index
    %70 = vector.load %arg2[%c2_61, %c2_62, %c0_63, %c0_64] : memref<3x3x4x4xf32, #tpu.memory_space<vmem>>, vector<1x1x4x4xf32>
    %71 = vector.shape_cast %70 : vector<1x1x4x4xf32> to vector<4x4xf32>
    %cst_65 = arith.constant dense<0.000000e+00> : vector<288x4xf32>
    %72 = tpu.matmul %69, %71, %cst_65 {dimension_numbers = #tpu.dot_dimension_numbers<[1], [0], [0], [1], [0, 0, 1, 1], [], []>} : vector<288x4xf32>, vector<4x4xf32>, vector<288x4xf32> -> vector<288x4xf32>
    %73 = arith.addf %67, %72 : vector<288x4xf32>
    %cst_66 = arith.constant 0.000000e+00 : f32
    %74 = vector.shape_cast %18 : vector<288x1xi1> to vector<288x1xi1>
    %75 = vector.broadcast %74 : vector<288x1xi1> to vector<288x4xi1>
    %76 = vector.broadcast %cst_66 : f32 to vector<288x4xf32>
    %77 = arith.select %75, %73, %76 : vector<288x4xi1>, vector<288x4xf32>
    %cst_67 = arith.constant dense<0.000000e+00> : vector<4xf32>
    %78 = vector.multi_reduction <add>, %77, %cst_67 [0] : vector<288x4xf32> to vector<4xf32>
    %79 = vector.shape_cast %78 : vector<4xf32> to vector<1x4xf32>
    %cst_68 = arith.constant 3.906250e-03 : f32
    %80 = vector.broadcast %cst_68 : f32 to vector<1x4xf32>
    %81 = arith.mulf %79, %80 : vector<1x4xf32>
    %82 = arith.mulf %77, %77 : vector<288x4xf32>
    %cst_69 = arith.constant dense<0.000000e+00> : vector<4xf32>
    %83 = vector.multi_reduction <add>, %82, %cst_69 [0] : vector<288x4xf32> to vector<4xf32>
    %84 = vector.shape_cast %83 : vector<4xf32> to vector<1x4xf32>
    %cst_70 = arith.constant 3.906250e-03 : f32
    %85 = vector.broadcast %cst_70 : f32 to vector<1x4xf32>
    %86 = arith.mulf %84, %85 : vector<1x4xf32>
    %87 = arith.mulf %81, %81 : vector<1x4xf32>
    %88 = arith.subf %86, %87 : vector<1x4xf32>
    %cst_71 = arith.constant 0.000000e+00 : f32
    %89 = vector.broadcast %cst_71 : f32 to vector<1x4xf32>
    %90 = arith.maximumf %88, %89 : vector<1x4xf32>
    %91 = vector.broadcast %81 : vector<1x4xf32> to vector<288x4xf32>
    %92 = arith.subf %77, %91 : vector<288x4xf32>
    %cst_72 = arith.constant 9.99999974E-6 : f32
    %93 = vector.broadcast %cst_72 : f32 to vector<1x4xf32>
    %94 = arith.addf %90, %93 : vector<1x4xf32>
    %95 = math.rsqrt %94 : vector<1x4xf32>
    %96 = vector.broadcast %95 : vector<1x4xf32> to vector<288x4xf32>
    %97 = arith.mulf %92, %96 : vector<288x4xf32>
    %cst_73 = arith.constant 0.000000e+00 : f32
    %98 = vector.broadcast %cst_73 : f32 to vector<288x4xf32>
    %99 = arith.maximumf %97, %98 : vector<288x4xf32>
    %cst_74 = arith.constant 0.000000e+00 : f32
    %100 = vector.broadcast %cst_74 : f32 to vector<2x4xf32>
    %c324 = arith.constant 324 : index
    %c0_75 = arith.constant 0 : index
    %101 = vector.load %arg5[%c324, %c0_75] : memref<326x4xf32, #tpu.memory_space<vmem>>, vector<2x4xf32>
    tpu.vector_store %arg5[%c324, %c0_75], %100 {strides = array<i32>} : memref<326x4xf32, #tpu.memory_space<vmem>>, vector<2x4xf32>,
    %c19_76 = arith.constant 19 : index
    %c0_77 = arith.constant 0 : index
    %102 = vector.load %arg5[%c19_76, %c0_77] : memref<326x4xf32, #tpu.memory_space<vmem>>, vector<288x4xf32>
    tpu.vector_store %arg5[%c19_76, %c0_77], %99 {strides = array<i32>} : memref<326x4xf32, #tpu.memory_space<vmem>>, vector<288x4xf32>,
    %c20_78 = arith.constant 20 : index
    %c0_79 = arith.constant 0 : index
    %103 = vector.load %arg5[%c20_78, %c0_79] : memref<326x4xf32, #tpu.memory_space<vmem>>, vector<1x4xf32>
    %c18_80 = arith.constant 18 : index
    %c0_81 = arith.constant 0 : index
    %104 = vector.load %arg5[%c18_80, %c0_81] : memref<326x4xf32, #tpu.memory_space<vmem>>, vector<1x4xf32>
    tpu.vector_store %arg5[%c18_80, %c0_81], %103 {strides = array<i32>} : memref<326x4xf32, #tpu.memory_space<vmem>>, vector<1x4xf32>,
    %c33 = arith.constant 33 : index
    %c0_82 = arith.constant 0 : index
    %105 = vector.load %arg5[%c33, %c0_82] : memref<326x4xf32, #tpu.memory_space<vmem>>, vector<1x4xf32>
    %c35 = arith.constant 35 : index
    %c0_83 = arith.constant 0 : index
    %106 = vector.load %arg5[%c35, %c0_83] : memref<326x4xf32, #tpu.memory_space<vmem>>, vector<1x4xf32>
    tpu.vector_store %arg5[%c35, %c0_83], %105 {strides = array<i32>} : memref<326x4xf32, #tpu.memory_space<vmem>>, vector<1x4xf32>,
    %c38_84 = arith.constant 38 : index
    %c0_85 = arith.constant 0 : index
    %107 = vector.load %arg5[%c38_84, %c0_85] : memref<326x4xf32, #tpu.memory_space<vmem>>, vector<1x4xf32>
    %c36_86 = arith.constant 36 : index
    %c0_87 = arith.constant 0 : index
    %108 = vector.load %arg5[%c36_86, %c0_87] : memref<326x4xf32, #tpu.memory_space<vmem>>, vector<1x4xf32>
    tpu.vector_store %arg5[%c36_86, %c0_87], %107 {strides = array<i32>} : memref<326x4xf32, #tpu.memory_space<vmem>>, vector<1x4xf32>,
    %c51 = arith.constant 51 : index
    %c0_88 = arith.constant 0 : index
    %109 = vector.load %arg5[%c51, %c0_88] : memref<326x4xf32, #tpu.memory_space<vmem>>, vector<1x4xf32>
    %c53 = arith.constant 53 : index
    %c0_89 = arith.constant 0 : index
    %110 = vector.load %arg5[%c53, %c0_89] : memref<326x4xf32, #tpu.memory_space<vmem>>, vector<1x4xf32>
    tpu.vector_store %arg5[%c53, %c0_89], %109 {strides = array<i32>} : memref<326x4xf32, #tpu.memory_space<vmem>>, vector<1x4xf32>,
    %c56 = arith.constant 56 : index
    %c0_90 = arith.constant 0 : index
    %111 = vector.load %arg5[%c56, %c0_90] : memref<326x4xf32, #tpu.memory_space<vmem>>, vector<1x4xf32>
    %c54 = arith.constant 54 : index
    %c0_91 = arith.constant 0 : index
    %112 = vector.load %arg5[%c54, %c0_91] : memref<326x4xf32, #tpu.memory_space<vmem>>, vector<1x4xf32>
    tpu.vector_store %arg5[%c54, %c0_91], %111 {strides = array<i32>} : memref<326x4xf32, #tpu.memory_space<vmem>>, vector<1x4xf32>,
    %c69 = arith.constant 69 : index
    %c0_92 = arith.constant 0 : index
    %113 = vector.load %arg5[%c69, %c0_92] : memref<326x4xf32, #tpu.memory_space<vmem>>, vector<1x4xf32>
    %c71 = arith.constant 71 : index
    %c0_93 = arith.constant 0 : index
    %114 = vector.load %arg5[%c71, %c0_93] : memref<326x4xf32, #tpu.memory_space<vmem>>, vector<1x4xf32>
    tpu.vector_store %arg5[%c71, %c0_93], %113 {strides = array<i32>} : memref<326x4xf32, #tpu.memory_space<vmem>>, vector<1x4xf32>,
    %c74 = arith.constant 74 : index
    %c0_94 = arith.constant 0 : index
    %115 = vector.load %arg5[%c74, %c0_94] : memref<326x4xf32, #tpu.memory_space<vmem>>, vector<1x4xf32>
    %c72 = arith.constant 72 : index
    %c0_95 = arith.constant 0 : index
    %116 = vector.load %arg5[%c72, %c0_95] : memref<326x4xf32, #tpu.memory_space<vmem>>, vector<1x4xf32>
    tpu.vector_store %arg5[%c72, %c0_95], %115 {strides = array<i32>} : memref<326x4xf32, #tpu.memory_space<vmem>>, vector<1x4xf32>,
    %c87 = arith.constant 87 : index
    %c0_96 = arith.constant 0 : index
    %117 = vector.load %arg5[%c87, %c0_96] : memref<326x4xf32, #tpu.memory_space<vmem>>, vector<1x4xf32>
    %c89 = arith.constant 89 : index
    %c0_97 = arith.constant 0 : index
    %118 = vector.load %arg5[%c89, %c0_97] : memref<326x4xf32, #tpu.memory_space<vmem>>, vector<1x4xf32>
    tpu.vector_store %arg5[%c89, %c0_97], %117 {strides = array<i32>} : memref<326x4xf32, #tpu.memory_space<vmem>>, vector<1x4xf32>,
    %c92 = arith.constant 92 : index
    %c0_98 = arith.constant 0 : index
    %119 = vector.load %arg5[%c92, %c0_98] : memref<326x4xf32, #tpu.memory_space<vmem>>, vector<1x4xf32>
    %c90 = arith.constant 90 : index
    %c0_99 = arith.constant 0 : index
    %120 = vector.load %arg5[%c90, %c0_99] : memref<326x4xf32, #tpu.memory_space<vmem>>, vector<1x4xf32>
    tpu.vector_store %arg5[%c90, %c0_99], %119 {strides = array<i32>} : memref<326x4xf32, #tpu.memory_space<vmem>>, vector<1x4xf32>,
    %c105 = arith.constant 105 : index
    %c0_100 = arith.constant 0 : index
    %121 = vector.load %arg5[%c105, %c0_100] : memref<326x4xf32, #tpu.memory_space<vmem>>, vector<1x4xf32>
    %c107 = arith.constant 107 : index
    %c0_101 = arith.constant 0 : index
    %122 = vector.load %arg5[%c107, %c0_101] : memref<326x4xf32, #tpu.memory_space<vmem>>, vector<1x4xf32>
    tpu.vector_store %arg5[%c107, %c0_101], %121 {strides = array<i32>} : memref<326x4xf32, #tpu.memory_space<vmem>>, vector<1x4xf32>,
    %c110 = arith.constant 110 : index
    %c0_102 = arith.constant 0 : index
    %123 = vector.load %arg5[%c110, %c0_102] : memref<326x4xf32, #tpu.memory_space<vmem>>, vector<1x4xf32>
    %c108 = arith.constant 108 : index
    %c0_103 = arith.constant 0 : index
    %124 = vector.load %arg5[%c108, %c0_103] : memref<326x4xf32, #tpu.memory_space<vmem>>, vector<1x4xf32>
    tpu.vector_store %arg5[%c108, %c0_103], %123 {strides = array<i32>} : memref<326x4xf32, #tpu.memory_space<vmem>>, vector<1x4xf32>,
    %c123 = arith.constant 123 : index
    %c0_104 = arith.constant 0 : index
    %125 = vector.load %arg5[%c123, %c0_104] : memref<326x4xf32, #tpu.memory_space<vmem>>, vector<1x4xf32>
    %c125 = arith.constant 125 : index
    %c0_105 = arith.constant 0 : index
    %126 = vector.load %arg5[%c125, %c0_105] : memref<326x4xf32, #tpu.memory_space<vmem>>, vector<1x4xf32>
    tpu.vector_store %arg5[%c125, %c0_105], %125 {strides = array<i32>} : memref<326x4xf32, #tpu.memory_space<vmem>>, vector<1x4xf32>,
    %c128 = arith.constant 128 : index
    %c0_106 = arith.constant 0 : index
    %127 = vector.load %arg5[%c128, %c0_106] : memref<326x4xf32, #tpu.memory_space<vmem>>, vector<1x4xf32>
    %c126 = arith.constant 126 : index
    %c0_107 = arith.constant 0 : index
    %128 = vector.load %arg5[%c126, %c0_107] : memref<326x4xf32, #tpu.memory_space<vmem>>, vector<1x4xf32>
    tpu.vector_store %arg5[%c126, %c0_107], %127 {strides = array<i32>} : memref<326x4xf32, #tpu.memory_space<vmem>>, vector<1x4xf32>,
    %c141 = arith.constant 141 : index
    %c0_108 = arith.constant 0 : index
    %129 = vector.load %arg5[%c141, %c0_108] : memref<326x4xf32, #tpu.memory_space<vmem>>, vector<1x4xf32>
    %c143 = arith.constant 143 : index
    %c0_109 = arith.constant 0 : index
    %130 = vector.load %arg5[%c143, %c0_109] : memref<326x4xf32, #tpu.memory_space<vmem>>, vector<1x4xf32>
    tpu.vector_store %arg5[%c143, %c0_109], %129 {strides = array<i32>} : memref<326x4xf32, #tpu.memory_space<vmem>>, vector<1x4xf32>,
    %c146 = arith.constant 146 : index
    %c0_110 = arith.constant 0 : index
    %131 = vector.load %arg5[%c146, %c0_110] : memref<326x4xf32, #tpu.memory_space<vmem>>, vector<1x4xf32>
    %c144 = arith.constant 144 : index
    %c0_111 = arith.constant 0 : index
    %132 = vector.load %arg5[%c144, %c0_111] : memref<326x4xf32, #tpu.memory_space<vmem>>, vector<1x4xf32>
    tpu.vector_store %arg5[%c144, %c0_111], %131 {strides = array<i32>} : memref<326x4xf32, #tpu.memory_space<vmem>>, vector<1x4xf32>,
    %c159 = arith.constant 159 : index
    %c0_112 = arith.constant 0 : index
    %133 = vector.load %arg5[%c159, %c0_112] : memref<326x4xf32, #tpu.memory_space<vmem>>, vector<1x4xf32>
    %c161 = arith.constant 161 : index
    %c0_113 = arith.constant 0 : index
    %134 = vector.load %arg5[%c161, %c0_113] : memref<326x4xf32, #tpu.memory_space<vmem>>, vector<1x4xf32>
    tpu.vector_store %arg5[%c161, %c0_113], %133 {strides = array<i32>} : memref<326x4xf32, #tpu.memory_space<vmem>>, vector<1x4xf32>,
    %c164 = arith.constant 164 : index
    %c0_114 = arith.constant 0 : index
    %135 = vector.load %arg5[%c164, %c0_114] : memref<326x4xf32, #tpu.memory_space<vmem>>, vector<1x4xf32>
    %c162 = arith.constant 162 : index
    %c0_115 = arith.constant 0 : index
    %136 = vector.load %arg5[%c162, %c0_115] : memref<326x4xf32, #tpu.memory_space<vmem>>, vector<1x4xf32>
    tpu.vector_store %arg5[%c162, %c0_115], %135 {strides = array<i32>} : memref<326x4xf32, #tpu.memory_space<vmem>>, vector<1x4xf32>,
    %c177 = arith.constant 177 : index
    %c0_116 = arith.constant 0 : index
    %137 = vector.load %arg5[%c177, %c0_116] : memref<326x4xf32, #tpu.memory_space<vmem>>, vector<1x4xf32>
    %c179 = arith.constant 179 : index
    %c0_117 = arith.constant 0 : index
    %138 = vector.load %arg5[%c179, %c0_117] : memref<326x4xf32, #tpu.memory_space<vmem>>, vector<1x4xf32>
    tpu.vector_store %arg5[%c179, %c0_117], %137 {strides = array<i32>} : memref<326x4xf32, #tpu.memory_space<vmem>>, vector<1x4xf32>,
    %c182 = arith.constant 182 : index
    %c0_118 = arith.constant 0 : index
    %139 = vector.load %arg5[%c182, %c0_118] : memref<326x4xf32, #tpu.memory_space<vmem>>, vector<1x4xf32>
    %c180 = arith.constant 180 : index
    %c0_119 = arith.constant 0 : index
    %140 = vector.load %arg5[%c180, %c0_119] : memref<326x4xf32, #tpu.memory_space<vmem>>, vector<1x4xf32>
    tpu.vector_store %arg5[%c180, %c0_119], %139 {strides = array<i32>} : memref<326x4xf32, #tpu.memory_space<vmem>>, vector<1x4xf32>,
    %c195 = arith.constant 195 : index
    %c0_120 = arith.constant 0 : index
    %141 = vector.load %arg5[%c195, %c0_120] : memref<326x4xf32, #tpu.memory_space<vmem>>, vector<1x4xf32>
    %c197 = arith.constant 197 : index
    %c0_121 = arith.constant 0 : index
    %142 = vector.load %arg5[%c197, %c0_121] : memref<326x4xf32, #tpu.memory_space<vmem>>, vector<1x4xf32>
    tpu.vector_store %arg5[%c197, %c0_121], %141 {strides = array<i32>} : memref<326x4xf32, #tpu.memory_space<vmem>>, vector<1x4xf32>,
    %c200 = arith.constant 200 : index
    %c0_122 = arith.constant 0 : index
    %143 = vector.load %arg5[%c200, %c0_122] : memref<326x4xf32, #tpu.memory_space<vmem>>, vector<1x4xf32>
    %c198 = arith.constant 198 : index
    %c0_123 = arith.constant 0 : index
    %144 = vector.load %arg5[%c198, %c0_123] : memref<326x4xf32, #tpu.memory_space<vmem>>, vector<1x4xf32>
    tpu.vector_store %arg5[%c198, %c0_123], %143 {strides = array<i32>} : memref<326x4xf32, #tpu.memory_space<vmem>>, vector<1x4xf32>,
    %c213 = arith.constant 213 : index
    %c0_124 = arith.constant 0 : index
    %145 = vector.load %arg5[%c213, %c0_124] : memref<326x4xf32, #tpu.memory_space<vmem>>, vector<1x4xf32>
    %c215 = arith.constant 215 : index
    %c0_125 = arith.constant 0 : index
    %146 = vector.load %arg5[%c215, %c0_125] : memref<326x4xf32, #tpu.memory_space<vmem>>, vector<1x4xf32>
    tpu.vector_store %arg5[%c215, %c0_125], %145 {strides = array<i32>} : memref<326x4xf32, #tpu.memory_space<vmem>>, vector<1x4xf32>,
    %c218 = arith.constant 218 : index
    %c0_126 = arith.constant 0 : index
    %147 = vector.load %arg5[%c218, %c0_126] : memref<326x4xf32, #tpu.memory_space<vmem>>, vector<1x4xf32>
    %c216 = arith.constant 216 : index
    %c0_127 = arith.constant 0 : index
    %148 = vector.load %arg5[%c216, %c0_127] : memref<326x4xf32, #tpu.memory_space<vmem>>, vector<1x4xf32>
    tpu.vector_store %arg5[%c216, %c0_127], %147 {strides = array<i32>} : memref<326x4xf32, #tpu.memory_space<vmem>>, vector<1x4xf32>,
    %c231 = arith.constant 231 : index
    %c0_128 = arith.constant 0 : index
    %149 = vector.load %arg5[%c231, %c0_128] : memref<326x4xf32, #tpu.memory_space<vmem>>, vector<1x4xf32>
    %c233 = arith.constant 233 : index
    %c0_129 = arith.constant 0 : index
    %150 = vector.load %arg5[%c233, %c0_129] : memref<326x4xf32, #tpu.memory_space<vmem>>, vector<1x4xf32>
    tpu.vector_store %arg5[%c233, %c0_129], %149 {strides = array<i32>} : memref<326x4xf32, #tpu.memory_space<vmem>>, vector<1x4xf32>,
    %c236 = arith.constant 236 : index
    %c0_130 = arith.constant 0 : index
    %151 = vector.load %arg5[%c236, %c0_130] : memref<326x4xf32, #tpu.memory_space<vmem>>, vector<1x4xf32>
    %c234 = arith.constant 234 : index
    %c0_131 = arith.constant 0 : index
    %152 = vector.load %arg5[%c234, %c0_131] : memref<326x4xf32, #tpu.memory_space<vmem>>, vector<1x4xf32>
    tpu.vector_store %arg5[%c234, %c0_131], %151 {strides = array<i32>} : memref<326x4xf32, #tpu.memory_space<vmem>>, vector<1x4xf32>,
    %c249 = arith.constant 249 : index
    %c0_132 = arith.constant 0 : index
    %153 = vector.load %arg5[%c249, %c0_132] : memref<326x4xf32, #tpu.memory_space<vmem>>, vector<1x4xf32>
    %c251 = arith.constant 251 : index
    %c0_133 = arith.constant 0 : index
    %154 = vector.load %arg5[%c251, %c0_133] : memref<326x4xf32, #tpu.memory_space<vmem>>, vector<1x4xf32>
    tpu.vector_store %arg5[%c251, %c0_133], %153 {strides = array<i32>} : memref<326x4xf32, #tpu.memory_space<vmem>>, vector<1x4xf32>,
    %c254 = arith.constant 254 : index
    %c0_134 = arith.constant 0 : index
    %155 = vector.load %arg5[%c254, %c0_134] : memref<326x4xf32, #tpu.memory_space<vmem>>, vector<1x4xf32>
    %c252 = arith.constant 252 : index
    %c0_135 = arith.constant 0 : index
    %156 = vector.load %arg5[%c252, %c0_135] : memref<326x4xf32, #tpu.memory_space<vmem>>, vector<1x4xf32>
    tpu.vector_store %arg5[%c252, %c0_135], %155 {strides = array<i32>} : memref<326x4xf32, #tpu.memory_space<vmem>>, vector<1x4xf32>,
    %c267 = arith.constant 267 : index
    %c0_136 = arith.constant 0 : index
    %157 = vector.load %arg5[%c267, %c0_136] : memref<326x4xf32, #tpu.memory_space<vmem>>, vector<1x4xf32>
    %c269 = arith.constant 269 : index
    %c0_137 = arith.constant 0 : index
    %158 = vector.load %arg5[%c269, %c0_137] : memref<326x4xf32, #tpu.memory_space<vmem>>, vector<1x4xf32>
    tpu.vector_store %arg5[%c269, %c0_137], %157 {strides = array<i32>} : memref<326x4xf32, #tpu.memory_space<vmem>>, vector<1x4xf32>,
    %c272 = arith.constant 272 : index
    %c0_138 = arith.constant 0 : index
    %159 = vector.load %arg5[%c272, %c0_138] : memref<326x4xf32, #tpu.memory_space<vmem>>, vector<1x4xf32>
    %c270 = arith.constant 270 : index
    %c0_139 = arith.constant 0 : index
    %160 = vector.load %arg5[%c270, %c0_139] : memref<326x4xf32, #tpu.memory_space<vmem>>, vector<1x4xf32>
    tpu.vector_store %arg5[%c270, %c0_139], %159 {strides = array<i32>} : memref<326x4xf32, #tpu.memory_space<vmem>>, vector<1x4xf32>,
    %c285 = arith.constant 285 : index
    %c0_140 = arith.constant 0 : index
    %161 = vector.load %arg5[%c285, %c0_140] : memref<326x4xf32, #tpu.memory_space<vmem>>, vector<1x4xf32>
    %c287 = arith.constant 287 : index
    %c0_141 = arith.constant 0 : index
    %162 = vector.load %arg5[%c287, %c0_141] : memref<326x4xf32, #tpu.memory_space<vmem>>, vector<1x4xf32>
    tpu.vector_store %arg5[%c287, %c0_141], %161 {strides = array<i32>} : memref<326x4xf32, #tpu.memory_space<vmem>>, vector<1x4xf32>,
    %c290 = arith.constant 290 : index
    %c0_142 = arith.constant 0 : index
    %163 = vector.load %arg5[%c290, %c0_142] : memref<326x4xf32, #tpu.memory_space<vmem>>, vector<1x4xf32>
    %c288 = arith.constant 288 : index
    %c0_143 = arith.constant 0 : index
    %164 = vector.load %arg5[%c288, %c0_143] : memref<326x4xf32, #tpu.memory_space<vmem>>, vector<1x4xf32>
    tpu.vector_store %arg5[%c288, %c0_143], %163 {strides = array<i32>} : memref<326x4xf32, #tpu.memory_space<vmem>>, vector<1x4xf32>,
    %c303 = arith.constant 303 : index
    %c0_144 = arith.constant 0 : index
    %165 = vector.load %arg5[%c303, %c0_144] : memref<326x4xf32, #tpu.memory_space<vmem>>, vector<1x4xf32>
    %c305 = arith.constant 305 : index
    %c0_145 = arith.constant 0 : index
    %166 = vector.load %arg5[%c305, %c0_145] : memref<326x4xf32, #tpu.memory_space<vmem>>, vector<1x4xf32>
    tpu.vector_store %arg5[%c305, %c0_145], %165 {strides = array<i32>} : memref<326x4xf32, #tpu.memory_space<vmem>>, vector<1x4xf32>,
    %c36_146 = arith.constant 36 : index
    %c0_147 = arith.constant 0 : index
    %167 = vector.load %arg5[%c36_146, %c0_147] : memref<326x4xf32, #tpu.memory_space<vmem>>, vector<18x4xf32>
    %c0_148 = arith.constant 0 : index
    %c0_149 = arith.constant 0 : index
    %168 = vector.load %arg5[%c0_148, %c0_149] : memref<326x4xf32, #tpu.memory_space<vmem>>, vector<18x4xf32>
    tpu.vector_store %arg5[%c0_148, %c0_149], %167 {strides = array<i32>} : memref<326x4xf32, #tpu.memory_space<vmem>>, vector<18x4xf32>,
    %c270_150 = arith.constant 270 : index
    %c0_151 = arith.constant 0 : index
    %169 = vector.load %arg5[%c270_150, %c0_151] : memref<326x4xf32, #tpu.memory_space<vmem>>, vector<18x4xf32>
    %c306 = arith.constant 306 : index
    %c0_152 = arith.constant 0 : index
    %170 = vector.load %arg5[%c306, %c0_152] : memref<326x4xf32, #tpu.memory_space<vmem>>, vector<18x4xf32>
    tpu.vector_store %arg5[%c306, %c0_152], %169 {strides = array<i32>} : memref<326x4xf32, #tpu.memory_space<vmem>>, vector<18x4xf32>,
    %cst_153 = arith.constant 0.000000e+00 : f32
    %171 = vector.broadcast %cst_153 : f32 to vector<288x4xf32>
    %c0_154 = arith.constant 0 : index
    %c0_155 = arith.constant 0 : index
    %172 = vector.load %arg5[%c0_154, %c0_155] : memref<326x4xf32, #tpu.memory_space<vmem>>, vector<288x4xf32>
    %c0_156 = arith.constant 0 : index
    %c0_157 = arith.constant 0 : index
    %c0_158 = arith.constant 0 : index
    %c0_159 = arith.constant 0 : index
    %173 = vector.load %arg3[%c0_156, %c0_157, %c0_158, %c0_159] : memref<3x3x4x4xf32, #tpu.memory_space<vmem>>, vector<1x1x4x4xf32>
    %174 = vector.shape_cast %173 : vector<1x1x4x4xf32> to vector<4x4xf32>
    %cst_160 = arith.constant dense<0.000000e+00> : vector<288x4xf32>
    %175 = tpu.matmul %172, %174, %cst_160 {dimension_numbers = #tpu.dot_dimension_numbers<[1], [0], [0], [1], [0, 0, 1, 1], [], []>} : vector<288x4xf32>, vector<4x4xf32>, vector<288x4xf32> -> vector<288x4xf32>
    %176 = arith.addf %171, %175 : vector<288x4xf32>
    %c1_161 = arith.constant 1 : index
    %c0_162 = arith.constant 0 : index
    %177 = vector.load %arg5[%c1_161, %c0_162] : memref<326x4xf32, #tpu.memory_space<vmem>>, vector<288x4xf32>
    %c0_163 = arith.constant 0 : index
    %c1_164 = arith.constant 1 : index
    %c0_165 = arith.constant 0 : index
    %c0_166 = arith.constant 0 : index
    %178 = vector.load %arg3[%c0_163, %c1_164, %c0_165, %c0_166] : memref<3x3x4x4xf32, #tpu.memory_space<vmem>>, vector<1x1x4x4xf32>
    %179 = vector.shape_cast %178 : vector<1x1x4x4xf32> to vector<4x4xf32>
    %cst_167 = arith.constant dense<0.000000e+00> : vector<288x4xf32>
    %180 = tpu.matmul %177, %179, %cst_167 {dimension_numbers = #tpu.dot_dimension_numbers<[1], [0], [0], [1], [0, 0, 1, 1], [], []>} : vector<288x4xf32>, vector<4x4xf32>, vector<288x4xf32> -> vector<288x4xf32>
    %181 = arith.addf %176, %180 : vector<288x4xf32>
    %c2_168 = arith.constant 2 : index
    %c0_169 = arith.constant 0 : index
    %182 = vector.load %arg5[%c2_168, %c0_169] : memref<326x4xf32, #tpu.memory_space<vmem>>, vector<288x4xf32>
    %c0_170 = arith.constant 0 : index
    %c2_171 = arith.constant 2 : index
    %c0_172 = arith.constant 0 : index
    %c0_173 = arith.constant 0 : index
    %183 = vector.load %arg3[%c0_170, %c2_171, %c0_172, %c0_173] : memref<3x3x4x4xf32, #tpu.memory_space<vmem>>, vector<1x1x4x4xf32>
    %184 = vector.shape_cast %183 : vector<1x1x4x4xf32> to vector<4x4xf32>
    %cst_174 = arith.constant dense<0.000000e+00> : vector<288x4xf32>
    %185 = tpu.matmul %182, %184, %cst_174 {dimension_numbers = #tpu.dot_dimension_numbers<[1], [0], [0], [1], [0, 0, 1, 1], [], []>} : vector<288x4xf32>, vector<4x4xf32>, vector<288x4xf32> -> vector<288x4xf32>
    %186 = arith.addf %181, %185 : vector<288x4xf32>
    %c18_175 = arith.constant 18 : index
    %c0_176 = arith.constant 0 : index
    %187 = vector.load %arg5[%c18_175, %c0_176] : memref<326x4xf32, #tpu.memory_space<vmem>>, vector<288x4xf32>
    %c1_177 = arith.constant 1 : index
    %c0_178 = arith.constant 0 : index
    %c0_179 = arith.constant 0 : index
    %c0_180 = arith.constant 0 : index
    %188 = vector.load %arg3[%c1_177, %c0_178, %c0_179, %c0_180] : memref<3x3x4x4xf32, #tpu.memory_space<vmem>>, vector<1x1x4x4xf32>
    %189 = vector.shape_cast %188 : vector<1x1x4x4xf32> to vector<4x4xf32>
    %cst_181 = arith.constant dense<0.000000e+00> : vector<288x4xf32>
    %190 = tpu.matmul %187, %189, %cst_181 {dimension_numbers = #tpu.dot_dimension_numbers<[1], [0], [0], [1], [0, 0, 1, 1], [], []>} : vector<288x4xf32>, vector<4x4xf32>, vector<288x4xf32> -> vector<288x4xf32>
    %191 = arith.addf %186, %190 : vector<288x4xf32>
    %c19_182 = arith.constant 19 : index
    %c0_183 = arith.constant 0 : index
    %192 = vector.load %arg5[%c19_182, %c0_183] : memref<326x4xf32, #tpu.memory_space<vmem>>, vector<288x4xf32>
    %c1_184 = arith.constant 1 : index
    %c1_185 = arith.constant 1 : index
    %c0_186 = arith.constant 0 : index
    %c0_187 = arith.constant 0 : index
    %193 = vector.load %arg3[%c1_184, %c1_185, %c0_186, %c0_187] : memref<3x3x4x4xf32, #tpu.memory_space<vmem>>, vector<1x1x4x4xf32>
    %194 = vector.shape_cast %193 : vector<1x1x4x4xf32> to vector<4x4xf32>
    %cst_188 = arith.constant dense<0.000000e+00> : vector<288x4xf32>
    %195 = tpu.matmul %192, %194, %cst_188 {dimension_numbers = #tpu.dot_dimension_numbers<[1], [0], [0], [1], [0, 0, 1, 1], [], []>} : vector<288x4xf32>, vector<4x4xf32>, vector<288x4xf32> -> vector<288x4xf32>
    %196 = arith.addf %191, %195 : vector<288x4xf32>
    %c20_189 = arith.constant 20 : index
    %c0_190 = arith.constant 0 : index
    %197 = vector.load %arg5[%c20_189, %c0_190] : memref<326x4xf32, #tpu.memory_space<vmem>>, vector<288x4xf32>
    %c1_191 = arith.constant 1 : index
    %c2_192 = arith.constant 2 : index
    %c0_193 = arith.constant 0 : index
    %c0_194 = arith.constant 0 : index
    %198 = vector.load %arg3[%c1_191, %c2_192, %c0_193, %c0_194] : memref<3x3x4x4xf32, #tpu.memory_space<vmem>>, vector<1x1x4x4xf32>
    %199 = vector.shape_cast %198 : vector<1x1x4x4xf32> to vector<4x4xf32>
    %cst_195 = arith.constant dense<0.000000e+00> : vector<288x4xf32>
    %200 = tpu.matmul %197, %199, %cst_195 {dimension_numbers = #tpu.dot_dimension_numbers<[1], [0], [0], [1], [0, 0, 1, 1], [], []>} : vector<288x4xf32>, vector<4x4xf32>, vector<288x4xf32> -> vector<288x4xf32>
    %201 = arith.addf %196, %200 : vector<288x4xf32>
    %c36_196 = arith.constant 36 : index
    %c0_197 = arith.constant 0 : index
    %202 = vector.load %arg5[%c36_196, %c0_197] : memref<326x4xf32, #tpu.memory_space<vmem>>, vector<288x4xf32>
    %c2_198 = arith.constant 2 : index
    %c0_199 = arith.constant 0 : index
    %c0_200 = arith.constant 0 : index
    %c0_201 = arith.constant 0 : index
    %203 = vector.load %arg3[%c2_198, %c0_199, %c0_200, %c0_201] : memref<3x3x4x4xf32, #tpu.memory_space<vmem>>, vector<1x1x4x4xf32>
    %204 = vector.shape_cast %203 : vector<1x1x4x4xf32> to vector<4x4xf32>
    %cst_202 = arith.constant dense<0.000000e+00> : vector<288x4xf32>
    %205 = tpu.matmul %202, %204, %cst_202 {dimension_numbers = #tpu.dot_dimension_numbers<[1], [0], [0], [1], [0, 0, 1, 1], [], []>} : vector<288x4xf32>, vector<4x4xf32>, vector<288x4xf32> -> vector<288x4xf32>
    %206 = arith.addf %201, %205 : vector<288x4xf32>
    %c37_203 = arith.constant 37 : index
    %c0_204 = arith.constant 0 : index
    %207 = vector.load %arg5[%c37_203, %c0_204] : memref<326x4xf32, #tpu.memory_space<vmem>>, vector<288x4xf32>
    %c2_205 = arith.constant 2 : index
    %c1_206 = arith.constant 1 : index
    %c0_207 = arith.constant 0 : index
    %c0_208 = arith.constant 0 : index
    %208 = vector.load %arg3[%c2_205, %c1_206, %c0_207, %c0_208] : memref<3x3x4x4xf32, #tpu.memory_space<vmem>>, vector<1x1x4x4xf32>
    %209 = vector.shape_cast %208 : vector<1x1x4x4xf32> to vector<4x4xf32>
    %cst_209 = arith.constant dense<0.000000e+00> : vector<288x4xf32>
    %210 = tpu.matmul %207, %209, %cst_209 {dimension_numbers = #tpu.dot_dimension_numbers<[1], [0], [0], [1], [0, 0, 1, 1], [], []>} : vector<288x4xf32>, vector<4x4xf32>, vector<288x4xf32> -> vector<288x4xf32>
    %211 = arith.addf %206, %210 : vector<288x4xf32>
    %c38_210 = arith.constant 38 : index
    %c0_211 = arith.constant 0 : index
    %212 = vector.load %arg5[%c38_210, %c0_211] : memref<326x4xf32, #tpu.memory_space<vmem>>, vector<288x4xf32>
    %c2_212 = arith.constant 2 : index
    %c2_213 = arith.constant 2 : index
    %c0_214 = arith.constant 0 : index
    %c0_215 = arith.constant 0 : index
    %213 = vector.load %arg3[%c2_212, %c2_213, %c0_214, %c0_215] : memref<3x3x4x4xf32, #tpu.memory_space<vmem>>, vector<1x1x4x4xf32>
    %214 = vector.shape_cast %213 : vector<1x1x4x4xf32> to vector<4x4xf32>
    %cst_216 = arith.constant dense<0.000000e+00> : vector<288x4xf32>
    %215 = tpu.matmul %212, %214, %cst_216 {dimension_numbers = #tpu.dot_dimension_numbers<[1], [0], [0], [1], [0, 0, 1, 1], [], []>} : vector<288x4xf32>, vector<4x4xf32>, vector<288x4xf32> -> vector<288x4xf32>
    %216 = arith.addf %211, %215 : vector<288x4xf32>
    %cst_217 = arith.constant 0.000000e+00 : f32
    %217 = vector.shape_cast %18 : vector<288x1xi1> to vector<288x1xi1>
    %218 = vector.broadcast %217 : vector<288x1xi1> to vector<288x4xi1>
    %219 = vector.broadcast %cst_217 : f32 to vector<288x4xf32>
    %220 = arith.select %218, %216, %219 : vector<288x4xi1>, vector<288x4xf32>
    %cst_218 = arith.constant dense<0.000000e+00> : vector<4xf32>
    %221 = vector.multi_reduction <add>, %220, %cst_218 [0] : vector<288x4xf32> to vector<4xf32>
    %222 = vector.shape_cast %221 : vector<4xf32> to vector<1x4xf32>
    %cst_219 = arith.constant 3.906250e-03 : f32
    %223 = vector.broadcast %cst_219 : f32 to vector<1x4xf32>
    %224 = arith.mulf %222, %223 : vector<1x4xf32>
    %225 = arith.mulf %220, %220 : vector<288x4xf32>
    %cst_220 = arith.constant dense<0.000000e+00> : vector<4xf32>
    %226 = vector.multi_reduction <add>, %225, %cst_220 [0] : vector<288x4xf32> to vector<4xf32>
    %227 = vector.shape_cast %226 : vector<4xf32> to vector<1x4xf32>
    %cst_221 = arith.constant 3.906250e-03 : f32
    %228 = vector.broadcast %cst_221 : f32 to vector<1x4xf32>
    %229 = arith.mulf %227, %228 : vector<1x4xf32>
    %230 = arith.mulf %224, %224 : vector<1x4xf32>
    %231 = arith.subf %229, %230 : vector<1x4xf32>
    %cst_222 = arith.constant 0.000000e+00 : f32
    %232 = vector.broadcast %cst_222 : f32 to vector<1x4xf32>
    %233 = arith.maximumf %231, %232 : vector<1x4xf32>
    %234 = vector.broadcast %224 : vector<1x4xf32> to vector<288x4xf32>
    %235 = arith.subf %220, %234 : vector<288x4xf32>
    %cst_223 = arith.constant 9.99999974E-6 : f32
    %236 = vector.broadcast %cst_223 : f32 to vector<1x4xf32>
    %237 = arith.addf %233, %236 : vector<1x4xf32>
    %238 = math.rsqrt %237 : vector<1x4xf32>
    %239 = vector.broadcast %238 : vector<1x4xf32> to vector<288x4xf32>
    %240 = arith.mulf %235, %239 : vector<288x4xf32>
    %c0_224 = arith.constant 0 : index
    %c19_225 = arith.constant 19 : index
    %c0_226 = arith.constant 0 : index
    %241 = vector.load %arg1[%c0_224, %c19_225, %c0_226] : memref<1x326x4xf32, #tpu.memory_space<vmem>>, vector<1x288x4xf32>
    %242 = vector.shape_cast %241 : vector<1x288x4xf32> to vector<288x4xf32>
    %243 = arith.addf %242, %240 : vector<288x4xf32>
    %c0_227 = arith.constant 0 : index
    %c0_228 = arith.constant 0 : index
    %c0_229 = arith.constant 0 : index
    %244 = vector.load %arg4[%c0_227, %c0_228, %c0_229] : memref<1x288x4xf32, #tpu.memory_space<vmem>>, vector<1x288x4xf32>
    %245 = vector.shape_cast %244 : vector<1x288x4xf32> to vector<288x4xf32>
    %246 = vector.shape_cast %243 : vector<288x4xf32> to vector<1x288x4xf32>
    tpu.vector_store %arg4[%c0_227, %c0_228, %c0_229], %246 {strides = array<i32>} : memref<1x288x4xf32, #tpu.memory_space<vmem>>, vector<1x288x4xf32>,
    return
  }
  func.func @transform_0(%arg0: i32) -> (i32, i32, i32) {
    %c0_i32 = arith.constant 0 : i32
    %c0_i32_0 = arith.constant 0 : i32
    %c0_i32_1 = arith.constant 0 : i32
    return %arg0, %c0_i32, %c0_i32_0 : i32, i32, i32
  }
  func.func @transform_1(%arg0: i32) -> (i32, i32, i32, i32) {
    %c0_i32 = arith.constant 0 : i32
    %c0_i32_0 = arith.constant 0 : i32
    %c0_i32_1 = arith.constant 0 : i32
    %c0_i32_2 = arith.constant 0 : i32
    %c0_i32_3 = arith.constant 0 : i32
    return %c0_i32, %c0_i32_0, %c0_i32_1, %c0_i32_2 : i32, i32, i32, i32
  }
  func.func @transform_2(%arg0: i32) -> (i32, i32, i32, i32) {
    %c0_i32 = arith.constant 0 : i32
    %c0_i32_0 = arith.constant 0 : i32
    %c0_i32_1 = arith.constant 0 : i32
    %c0_i32_2 = arith.constant 0 : i32
    %c0_i32_3 = arith.constant 0 : i32
    return %c0_i32, %c0_i32_0, %c0_i32_1, %c0_i32_2 : i32, i32, i32, i32
  }
  func.func @transform_3(%arg0: i32) -> (i32, i32, i32) {
    %c0_i32 = arith.constant 0 : i32
    %c0_i32_0 = arith.constant 0 : i32
    %c0_i32_1 = arith.constant 0 : i32
    return %arg0, %c0_i32, %c0_i32_0 : i32, i32, i32
  }
}

</mosaic_0001>

<bundles_post_ra>
// kernel: resnet_block_forward.1
= control target key start
LH: loop header
LB: loop body
LE: loop exit
PB: predicated region body
PF: predicated region fallthrough
CT: control target
= control target key end

     0   :  { %s8661_s12 = smov 0   ;;  %s12668_s0 = inlined_call_operand.vmem [shape: f32[2,326,4], index: 0, kind: input, shape index: {}]   ;;  %s12669_s1 = inlined_call_operand.vmem [shape: f32[3,3,4,4], index: 1, kind: input, shape index: {}]   ;;  %s12670_s2 = inlined_call_operand.vmem [shape: f32[3,3,4,4], index: 2, kind: input, shape index: {}]   ;;  %s12671_s3 = inlined_call_operand.vmem [shape: f32[2,288,4], index: 3, kind: output, shape index: {}]  }
   0x1 LB: > { %s7918_s13 = sadd.s32 4294967295, %s8637_s12   ;;  %p7922_p0 = scmp.ge.s32.totalorder %s8637_s12, 1  ;;  %s8637_s12 = sphi %s8661_s12, %s13_s12  }
   0x2   : > { %p137_p1 = scmp.lt.s32.totalorder %s8637_s12, 3 }
   0x4   : > { %p138_p2 = pnand %p7922_p0, %p137_p1 }
   0x6   : > { %141 = sbr.rel (%p138_p2) target bundleno = 2088 (0x828), region = 32 }
   0xb   : > { %v7925_v0 = vld [vmem:[%s12669_s1 + $0x4] sm:$0xf]  ;;  %vm12696_vm0 = vcmask 1043456   ;;  %v1504_v1 = vld [vmem:[%s12669_s1] sm:$0xf]  ;;  %p161_p3 = scmp.lt.s32.totalorder %s7918_s13, 1 }
   0xc   : > { %8609 = vmatpush.msk.msra.mxu2 %vm12696_vm0, %v7925_v0  ;;  %8610 = vmatpush.msk.msra.mxu3 %vm12696_vm0, %v1504_v1  ;;  %v8000_v2 = vld [vmem:[%s12669_s1 + $0x8] sm:$0xf]  ;;  %v8038_v3 = vld [vmem:[%s12669_s1 + $0xc] sm:$0xf]  ;;  %v8076_v4 = vld [vmem:[%s12669_s1 + $0x10] sm:$0xf] }
   0xd   : > { %s13587_s13 = smov (!%p161_p3, %s7918_s13), 1  ;;  %7926 = vmatpush.msk.msra.mxu0 %vm12696_vm0, %v7925_v0  ;;  %7963 = vmatpush.msk.msra.mxu1 %vm12696_vm0, %v1504_v1  ;;  %vm12704_vm1 = vcmask 31744   ;;  %v8152_v1 = vld [vmem:[%s12669_s1 + $0x18] sm:$0xf] }
   0xe   : > { %8001 = vmatpush.msk.msrb.mxu2 %vm12696_vm0, %v8000_v2  ;;  %8039 = vmatpush.msk.msrb.mxu3 %vm12696_vm0, %v8038_v3  ;;  %s8611_s24 = smul.u32 328, %s13587_s13  ;;  %v8190_v2 = vld [vmem:[%s12669_s1 + $0x1c] sm:$0xf] }
   0xf   : > { %8077 = vmatpush.msk.msrb.mxu0 %vm12696_vm0, %v8076_v4  ;;  %s8612_s30 = smul.u32 288, %s13587_s13 }
  0x10   : > { %s8697_s27 = scalar_lea.vmem %s12668_s0, %s8611_s24 }
  0x11   : > { %v1523_v5 = vld [vmem:[%s8697_s27 + $0x91] sm:$0xff]  ;;  %v1505_v7 = vld [vmem:[%s8697_s27 + $0x1] sm:$0xff]  ;;  %v1524_v9 = vld [vmem:[%s8697_s27 + $0x99] sm:$0xff]  ;;  %s12516_s5 = scalar_lea.vmem %s12671_s3, %s8612_s30 }
  0x12   : > { %v1486_v6 = vld [vmem:[%s8697_s27 + $0x90] sm:$0xff]  ;;  %7945 = vmatmul.msk.f32.vlgmr.msra.gmra.mxu2 %vm12704_vm1, %v1523_v5  ;;  %v1468_v8 = vld [vmem:[%s8697_s27] sm:$0xff]  ;;  %7927 = vmatmul.msk.f32.vlgmr.msra.gmra.mxu0 %vm12704_vm1, %v1505_v7  ;;  %v1487_v10 = vld [vmem:[%s8697_s27 + $0x98] sm:$0xff] }
  0x13   : > { %7982 = vmatmul.msk.f32.vlgmr.msra.gmra.mxu3 %vm12704_vm1, %v1486_v6  ;;  %7964 = vmatmul.msk.f32.vlgmr.msra.gmra.mxu1 %vm12704_vm1, %v1468_v8  ;;  %v1506_v11 = vld [vmem:[%s8697_s27 + $0x9] sm:$0xff]  ;;  %v1525_v13 = vld [vmem:[%s8697_s27 + $0xa1] sm:$0xff]  ;;  %v1507_v15 = vld [vmem:[%s8697_s27 + $0x11] sm:$0xff] }
  0x14   : > { %v1469_v12 = vld [vmem:[%s8697_s27 + $0x8] sm:$0xff]  ;;  %v1488_v14 = vld [vmem:[%s8697_s27 + $0xa0] sm:$0xff]  ;;  %v1470_v16 = vld [vmem:[%s8697_s27 + $0x10] sm:$0xff]  ;;  %8153 = vmatpush.msk.msra.mxu2 %vm12696_vm0, %v8152_v1  ;;  %8191 = vmatpush.msk.msra.mxu3 %vm12696_vm0, %v8190_v2 }
  0x15   : > { %v1526_v17 = vld [vmem:[%s8697_s27 + $0xa9] sm:$0xff]  ;;  %v1508_v19 = vld [vmem:[%s8697_s27 + $0x19] sm:$0xff]  ;;  %v1527_v21 = vld [vmem:[%s8697_s27 + $0xb1] sm:$0xff] }
  0x16   : > { %v1489_v18 = vld [vmem:[%s8697_s27 + $0xa8] sm:$0xff]  ;;  %v1471_v20 = vld [vmem:[%s8697_s27 + $0x18] sm:$0xff]  ;;  %v1490_v22 = vld [vmem:[%s8697_s27 + $0xb0] sm:$0xff] }
  0x17   : > { %v1509_v23 = vld [vmem:[%s8697_s27 + $0x21] sm:$0xff]  ;;  %v1528_v25 = vld [vmem:[%s8697_s27 + $0xb9] sm:$0xff]  ;;  %v1510_v27 = vld [vmem:[%s8697_s27 + $0x29] sm:$0xff] }
  0x18   : > { %v1472_v24 = vld [vmem:[%s8697_s27 + $0x20] sm:$0xff]  ;;  %v1491_v26 = vld [vmem:[%s8697_s27 + $0xb8] sm:$0xff]  ;;  %v1473_v28 = vld [vmem:[%s8697_s27 + $0x28] sm:$0xff] }
  0x19   : > { %v1529_v29 = vld [vmem:[%s8697_s27 + $0xc1] sm:$0xff]  ;;  %v1511_v31 = vld [vmem:[%s8697_s27 + $0x31] sm:$0xff]  ;;  %v1530_v33 = vld [vmem:[%s8697_s27 + $0xc9] sm:$0xff] }
  0x1a   : > { %7946 = vmatmul.msk.f32.gmra.mxu2 %vm12704_vm1, %v1524_v9  ;;  %7928 = vmatmul.msk.f32.gmra.mxu0 %vm12704_vm1, %v1506_v11  ;;  %v1492_v30 = vld [vmem:[%s8697_s27 + $0xc0] sm:$0xff]  ;;  %v1474_v32 = vld [vmem:[%s8697_s27 + $0x30] sm:$0xff]  ;;  %v1493_v34 = vld [vmem:[%s8697_s27 + $0xc8] sm:$0xff] }
  0x1b   : > { %7983 = vmatmul.msk.f32.gmra.mxu3 %vm12704_vm1, %v1487_v10  ;;  %7965 = vmatmul.msk.f32.gmra.mxu1 %vm12704_vm1, %v1469_v12  ;;  %v1512_v35 = vld [vmem:[%s8697_s27 + $0x39] sm:$0xff]  ;;  %v1531_v37 = vld [vmem:[%s8697_s27 + $0xd1] sm:$0xff]  ;;  %v1513_v39 = vld [vmem:[%s8697_s27 + $0x41] sm:$0xff] }
  0x1c   : > { %v1475_v36 = vld [vmem:[%s8697_s27 + $0x38] sm:$0xff]  ;;  %v1494_v38 = vld [vmem:[%s8697_s27 + $0xd0] sm:$0xff]  ;;  %v1476_v40 = vld [vmem:[%s8697_s27 + $0x40] sm:$0xff] }
  0x1d   : > { %v1532_v41 = vld [vmem:[%s8697_s27 + $0xd9] sm:$0xff]  ;;  %v1514_v43 = vld [vmem:[%s8697_s27 + $0x49] sm:$0xff]  ;;  %v1533_v45 = vld [vmem:[%s8697_s27 + $0xe1] sm:$0xff] }
  0x1e   : > { %v1495_v42 = vld [vmem:[%s8697_s27 + $0xd8] sm:$0xff]  ;;  %v1477_v44 = vld [vmem:[%s8697_s27 + $0x48] sm:$0xff]  ;;  %v1496_v46 = vld [vmem:[%s8697_s27 + $0xe0] sm:$0xff] }
  0x1f   : > { %v1515_v47 = vld [vmem:[%s8697_s27 + $0x51] sm:$0xff]  ;;  %v1534_v49 = vld [vmem:[%s8697_s27 + $0xe9] sm:$0xff]  ;;  %v1516_v51 = vld [vmem:[%s8697_s27 + $0x59] sm:$0xff] }
  0x20   : > { %v1478_v48 = vld [vmem:[%s8697_s27 + $0x50] sm:$0xff]  ;;  %v1497_v50 = vld [vmem:[%s8697_s27 + $0xe8] sm:$0xff]  ;;  %v1479_v52 = vld [vmem:[%s8697_s27 + $0x58] sm:$0xff] }
  0x21   : > { %v1535_v53 = vld [vmem:[%s8697_s27 + $0xf1] sm:$0xff]  ;;  %v1517_v55 = vld [vmem:[%s8697_s27 + $0x61] sm:$0xff]  ;;  %v1536_v57 = vld [vmem:[%s8697_s27 + $0xf9] sm:$0xff] }
  0x22   : > { %7947 = vmatmul.msk.f32.gmra.mxu2 %vm12704_vm1, %v1525_v13  ;;  %7929 = vmatmul.msk.f32.gmra.mxu0 %vm12704_vm1, %v1507_v15  ;;  %v1498_v54 = vld [vmem:[%s8697_s27 + $0xf0] sm:$0xff]  ;;  %v1480_v56 = vld [vmem:[%s8697_s27 + $0x60] sm:$0xff]  ;;  %v1499_v58 = vld [vmem:[%s8697_s27 + $0xf8] sm:$0xff] }
  0x23   : > { %7984 = vmatmul.msk.f32.gmra.mxu3 %vm12704_vm1, %v1488_v14  ;;  %7966 = vmatmul.msk.f32.gmra.mxu1 %vm12704_vm1, %v1470_v16  ;;  %v1518_v59 = vld [vmem:[%s8697_s27 + $0x69] sm:$0xff]  ;;  %v1537_v61 = vld [vmem:[%s8697_s27 + $0x101] sm:$0xff]  ;;  %v1519_v63 = vld [vmem:[%s8697_s27 + $0x71] sm:$0xff] }
  0x24   : > { %v1481_v60 = vld [vmem:[%s8697_s27 + $0x68] sm:$0xff]  ;;  %v1500_v62 = vld [vmem:[%s8697_s27 + $0x100] sm:$0xff]  ;;  %v1482_v0 = vld [vmem:[%s8697_s27 + $0x70] sm:$0xff] }
  0x25   : > { %v1538_v3 = vld [vmem:[%s8697_s27 + $0x109] sm:$0xff]  ;;  %v1520_v5 = vld [vmem:[%s8697_s27 + $0x79] sm:$0xff]  ;;  %v8114_v8 = vld [vmem:[%s12669_s1 + $0x14] sm:$0xf] }
  0x26   : > { %v1501_v4 = vld [vmem:[%s8697_s27 + $0x108] sm:$0xff]  ;;  %v1483_v6 = vld [vmem:[%s8697_s27 + $0x78] sm:$0xff]  ;;  %v8228_v7 = vld [vmem:[%s12669_s1 + $0x20] sm:$0xf]  ;;  %8115 = vmatpush.msk.msrb.mxu1 %vm12696_vm0, %v8114_v8 }
  0x27   : > { %8229 = vmatpush.msk.msra.mxu0 %vm12696_vm0, %v8228_v7  ;;  %v1539_v9 = vld [vmem:[%s8697_s27 + $0x111] sm:$0xff]  ;;  %v1521_v13 = vld [vmem:[%s8697_s27 + $0x81] sm:$0xff] }
  0x28   : > { %v1502_v10 = vld [vmem:[%s8697_s27 + $0x110] sm:$0xff]  ;;  %v1484_v14 = vld [vmem:[%s8697_s27 + $0x80] sm:$0xff] }
  0x29   : > { %v8938_v1 = vld [vmem:[%s8697_s27 + $0x34] sm:$0xff] }
  0x2a   : > { %7948 = vmatmul.msk.f32.gmra.mxu2 %vm12704_vm1, %v1526_v17  ;;  %7930 = vmatmul.msk.f32.gmra.mxu0 %vm12704_vm1, %v1508_v19  ;;  %v1503_v19 = vld [vmem:[%s8697_s27 + $0x118] sm:$0xff] }
  0x2b   : > { %7985 = vmatmul.msk.f32.gmra.mxu3 %vm12704_vm1, %v1489_v18  ;;  %7967 = vmatmul.msk.f32.gmra.mxu1 %vm12704_vm1, %v1471_v20  ;;  %v1540_v18 = vld [vmem:[%s8697_s27 + $0x119] sm:$0xff] }
  0x2c   : > { %v2642_v8 = vld [vmem:[%s8697_s27 + $0x3b] sm:$0xff] }
  0x32   : > { %7949 = vmatmul.msk.f32.gmra.mxu2 %vm12704_vm1, %v1527_v21  ;;  %7931 = vmatmul.msk.f32.gmra.mxu0 %vm12704_vm1, %v1509_v23  ;;  %v1485_v23 = vld [vmem:[%s8697_s27 + $0x88] sm:$0xff] }
  0x33   : > { %7986 = vmatmul.msk.f32.gmra.mxu3 %vm12704_vm1, %v1490_v22  ;;  %7968 = vmatmul.msk.f32.gmra.mxu1 %vm12704_vm1, %v1472_v24  ;;  %v1522_v22 = vld [vmem:[%s8697_s27 + $0x89] sm:$0xff] }
  0x3a   : > { %7950 = vmatmul.msk.f32.gmra.mxu2 %vm12704_vm1, %v1528_v25  ;;  %7932 = vmatmul.msk.f32.gmra.mxu0 %vm12704_vm1, %v1510_v27  ;;  %v2017_v27 = vld [vmem:[%s8697_s27 + $0x2] sm:$0xff] }
  0x3b   : > { %7987 = vmatmul.msk.f32.gmra.mxu3 %vm12704_vm1, %v1491_v26  ;;  %7969 = vmatmul.msk.f32.gmra.mxu1 %vm12704_vm1, %v1473_v28  ;;  %v2327_v28 = vld [vmem:[%s8697_s27 + $0x12] sm:$0xff] }
  0x42   : > { %7951 = vmatmul.msk.f32.gmra.mxu2 %vm12704_vm1, %v1529_v29  ;;  %7933 = vmatmul.msk.f32.gmra.mxu0 %vm12704_vm1, %v1511_v31  ;;  %v2637_v31 = vld [vmem:[%s8697_s27 + $0x13] sm:$0xff] }
  0x43   : > { %7988 = vmatmul.msk.f32.gmra.mxu3 %vm12704_vm1, %v1492_v30  ;;  %7970 = vmatmul.msk.f32.gmra.mxu1 %vm12704_vm1, %v1474_v32  ;;  %v2947_v32 = vld [vmem:[%s8697_s27 + $0x14] sm:$0xff] }
  0x4a   : > { %7952 = vmatmul.msk.f32.gmra.mxu2 %vm12704_vm1, %v1530_v33  ;;  %7934 = vmatmul.msk.f32.gmra.mxu0 %vm12704_vm1, %v1512_v35 }
  0x4b   : > { %7989 = vmatmul.msk.f32.gmra.mxu3 %vm12704_vm1, %v1493_v34  ;;  %7971 = vmatmul.msk.f32.gmra.mxu1 %vm12704_vm1, %v1475_v36  ;;  %v2018_v36 = vld [vmem:[%s8697_s27 + $0xa] sm:$0xff] }
  0x52   : > { %7953 = vmatmul.msk.f32.gmra.mxu2 %vm12704_vm1, %v1531_v37  ;;  %7935 = vmatmul.msk.f32.gmra.mxu0 %vm12704_vm1, %v1513_v39  ;;  %v2328_v37 = vld [vmem:[%s8697_s27 + $0x1a] sm:$0xff] }
  0x53   : > { %7990 = vmatmul.msk.f32.gmra.mxu3 %vm12704_vm1, %v1494_v38  ;;  %7972 = vmatmul.msk.f32.gmra.mxu1 %vm12704_vm1, %v1476_v40  ;;  %v2638_v40 = vld [vmem:[%s8697_s27 + $0x1b] sm:$0xff] }
  0x5a   : > { %7954 = vmatmul.msk.f32.gmra.mxu2 %vm12704_vm1, %v1532_v41  ;;  %7936 = vmatmul.msk.f32.gmra.mxu0 %vm12704_vm1, %v1514_v43  ;;  %v2948_v41 = vld [vmem:[%s8697_s27 + $0x1c] sm:$0xff] }
  0x5b   : > { %7991 = vmatmul.msk.f32.gmra.mxu3 %vm12704_vm1, %v1495_v42  ;;  %7973 = vmatmul.msk.f32.gmra.mxu1 %vm12704_vm1, %v1477_v44 }
  0x62   : > { %7955 = vmatmul.msk.f32.gmra.mxu2 %vm12704_vm1, %v1533_v45  ;;  %7937 = vmatmul.msk.f32.gmra.mxu0 %vm12704_vm1, %v1515_v47  ;;  %v2329_v45 = vld [vmem:[%s8697_s27 + $0x22] sm:$0xff] }
  0x63   : > { %7992 = vmatmul.msk.f32.gmra.mxu3 %vm12704_vm1, %v1496_v46  ;;  %7974 = vmatmul.msk.f32.gmra.mxu1 %vm12704_vm1, %v1478_v48  ;;  %v2639_v48 = vld [vmem:[%s8697_s27 + $0x23] sm:$0xff] }
  0x6a   : > { %7956 = vmatmul.msk.f32.gmra.mxu2 %vm12704_vm1, %v1534_v49  ;;  %7938 = vmatmul.msk.f32.gmra.mxu0 %vm12704_vm1, %v1516_v51  ;;  %v8906_v49 = vld [vmem:[%s8697_s27 + $0x24] sm:$0xff] }
  0x6b   : > { %7993 = vmatmul.msk.f32.gmra.mxu3 %vm12704_vm1, %v1497_v50  ;;  %7975 = vmatmul.msk.f32.gmra.mxu1 %vm12704_vm1, %v1479_v52 }
  0x72   : > { %7957 = vmatmul.msk.f32.gmra.mxu2 %vm12704_vm1, %v1535_v53  ;;  %7939 = vmatmul.msk.f32.gmra.mxu0 %vm12704_vm1, %v1517_v55  ;;  %v2330_v53 = vld [vmem:[%s8697_s27 + $0x2a] sm:$0xff] }
  0x73   : > { %7994 = vmatmul.msk.f32.gmra.mxu3 %vm12704_vm1, %v1498_v54  ;;  %7976 = vmatmul.msk.f32.gmra.mxu1 %vm12704_vm1, %v1480_v56  ;;  %v2640_v56 = vld [vmem:[%s8697_s27 + $0x2b] sm:$0xff] }
  0x7a   : > { %7958 = vmatmul.msk.f32.gmra.mxu2 %vm12704_vm1, %v1536_v57  ;;  %7940 = vmatmul.msk.f32.gmra.mxu0 %vm12704_vm1, %v1518_v59  ;;  %v8922_v57 = vld [vmem:[%s8697_s27 + $0x2c] sm:$0xff] }
  0x7b   : > { %7995 = vmatmul.msk.f32.gmra.mxu3 %vm12704_vm1, %v1499_v58  ;;  %7977 = vmatmul.msk.f32.gmra.mxu1 %vm12704_vm1, %v1481_v60 }
  0x82   : > { %7959 = vmatmul.msk.f32.gmra.mxu2 %vm12704_vm1, %v1537_v61  ;;  %7941 = vmatmul.msk.f32.gmra.mxu0 %vm12704_vm1, %v1519_v63  ;;  %v2331_v61 = vld [vmem:[%s8697_s27 + $0x32] sm:$0xff] }
  0x83   : > { %7996 = vmatmul.msk.f32.gmra.mxu3 %vm12704_vm1, %v1500_v62  ;;  %7978 = vmatmul.msk.f32.gmra.mxu1 %vm12704_vm1, %v1482_v0  ;;  %v2641_v0 = vld [vmem:[%s8697_s27 + $0x33] sm:$0xff] }
  0x8a   : > { %7960 = vmatmul.msk.f32.gmra.mxu2 %vm12704_vm1, %v1538_v3  ;;  %7942 = vmatmul.msk.f32.gmra.mxu0 %vm12704_vm1, %v1520_v5  ;;  %v2332_v5 = vld [vmem:[%s8697_s27 + $0x3a] sm:$0xff] }
  0x8b   : > { %7997 = vmatmul.msk.f32.gmra.mxu3 %vm12704_vm1, %v1501_v4  ;;  %7979 = vmatmul.msk.f32.gmra.mxu1 %vm12704_vm1, %v1483_v6 }
  0x8f   : > { %v8845_v11 = vpop.f32.mrf.mxu0 }
  0x90   : > { %v8847_v12 = vpop.f32.mrf.mxu1 }
  0x92   : > { %7961 = vmatmul.msk.f32.gmra.mxu2 %vm12704_vm1, %v1539_v9  ;;  %7943 = vmatmul.msk.f32.gmra.mxu0 %vm12704_vm1, %v1521_v13  ;;  %v8954_v9 = vld [vmem:[%s8697_s27 + $0x3c] sm:$0xff] }
  0x93   : > { %7998 = vmatmul.msk.f32.gmra.mxu3 %vm12704_vm1, %v1502_v10  ;;  %7980 = vmatmul.msk.f32.gmra.mxu1 %vm12704_vm1, %v1484_v14 }
  0x95   : > { %v1727_v15 = vpop.f32.mrf.mxu2 }
  0x96   : > { %v1963_v16 = vpop.f32.mrf.mxu3 }
  0x97   : > { %v8855_v17 = vadd.f32 %v1963_v16, %v1727_v15  ;;  %v8859_v20 = vpop.f32.mrf.mxu0  ;;  %v2333_v15 = vld [vmem:[%s8697_s27 + $0x42] sm:$0xff] }
  0x98   : > { %v8861_v21 = vpop.f32.mrf.mxu1 }
  0x9a   : > { %7962 = vmatmul.msk.f32.gmra.mxu2 %vm12704_vm1, %v1540_v18  ;;  %7944 = vmatmul.msk.f32.gmra.mxu0 %vm12704_vm1, %v1522_v22  ;;  %v8970_v22 = vld [vmem:[%s8697_s27 + $0x44] sm:$0xff] }
  0x9b   : > { %7999 = vmatmul.msk.f32.gmra.mxu3 %vm12704_vm1, %v1503_v19  ;;  %7981 = vmatmul.msk.f32.gmra.mxu1 %vm12704_vm1, %v1485_v23  ;;  %v2643_v19 = vld [vmem:[%s8697_s27 + $0x43] sm:$0xff] }
  0x9d   : > { %v1730_v24 = vpop.f32.mrf.mxu2 }
  0x9e   : > { %v1966_v25 = vpop.f32.mrf.mxu3 }
  0x9f   : > { %v8869_v26 = vadd.f32 %v1966_v25, %v1730_v24  ;;  %v8873_v29 = vpop.f32.mrf.mxu0 }
  0xa0   : > { %v8875_v30 = vpop.f32.mrf.mxu1 }
  0xa2   : > { %8002 = vmatmul.msk.f32.vlgmr.msrb.gmra.mxu2 %vm12704_vm1, %v2017_v27  ;;  %8078 = vmatmul.msk.f32.vlgmr.msrb.gmra.mxu0 %vm12704_vm1, %v2637_v31  ;;  %v2334_v27 = vld [vmem:[%s8697_s27 + $0x4a] sm:$0xff] }
  0xa3   : > { %8040 = vmatmul.msk.f32.vlgmr.msrb.gmra.mxu3 %vm12704_vm1, %v2327_v28  ;;  %8116 = vmatmul.msk.f32.vlgmr.msrb.gmra.mxu1 %vm12704_vm1, %v2947_v32  ;;  %v2644_v32 = vld [vmem:[%s8697_s27 + $0x4b] sm:$0xff] }
  0xa5   : > { %v1733_v33 = vpop.f32.mrf.mxu2 }
  0xa6   : > { %v1969_v34 = vpop.f32.mrf.mxu3 }
  0xa7   : > { %v8883_v35 = vadd.f32 %v1969_v34, %v1733_v33  ;;  %v8887_v38 = vpop.f32.mrf.mxu0  ;;  %v8986_v33 = vld [vmem:[%s8697_s27 + $0x4c] sm:$0xff] }
  0xa8   : > { %v8889_v39 = vpop.f32.mrf.mxu1  ;;  %12765 = vst [vmem:[#allocation6_spill] sm:$0xff] %v8986_v33 }
  0xaa   : > { %8003 = vmatmul.msk.f32.gmra.mxu2 %vm12704_vm1, %v2018_v36  ;;  %8079 = vmatmul.msk.f32.gmra.mxu0 %vm12704_vm1, %v2638_v40  ;;  %v2335_v40 = vld [vmem:[%s8697_s27 + $0x52] sm:$0xff] }
  0xab   : > { %8041 = vmatmul.msk.f32.gmra.mxu3 %vm12704_vm1, %v2328_v37  ;;  %8117 = vmatmul.msk.f32.gmra.mxu1 %vm12704_vm1, %v2948_v41 }
  0xad   : > { %v1736_v42 = vpop.f32.mrf.mxu2 }
  0xae   : > { %v1972_v43 = vpop.f32.mrf.mxu3 }
  0xaf   : > { %v8897_v44 = vadd.f32 %v1972_v43, %v1736_v42  ;;  %v8900_v46 = vpop.f32.mrf.mxu0  ;;  %v2645_v43 = vld [vmem:[%s8697_s27 + $0x53] sm:$0xff] }
  0xb0   : > { %v8902_v47 = vpop.f32.mrf.mxu1 }
  0xb2   : > { %8004 = vmatmul.msk.f32.gmra.mxu2 %vm12704_vm1, %v2327_v28  ;;  %8080 = vmatmul.msk.f32.gmra.mxu0 %vm12704_vm1, %v2639_v48 }
  0xb3   : > { %8042 = vmatmul.msk.f32.gmra.mxu3 %vm12704_vm1, %v2329_v45  ;;  %8118 = vmatmul.msk.f32.gmra.mxu1 %vm12704_vm1, %v8906_v49 }
  0xb5   : > { %v1739_v50 = vpop.f32.mrf.mxu2 }
  0xb6   : > { %v1975_v51 = vpop.f32.mrf.mxu3 }
  0xb7   : > { %v8913_v52 = vadd.f32 %v1975_v51, %v1739_v50  ;;  %v8916_v54 = vpop.f32.mrf.mxu0 }
  0xb8   : > { %v8918_v55 = vpop.f32.mrf.mxu1 }
  0xba   : > { %8005 = vmatmul.msk.f32.gmra.mxu2 %vm12704_vm1, %v2328_v37  ;;  %8081 = vmatmul.msk.f32.gmra.mxu0 %vm12704_vm1, %v2640_v56 }
  0xbb   : > { %8043 = vmatmul.msk.f32.gmra.mxu3 %vm12704_vm1, %v2330_v53  ;;  %8119 = vmatmul.msk.f32.gmra.mxu1 %vm12704_vm1, %v8922_v57 }
  0xbd   : > { %v1742_v58 = vpop.f32.mrf.mxu2 }
  0xbe   : > { %v1978_v59 = vpop.f32.mrf.mxu3 }
  0xbf   : > { %v8929_v60 = vadd.f32 %v1978_v59, %v1742_v58  ;;  %v8932_v62 = vpop.f32.mrf.mxu0  ;;  %v2646_v59 = vld [vmem:[%s8697_s27 + $0x5b] sm:$0xff] }
  0xc0   : > { %v8934_v63 = vpop.f32.mrf.mxu1 }
  0xc2   : > { %8006 = vmatmul.msk.f32.gmra.mxu2 %vm12704_vm1, %v2329_v45  ;;  %8082 = vmatmul.msk.f32.gmra.mxu0 %vm12704_vm1, %v2641_v0  ;;  %v9002_v45 = vld [vmem:[%s8697_s27 + $0x54] sm:$0xff] }
  0xc3   : > { %8044 = vmatmul.msk.f32.gmra.mxu3 %vm12704_vm1, %v2331_v61  ;;  %8120 = vmatmul.msk.f32.gmra.mxu1 %vm12704_vm1, %v8938_v1  ;;  %12767 = vst [vmem:[#allocation8_spill] sm:$0xff] %v9002_v45 }
  0xc5   : > { %v1745_v2 = vpop.f32.mrf.mxu2 }
  0xc6   : > { %v1981_v3 = vpop.f32.mrf.mxu3 }
  0xc7   : > { %v8945_v4 = vadd.f32 %v1981_v3, %v1745_v2  ;;  %v8948_v6 = vpop.f32.mrf.mxu0 }
  0xc8   : > { %v8950_v7 = vpop.f32.mrf.mxu1 }
  0xc9   : > { %12762 = vst [vmem:[#allocation3_spill] sm:$0xff] %v8945_v4 }
  0xca   : > { %8007 = vmatmul.msk.f32.gmra.mxu2 %vm12704_vm1, %v2330_v53  ;;  %8083 = vmatmul.msk.f32.gmra.mxu0 %vm12704_vm1, %v2642_v8  ;;  %v2336_v53 = vld [vmem:[%s8697_s27 + $0x5a] sm:$0xff] }
  0xcb   : > { %8045 = vmatmul.msk.f32.gmra.mxu3 %vm12704_vm1, %v2332_v5  ;;  %8121 = vmatmul.msk.f32.gmra.mxu1 %vm12704_vm1, %v8954_v9 }
  0xcd   : > { %v1748_v10 = vpop.f32.mrf.mxu2 }
  0xce   : > { %v1984_v13 = vpop.f32.mrf.mxu3 }
  0xcf   : > { %v8961_v14 = vadd.f32 %v1984_v13, %v1748_v10  ;;  %v8964_v16 = vpop.f32.mrf.mxu0  ;;  %v2647_v13 = vld [vmem:[%s8697_s27 + $0x63] sm:$0xff] }
  0xd0   : > { %v8966_v18 = vpop.f32.mrf.mxu1 }
  0xd1   : > { %12763 = vst [vmem:[#allocation4_spill] sm:$0xff] %v8961_v14 }
  0xd2   : > { %8008 = vmatmul.msk.f32.gmra.mxu2 %vm12704_vm1, %v2331_v61  ;;  %8084 = vmatmul.msk.f32.gmra.mxu0 %vm12704_vm1, %v2643_v19  ;;  %v9018_v61 = vld [vmem:[%s8697_s27 + $0x5c] sm:$0xff] }
  0xd3   : > { %8046 = vmatmul.msk.f32.gmra.mxu3 %vm12704_vm1, %v2333_v15  ;;  %8122 = vmatmul.msk.f32.gmra.mxu1 %vm12704_vm1, %v8970_v22  ;;  %12769 = vst [vmem:[#allocation10_spill] sm:$0xff] %v9018_v61 }
  0xd5   : > { %v1751_v23 = vpop.f32.mrf.mxu2 }
  0xd6   : > { %v1987_v24 = vpop.f32.mrf.mxu3 }
  0xd7   : > { %v8977_v25 = vadd.f32 %v1987_v24, %v1751_v23  ;;  %v8980_v28 = vpop.f32.mrf.mxu0 }
  0xd8   : > { %v8982_v31 = vpop.f32.mrf.mxu1 }
  0xd9   : > { %12764 = vst [vmem:[#allocation5_spill] sm:$0xff] %v8977_v25  ;;  %v2963_v25 = vld [vmem:[%s8697_s27 + $0x94] sm:$0xff] }
  0xda   : > { %8009 = vmatmul.msk.f32.gmra.mxu2 %vm12704_vm1, %v2332_v5  ;;  %8085 = vmatmul.msk.f32.gmra.mxu0 %vm12704_vm1, %v2644_v32  ;;  %v2337_v5 = vld [vmem:[%s8697_s27 + $0x62] sm:$0xff] }
  0xdb   : > { %8047 = vmatmul.msk.f32.gmra.mxu3 %vm12704_vm1, %v2334_v27  ;;  %8123 = vmatmul.msk.f32.gmra.mxu1 %vm12704_vm1, %v8986_v33  ;;  %v2654_v33 = vld [vmem:[%s8697_s27 + $0x9b] sm:$0xff] }
  0xdd   : > { %v1754_v34 = vpop.f32.mrf.mxu2 }
  0xde   : > { %v1990_v36 = vpop.f32.mrf.mxu3 }
  0xdf   : > { %v8993_v37 = vadd.f32 %v1990_v36, %v1754_v34  ;;  %v8996_v41 = vpop.f32.mrf.mxu0  ;;  %v2648_v36 = vld [vmem:[%s8697_s27 + $0x6b] sm:$0xff] }
  0xe0   : > { %v8998_v42 = vpop.f32.mrf.mxu1 }
  0xe1   : > { %12766 = vst [vmem:[#allocation7_spill] sm:$0xff] %v8993_v37 }
  0xe2   : > { %8010 = vmatmul.msk.f32.gmra.mxu2 %vm12704_vm1, %v2333_v15  ;;  %8086 = vmatmul.msk.f32.gmra.mxu0 %vm12704_vm1, %v2645_v43  ;;  %v9034_v15 = vld [vmem:[%s8697_s27 + $0x64] sm:$0xff] }
  0xe3   : > { %8048 = vmatmul.msk.f32.gmra.mxu3 %vm12704_vm1, %v2335_v40  ;;  %8124 = vmatmul.msk.f32.gmra.mxu1 %vm12704_vm1, %v9002_v45  ;;  %12771 = vst [vmem:[#allocation12_spill] sm:$0xff] %v9034_v15 }
  0xe5   : > { %v1757_v48 = vpop.f32.mrf.mxu2 }
  0xe6   : > { %v1993_v50 = vpop.f32.mrf.mxu3 }
  0xe7   : > { %v9009_v51 = vadd.f32 %v1993_v50, %v1757_v48  ;;  %v9012_v56 = vpop.f32.mrf.mxu0 }
  0xe8   : > { %v9014_v58 = vpop.f32.mrf.mxu1 }
  0xe9   : > { %12768 = vst [vmem:[#allocation9_spill] sm:$0xff] %v9009_v51 }
  0xea   : > { %8011 = vmatmul.msk.f32.gmra.mxu2 %vm12704_vm1, %v2334_v27  ;;  %8087 = vmatmul.msk.f32.gmra.mxu0 %vm12704_vm1, %v2646_v59  ;;  %v2338_v27 = vld [vmem:[%s8697_s27 + $0x6a] sm:$0xff]  ;;  %v2339_v59 = vld [vmem:[%s8697_s27 + $0x72] sm:$0xff] }
  0xeb   : > { %8049 = vmatmul.msk.f32.gmra.mxu3 %vm12704_vm1, %v2336_v53  ;;  %8125 = vmatmul.msk.f32.gmra.mxu1 %vm12704_vm1, %v9018_v61  ;;  %v2653_v61 = vld [vmem:[%s8697_s27 + $0x93] sm:$0xff] }
  0xed   : > { %v1760_v0 = vpop.f32.mrf.mxu2 }
  0xee   : > { %v1996_v2 = vpop.f32.mrf.mxu3 }
  0xef   : > { %v9025_v3 = vadd.f32 %v1996_v2, %v1760_v0  ;;  %v9028_v8 = vpop.f32.mrf.mxu0 }
  0xf0   : > { %v9030_v10 = vpop.f32.mrf.mxu1 }
  0xf1   : > { %12770 = vst [vmem:[#allocation11_spill] sm:$0xff] %v9025_v3 }
  0xf2   : > { %8012 = vmatmul.msk.f32.gmra.mxu2 %vm12704_vm1, %v2335_v40  ;;  %8088 = vmatmul.msk.f32.gmra.mxu0 %vm12704_vm1, %v2647_v13  ;;  %v9050_v40 = vld [vmem:[%s8697_s27 + $0x6c] sm:$0xff]  ;;  %v9066_v13 = vld [vmem:[%s8697_s27 + $0x74] sm:$0xff] }
  0xf3   : > { %8050 = vmatmul.msk.f32.gmra.mxu3 %vm12704_vm1, %v2337_v5  ;;  %8126 = vmatmul.msk.f32.gmra.mxu1 %vm12704_vm1, %v9034_v15  ;;  %12773 = vst [vmem:[#allocation14_spill] sm:$0xff] %v9050_v40  ;;  %v2962_v15 = vld [vmem:[%s8697_s27 + $0x8c] sm:$0xff] }
  0xf4   : > { %12775 = vst [vmem:[#allocation16_spill] sm:$0xff] %v9066_v13 }
  0xf5   : > { %v1763_v19 = vpop.f32.mrf.mxu2 }
  0xf6   : > { %v1999_v23 = vpop.f32.mrf.mxu3 }
  0xf7   : > { %v9041_v24 = vadd.f32 %v1999_v23, %v1763_v19  ;;  %v9044_v32 = vpop.f32.mrf.mxu0 }
  0xf8   : > { %v9046_v34 = vpop.f32.mrf.mxu1 }
  0xf9   : > { %12772 = vst [vmem:[#allocation13_spill] sm:$0xff] %v9041_v24  ;;  %v9082_v24 = vld [vmem:[%s8697_s27 + $0x7c] sm:$0xff] }
  0xfa   : > { %8013 = vmatmul.msk.f32.gmra.mxu2 %vm12704_vm1, %v2336_v53  ;;  %8089 = vmatmul.msk.f32.gmra.mxu0 %vm12704_vm1, %v2648_v36  ;;  %v2649_v53 = vld [vmem:[%s8697_s27 + $0x73] sm:$0xff]  ;;  %12777 = vst [vmem:[#allocation18_spill] sm:$0xff] %v9082_v24 }
  0xfb   : > { %8051 = vmatmul.msk.f32.gmra.mxu3 %vm12704_vm1, %v2338_v27  ;;  %8127 = vmatmul.msk.f32.gmra.mxu1 %vm12704_vm1, %v9050_v40  ;;  %v9098_v40 = vld [vmem:[%s8697_s27 + $0x84] sm:$0xff] }
  0xfc   : > { %12779 = vst [vmem:[#allocation20_spill] sm:$0xff] %v9098_v40 }
  0xfd   : > { %v1766_v43 = vpop.f32.mrf.mxu2 }
  0xfe   : > { %v2002_v48 = vpop.f32.mrf.mxu3 }
  0xff   : > { %v9057_v50 = vadd.f32 %v2002_v48, %v1766_v43  ;;  %v9060_v0 = vpop.f32.mrf.mxu0  ;;  %v2340_v43 = vld [vmem:[%s8697_s27 + $0x7a] sm:$0xff] }
 0x100   : > { %v9062_v2 = vpop.f32.mrf.mxu1 }
 0x101   : > { %12774 = vst [vmem:[#allocation15_spill] sm:$0xff] %v9057_v50 }
 0x102   : > { %8014 = vmatmul.msk.f32.gmra.mxu2 %vm12704_vm1, %v2337_v5  ;;  %8090 = vmatmul.msk.f32.gmra.mxu0 %vm12704_vm1, %v2649_v53  ;;  %v2650_v5 = vld [vmem:[%s8697_s27 + $0x7b] sm:$0xff] }
 0x103   : > { %8052 = vmatmul.msk.f32.gmra.mxu3 %vm12704_vm1, %v2339_v59  ;;  %8128 = vmatmul.msk.f32.gmra.mxu1 %vm12704_vm1, %v9066_v13 }
 0x105   : > { %v1769_v19 = vpop.f32.mrf.mxu2 }
 0x106   : > { %v2005_v23 = vpop.f32.mrf.mxu3 }
 0x107   : > { %v9073_v36 = vadd.f32 %v2005_v23, %v1769_v19  ;;  %v9076_v48 = vpop.f32.mrf.mxu0 }
 0x108   : > { %v9078_v50 = vpop.f32.mrf.mxu1 }
 0x109   : > { %12776 = vst [vmem:[#allocation17_spill] sm:$0xff] %v9073_v36  ;;  %v2341_v36 = vld [vmem:[%s8697_s27 + $0x82] sm:$0xff] }
 0x10a   : > { %8015 = vmatmul.msk.f32.gmra.mxu2 %vm12704_vm1, %v2338_v27  ;;  %8091 = vmatmul.msk.f32.gmra.mxu0 %vm12704_vm1, %v2650_v5  ;;  %v2651_v27 = vld [vmem:[%s8697_s27 + $0x83] sm:$0xff] }
 0x10b   : > { %8053 = vmatmul.msk.f32.gmra.mxu3 %vm12704_vm1, %v2340_v43  ;;  %8129 = vmatmul.msk.f32.gmra.mxu1 %vm12704_vm1, %v9082_v24 }
 0x10d   : > { %v1772_v53 = vpop.f32.mrf.mxu2 }
 0x10e   : > { %v2008_v19 = vpop.f32.mrf.mxu3 }
 0x10f   : > { %v9089_v23 = vadd.f32 %v2008_v19, %v1772_v53  ;;  %v9092_v13 = vpop.f32.mrf.mxu0 }
 0x110   : > { %v9094_v3 = vpop.f32.mrf.mxu1 }
 0x111   : > { %12778 = vst [vmem:[#allocation19_spill] sm:$0xff] %v9089_v23  ;;  %v2342_v23 = vld [vmem:[%s8697_s27 + $0x8a] sm:$0xff] }
 0x112   : > { %8016 = vmatmul.msk.f32.gmra.mxu2 %vm12704_vm1, %v2339_v59  ;;  %8092 = vmatmul.msk.f32.gmra.mxu0 %vm12704_vm1, %v2651_v27  ;;  %v2652_v59 = vld [vmem:[%s8697_s27 + $0x8b] sm:$0xff] }
 0x113   : > { %8054 = vmatmul.msk.f32.gmra.mxu3 %vm12704_vm1, %v2341_v36  ;;  %8130 = vmatmul.msk.f32.gmra.mxu1 %vm12704_vm1, %v9098_v40 }
 0x115   : > { %v1775_v5 = vpop.f32.mrf.mxu2 }
 0x116   : > { %v2011_v53 = vpop.f32.mrf.mxu3 }
 0x117   : > { %v9105_v19 = vadd.f32 %v2011_v53, %v1775_v5  ;;  %v9108_v24 = vpop.f32.mrf.mxu0 }
 0x118   : > { %v9110_v51 = vpop.f32.mrf.mxu1 }
 0x119   : > { %12780 = vst [vmem:[#allocation21_spill] sm:$0xff] %v9105_v19  ;;  %v2343_v19 = vld [vmem:[%s8697_s27 + $0x92] sm:$0xff] }
 0x11a   : > { %8017 = vmatmul.msk.f32.gmra.mxu2 %vm12704_vm1, %v2340_v43  ;;  %8093 = vmatmul.msk.f32.gmra.mxu0 %vm12704_vm1, %v2652_v59 }
 0x11b   : > { %8055 = vmatmul.msk.f32.gmra.mxu3 %vm12704_vm1, %v2342_v23  ;;  %8131 = vmatmul.msk.f32.gmra.mxu1 %vm12704_vm1, %v2962_v15  ;;  %v1910_v15 = vadd.f32 %v8847_v12, %v8845_v11  ;;  %v1913_v11 = vadd.f32 %v8861_v21, %v8859_v20  ;;  %v1916_v20 = vadd.f32 %v8875_v30, %v8873_v29 }
 0x11c   : > { %v1919_v29 = vadd.f32 %v8889_v39, %v8887_v38  ;;  %v1922_v38 = vadd.f32 %v8902_v47, %v8900_v46  ;;  %v1925_v46 = vadd.f32 %v8918_v55, %v8916_v54  ;;  %v1928_v54 = vadd.f32 %v8934_v63, %v8932_v62 }
 0x11d   : > { %v1778_v27 = vpop.f32.mrf.mxu2  ;;  %v1931_v62 = vadd.f32 %v8950_v7, %v8948_v6  ;;  %v1934_v6 = vadd.f32 %v8966_v18, %v8964_v16  ;;  %v1937_v16 = vadd.f32 %v8982_v31, %v8980_v28  ;;  %v1940_v28 = vadd.f32 %v8998_v42, %v8996_v41 }
 0x11e   : > { %v2014_v5 = vpop.f32.mrf.mxu3  ;;  %v1943_v41 = vadd.f32 %v9014_v58, %v9012_v56  ;;  %v1946_v56 = vadd.f32 %v9030_v10, %v9028_v8  ;;  %v1949_v8 = vadd.f32 %v9046_v34, %v9044_v32  ;;  %v1952_v32 = vadd.f32 %v9062_v2, %v9060_v0 }
 0x11f   : > { %v9118_v53 = vadd.f32 %v2014_v5, %v1778_v27  ;;  %v2803_v40 = vpop.f32.mrf.mxu0  ;;  %v2344_v5 = vld [vmem:[%s8697_s27 + $0x9a] sm:$0xff]  ;;  %v1955_v0 = vadd.f32 %v9078_v50, %v9076_v48  ;;  %v1958_v50 = vadd.f32 %v9094_v3, %v9092_v13  ;;  %v1961_v3 = vadd.f32 %v9110_v51, %v9108_v24 }
 0x120   : > { %v3113_v37 = vpop.f32.mrf.mxu1 }
 0x121   : > { %12781 = vst [vmem:[#allocation22_spill] sm:$0xff] %v9118_v53 }
 0x122   : > { %8018 = vmatmul.msk.f32.gmra.mxu2 %vm12704_vm1, %v2341_v36  ;;  %8094 = vmatmul.msk.f32.gmra.mxu0 %vm12704_vm1, %v2653_v61  ;;  %v2964_v36 = vld [vmem:[%s8697_s27 + $0x9c] sm:$0xff] }
 0x123   : > { %8056 = vmatmul.msk.f32.gmra.mxu3 %vm12704_vm1, %v2343_v19  ;;  %8132 = vmatmul.msk.f32.gmra.mxu1 %vm12704_vm1, %v2963_v25 }
 0x125   : > { %v2183_v43 = vpop.f32.mrf.mxu2 }
 0x126   : > { %v2493_v59 = vpop.f32.mrf.mxu3  ;;  %v2291_v27 = vadd.f32 %v2183_v43, %v1910_v15  ;;  %v2345_v43 = vld [vmem:[%s8697_s27 + $0xa2] sm:$0xff] }
 0x127   : > { %v2806_v45 = vpop.f32.mrf.mxu0 }
 0x128   : > { %v2601_v53 = vadd.f32 %v2493_v59, %v2291_v27  ;;  %v3116_v14 = vpop.f32.mrf.mxu1  ;;  %v2965_v27 = vld [vmem:[%s8697_s27 + $0xa4] sm:$0xff] }
 0x12a   : > { %v2911_v4 = vadd.f32 %v2803_v40, %v2601_v53  ;;  %8019 = vmatmul.msk.f32.gmra.mxu2 %vm12704_vm1, %v2342_v23  ;;  %8095 = vmatmul.msk.f32.gmra.mxu0 %vm12704_vm1, %v2654_v33  ;;  %v2655_v23 = vld [vmem:[%s8697_s27 + $0xa3] sm:$0xff] }
 0x12b   : > { %8057 = vmatmul.msk.f32.gmra.mxu3 %vm12704_vm1, %v2344_v5  ;;  %8133 = vmatmul.msk.f32.gmra.mxu1 %vm12704_vm1, %v2964_v36 }
 0x12c   : > { %v9138_v12 = vadd.f32 %v3113_v37, %v2911_v4 }
 0x12d   : > { %v2186_v25 = vpop.f32.mrf.mxu2 }
 0x12e   : > { %12782 = vst [vmem:[#allocation23_spill] sm:$0xff] %v9138_v12  ;;  %v2496_v61 = vpop.f32.mrf.mxu3  ;;  %v2292_v15 = vadd.f32 %v2186_v25, %v1913_v11  ;;  %v2346_v11 = vld [vmem:[%s8697_s27 + $0xaa] sm:$0xff] }
 0x12f   : > { %v2809_v40 = vpop.f32.mrf.mxu0 }
 0x130   : > { %v2602_v59 = vadd.f32 %v2496_v61, %v2292_v15  ;;  %v3119_v53 = vpop.f32.mrf.mxu1  ;;  %v2966_v15 = vld [vmem:[%s8697_s27 + $0xac] sm:$0xff] }
 0x132   : > { %v2912_v33 = vadd.f32 %v2806_v45, %v2602_v59  ;;  %8020 = vmatmul.msk.f32.gmra.mxu2 %vm12704_vm1, %v2343_v19  ;;  %8096 = vmatmul.msk.f32.gmra.mxu0 %vm12704_vm1, %v2655_v23  ;;  %v2656_v19 = vld [vmem:[%s8697_s27 + $0xab] sm:$0xff] }
 0x133   : > { %8058 = vmatmul.msk.f32.gmra.mxu3 %vm12704_vm1, %v2345_v43  ;;  %8134 = vmatmul.msk.f32.gmra.mxu1 %vm12704_vm1, %v2965_v27 }
 0x134   : > { %v9149_v21 = vadd.f32 %v3116_v14, %v2912_v33  ;;  %v2347_v33 = vld [vmem:[%s8697_s27 + $0xb2] sm:$0xff] }
 0x135   : > { %v2189_v4 = vpop.f32.mrf.mxu2 }
 0x136   : > { %12783 = vst [vmem:[#allocation24_spill] sm:$0xff] %v9149_v21  ;;  %v2499_v37 = vpop.f32.mrf.mxu3  ;;  %v2293_v36 = vadd.f32 %v2189_v4, %v1916_v20 }
 0x137   : > { %v2812_v45 = vpop.f32.mrf.mxu0 }
 0x138   : > { %v2603_v25 = vadd.f32 %v2499_v37, %v2293_v36  ;;  %v3122_v61 = vpop.f32.mrf.mxu1  ;;  %v2967_v37 = vld [vmem:[%s8697_s27 + $0xb4] sm:$0xff] }
 0x13a   : > { %v2913_v59 = vadd.f32 %v2809_v40, %v2603_v25  ;;  %8021 = vmatmul.msk.f32.gmra.mxu2 %vm12704_vm1, %v2344_v5  ;;  %8097 = vmatmul.msk.f32.gmra.mxu0 %vm12704_vm1, %v2656_v19  ;;  %v2657_v5 = vld [vmem:[%s8697_s27 + $0xb3] sm:$0xff] }
 0x13b   : > { %8059 = vmatmul.msk.f32.gmra.mxu3 %vm12704_vm1, %v2346_v11  ;;  %8135 = vmatmul.msk.f32.gmra.mxu1 %vm12704_vm1, %v2966_v15  ;;  %v2348_v15 = vld [vmem:[%s8697_s27 + $0xba] sm:$0xff] }
 0x13c   : > { %v9160_v30 = vadd.f32 %v3119_v53, %v2913_v59 }
 0x13d   : > { %v2192_v14 = vpop.f32.mrf.mxu2 }
 0x13e   : > { %12784 = vst [vmem:[#allocation25_spill] sm:$0xff] %v9160_v30  ;;  %v2502_v23 = vpop.f32.mrf.mxu3  ;;  %v2294_v27 = vadd.f32 %v2192_v14, %v1919_v29  ;;  %v2968_v14 = vld [vmem:[%s8697_s27 + $0xbc] sm:$0xff]  ;;  %v3889_v30 = vld [vmem:[%s8697_s27 + $0x86] sm:$0xff] }
 0x13f   : > { %v2815_v40 = vpop.f32.mrf.mxu0 }
 0x140   : > { %v2604_v20 = vadd.f32 %v2502_v23, %v2294_v27  ;;  %v3125_v4 = vpop.f32.mrf.mxu1 }
 0x142   : > { %v2914_v36 = vadd.f32 %v2812_v45, %v2604_v20  ;;  %8022 = vmatmul.msk.f32.gmra.mxu2 %vm12704_vm1, %v2345_v43  ;;  %8098 = vmatmul.msk.f32.gmra.mxu0 %vm12704_vm1, %v2657_v5  ;;  %v2658_v43 = vld [vmem:[%s8697_s27 + $0xbb] sm:$0xff] }
 0x143   : > { %8060 = vmatmul.msk.f32.gmra.mxu3 %vm12704_vm1, %v2347_v33  ;;  %8136 = vmatmul.msk.f32.gmra.mxu1 %vm12704_vm1, %v2967_v37  ;;  %v2349_v5 = vld [vmem:[%s8697_s27 + $0xc2] sm:$0xff] }
 0x144   : > { %v9171_v39 = vadd.f32 %v3122_v61, %v2914_v36 }
 0x145   : > { %v2195_v53 = vpop.f32.mrf.mxu2 }
 0x146   : > { %12785 = vst [vmem:[#allocation26_spill] sm:$0xff] %v9171_v39  ;;  %v2505_v25 = vpop.f32.mrf.mxu3  ;;  %v2295_v19 = vadd.f32 %v2195_v53, %v1922_v38  ;;  %v2969_v38 = vld [vmem:[%s8697_s27 + $0xc4] sm:$0xff] }
 0x147   : > { %v2818_v45 = vpop.f32.mrf.mxu0 }
 0x148   : > { %v2605_v59 = vadd.f32 %v2505_v25, %v2295_v19  ;;  %v3128_v29 = vpop.f32.mrf.mxu1 }
 0x14a   : > { %v2915_v23 = vadd.f32 %v2815_v40, %v2605_v59  ;;  %8023 = vmatmul.msk.f32.gmra.mxu2 %vm12704_vm1, %v2346_v11  ;;  %8099 = vmatmul.msk.f32.gmra.mxu0 %vm12704_vm1, %v2658_v43  ;;  %v2659_v11 = vld [vmem:[%s8697_s27 + $0xc3] sm:$0xff] }
 0x14b   : > { %8061 = vmatmul.msk.f32.gmra.mxu3 %vm12704_vm1, %v2348_v15  ;;  %8137 = vmatmul.msk.f32.gmra.mxu1 %vm12704_vm1, %v2968_v14  ;;  %v2350_v59 = vld [vmem:[%s8697_s27 + $0xca] sm:$0xff] }
 0x14c   : > { %v9182_v47 = vadd.f32 %v3125_v4, %v2915_v23  ;;  %v2970_v23 = vld [vmem:[%s8697_s27 + $0xcc] sm:$0xff] }
 0x14d   : > { %v2198_v61 = vpop.f32.mrf.mxu2 }
 0x14e   : > { %12786 = vst [vmem:[#allocation27_spill] sm:$0xff] %v9182_v47  ;;  %v2508_v27 = vpop.f32.mrf.mxu3  ;;  %v2296_v20 = vadd.f32 %v2198_v61, %v1925_v46 }
 0x14f   : > { %v2821_v40 = vpop.f32.mrf.mxu0 }
 0x150   : > { %v2606_v37 = vadd.f32 %v2508_v27, %v2296_v20  ;;  %v3131_v36 = vpop.f32.mrf.mxu1  ;;  %v2351_v20 = vld [vmem:[%s8697_s27 + $0xd2] sm:$0xff] }
 0x152   : > { %v2916_v53 = vadd.f32 %v2818_v45, %v2606_v37  ;;  %8024 = vmatmul.msk.f32.gmra.mxu2 %vm12704_vm1, %v2347_v33  ;;  %8100 = vmatmul.msk.f32.gmra.mxu0 %vm12704_vm1, %v2659_v11  ;;  %v2660_v33 = vld [vmem:[%s8697_s27 + $0xcb] sm:$0xff] }
 0x153   : > { %8062 = vmatmul.msk.f32.gmra.mxu3 %vm12704_vm1, %v2349_v5  ;;  %8138 = vmatmul.msk.f32.gmra.mxu1 %vm12704_vm1, %v2969_v38  ;;  %v2971_v38 = vld [vmem:[%s8697_s27 + $0xd4] sm:$0xff] }
 0x154   : > { %v9193_v55 = vadd.f32 %v3128_v29, %v2916_v53 }
 0x155   : > { %v2201_v4 = vpop.f32.mrf.mxu2 }
 0x156   : > { %12787 = vst [vmem:[#allocation28_spill] sm:$0xff] %v9193_v55  ;;  %v2511_v25 = vpop.f32.mrf.mxu3  ;;  %v2297_v19 = vadd.f32 %v2201_v4, %v1928_v54 }
 0x157   : > { %v2824_v45 = vpop.f32.mrf.mxu0 }
 0x158   : > { %v2607_v43 = vadd.f32 %v2511_v25, %v2297_v19  ;;  %v3134_v14 = vpop.f32.mrf.mxu1  ;;  %v2352_v25 = vld [vmem:[%s8697_s27 + $0xda] sm:$0xff] }
 0x15a   : > { %v2917_v46 = vadd.f32 %v2821_v40, %v2607_v43  ;;  %8025 = vmatmul.msk.f32.gmra.mxu2 %vm12704_vm1, %v2348_v15  ;;  %8101 = vmatmul.msk.f32.gmra.mxu0 %vm12704_vm1, %v2660_v33  ;;  %v2661_v15 = vld [vmem:[%s8697_s27 + $0xd3] sm:$0xff]  ;;  %v2972_v33 = vld [vmem:[%s8697_s27 + $0xdc] sm:$0xff] }
 0x15b   : > { %8063 = vmatmul.msk.f32.gmra.mxu3 %vm12704_vm1, %v2350_v59  ;;  %8139 = vmatmul.msk.f32.gmra.mxu1 %vm12704_vm1, %v2970_v23 }
 0x15c   : > { %v9204_v63 = vadd.f32 %v3131_v36, %v2917_v46 }
 0x15d   : > { %v2204_v29 = vpop.f32.mrf.mxu2 }
 0x15e   : > { %12788 = vst [vmem:[#allocation29_spill] sm:$0xff] %v9204_v63  ;;  %v2514_v61 = vpop.f32.mrf.mxu3  ;;  %v2298_v27 = vadd.f32 %v2204_v29, %v1931_v62  ;;  %v2353_v29 = vld [vmem:[%s8697_s27 + $0xe2] sm:$0xff] }
 0x15f   : > { %v2827_v40 = vpop.f32.mrf.mxu0 }
 0x160   : > { %v2608_v37 = vadd.f32 %v2514_v61, %v2298_v27  ;;  %v3137_v11 = vpop.f32.mrf.mxu1 }
 0x162   : > { %v2918_v53 = vadd.f32 %v2824_v45, %v2608_v37  ;;  %8026 = vmatmul.msk.f32.gmra.mxu2 %vm12704_vm1, %v2349_v5  ;;  %8102 = vmatmul.msk.f32.gmra.mxu0 %vm12704_vm1, %v2661_v15  ;;  %v2662_v5 = vld [vmem:[%s8697_s27 + $0xdb] sm:$0xff] }
 0x163   : > { %8064 = vmatmul.msk.f32.gmra.mxu3 %vm12704_vm1, %v2351_v20  ;;  %8140 = vmatmul.msk.f32.gmra.mxu1 %vm12704_vm1, %v2971_v38 }
 0x164   : > { %v9215_v7 = vadd.f32 %v3134_v14, %v2918_v53 }
 0x165   : > { %v2207_v36 = vpop.f32.mrf.mxu2 }
 0x166   : > { %12789 = vst [vmem:[#allocation30_spill] sm:$0xff] %v9215_v7  ;;  %v2517_v54 = vpop.f32.mrf.mxu3  ;;  %v2299_v4 = vadd.f32 %v2207_v36, %v1934_v6  ;;  %v2354_v6 = vld [vmem:[%s8697_s27 + $0xea] sm:$0xff] }
 0x167   : > { %v2830_v43 = vpop.f32.mrf.mxu0 }
 0x168   : > { %v2609_v19 = vadd.f32 %v2517_v54, %v2299_v4  ;;  %v3140_v45 = vpop.f32.mrf.mxu1 }
 0x16a   : > { %v2919_v23 = vadd.f32 %v2827_v40, %v2609_v19  ;;  %8027 = vmatmul.msk.f32.gmra.mxu2 %vm12704_vm1, %v2350_v59  ;;  %8103 = vmatmul.msk.f32.gmra.mxu0 %vm12704_vm1, %v2662_v5  ;;  %v2663_v59 = vld [vmem:[%s8697_s27 + $0xe3] sm:$0xff]  ;;  %v2974_v19 = vld [vmem:[%s8697_s27 + $0xec] sm:$0xff] }
 0x16b   : > { %8065 = vmatmul.msk.f32.gmra.mxu3 %vm12704_vm1, %v2352_v25  ;;  %8141 = vmatmul.msk.f32.gmra.mxu1 %vm12704_vm1, %v2972_v33  ;;  %v2973_v40 = vld [vmem:[%s8697_s27 + $0xe4] sm:$0xff] }
 0x16c   : > { %v9226_v18 = vadd.f32 %v3137_v11, %v2919_v23  ;;  %v2355_v23 = vld [vmem:[%s8697_s27 + $0xf2] sm:$0xff] }
 0x16d   : > { %v2210_v14 = vpop.f32.mrf.mxu2 }
 0x16e   : > { %12790 = vst [vmem:[#allocation31_spill] sm:$0xff] %v9226_v18  ;;  %v2520_v46 = vpop.f32.mrf.mxu3  ;;  %v2300_v62 = vadd.f32 %v2210_v14, %v1937_v16  ;;  %v12808_v18 = vld [vmem:[#allocation15_spill] sm:$0xff] }
 0x16f   : > { %v2833_v27 = vpop.f32.mrf.mxu0 }
 0x170   : > { %v2610_v61 = vadd.f32 %v2520_v46, %v2300_v62  ;;  %v3143_v37 = vpop.f32.mrf.mxu1  ;;  %v2975_v62 = vld [vmem:[%s8697_s27 + $0xf4] sm:$0xff] }
 0x172   : > { %v2920_v15 = vadd.f32 %v2830_v43, %v2610_v61  ;;  %8028 = vmatmul.msk.f32.gmra.mxu2 %vm12704_vm1, %v2351_v20  ;;  %8104 = vmatmul.msk.f32.gmra.mxu0 %vm12704_vm1, %v2663_v59  ;;  %v2664_v20 = vld [vmem:[%s8697_s27 + $0xeb] sm:$0xff] }
 0x173   : > { %8066 = vmatmul.msk.f32.gmra.mxu3 %vm12704_vm1, %v2353_v29  ;;  %8142 = vmatmul.msk.f32.gmra.mxu1 %vm12704_vm1, %v2973_v40  ;;  %v2356_v40 = vld [vmem:[%s8697_s27 + $0xfa] sm:$0xff] }
 0x174   : > { %v9237_v31 = vadd.f32 %v3140_v45, %v2920_v15 }
 0x175   : > { %v2213_v11 = vpop.f32.mrf.mxu2 }
 0x176   : > { %12791 = vst [vmem:[#allocation32_spill] sm:$0xff] %v9237_v31  ;;  %v2523_v38 = vpop.f32.mrf.mxu3  ;;  %v2301_v53 = vadd.f32 %v2213_v11, %v1940_v28 }
 0x177   : > { %v2836_v54 = vpop.f32.mrf.mxu0 }
 0x178   : > { %v2611_v36 = vadd.f32 %v2523_v38, %v2301_v53  ;;  %v3146_v4 = vpop.f32.mrf.mxu1  ;;  %v2976_v38 = vld [vmem:[%s8697_s27 + $0xfc] sm:$0xff] }
 0x17a   : > { %v2921_v43 = vadd.f32 %v2833_v27, %v2611_v36  ;;  %8029 = vmatmul.msk.f32.gmra.mxu2 %vm12704_vm1, %v2352_v25  ;;  %8105 = vmatmul.msk.f32.gmra.mxu0 %vm12704_vm1, %v2664_v20  ;;  %v2665_v25 = vld [vmem:[%s8697_s27 + $0xf3] sm:$0xff] }
 0x17b   : > { %8067 = vmatmul.msk.f32.gmra.mxu3 %vm12704_vm1, %v2354_v6  ;;  %8143 = vmatmul.msk.f32.gmra.mxu1 %vm12704_vm1, %v2974_v19 }
 0x17c   : > { %v9248_v42 = vadd.f32 %v3143_v37, %v2921_v43 }
 0x17d   : > { %v2216_v45 = vpop.f32.mrf.mxu2 }
 0x17e   : > { %12792 = vst [vmem:[#allocation33_spill] sm:$0xff] %v9248_v42  ;;  %v2526_v5 = vpop.f32.mrf.mxu3  ;;  %v2302_v33 = vadd.f32 %v2216_v45, %v1943_v41  ;;  %v2977_v41 = vld [vmem:[%s8697_s27 + $0x104] sm:$0xff] }
 0x17f   : > { %v2839_v14 = vpop.f32.mrf.mxu0 }
 0x180   : > { %v2612_v16 = vadd.f32 %v2526_v5, %v2302_v33  ;;  %v9251_v46 = vpop.f32.mrf.mxu1 }
 0x182   : > { %v2922_v61 = vadd.f32 %v2836_v54, %v2612_v16  ;;  %8030 = vmatmul.msk.f32.gmra.mxu2 %vm12704_vm1, %v2353_v29  ;;  %8106 = vmatmul.msk.f32.gmra.mxu0 %vm12704_vm1, %v2665_v25  ;;  %v2666_v29 = vld [vmem:[%s8697_s27 + $0xfb] sm:$0xff]  ;;  %v2358_v16 = vld [vmem:[%s8697_s27 + $0x10a] sm:$0xff] }
 0x183   : > { %8068 = vmatmul.msk.f32.gmra.mxu3 %vm12704_vm1, %v2355_v23  ;;  %8144 = vmatmul.msk.f32.gmra.mxu1 %vm12704_vm1, %v2975_v62 }
 0x184   : > { %v9261_v58 = vadd.f32 %v3146_v4, %v2922_v61  ;;  %v2357_v4 = vld [vmem:[%s8697_s27 + $0x102] sm:$0xff]  ;;  %v2978_v61 = vld [vmem:[%s8697_s27 + $0x10c] sm:$0xff] }
 0x185   : > { %v2219_v27 = vpop.f32.mrf.mxu2 }
 0x186   : > { %12793 = vst [vmem:[#allocation34_spill] sm:$0xff] %v9261_v58  ;;  %v2529_v37 = vpop.f32.mrf.mxu3  ;;  %v2303_v59 = vadd.f32 %v2219_v27, %v1946_v56 }
 0x187   : > { %v2842_v28 = vpop.f32.mrf.mxu0 }
 0x188   : > { %v2613_v15 = vadd.f32 %v2529_v37, %v2303_v59  ;;  %v9264_v11 = vpop.f32.mrf.mxu1  ;;  %v2359_v59 = vld [vmem:[%s8697_s27 + $0x112] sm:$0xff] }
 0x18a   : > { %v9268_v53 = vadd.f32 %v2839_v14, %v2613_v15  ;;  %8031 = vmatmul.msk.f32.gmra.mxu2 %vm12704_vm1, %v2354_v6  ;;  %8107 = vmatmul.msk.f32.gmra.mxu0 %vm12704_vm1, %v2666_v29  ;;  %v2667_v6 = vld [vmem:[%s8697_s27 + $0x103] sm:$0xff] }
 0x18b   : > { %8069 = vmatmul.msk.f32.gmra.mxu3 %vm12704_vm1, %v2356_v40  ;;  %8145 = vmatmul.msk.f32.gmra.mxu1 %vm12704_vm1, %v2976_v38  ;;  %v2979_v38 = vld [vmem:[%s8697_s27 + $0x114] sm:$0xff] }
 0x18d   : > { %v2222_v10 = vpop.f32.mrf.mxu2 }
 0x18e   : > { %v2532_v36 = vpop.f32.mrf.mxu3  ;;  %v2304_v54 = vadd.f32 %v2222_v10, %v1949_v8 }
 0x18f   : > { %v2845_v19 = vpop.f32.mrf.mxu0 }
 0x190   : > { %v2614_v20 = vadd.f32 %v2532_v36, %v2304_v54  ;;  %v9277_v43 = vpop.f32.mrf.mxu1  ;;  %v2360_v54 = vld [vmem:[%s8697_s27 + $0x11a] sm:$0xff] }
 0x192   : > { %v9281_v45 = vadd.f32 %v2842_v28, %v2614_v20  ;;  %8032 = vmatmul.msk.f32.gmra.mxu2 %vm12704_vm1, %v2355_v23  ;;  %8108 = vmatmul.msk.f32.gmra.mxu0 %vm12704_vm1, %v2667_v6  ;;  %v2668_v23 = vld [vmem:[%s8697_s27 + $0x10b] sm:$0xff]  ;;  %v2670_v6 = vld [vmem:[%s8697_s27 + $0x11b] sm:$0xff] }
 0x193   : > { %8070 = vmatmul.msk.f32.gmra.mxu3 %vm12704_vm1, %v2357_v4  ;;  %8146 = vmatmul.msk.f32.gmra.mxu1 %vm12704_vm1, %v2977_v41 }
 0x195   : > { %v2225_v34 = vpop.f32.mrf.mxu2 }
 0x196   : > { %v2535_v5 = vpop.f32.mrf.mxu3  ;;  %v2305_v33 = vadd.f32 %v2225_v34, %v1952_v32 }
 0x197   : > { %v2848_v25 = vpop.f32.mrf.mxu0 }
 0x198   : > { %v2615_v14 = vadd.f32 %v2535_v5, %v2305_v33  ;;  %v9290_v62 = vpop.f32.mrf.mxu1  ;;  %v2361_v33 = vld [vmem:[%s8697_s27 + $0x122] sm:$0xff] }
 0x19a   : > { %v9294_v56 = vadd.f32 %v2845_v19, %v2615_v14  ;;  %8033 = vmatmul.msk.f32.gmra.mxu2 %vm12704_vm1, %v2356_v40  ;;  %8109 = vmatmul.msk.f32.gmra.mxu0 %vm12704_vm1, %v2668_v23  ;;  %v2669_v40 = vld [vmem:[%s8697_s27 + $0x113] sm:$0xff]  ;;  %v2981_v23 = vld [vmem:[%s8697_s27 + $0x124] sm:$0xff] }
 0x19b   : > { %8071 = vmatmul.msk.f32.gmra.mxu3 %vm12704_vm1, %v2358_v16  ;;  %8147 = vmatmul.msk.f32.gmra.mxu1 %vm12704_vm1, %v2978_v61 }
 0x19d   : > { %v2228_v2 = vpop.f32.mrf.mxu2 }
 0x19e   : > { %v2538_v27 = vpop.f32.mrf.mxu3  ;;  %v2306_v37 = vadd.f32 %v2228_v2, %v1955_v0 }
 0x19f   : > { %v2851_v28 = vpop.f32.mrf.mxu0 }
 0x1a0   : > { %v2616_v15 = vadd.f32 %v2538_v27, %v2306_v37  ;;  %v9303_v29 = vpop.f32.mrf.mxu1  ;;  %v2362_v27 = vld [vmem:[%s8697_s27 + $0x12a] sm:$0xff] }
 0x1a2   : > { %v9307_v8 = vadd.f32 %v2848_v25, %v2616_v15  ;;  %8034 = vmatmul.msk.f32.gmra.mxu2 %vm12704_vm1, %v2357_v4  ;;  %8110 = vmatmul.msk.f32.gmra.mxu0 %vm12704_vm1, %v2669_v40  ;;  %v2980_v4 = vld [vmem:[%s8697_s27 + $0x11c] sm:$0xff]  ;;  %v2982_v40 = vld [vmem:[%s8697_s27 + $0x12c] sm:$0xff] }
 0x1a3   : > { %8072 = vmatmul.msk.f32.gmra.mxu3 %vm12704_vm1, %v2359_v59  ;;  %8148 = vmatmul.msk.f32.gmra.mxu1 %vm12704_vm1, %v2979_v38 }
 0x1a5   : > { %v2231_v48 = vpop.f32.mrf.mxu2 }
 0x1a6   : > { %v2541_v10 = vpop.f32.mrf.mxu3  ;;  %v2307_v36 = vadd.f32 %v2231_v48, %v1958_v50 }
 0x1a7   : > { %v2854_v19 = vpop.f32.mrf.mxu0 }
 0x1a8   : > { %v2617_v20 = vadd.f32 %v2541_v10, %v2307_v36  ;;  %v9322_v32 = vpop.f32.mrf.mxu1  ;;  %v3567_v10 = vld [vmem:[%s8697_s27 + $0x25] sm:$0xff] }
 0x1aa   : > { %v9318_v41 = vadd.f32 %v2851_v28, %v2617_v20  ;;  %8035 = vmatmul.msk.f32.gmra.mxu2 %vm12704_vm1, %v2358_v16  ;;  %8111 = vmatmul.msk.f32.gmra.mxu0 %vm12704_vm1, %v2670_v6  ;;  %v2671_v16 = vld [vmem:[%s8697_s27 + $0x123] sm:$0xff]  ;;  %v2672_v28 = vld [vmem:[%s8697_s27 + $0x12b] sm:$0xff] }
 0x1ab   : > { %8073 = vmatmul.msk.f32.gmra.mxu3 %vm12704_vm1, %v2360_v54  ;;  %8149 = vmatmul.msk.f32.gmra.mxu1 %vm12704_vm1, %v2980_v4 }
 0x1ad   : > { %v2234_v13 = vpop.f32.mrf.mxu2 }
 0x1ae   : > { %v2544_v34 = vpop.f32.mrf.mxu3  ;;  %v2308_v5 = vadd.f32 %v2234_v13, %v1961_v3  ;;  %v3568_v3 = vld [vmem:[%s8697_s27 + $0x2d] sm:$0xff] }
 0x1af   : > { %v2857_v25 = vpop.f32.mrf.mxu0 }
 0x1b0   : > { %v2618_v14 = vadd.f32 %v2544_v34, %v2308_v5  ;;  %v9337_v51 = vpop.f32.mrf.mxu1 }
 0x1b2   : > { %v9331_v61 = vadd.f32 %v2854_v19, %v2618_v14  ;;  %8036 = vmatmul.msk.f32.gmra.mxu2 %vm12704_vm1, %v2359_v59  ;;  %8112 = vmatmul.msk.f32.gmra.mxu0 %vm12704_vm1, %v2671_v16  ;;  %v3877_v19 = vld [vmem:[%s8697_s27 + $0x26] sm:$0xff]  ;;  %v3569_v16 = vld [vmem:[%s8697_s27 + $0x35] sm:$0xff] }
 0x1b3   : > { %8074 = vmatmul.msk.f32.gmra.mxu3 %vm12704_vm1, %v2361_v33  ;;  %8150 = vmatmul.msk.f32.gmra.mxu1 %vm12704_vm1, %v2981_v23  ;;  %v3878_v33 = vld [vmem:[%s8697_s27 + $0x2e] sm:$0xff] }
 0x1b5   : > { %v2237_v24 = vpop.f32.mrf.mxu2 }
 0x1b6   : > { %v2547_v0 = vpop.f32.mrf.mxu3  ;;  %v2309_v2 = vadd.f32 %v2237_v24, %v8855_v17 }
 0x1b7   : > { %v2860_v15 = vpop.f32.mrf.mxu0 }
 0x1b8   : > { %v2619_v37 = vadd.f32 %v2547_v0, %v2309_v2  ;;  %v9350_v48 = vpop.f32.mrf.mxu1  ;;  %v3879_v0 = vld [vmem:[%s8697_s27 + $0x36] sm:$0xff] }
 0x1ba   : > { %v9343_v59 = vadd.f32 %v2857_v25, %v2619_v37  ;;  %8037 = vmatmul.msk.f32.gmra.mxu2 %vm12704_vm1, %v2360_v54  ;;  %8113 = vmatmul.msk.f32.gmra.mxu0 %vm12704_vm1, %v2672_v28 }
 0x1bb   : > { %8075 = vmatmul.msk.f32.gmra.mxu3 %vm12704_vm1, %v2362_v27  ;;  %8151 = vmatmul.msk.f32.gmra.mxu1 %vm12704_vm1, %v2982_v40 }
 0x1bd   : > { %v2240_v38 = vpop.f32.mrf.mxu2 }
 0x1be   : > { %v2550_v50 = vpop.f32.mrf.mxu3  ;;  %v2310_v17 = vadd.f32 %v2240_v38, %v8869_v26  ;;  %v3880_v38 = vld [vmem:[%s8697_s27 + $0x3e] sm:$0xff] }
 0x1bf   : > { %v2863_v20 = vpop.f32.mrf.mxu0 }
 0x1c0   : > { %v2620_v36 = vadd.f32 %v2550_v50, %v2310_v17  ;;  %v9362_v34 = vpop.f32.mrf.mxu1 }
 0x1c2   : > { %v9354_v6 = vadd.f32 %v2860_v15, %v2620_v36  ;;  %8154 = vmatmul.msk.f32.vlgmr.msra.gmra.mxu2 %vm12704_vm1, %v8906_v49  ;;  %8230 = vmatmul.msk.f32.vlgmr.msra.gmra.mxu0 %vm12704_vm1, %v3877_v19  ;;  %v3570_v15 = vld [vmem:[%s8697_s27 + $0x3d] sm:$0xff]  ;;  %v3571_v36 = vld [vmem:[%s8697_s27 + $0x45] sm:$0xff] }
 0x1c3   : > { %8192 = vmatmul.msk.f32.vlgmr.msra.gmra.mxu3 %vm12704_vm1, %v3567_v10 }
 0x1c5   : > { %v2243_v54 = vpop.f32.mrf.mxu2 }
 0x1c6   : > { %v2553_v4 = vpop.f32.mrf.mxu3  ;;  %v2311_v26 = vadd.f32 %v2243_v54, %v8883_v35  ;;  %v3881_v54 = vld [vmem:[%s8697_s27 + $0x46] sm:$0xff] }
 0x1c7   : > { %v2866_v5 = vpop.f32.mrf.mxu0 }
 0x1c8   : > { %v2621_v13 = vadd.f32 %v2553_v4, %v2311_v26 }
 0x1ca   : > { %v9365_v14 = vadd.f32 %v2863_v20, %v2621_v13  ;;  %8155 = vmatmul.msk.f32.gmra.mxu2 %vm12704_vm1, %v8922_v57  ;;  %8231 = vmatmul.msk.f32.gmra.mxu0 %vm12704_vm1, %v3878_v33  ;;  %v9378_v57 = vpop.f32.mrf.mxu1 }
 0x1cb   : > { %8193 = vmatmul.msk.f32.gmra.mxu3 %vm12704_vm1, %v3568_v3 }
 0x1cd   : > { %v2246_v49 = vpop.f32.mrf.mxu2 }
 0x1ce   : > { %v2556_v25 = vpop.f32.mrf.mxu3  ;;  %v2312_v35 = vadd.f32 %v2246_v49, %v8897_v44 }
 0x1cf   : > { %v2869_v24 = vpop.f32.mrf.mxu0 }
 0x1d0   : > { %v2622_v23 = vadd.f32 %v2556_v25, %v2312_v35  ;;  %v3882_v25 = vld [vmem:[%s8697_s27 + $0x4e] sm:$0xff] }
 0x1d2   : > { %v9374_v2 = vadd.f32 %v2866_v5, %v2622_v23  ;;  %8156 = vmatmul.msk.f32.gmra.mxu2 %vm12704_vm1, %v8938_v1  ;;  %8232 = vmatmul.msk.f32.gmra.mxu0 %vm12704_vm1, %v3879_v0  ;;  %v9391_v1 = vpop.f32.mrf.mxu1  ;;  %v3572_v5 = vld [vmem:[%s8697_s27 + $0x4d] sm:$0xff] }
 0x1d3   : > { %8194 = vmatmul.msk.f32.gmra.mxu3 %vm12704_vm1, %v3569_v16  ;;  %v12795_v16 = vld [vmem:[#allocation6_spill] sm:$0xff] }
 0x1d5   : > { %v2249_v27 = vpop.f32.mrf.mxu2 }
 0x1d6   : > { %v2559_v37 = vpop.f32.mrf.mxu3  ;;  %v2313_v44 = vadd.f32 %v2249_v27, %v8913_v52  ;;  %v3573_v27 = vld [vmem:[%s8697_s27 + $0x55] sm:$0xff] }
 0x1d7   : > { %v2872_v40 = vpop.f32.mrf.mxu0 }
 0x1d8   : > { %v2623_v28 = vadd.f32 %v2559_v37, %v2313_v44 }
 0x1da   : > { %v9385_v50 = vadd.f32 %v2869_v24, %v2623_v28  ;;  %8157 = vmatmul.msk.f32.gmra.mxu2 %vm12704_vm1, %v8954_v9  ;;  %8233 = vmatmul.msk.f32.gmra.mxu0 %vm12704_vm1, %v3880_v38  ;;  %v9402_v3 = vpop.f32.mrf.mxu1  ;;  %v12796_v24 = vld [vmem:[#allocation4_spill] sm:$0xff] }
 0x1db   : > { %8195 = vmatmul.msk.f32.gmra.mxu3 %vm12704_vm1, %v3570_v15  ;;  %v3883_v28 = vld [vmem:[%s8697_s27 + $0x56] sm:$0xff] }
 0x1dc   : > { %v12797_v38 = vld [vmem:[#allocation8_spill] sm:$0xff] }
 0x1dd   : > { %v2252_v17 = vpop.f32.mrf.mxu2 }
 0x1de   : > { %v2562_v10 = vpop.f32.mrf.mxu3  ;;  %v2314_v52 = vadd.f32 %v2252_v17, %v8929_v60  ;;  %v12794_v60 = vld [vmem:[#allocation3_spill] sm:$0xff] }
 0x1df   : > { %v2875_v19 = vpop.f32.mrf.mxu0 }
 0x1e0   : > { %v2624_v20 = vadd.f32 %v2562_v10, %v2314_v52  ;;  %v12798_v52 = vld [vmem:[#allocation5_spill] sm:$0xff] }
 0x1e2   : > { %v9396_v4 = vadd.f32 %v2872_v40, %v2624_v20  ;;  %8158 = vmatmul.msk.f32.gmra.mxu2 %vm12704_vm1, %v8970_v22  ;;  %8234 = vmatmul.msk.f32.gmra.mxu0 %vm12704_vm1, %v3881_v54  ;;  %v9415_v37 = vpop.f32.mrf.mxu1  ;;  %v3574_v20 = vld [vmem:[%s8697_s27 + $0x5d] sm:$0xff] }
 0x1e3   : > { %8196 = vmatmul.msk.f32.gmra.mxu3 %vm12704_vm1, %v3571_v36 }
 0x1e5   : > { %v2255_v9 = vpop.f32.mrf.mxu2 }
 0x1e6   : > { %v2565_v26 = vpop.f32.mrf.mxu3  ;;  %v2315_v13 = vadd.f32 %v2255_v9, %v12794_v60  ;;  %v3884_v9 = vld [vmem:[%s8697_s27 + $0x5e] sm:$0xff] }
 0x1e7   : > { %v2878_v49 = vpop.f32.mrf.mxu0 }
 0x1e8   : > { %v2625_v33 = vadd.f32 %v2565_v26, %v2315_v13  ;;  %v12799_v13 = vld [vmem:[#allocation10_spill] sm:$0xff] }
 0x1ea   : > { %v9407_v35 = vadd.f32 %v2875_v19, %v2625_v33  ;;  %8159 = vmatmul.msk.f32.gmra.mxu2 %vm12704_vm1, %v12795_v16  ;;  %8235 = vmatmul.msk.f32.gmra.mxu0 %vm12704_vm1, %v3882_v25  ;;  %v9427_v26 = vpop.f32.mrf.mxu1  ;;  %v3575_v16 = vld [vmem:[%s8697_s27 + $0x65] sm:$0xff] }
 0x1eb   : > { %8197 = vmatmul.msk.f32.gmra.mxu3 %vm12704_vm1, %v3572_v5 }
 0x1ed   : > { %v2258_v22 = vpop.f32.mrf.mxu2 }
 0x1ee   : > { %v2568_v23 = vpop.f32.mrf.mxu3  ;;  %v2316_v0 = vadd.f32 %v2258_v22, %v12796_v24  ;;  %v3885_v24 = vld [vmem:[%s8697_s27 + $0x66] sm:$0xff] }
 0x1ef   : > { %v2881_v15 = vpop.f32.mrf.mxu0 }
 0x1f0   : > { %v2626_v44 = vadd.f32 %v2568_v23, %v2316_v0 }
 0x1f2   : > { %v9418_v40 = vadd.f32 %v2878_v49, %v2626_v44  ;;  %8160 = vmatmul.msk.f32.gmra.mxu2 %vm12704_vm1, %v12797_v38  ;;  %8236 = vmatmul.msk.f32.gmra.mxu0 %vm12704_vm1, %v3883_v28  ;;  %v12800_v49 = vld [vmem:[#allocation7_spill] sm:$0xff]  ;;  %v9444_v44 = vpop.f32.mrf.mxu1  ;;  %v12802_v38 = vld [vmem:[#allocation9_spill] sm:$0xff] }
 0x1f3   : > { %8198 = vmatmul.msk.f32.gmra.mxu3 %vm12704_vm1, %v3573_v27  ;;  %v12801_v27 = vld [vmem:[#allocation12_spill] sm:$0xff] }
 0x1f5   : > { %v2261_v17 = vpop.f32.mrf.mxu2 }
 0x1f6   : > { %v2571_v10 = vpop.f32.mrf.mxu3  ;;  %v2317_v36 = vadd.f32 %v2261_v17, %v12798_v52 }
 0x1f7   : > { %v2884_v54 = vpop.f32.mrf.mxu0 }
 0x1f8   : > { %v2627_v19 = vadd.f32 %v2571_v10, %v2317_v36  ;;  %v3576_v10 = vld [vmem:[%s8697_s27 + $0x6d] sm:$0xff] }
 0x1fa   : > { %v9429_v60 = vadd.f32 %v2881_v15, %v2627_v19  ;;  %8161 = vmatmul.msk.f32.gmra.mxu2 %vm12704_vm1, %v12799_v13  ;;  %8237 = vmatmul.msk.f32.gmra.mxu0 %vm12704_vm1, %v3884_v9 }
 0x1fb   : > { %8199 = vmatmul.msk.f32.gmra.mxu3 %vm12704_vm1, %v3574_v20  ;;  %v3886_v20 = vld [vmem:[%s8697_s27 + $0x6e] sm:$0xff] }
 0x1fd   : > { %v2264_v5 = vpop.f32.mrf.mxu2 }
 0x1fe   : > { %v2574_v33 = vpop.f32.mrf.mxu3  ;;  %v2318_v25 = vadd.f32 %v2264_v5, %v12800_v49  ;;  %v9455_v5 = vpop.f32.mrf.mxu1 }
 0x1ff   : > { %v2887_v23 = vpop.f32.mrf.mxu0 }
 0x200   : > { %v2628_v22 = vadd.f32 %v2574_v33, %v2318_v25  ;;  %v12804_v33 = vld [vmem:[#allocation11_spill] sm:$0xff]  ;;  %v171_v25 = vlaneseq }
 0x202   : > { %v9438_v0 = vadd.f32 %v2884_v54, %v2628_v22  ;;  %8162 = vmatmul.msk.f32.gmra.mxu2 %vm12704_vm1, %v12801_v27  ;;  %8238 = vmatmul.msk.f32.gmra.mxu0 %vm12704_vm1, %v3885_v24  ;;  %v12803_v54 = vld [vmem:[#allocation14_spill] sm:$0xff]  ;;  %v9460_v27 = vshrl.u32 %v171_v25, 7 }
 0x203   : > { %8200 = vmatmul.msk.f32.gmra.mxu3 %vm12704_vm1, %v3575_v16  ;;  %v3577_v16 = vld [vmem:[%s8697_s27 + $0x75] sm:$0xff] }
 0x204   : > { %v9482_v42 = vadd.s32 8, %v9460_v27 }
 0x205   : > { %v2267_v15 = vpop.f32.mrf.mxu2 }
 0x206   : > { %v2577_v28 = vpop.f32.mrf.mxu3  ;;  %v2319_v17 = vadd.f32 %v2267_v15, %v12802_v38  ;;  %v211_v38 = vand.u32 65535, %v9460_v27  ;;  %v9477_v25 = vpop.f32.mrf.mxu1 }
 0x207   : > { %v2890_v36 = vpop.f32.mrf.mxu0 }
 0x208   : > { %v2629_v52 = vadd.f32 %v2577_v28, %v2319_v17  ;;  %v12805_v28 = vld [vmem:[#allocation16_spill] sm:$0xff]  ;;  %v212_v17 = vshrl.u32 %v9460_v27, 16 }
 0x20a   : > { %v9449_v19 = vadd.f32 %v2887_v23, %v2629_v52  ;;  %8163 = vmatmul.msk.f32.gmra.mxu2 %vm12704_vm1, %v12803_v54  ;;  %8239 = vmatmul.msk.f32.gmra.mxu0 %vm12704_vm1, %v3886_v20  ;;  %v3887_v23 = vld [vmem:[%s8697_s27 + $0x76] sm:$0xff] }
 0x20b   : > { %8201 = vmatmul.msk.f32.gmra.mxu3 %vm12704_vm1, %v3576_v10  ;;  %v9470_v10 = vmul.u32 58254, %v211_v38  ;;  %v12806_v54 = vld [vmem:[#allocation13_spill] sm:$0xff] }
 0x20d   : > { %v2270_v9 = vpop.f32.mrf.mxu2 }
 0x20e   : > { %v2580_v13 = vpop.f32.mrf.mxu3  ;;  %v2320_v49 = vadd.f32 %v2270_v9, %v12804_v33  ;;  %v218_v33 = vshll.u32 %v9470_v10, 16 }
 0x20f   : > { %v2893_v24 = vpop.f32.mrf.mxu0 }
 0x210   : > { %v2630_v22 = vadd.f32 %v2580_v13, %v2320_v49  ;;  %v9473_v13 = vmul.u32 14564, %v212_v17  ;;  %v3578_v49 = vld [vmem:[%s8697_s27 + $0x7d] sm:$0xff] }
 0x212   : > { %v9462_v15 = vadd.f32 %v2890_v36, %v2630_v22  ;;  %8164 = vmatmul.msk.f32.gmra.mxu2 %vm12704_vm1, %v12805_v28  ;;  %8240 = vmatmul.msk.f32.gmra.mxu0 %vm12704_vm1, %v3887_v23  ;;  %v214_v36 = vmul.u32 14564, %v211_v38  ;;  %v3888_v28 = vld [vmem:[%s8697_s27 + $0x7e] sm:$0xff]  ;;  %v220_v23 = vshll.u32 %v9473_v13, 16 }
 0x213   : > { %8202 = vmatmul.msk.f32.gmra.mxu3 %vm12704_vm1, %v3577_v16  ;;  %v12807_v38 = vld [vmem:[#allocation18_spill] sm:$0xff] }
 0x214   : > { %vm222_vm2 = vc.u32 %v214_v36, %v218_v33  ;;  %v224_v58 = vadd.s32 %v218_v33, %v214_v36  ;;  %v241_v36 = vshrl.u32 %v9482_v42, 16 }
 0x215   : > { %v2273_v52 = vpop.f32.mrf.mxu2 }
 0x216   : > { %v2583_v20 = vpop.f32.mrf.mxu3  ;;  %v2321_v9 = vadd.f32 %v2273_v52, %v12806_v54  ;;  %v217_v52 = vmul.u32 58254, %v212_v17  ;;  %v12682_v54 = vmov 0   ;;  %vm226_vm3 = vc.u32 %v224_v58, %v220_v23 }
 0x217   : > { %v2896_v22 = vpop.f32.mrf.mxu0  ;;  %v9494_v63 = vmul.u32 14564, %v241_v36  ;;  %v227_v17 = vsel %vm226_vm3, 1, %v12682_v54  ;;  %v246_v21 = vmul.u32 58254, %v241_v36  ;;  %v9501_v23 = vadd.s32 16, %v9460_v27 }
 0x218   : > { %v2631_v16 = vadd.f32 %v2583_v20, %v2321_v9  ;;  %v240_v20 = vand.u32 65535, %v9482_v42  ;;  %v223_v9 = vsel %vm222_vm2, 1, %v12682_v54 }
 0x219   : > { %v249_v58 = vshll.u32 %v9494_v63, 16 }
 0x21a   : > { %v9484_v31 = vadd.f32 %v2893_v24, %v2631_v16  ;;  %8165 = vmatmul.msk.f32.gmra.mxu2 %vm12704_vm1, %v12807_v38  ;;  %8241 = vmatmul.msk.f32.gmra.mxu0 %vm12704_vm1, %v3888_v28  ;;  %v244_v16 = vmul.u32 58254, %v240_v20  ;;  %v243_v38 = vmul.u32 14564, %v240_v20  ;;  %v225_v28 = vadd.s32 %v223_v9, %v217_v52 }
 0x21b   : > { %8203 = vmatmul.msk.f32.gmra.mxu3 %vm12704_vm1, %v3578_v49  ;;  %v3579_v49 = vld [vmem:[%s8697_s27 + $0x85] sm:$0xff]  ;;  %v269_v52 = vand.u32 65535, %v9501_v23  ;;  %v219_v9 = vshrl.u32 %v9470_v10, 16  ;;  %v9524_v10 = vadd.f32 %v9264_v11, %v9281_v45  ;;  %v3890_v11 = vld [vmem:[%s8697_s27 + $0x8e] sm:$0xff]  ;;  %v250_v45 = vshrl.u32 %v9494_v63, 16 }
 0x21c   : > { %v247_v55 = vshll.u32 %v244_v16, 16  ;;  %v229_v36 = vadd.s32 %v227_v17, %v225_v28  ;;  %v9531_v17 = vadd.f32 %v9277_v43, %v9294_v56  ;;  %v9543_v43 = vadd.f32 %v9290_v62, %v9307_v8 }
 0x21d   : > { %v2276_v24 = vpop.f32.mrf.mxu2  ;;  %v9547_v56 = vadd.f32 %v9303_v29, %v9318_v41  ;;  %v9558_v62 = vadd.f32 %v9322_v32, %v9331_v61  ;;  %v9562_v29 = vadd.f32 %v9337_v51, %v9343_v59  ;;  %v9568_v41 = vadd.f32 %v9350_v48, %v9354_v6 }
 0x21e   : > { %v2586_v33 = vpop.f32.mrf.mxu3  ;;  %v2322_v7 = vadd.f32 %v2276_v24, %v12808_v18  ;;  %vm251_vm4 = vc.u32 %v243_v38, %v247_v55  ;;  %v253_v12 = vadd.s32 %v247_v55, %v243_v38  ;;  %v9503_v18 = vpop.f32.mrf.mxu1  ;;  %v12810_v24 = vld [vmem:[#allocation20_spill] sm:$0xff]  ;;  %v9518_v38 = vadd.f32 %v9251_v46, %v9268_v53 }
 0x21f   : > { %v2899_v39 = vpop.f32.mrf.mxu0  ;;  %v3580_v46 = vld [vmem:[%s8697_s27 + $0x8d] sm:$0xff]  ;;  %v221_v53 = vshrl.u32 %v9473_v13, 16  ;;  %v9576_v32 = vadd.f32 %v9378_v57, %v9374_v2 }
 0x220   : > { %v2632_v47 = vadd.f32 %v2586_v33, %v2322_v7  ;;  %v252_v7 = vsel %vm251_vm4, 1, %v12682_v54  ;;  %vm255_vm5 = vc.u32 %v253_v12, %v249_v58  ;;  %v248_v33 = vshrl.u32 %v244_v16, 16  ;;  %v12811_v12 = vld [vmem:[#allocation17_spill] sm:$0xff] }
 0x221   : > { %v254_v55 = vadd.s32 %v252_v7, %v246_v21  ;;  %v272_v16 = vmul.u32 14564, %v269_v52  ;;  %v230_v58 = vadd.s32 %v229_v36, %v219_v9 }
 0x222   : > { %v9505_v20 = vadd.f32 %v2896_v22, %v2632_v47  ;;  %8166 = vmatmul.msk.f32.gmra.mxu2 %vm12704_vm1, %v12810_v24  ;;  %8242 = vmatmul.msk.f32.gmra.mxu0 %vm12704_vm1, %v3889_v30  ;;  %v256_v47 = vsel %vm255_vm5, 1, %v12682_v54  ;;  %v270_v22 = vshrl.u32 %v9501_v23, 16  ;;  %v9520_v30 = vmul.u32 58254, %v269_v52 }
 0x223   : > { %8204 = vmatmul.msk.f32.gmra.mxu3 %vm12704_vm1, %v3579_v49  ;;  %v9539_v52 = vadd.s32 24, %v9460_v27 }
 0x224   : > { %12809 = vst [vmem:[#allocation3_spill] sm:$0xff] %v9505_v20  ;;  %v258_v20 = vadd.s32 %v256_v47, %v254_v55  ;;  %v9527_v28 = vmul.u32 14564, %v270_v22  ;;  %v276_v7 = vshll.u32 %v9520_v30, 16  ;;  %v275_v13 = vmul.u32 58254, %v270_v22 }
 0x225   : > { %v2279_v49 = vpop.f32.mrf.mxu2  ;;  %v299_v48 = vshrl.u32 %v9539_v52, 16 }
 0x226   : > { %v2589_v24 = vpop.f32.mrf.mxu3  ;;  %v2323_v21 = vadd.f32 %v2279_v49, %v12811_v12  ;;  %v259_v49 = vadd.s32 %v258_v20, %v248_v33  ;;  %v278_v9 = vshll.u32 %v9527_v28, 16  ;;  %vm280_vm6 = vc.u32 %v272_v16, %v276_v7  ;;  %v9578_v61 = vpop.f32.mrf.mxu1 }
 0x227   : > { %v2902_v47 = vpop.f32.mrf.mxu0  ;;  %v282_v63 = vadd.s32 %v276_v7, %v272_v16  ;;  %v298_v20 = vand.u32 65535, %v9539_v52  ;;  %v281_v8 = vsel %vm280_vm6, 1, %v12682_v54  ;;  %v9572_v33 = vadd.f32 %v9362_v34, %v9365_v14  ;;  %v12812_v34 = vld [vmem:[#allocation19_spill] sm:$0xff] }
 0x228   : > { %v2633_v55 = vadd.f32 %v2589_v24, %v2323_v21  ;;  %v8627_v24 = vld [vmem:[%s8697_s27 + $0x8c] sm:$0xff]  ;;  %v260_v51 = vadd.s32 %v259_v49, %v250_v45  ;;  %v283_v12 = vadd.s32 %v281_v8, %v275_v13  ;;  %v9583_v21 = vadd.f32 %v9391_v1, %v9385_v50  ;;  %v3891_v45 = vld [vmem:[%s8697_s27 + $0x96] sm:$0xff] }
 0x229   : > { %vm284_vm7 = vc.u32 %v282_v63, %v278_v9  ;;  %v302_v6 = vmul.u32 58254, %v298_v20  ;;  %v301_v57 = vmul.u32 14564, %v298_v20  ;;  %v9589_v16 = vadd.f32 %v9402_v3, %v9396_v4  ;;  %v8628_v63 = vld [vmem:[%s8697_s27 + $0x94] sm:$0xff] }
 0x22a   : > { %v9550_v36 = vadd.f32 %v2899_v39, %v2633_v55  ;;  %8167 = vmatmul.msk.f32.gmra.mxu2 %vm12704_vm1, %v8627_v24  ;;  %8243 = vmatmul.msk.f32.gmra.mxu0 %vm12704_vm1, %v3890_v11  ;;  %v231_v39 = vadd.s32 %v230_v58, %v221_v53  ;;  %v285_v2 = vsel %vm284_vm7, 1, %v12682_v54  ;;  %v9592_v58 = vmul.u32 14564, %v299_v48 }
 0x22b   : > { %8205 = vmatmul.msk.f32.gmra.mxu3 %vm12704_vm1, %v3580_v46  ;;  %v3581_v46 = vld [vmem:[%s8697_s27 + $0x95] sm:$0xff]  ;;  %v305_v7 = vshll.u32 %v302_v6, 16  ;;  %v261_v50 = vshrl.u32 %v260_v51, 4  ;;  %v304_v1 = vmul.u32 58254, %v299_v48  ;;  %v9596_v49 = vadd.s32 32, %v9460_v27 }
 0x22c   : > { %v232_v53 = vshrl.u32 %v231_v39, 4  ;;  %v9600_v13 = vadd.f32 %v9415_v37, %v9407_v35  ;;  %v9604_v4 = vadd.f32 %v9427_v26, %v9418_v40  ;;  %v277_v3 = vshrl.u32 %v9520_v30, 16  ;;  %v12813_v48 = vld [vmem:[#allocation21_spill] sm:$0xff] }
 0x22d   : > { %v2282_v59 = vpop.f32.mrf.mxu2  ;;  %v287_v9 = vadd.s32 %v285_v2, %v283_v12  ;;  %v307_v20 = vshll.u32 %v9592_v58, 16  ;;  %vm309_vm8 = vc.u32 %v301_v57, %v305_v7  ;;  %v311_v39 = vadd.s32 %v305_v7, %v301_v57 }
 0x22e   : > { %v2592_v22 = vpop.f32.mrf.mxu3  ;;  %v2324_v14 = vadd.f32 %v2282_v59, %v12812_v34  ;;  %v9615_v35 = vadd.f32 %v9444_v44, %v9429_v60  ;;  %v233_v37 = vmul.u32 18, %v232_v53  ;;  %v310_v40 = vsel %vm309_vm8, 1, %v12682_v54 }
 0x22f   : > { %v2905_v11 = vpop.f32.mrf.mxu0  ;;  %v327_v26 = vand.u32 65535, %v9596_v49  ;;  %v9622_v30 = vadd.f32 %v9455_v5, %v9438_v0  ;;  %v279_v8 = vshrl.u32 %v9527_v28, 16  ;;  %v312_v51 = vadd.s32 %v310_v40, %v304_v1  ;;  %v9628_v0 = vpop.f32.mrf.mxu1  ;;  %v3582_v5 = vld [vmem:[%s8697_s27 + $0x9d] sm:$0xff] }
 0x230   : > { %v2634_v55 = vadd.f32 %v2592_v22, %v2324_v14  ;;  %v306_v60 = vshrl.u32 %v302_v6, 16  ;;  %vm313_vm9 = vc.u32 %v311_v39, %v307_v20  ;;  %v328_v44 = vshrl.u32 %v9596_v49, 16 }
 0x231   : > { %v331_v12 = vmul.u32 58254, %v327_v26  ;;  %v288_v14 = vadd.s32 %v287_v9, %v277_v3  ;;  %v314_v2 = vsel %vm313_vm9, 1, %v12682_v54  ;;  %v330_v57 = vmul.u32 14564, %v327_v26 }
 0x232   : > { %v9607_v24 = vadd.f32 %v2902_v47, %v2634_v55  ;;  %8168 = vmatmul.msk.f32.gmra.mxu2 %vm12704_vm1, %v8628_v63  ;;  %8244 = vmatmul.msk.f32.gmra.mxu0 %vm12704_vm1, %v3891_v45  ;;  %v262_v47 = vmul.u32 18, %v261_v50  ;;  %v9632_v28 = vsub.s32 %v9460_v27, %v233_v37  ;;  %v9634_v6 = vmul.u32 14564, %v328_v44  ;;  %v3892_v45 = vld [vmem:[%s8697_s27 + $0x9e] sm:$0xff] }
 0x233   : > { %8206 = vmatmul.msk.f32.gmra.mxu3 %vm12704_vm1, %v3581_v46  ;;  %v316_v46 = vadd.s32 %v314_v2, %v312_v51  ;;  %v334_v53 = vshll.u32 %v331_v12, 16  ;;  %v308_v50 = vshrl.u32 %v9592_v58, 16  ;;  %v333_v1 = vmul.u32 58254, %v328_v44  ;;  %v8629_v37 = vld [vmem:[%s8697_s27 + $0x9c] sm:$0xff] }
 0x234   : > { %v9639_v3 = vadd.s32 40, %v9460_v27  ;;  %v9642_v9 = vsub.s32 %v9482_v42, %v262_v47  ;;  %v336_v20 = vshll.u32 %v9634_v6, 16  ;;  %v289_v40 = vadd.s32 %v288_v14, %v279_v8  ;;  %v12814_v44 = vld [vmem:[#allocation22_spill] sm:$0xff] }
 0x235   : > { %v2285_v59 = vpop.f32.mrf.mxu2  ;;  %v317_v63 = vadd.s32 %v316_v46, %v306_v60  ;;  %vm338_vm10 = vc.u32 %v330_v57, %v334_v53  ;;  %v340_v26 = vadd.s32 %v334_v53, %v330_v57  ;;  %v9653_v51 = vadd.f32 %v9477_v25, %v9449_v19 }
 0x236   : > { %v2595_v22 = vpop.f32.mrf.mxu3  ;;  %v2325_v34 = vadd.f32 %v2285_v59, %v12813_v48  ;;  %v339_v58 = vsel %vm338_vm10, 1, %v12682_v54  ;;  %vm1252_vm11 = vcmp.ne.s32.totalorder %v9632_v28, 0  ;;  %vm1288_vm12 = vcmp.lt.s32.totalorder %v9632_v28, 0 }
 0x237   : > { %v2908_v55 = vpop.f32.mrf.mxu0  ;;  %v356_v42 = vand.u32 65535, %v9639_v3  ;;  %v335_v47 = vshrl.u32 %v331_v12, 16  ;;  %v341_v59 = vadd.s32 %v339_v58, %v333_v1  ;;  %vm342_vm13 = vc.u32 %v340_v26, %v336_v20  ;;  %v3583_v12 = vld [vmem:[%s8697_s27 + $0xa5] sm:$0xff]  ;;  %vm9679_vm2 = vmand %vm1288_vm12, %vm1252_vm11  ;;  %v3209_v20 = vpop.f32.mrf.mxu1 }
 0x238   : > { %v2635_v7 = vadd.f32 %v2595_v22, %v2325_v34  ;;  %v1360_v60 = vadd.s32 18, %v9632_v28  ;;  %vm1253_vm14 = vcmp.ne.s32.totalorder %v9642_v9, 0  ;;  %v343_v19 = vsel %vm342_vm13, 1, %v12682_v54 }
 0x239   : > { %v357_v25 = vshrl.u32 %v9639_v3, 16  ;;  %v290_v34 = vshrl.u32 %v289_v40, 4  ;;  %v337_v14 = vshrl.u32 %v9634_v6, 16  ;;  %v345_v2 = vadd.s32 %v343_v19, %v341_v59 }
 0x23a   : > { %v9645_v39 = vadd.f32 %v2905_v11, %v2635_v7  ;;  %8169 = vmatmul.msk.f32.gmra.mxu2 %vm12704_vm1, %v8629_v37  ;;  %8245 = vmatmul.msk.f32.gmra.mxu0 %vm12704_vm1, %v3892_v45  ;;  %v318_v11 = vadd.s32 %v317_v63, %v308_v50  ;;  %vm1289_vm15 = vcmp.lt.s32.totalorder %v9642_v9, 0  ;;  %v359_v57 = vmul.u32 14564, %v356_v42  ;;  %v3893_v50 = vld [vmem:[%s8697_s27 + $0xa6] sm:$0xff] }
 0x23b   : > { %8207 = vmatmul.msk.f32.gmra.mxu3 %vm12704_vm1, %v3582_v5  ;;  %v9667_v5 = vmul.u32 58254, %v356_v42  ;;  %v9669_v46 = vmul.u32 14564, %v357_v25  ;;  %v9673_v53 = vadd.f32 %v9503_v18, %v9462_v15  ;;  %v346_v63 = vadd.s32 %v345_v2, %v335_v47  ;;  %v8630_v42 = vld [vmem:[%s8697_s27 + $0xa4] sm:$0xff]  ;;  %vm9702_vm3 = vmand %vm1289_vm15, %vm1253_vm14 }
 0x23c   : > { %v319_v1 = vshrl.u32 %v318_v11, 4  ;;  %v1361_v37 = vadd.s32 18, %v9642_v9  ;;  %v362_v40 = vmul.u32 58254, %v357_v25  ;;  %v9687_v18 = vadd.s32 48, %v9460_v27  ;;  %v12821_v2 = vld [vmem:[#allocation23_spill] sm:$0xff] }
 0x23d   : > { %v2288_v8 = vpop.f32.mrf.mxu2  ;;  %v363_v15 = vshll.u32 %v9667_v5, 16  ;;  %v9691_v58 = vadd.f32 %v9578_v61, %v9484_v31  ;;  %v291_v47 = vmul.u32 18, %v290_v34  ;;  %v347_v59 = vadd.s32 %v346_v63, %v337_v14  ;;  %v3584_v63 = vld [vmem:[%s8697_s27 + $0xad] sm:$0xff] }
 0x23e   : > { %v2598_v22 = vpop.f32.mrf.mxu3  ;;  %v2326_v48 = vadd.f32 %v2288_v8, %v12814_v44  ;;  %v12820_v8 = vld [vmem:[#allocation3_spill] sm:$0xff]  ;;  %v1396_v61 = vsel %vm9679_vm2, %v1360_v60, %v9632_v28  ;;  %v320_v19 = vmul.u32 18, %v319_v1  ;;  %v1397_v28 = vsel %vm9702_vm3, %v1361_v37, %v9642_v9 }
 0x23f   : > { %v4043_v45 = vpop.f32.mrf.mxu0  ;;  %v9708_v31 = vadd.f32 %v9628_v0, %v12820_v8  ;;  %vm367_vm4 = vc.u32 %v359_v57, %v363_v15  ;;  %v348_v25 = vshrl.u32 %v347_v59, 4  ;;  %v369_v60 = vadd.s32 %v363_v15, %v359_v57  ;;  %v3274_v1 = vld [vmem:[%s8697_s27 + $0xac] sm:$0xff] }
 0x240   : > { %v2636_v7 = vadd.f32 %v2598_v22, %v2326_v48  ;;  %v9716_v22 = vadd.f32 %v3209_v20, %v9550_v36  ;;  %v368_v44 = vsel %vm367_vm4, 1, %v12682_v54  ;;  %v385_v14 = vand.u32 65535, %v9687_v18  ;;  %v3894_v15 = vld [vmem:[%s8697_s27 + $0xae] sm:$0xff] }
 0x241   : > { %v370_v34 = vadd.s32 %v368_v44, %v362_v40  ;;  %vm9724_vm5 = vcmp.lt.s32.totalorder %v1396_v61, 16  ;;  %v12822_v36 = vmov 0  ;;  %v349_v6 = vmul.u32 18, %v348_v25 }
 0x242   : > { %v9693_v26 = vadd.f32 %v2908_v55, %v2636_v7  ;;  %8170 = vmatmul.msk.f32.gmra.mxu2 %vm12704_vm1, %v8630_v42  ;;  %8246 = vmatmul.msk.f32.gmra.mxu0 %vm12704_vm1, %v3893_v50  ;;  %v365_v55 = vshll.u32 %v9669_v46, 16  ;;  %v12823_v36 = vsel %vm9724_vm5, 4294967295, %v12822_v36  ;;  %v9729_v7 = vsub.s32 %v9501_v23, %v291_v47 }
 0x243   : > { %8208 = vmatmul.msk.f32.gmra.mxu3 %vm12704_vm1, %v3583_v12  ;;  %12824 = vst [vmem:[#allocation4_spill] sm:$0xff] %v12823_v36  ;;  %v364_v50 = vshrl.u32 %v9667_v5, 16  ;;  %v386_v9 = vshrl.u32 %v9687_v18, 16  ;;  %v388_v57 = vmul.u32 14564, %v385_v14  ;;  %v389_v20 = vmul.u32 58254, %v385_v14 }
 0x244   : > { %12817 = vst [vmem:[#allocation6_spill] sm:$0xff] %v9693_v26  ;;  %vm371_vm6 = vc.u32 %v369_v60, %v365_v55  ;;  %v9737_v42 = vsub.s32 %v9539_v52, %v320_v19  ;;  %v366_v11 = vshrl.u32 %v9669_v46, 16  ;;  %v9742_v47 = vsub.s32 %v9596_v49, %v349_v6  ;;  %v12828_v60 = vld [vmem:[#allocation24_spill] sm:$0xff] }
 0x245   : > { %v3423_v0 = vpop.f32.mrf.mxu2  ;;  %v372_v23 = vsel %vm371_vm6, 1, %v12682_v54  ;;  %v390_v59 = vmul.u32 14564, %v386_v9  ;;  %v392_v8 = vshll.u32 %v389_v20, 16  ;;  %vm9746_vm7 = vcmp.lt.s32.totalorder %v1397_v28, 16  ;;  %v3585_v6 = vld [vmem:[%s8697_s27 + $0xb5] sm:$0xff] }
 0x246   : > { %v3733_v48 = vpop.f32.mrf.mxu3  ;;  %v3531_v12 = vadd.f32 %v3423_v0, %v12821_v2  ;;  %v374_v5 = vadd.s32 %v372_v23, %v370_v34  ;;  %v12825_v55 = vmov 0  ;;  %v391_v52 = vmul.u32 58254, %v386_v9 }
 0x247   : > { %v4046_v40 = vpop.f32.mrf.mxu0  ;;  %v12826_v55 = vsel %vm9746_vm7, 4294967295, %v12825_v55  ;;  %v9751_v46 = vadd.s32 56, %v9460_v27  ;;  %v394_v19 = vshll.u32 %v390_v59, 16  ;;  %vm396_vm8 = vc.u32 %v388_v57, %v392_v8 }
 0x248   : > { %v3841_v37 = vadd.f32 %v3733_v48, %v3531_v12  ;;  %12827 = vst [vmem:[#allocation8_spill] sm:$0xff] %v12826_v55  ;;  %v375_v49 = vadd.s32 %v374_v5, %v364_v50  ;;  %v398_v25 = vadd.s32 %v392_v8, %v388_v57  ;;  %vm1254_vm9 = vcmp.ne.s32.totalorder %v9729_v7, 0  ;;  %v3275_v12 = vld [vmem:[%s8697_s27 + $0xb4] sm:$0xff]  ;;  %v3212_v57 = vpop.f32.mrf.mxu1 }
 0x249   : > { %vm1290_vm10 = vcmp.lt.s32.totalorder %v9729_v7, 0  ;;  %v397_v44 = vsel %vm396_vm8, 1, %v12682_v54  ;;  %vm1255_vm11 = vcmp.ne.s32.totalorder %v9737_v42, 0  ;;  %vm1291_vm12 = vcmp.lt.s32.totalorder %v9737_v42, 0 }
 0x24a   : > { %v4151_v61 = vadd.f32 %v4043_v45, %v3841_v37  ;;  %8171 = vmatmul.msk.f32.gmra.mxu2 %vm12704_vm1, %v3274_v1  ;;  %8247 = vmatmul.msk.f32.gmra.mxu0 %vm12704_vm1, %v3894_v15  ;;  %v1362_v45 = vadd.s32 18, %v9729_v7  ;;  %vm1256_vm13 = vcmp.ne.s32.totalorder %v9742_v47, 0  ;;  %v376_v28 = vadd.s32 %v375_v49, %v366_v11  ;;  %vm9768_vm15 = vmand %vm1290_vm10, %vm1254_vm9  ;;  %v3895_v15 = vld [vmem:[%s8697_s27 + $0xb6] sm:$0xff] }
 0x24b   : > { %8209 = vmatmul.msk.f32.gmra.mxu3 %vm12704_vm1, %v3584_v63  ;;  %v393_v14 = vshrl.u32 %v389_v20, 16  ;;  %v399_v2 = vadd.s32 %v397_v44, %v391_v52  ;;  %vm400_vm14 = vc.u32 %v398_v25, %v394_v19  ;;  %vm1292_vm2 = vcmp.lt.s32.totalorder %v9742_v47, 0  ;;  %vm9785_vm3 = vmand %vm1291_vm12, %vm1255_vm11  ;;  %v3896_v44 = vld [vmem:[%s8697_s27 + $0xbe] sm:$0xff] }
 0x24c   : > { %v395_v1 = vshrl.u32 %v390_v59, 16  ;;  %v401_v63 = vsel %vm400_vm14, 1, %v12682_v54  ;;  %v414_v9 = vand.u32 65535, %v9751_v46  ;;  %v377_v11 = vshrl.u32 %v376_v28, 4  ;;  %vm9804_vm4 = vmand %vm1292_vm2, %vm1256_vm13  ;;  %v3276_v59 = vld [vmem:[%s8697_s27 + $0xbc] sm:$0xff] }
 0x24d   : > { %v3426_v0 = vpop.f32.mrf.mxu2  ;;  %v403_v23 = vadd.s32 %v401_v63, %v399_v2  ;;  %v415_v5 = vshrl.u32 %v9751_v46, 16  ;;  %v9779_v8 = vsel %vm9724_vm5, %v4151_v61, 0.0  ;;  %v1363_v52 = vadd.s32 18, %v9737_v42 }
 0x24e   : > { %v3736_v48 = vpop.f32.mrf.mxu3  ;;  %v3532_v34 = vadd.f32 %v3426_v0, %v12828_v60  ;;  %12831 = vst [vmem:[#allocation5_spill] sm:$0xff] %v9779_v8  ;;  %v9791_v49 = vadd.s32 18, %v9742_v47  ;;  %v9793_v19 = vmul.u32 58254, %v414_v9  ;;  %v1398_v61 = vsel %vm9768_vm15, %v1362_v45, %v9729_v7 }
 0x24f   : > { %v4049_v37 = vpop.f32.mrf.mxu0  ;;  %v404_v0 = vadd.s32 %v403_v23, %v393_v14  ;;  %v417_v28 = vmul.u32 14564, %v414_v9  ;;  %v9816_v7 = vadd.s32 64, %v9460_v27  ;;  %v4373_v45 = vmul.f32 %v9779_v8, %v9779_v8 }
 0x250   : > { %v3842_v20 = vadd.f32 %v3736_v48, %v3532_v34  ;;  %v9808_v48 = vmul.u32 14564, %v415_v5  ;;  %v421_v60 = vshll.u32 %v9793_v19, 16  ;;  %v378_v14 = vmul.u32 18, %v377_v11 }
 0x251   : > { %vm9824_vm6 = vcmp.lt.s32.totalorder %v1398_v61, 16  ;;  %v1399_v50 = vsel %vm9785_vm3, %v1363_v52, %v9737_v42  ;;  %v1400_v63 = vsel %vm9804_vm4, %v9791_v49, %v9742_v47  ;;  %v420_v11 = vmul.u32 58254, %v415_v5  ;;  %v3586_v42 = vld [vmem:[%s8697_s27 + $0xbd] sm:$0xff] }
 0x252   : > { %v4152_v25 = vadd.f32 %v4046_v40, %v3842_v20  ;;  %8172 = vmatmul.msk.f32.gmra.mxu2 %vm12704_vm1, %v3275_v12  ;;  %v9811_v40 = vadd.f32 %v3212_v57, %v9607_v24  ;;  %8248 = vmatmul.msk.f32.gmra.mxu0 %vm12704_vm1, %v3895_v15  ;;  %v405_v24 = vadd.s32 %v404_v0, %v395_v1  ;;  %v423_v9 = vshll.u32 %v9808_v48, 16  ;;  %v12840_v57 = vld [vmem:[#allocation25_spill] sm:$0xff] }
 0x253   : > { %8210 = vmatmul.msk.f32.gmra.mxu3 %vm12704_vm1, %v3585_v6  ;;  %v12837_v6 = vmov 0  ;;  %v4295_v1 = vsel %vm12704_vm1, %v9779_v8, 0.0  ;;  %vm425_vm8 = vc.u32 %v417_v28, %v421_v60  ;;  %v427_v52 = vadd.s32 %v421_v60, %v417_v28 }
 0x254   : > { %v9822_v34 = vsel %vm9746_vm7, %v4152_v25, 0.0  ;;  %v12838_v6 = vsel %vm9824_vm6, 4294967295, %v12837_v6  ;;  %v406_v15 = vshrl.u32 %v405_v24, 4  ;;  %v443_v25 = vand.u32 65535, %v9816_v7 }
 0x255   : > { %12836 = vst [vmem:[#allocation10_spill] sm:$0xff] %v9822_v34  ;;  %v3429_v2 = vpop.f32.mrf.mxu2  ;;  %v4374_v23 = vmul.f32 %v9822_v34, %v9822_v34  ;;  %v4409_v47 = vsel %vm12704_vm1, %v4373_v45, 0.0  ;;  %v9847_v0 = vsub.s32 %v9639_v3, %v378_v14  ;;  %v4296_v5 = vsel %vm12704_vm1, %v9822_v34, 0.0  ;;  %v3899_v34 = vld [vmem:[%s8697_s27 + $0xd6] sm:$0xff] }
 0x256   : > { %v3739_v12 = vpop.f32.mrf.mxu3  ;;  %12839 = vst [vmem:[#allocation7_spill] sm:$0xff] %v12838_v6  ;;  %v3533_v20 = vadd.f32 %v3429_v2, %v12840_v57  ;;  %v407_v2 = vmul.u32 18, %v406_v15  ;;  %v426_v24 = vsel %vm425_vm8, 1, %v12682_v54  ;;  %vm429_vm9 = vc.u32 %v427_v52, %v423_v9 }
 0x257   : > { %v4052_v61 = vpop.f32.mrf.mxu0  ;;  %v444_v57 = vshrl.u32 %v9816_v7, 16  ;;  %vm9855_vm10 = vcmp.lt.s32.totalorder %v1399_v50, 16  ;;  %v12841_v60 = vmov 0  ;;  %v422_v3 = vshrl.u32 %v9793_v19, 16 }
 0x258   : > { %v3843_v49 = vadd.f32 %v3739_v12, %v3533_v20  ;;  %v12842_v60 = vsel %vm9855_vm10, 4294967295, %v12841_v60  ;;  %v428_v45 = vadd.s32 %v426_v24, %v420_v11  ;;  %v430_v14 = vsel %vm429_vm9, 1, %v12682_v54 }
 0x259   : > { %12843 = vst [vmem:[#allocation12_spill] sm:$0xff] %v12842_v60  ;;  %v4410_v12 = vsel %vm12704_vm1, %v4374_v23, 0.0  ;;  %v9864_v9 = vsub.s32 %v9687_v18, %v407_v2  ;;  %v9868_v20 = vmul.u32 14564, %v444_v57  ;;  %v4297_v50 = vadd.f32 %v4296_v5, %v4295_v1  ;;  %v3277_v5 = vld [vmem:[%s8697_s27 + $0xc4] sm:$0xff] }
 0x25a   : > { %v4153_v28 = vadd.f32 %v4049_v37, %v3843_v49  ;;  %8173 = vmatmul.msk.f32.gmra.mxu2 %vm12704_vm1, %v3276_v59  ;;  %8249 = vmatmul.msk.f32.gmra.mxu0 %vm12704_vm1, %v3896_v44  ;;  %v9866_v37 = vmul.u32 58254, %v443_v25  ;;  %vm1257_vm11 = vcmp.ne.s32.totalorder %v9847_v0, 0  ;;  %vm1293_vm12 = vcmp.lt.s32.totalorder %v9847_v0, 0  ;;  %v12845_v49 = vld [vmem:[#allocation26_spill] sm:$0xff] }
 0x25b   : > { %8211 = vmatmul.msk.f32.gmra.mxu3 %vm12704_vm1, %v3586_v42  ;;  %v446_v19 = vmul.u32 14564, %v443_v25  ;;  %v424_v18 = vshrl.u32 %v9808_v48, 16  ;;  %v432_v59 = vadd.s32 %v430_v14, %v428_v45  ;;  %v4411_v52 = vadd.f32 %v4410_v12, %v4409_v47  ;;  %v3587_v25 = vld [vmem:[%s8697_s27 + $0xc5] sm:$0xff]  ;;  %vm9899_vm3 = vmand %vm1293_vm12, %vm1257_vm11 }
 0x25c   : > { %v9874_v15 = vsel %vm9824_vm6, %v4153_v28, 0.0  ;;  %v450_v42 = vshll.u32 %v9866_v37, 16  ;;  %v1365_v44 = vadd.s32 18, %v9847_v0  ;;  %v449_v2 = vmul.u32 58254, %v444_v57  ;;  %v3897_v47 = vld [vmem:[%s8697_s27 + $0xc6] sm:$0xff] }
 0x25d   : > { %12844 = vst [vmem:[#allocation9_spill] sm:$0xff] %v9874_v15  ;;  %v3432_v11 = vpop.f32.mrf.mxu2  ;;  %vm1258_vm13 = vcmp.ne.s32.totalorder %v9864_v9, 0  ;;  %vm1294_vm14 = vcmp.lt.s32.totalorder %v9864_v9, 0  ;;  %v433_v24 = vadd.s32 %v432_v59, %v422_v3  ;;  %v452_v28 = vshll.u32 %v9868_v20, 16 }
 0x25e   : > { %v3742_v23 = vpop.f32.mrf.mxu3  ;;  %v3534_v1 = vadd.f32 %v3432_v11, %v12845_v49  ;;  %v4375_v48 = vmul.f32 %v9874_v15, %v9874_v15  ;;  %v9889_v12 = vadd.s32 18, %v9864_v9  ;;  %vm454_vm15 = vc.u32 %v446_v19, %v450_v42  ;;  %vm9917_vm4 = vmand %vm1294_vm14, %vm1258_vm13 }
 0x25f   : > { %v4055_v14 = vpop.f32.mrf.mxu0  ;;  %vm9891_vm2 = vcmp.lt.s32.totalorder %v1400_v63, 16  ;;  %v12846_v57 = vmov 0  ;;  %v434_v11 = vadd.s32 %v433_v24, %v424_v18  ;;  %v456_v59 = vadd.s32 %v450_v42, %v446_v19 }
 0x260   : > { %v3844_v45 = vadd.f32 %v3742_v23, %v3534_v1  ;;  %v12847_v57 = vsel %vm9891_vm2, 4294967295, %v12846_v57  ;;  %v455_v23 = vsel %vm454_vm15, 1, %v12682_v54  ;;  %v9905_v49 = vadd.s32 72, %v9460_v27 }
 0x261   : > { %12848 = vst [vmem:[#allocation14_spill] sm:$0xff] %v12847_v57  ;;  %v4298_v63 = vsel %vm12704_vm1, %v9874_v15, 0.0  ;;  %v451_v6 = vshrl.u32 %v9866_v37, 16  ;;  %v457_v36 = vadd.s32 %v455_v23, %v449_v2  ;;  %v435_v18 = vshrl.u32 %v434_v11, 4 }
 0x262   : > { %v4154_v1 = vadd.f32 %v4052_v61, %v3844_v45  ;;  %8174 = vmatmul.msk.f32.gmra.mxu2 %vm12704_vm1, %v3277_v5  ;;  %8250 = vmatmul.msk.f32.gmra.mxu0 %vm12704_vm1, %v3897_v47  ;;  %vm458_vm8 = vc.u32 %v456_v59, %v452_v28  ;;  %v472_v61 = vand.u32 65535, %v9905_v49  ;;  %v473_v42 = vshrl.u32 %v9905_v49, 16  ;;  %v12854_v59 = vld [vmem:[#allocation27_spill] sm:$0xff] }
 0x263   : > { %8212 = vmatmul.msk.f32.gmra.mxu3 %vm12704_vm1, %v3587_v25  ;;  %v4412_v37 = vsel %vm12704_vm1, %v4375_v48, 0.0  ;;  %v1401_v2 = vsel %vm9899_vm3, %v1365_v44, %v9847_v0  ;;  %v453_v5 = vshrl.u32 %v9868_v20, 16  ;;  %v459_v25 = vsel %vm458_vm8, 1, %v12682_v54  ;;  %v3278_v44 = vld [vmem:[%s8697_s27 + $0xcc] sm:$0xff] }
 0x264   : > { %v9931_v24 = vsel %vm9855_vm10, %v4154_v1, 0.0  ;;  %v436_v47 = vmul.u32 18, %v435_v18  ;;  %v461_v11 = vadd.s32 %v459_v25, %v457_v36  ;;  %v9934_v23 = vadd.s32 80, %v9460_v27  ;;  %v3588_v1 = vld [vmem:[%s8697_s27 + $0xcd] sm:$0xff] }
 0x265   : > { %12853 = vst [vmem:[#allocation11_spill] sm:$0xff] %v9931_v24  ;;  %v3435_v28 = vpop.f32.mrf.mxu2  ;;  %v4299_v48 = vadd.f32 %v4298_v63, %v4297_v50  ;;  %v1402_v0 = vsel %vm9917_vm4, %v9889_v12, %v9864_v9  ;;  %v9941_v20 = vmul.u32 58254, %v472_v61  ;;  %v475_v18 = vmul.u32 14564, %v472_v61 }
 0x266   : > { %v3745_v45 = vpop.f32.mrf.mxu3  ;;  %v3535_v3 = vadd.f32 %v3435_v28, %v12854_v59  ;;  %v9946_v54 = vsub.s32 %v9751_v46, %v436_v47  ;;  %v462_v36 = vadd.s32 %v461_v11, %v451_v6  ;;  %v9948_v25 = vmul.u32 14564, %v473_v42  ;;  %v3898_v59 = vld [vmem:[%s8697_s27 + $0xce] sm:$0xff] }
 0x267   : > { %v4413_v60 = vadd.f32 %v4412_v37, %v4411_v52  ;;  %v4376_v50 = vmul.f32 %v9931_v24, %v9931_v24  ;;  %v4058_v28 = vpop.f32.mrf.mxu0  ;;  %v479_v9 = vshll.u32 %v9941_v20, 16  ;;  %vm9954_vm9 = vcmp.lt.s32.totalorder %v1401_v2, 16 }
 0x268   : > { %v3845_v63 = vadd.f32 %v3745_v45, %v3535_v3  ;;  %v12855_v12 = vmov 0  ;;  %v463_v19 = vadd.s32 %v462_v36, %v453_v5  ;;  %v478_v46 = vmul.u32 58254, %v473_v42 }
 0x269   : > { %v12856_v12 = vsel %vm9954_vm9, 4294967295, %v12855_v12  ;;  %v501_v6 = vand.u32 65535, %v9934_v23  ;;  %v502_v61 = vshrl.u32 %v9934_v23, 16  ;;  %v4300_v52 = vsel %vm12704_vm1, %v9931_v24, 0.0 }
 0x26a   : > { %12857 = vst [vmem:[#allocation16_spill] sm:$0xff] %v12856_v12  ;;  %v4155_v37 = vadd.f32 %v4055_v14, %v3845_v63  ;;  %8175 = vmatmul.msk.f32.gmra.mxu2 %vm12704_vm1, %v3278_v44  ;;  %vm1259_vm11 = vcmp.ne.s32.totalorder %v9946_v54, 0  ;;  %v481_v2 = vshll.u32 %v9948_v25, 16  ;;  %8251 = vmatmul.msk.f32.gmra.mxu0 %vm12704_vm1, %v3898_v59  ;;  %vm1295_vm12 = vcmp.lt.s32.totalorder %v9946_v54, 0 }
 0x26b   : > { %8213 = vmatmul.msk.f32.gmra.mxu3 %vm12704_vm1, %v3588_v1  ;;  %v464_v42 = vshrl.u32 %v463_v19, 4  ;;  %vm483_vm13 = vc.u32 %v475_v18, %v479_v9  ;;  %v485_v5 = vadd.s32 %v479_v9, %v475_v18  ;;  %v4414_v45 = vsel %vm12704_vm1, %v4376_v50, 0.0  ;;  %v12860_v9 = vld [vmem:[#allocation28_spill] sm:$0xff]  ;;  %vm9985_vm14 = vmand %vm1295_vm12, %vm1259_vm11 }
 0x26c   : > { %v9971_v14 = vsel %vm9891_vm2, %v4155_v37, 0.0  ;;  %v9974_v47 = vadd.s32 18, %v9946_v54  ;;  %v12859_v11 = vmov 0   ;;  %v480_v63 = vshrl.u32 %v9941_v20, 16 }
 0x26d   : > { %12858 = vst [vmem:[#allocation13_spill] sm:$0xff] %v9971_v14  ;;  %v484_v3 = vsel %vm483_vm13, 1, %v12859_v11  ;;  %v3438_v44 = vpop.f32.mrf.mxu2  ;;  %v465_v36 = vmul.u32 18, %v464_v42  ;;  %v504_v18 = vmul.u32 14564, %v501_v6  ;;  %v4302_v50 = vsel %vm12704_vm1, %v9971_v14, 0.0 }
 0x26e   : > { %v3748_v1 = vpop.f32.mrf.mxu3  ;;  %v486_v59 = vadd.s32 %v484_v3, %v478_v46  ;;  %v3536_v19 = vadd.f32 %v3438_v44, %v12860_v9  ;;  %vm487_vm15 = vc.u32 %v485_v5, %v481_v2  ;;  %v505_v42 = vmul.u32 58254, %v501_v6  ;;  %v3279_v46 = vld [vmem:[%s8697_s27 + $0xd4] sm:$0xff]  ;;  %v8266_v6 = vld [vmem:[%s12670_s2 + $0x4] sm:$0xf] }
 0x26f   : > { %v4377_v20 = vmul.f32 %v9971_v14, %v9971_v14  ;;  %v3589_v3 = vld [vmem:[%s8697_s27 + $0xd5] sm:$0xff]  ;;  %v9994_v57 = vsub.s32 %v9816_v7, %v465_v36  ;;  %v488_v44 = vsel %vm487_vm15, 1, %v12859_v11  ;;  %v9997_v9 = vmul.u32 14564, %v502_v61  ;;  %v4061_v15 = vpop.f32.mrf.mxu0  ;;  %8267 = vmatpush.msk.msra.mxu1 %vm12696_vm0, %v8266_v6 }
 0x270   : > { %v4301_v55 = vadd.f32 %v4300_v52, %v4299_v48  ;;  %v3846_v24 = vadd.f32 %v3748_v1, %v3536_v19  ;;  %v482_v2 = vshrl.u32 %v9948_v25, 16  ;;  %v490_v5 = vadd.s32 %v488_v44, %v486_v59  ;;  %v12867_v59 = vld [vmem:[#allocation29_spill] sm:$0xff] }
 0x271   : > { %v4415_v14 = vadd.f32 %v4414_v45, %v4413_v60  ;;  %vm10004_vm3 = vcmp.lt.s32.totalorder %v1402_v0, 16  ;;  %v12863_v8 = vmov 0  ;;  %v1403_v7 = vsel %vm9985_vm14, %v9974_v47, %v9946_v54 }
 0x272   : > { %v12864_v8 = vsel %vm10004_vm3, 4294967295, %v12863_v8  ;;  %v507_v48 = vmul.u32 58254, %v502_v61  ;;  %v508_v52 = vshll.u32 %v505_v42, 16  ;;  %v4303_v1 = vadd.f32 %v4302_v50, %v4301_v55  ;;  %8176 = vmatmul.msk.f32.gmra.mxu2 %vm12704_vm1, %v3279_v46  ;;  %8252 = vmatmul.msk.f32.gmra.mxu0 %vm12704_vm1, %v3899_v34  ;;  %v3280_v46 = vld [vmem:[%s8697_s27 + $0xdc] sm:$0xff] }
 0x273   : > { %12865 = vst [vmem:[#allocation18_spill] sm:$0xff] %v12864_v8  ;;  %v4156_v36 = vadd.f32 %v4058_v28, %v3846_v24  ;;  %8214 = vmatmul.msk.f32.gmra.mxu3 %vm12704_vm1, %v3589_v3  ;;  %v491_v60 = vadd.s32 %v490_v5, %v480_v63  ;;  %v510_v0 = vshll.u32 %v9997_v9, 16  ;;  %v4416_v25 = vsel %vm12704_vm1, %v4377_v20, 0.0  ;;  %v3590_v3 = vld [vmem:[%s8697_s27 + $0xdd] sm:$0xff] }
 0x274   : > { %vm1260_vm4 = vcmp.ne.s32.totalorder %v9994_v57, 0  ;;  %vm512_vm8 = vc.u32 %v504_v18, %v508_v52  ;;  %v514_v54 = vadd.s32 %v508_v52, %v504_v18  ;;  %vm1296_vm11 = vcmp.lt.s32.totalorder %v9994_v57, 0 }
 0x275   : > { %v10021_v55 = vsel %vm9954_vm9, %v4156_v36, 0.0  ;;  %v492_v24 = vadd.s32 %v491_v60, %v482_v2  ;;  %v513_v28 = vsel %vm512_vm8, 1, %v12859_v11  ;;  %v3441_v45 = vpop.f32.mrf.mxu2  ;;  %v509_v47 = vshrl.u32 %v505_v42, 16  ;;  %vm10040_vm13 = vmand %vm1296_vm11, %vm1260_vm4  ;;  %v3900_v36 = vld [vmem:[%s8697_s27 + $0xde] sm:$0xff]  ;;  %v3902_v42 = vld [vmem:[%s8697_s27 + $0xee] sm:$0xff] }
 0x276   : > { %12866 = vst [vmem:[#allocation15_spill] sm:$0xff] %v10021_v55  ;;  %v4378_v61 = vmul.f32 %v10021_v55, %v10021_v55  ;;  %v3751_v34 = vpop.f32.mrf.mxu3  ;;  %v515_v63 = vadd.s32 %v513_v28, %v507_v48  ;;  %vm516_vm12 = vc.u32 %v514_v54, %v510_v0  ;;  %v3537_v18 = vadd.f32 %v3441_v45, %v12867_v59 }
 0x277   : > { %v10029_v50 = vadd.s32 18, %v9994_v57  ;;  %v493_v19 = vshrl.u32 %v492_v24, 4  ;;  %v517_v37 = vsel %vm516_vm12, 1, %v12859_v11  ;;  %v4304_v20 = vsel %vm12704_vm1, %v10021_v55, 0.0  ;;  %v4064_v52 = vpop.f32.mrf.mxu0 }
 0x278   : > { %v511_v44 = vshrl.u32 %v9997_v9, 16  ;;  %v519_v6 = vadd.s32 %v517_v37, %v515_v63  ;;  %v10046_v2 = vadd.s32 88, %v9460_v27  ;;  %v4418_v5 = vsel %vm12704_vm1, %v4378_v61, 0.0 }
 0x279   : > { %v3847_v48 = vadd.f32 %v3751_v34, %v3537_v18  ;;  %v494_v60 = vmul.u32 18, %v493_v19  ;;  %v10051_v0 = vadd.s32 96, %v9460_v27  ;;  %v4417_v54 = vadd.f32 %v4416_v25, %v4415_v14 }
 0x27a   : > { %vm10053_vm14 = vcmp.lt.s32.totalorder %v1403_v7, 16  ;;  %v12870_v24 = vmov 0  ;;  %v520_v28 = vadd.s32 %v519_v6, %v509_v47  ;;  %v530_v9 = vand.u32 65535, %v10046_v2  ;;  %8177 = vmatmul.msk.f32.gmra.mxu2 %vm12704_vm1, %v3280_v46  ;;  %8253 = vmatmul.msk.f32.gmra.mxu0 %vm12704_vm1, %v3900_v36  ;;  %v12874_v6 = vld [vmem:[#allocation30_spill] sm:$0xff] }
 0x27b   : > { %v12871_v24 = vsel %vm10053_vm14, 4294967295, %v12870_v24  ;;  %v531_v45 = vshrl.u32 %v10046_v2, 16  ;;  %v4157_v63 = vadd.f32 %v4061_v15, %v3847_v48  ;;  %8215 = vmatmul.msk.f32.gmra.mxu3 %vm12704_vm1, %v3590_v3  ;;  %v10066_v14 = vsub.s32 %v9905_v49, %v494_v60  ;;  %v3281_v60 = vld [vmem:[%s8697_s27 + $0xe4] sm:$0xff] }
 0x27c   : > { %12872 = vst [vmem:[#allocation20_spill] sm:$0xff] %v12871_v24  ;;  %v10069_v7 = vadd.s32 104, %v9460_v27  ;;  %v4305_v25 = vadd.f32 %v4304_v20, %v4303_v1  ;;  %v4419_v34 = vadd.f32 %v4418_v5, %v4417_v54  ;;  %v521_v15 = vadd.s32 %v520_v28, %v511_v44  ;;  %v3591_v54 = vld [vmem:[%s8697_s27 + $0xe5] sm:$0xff] }
 0x27d   : > { %v10072_v47 = vmul.u32 58254, %v530_v9  ;;  %v10076_v59 = vsel %vm10004_vm3, %v4157_v63, 0.0  ;;  %v10078_v18 = vmul.u32 14564, %v531_v45  ;;  %v559_v49 = vand.u32 65535, %v10051_v0  ;;  %v3444_v20 = vpop.f32.mrf.mxu2 }
 0x27e   : > { %12873 = vst [vmem:[#allocation17_spill] sm:$0xff] %v10076_v59  ;;  %v560_v19 = vshrl.u32 %v10051_v0, 16  ;;  %v4306_v1 = vsel %vm12704_vm1, %v10076_v59, 0.0  ;;  %v4379_v37 = vmul.f32 %v10076_v59, %v10076_v59  ;;  %v3754_v46 = vpop.f32.mrf.mxu3  ;;  %v522_v3 = vshrl.u32 %v521_v15, 4 }
 0x27f   : > { %v533_v44 = vmul.u32 14564, %v530_v9  ;;  %v3538_v5 = vadd.f32 %v3444_v20, %v12874_v6  ;;  %vm1261_vm15 = vcmp.ne.s32.totalorder %v10066_v14, 0  ;;  %v537_v48 = vshll.u32 %v10072_v47, 16  ;;  %v4067_v12 = vpop.f32.mrf.mxu0  ;;  %v3901_v20 = vld [vmem:[%s8697_s27 + $0xe6] sm:$0xff] }
 0x280   : > { %vm1297_vm4 = vcmp.lt.s32.totalorder %v10066_v14, 0  ;;  %v1369_v28 = vadd.s32 18, %v10066_v14  ;;  %v523_v63 = vmul.u32 18, %v522_v3  ;;  %v536_v61 = vmul.u32 58254, %v531_v45  ;;  %v3282_v45 = vld [vmem:[%s8697_s27 + $0xec] sm:$0xff] }
 0x281   : > { %v4307_v8 = vadd.f32 %v4306_v1, %v4305_v25  ;;  %v4420_v15 = vsel %vm12704_vm1, %v4379_v37, 0.0  ;;  %v3848_v9 = vadd.f32 %v3754_v46, %v3538_v5  ;;  %v539_v6 = vshll.u32 %v10078_v18, 16  ;;  %vm10107_vm11 = vmand %vm1297_vm4, %vm1261_vm15 }
 0x282   : > { %v10098_v59 = vsub.s32 %v9934_v23, %v523_v63  ;;  %v538_v36 = vshrl.u32 %v10072_v47, 16  ;;  %vm541_vm8 = vc.u32 %v533_v44, %v537_v48  ;;  %v543_v55 = vadd.s32 %v537_v48, %v533_v44  ;;  %8178 = vmatmul.msk.f32.gmra.mxu2 %vm12704_vm1, %v3281_v60  ;;  %8254 = vmatmul.msk.f32.gmra.mxu0 %vm12704_vm1, %v3901_v20 }
 0x283   : > { %v4158_v26 = vadd.f32 %v4064_v52, %v3848_v9  ;;  %8216 = vmatmul.msk.f32.gmra.mxu3 %vm12704_vm1, %v3591_v54  ;;  %v542_v23 = vsel %vm541_vm8, 1, %v12859_v11  ;;  %v10112_v25 = vmul.u32 58254, %v559_v49  ;;  %v10114_v47 = vmul.u32 14564, %v560_v19 }
 0x284   : > { %vm1262_vm12 = vcmp.ne.s32.totalorder %v10098_v59, 0  ;;  %vm1298_vm0 = vcmp.lt.s32.totalorder %v10098_v59, 0  ;;  %v10120_v52 = vadd.s32 18, %v10098_v59  ;;  %v544_v1 = vadd.s32 %v542_v23, %v536_v61 }
 0x285   : > { %v10124_v37 = vsel %vm10053_vm14, %v4158_v26, 0.0  ;;  %vm10126_vm15 = vmand %vm1298_vm0, %vm1262_vm12  ;;  %vm545_vm4 = vc.u32 %v543_v55, %v539_v6  ;;  %v562_v3 = vmul.u32 14564, %v559_v49  ;;  %v566_v44 = vshll.u32 %v10112_v25, 16  ;;  %v3447_v48 = vpop.f32.mrf.mxu2  ;;  %v12880_v55 = vld [vmem:[#allocation31_spill] sm:$0xff] }
 0x286   : > { %12877 = vst [vmem:[#allocation19_spill] sm:$0xff] %v10124_v37  ;;  %v4308_v5 = vsel %vm12704_vm1, %v10124_v37, 0.0  ;;  %v4380_v61 = vmul.f32 %v10124_v37, %v10124_v37  ;;  %v3757_v60 = vpop.f32.mrf.mxu3  ;;  %v1405_v26 = vsel %vm10107_vm11, %v1369_v28, %v10066_v14  ;;  %v546_v54 = vsel %vm545_vm4, 1, %v12859_v11  ;;  %v3592_v14 = vld [vmem:[%s8697_s27 + $0xed] sm:$0xff] }
 0x287   : > { %v3539_v63 = vadd.f32 %v3447_v48, %v12880_v55  ;;  %v540_v49 = vshrl.u32 %v10078_v18, 16  ;;  %v548_v9 = vadd.s32 %v546_v54, %v544_v1  ;;  %v565_v20 = vmul.u32 58254, %v560_v19 }
 0x288   : > { %v4421_v6 = vadd.f32 %v4420_v15, %v4419_v34  ;;  %v12881_v23 = vsel %vm10040_vm13, %v10029_v50, %v9994_v57  ;;  %v12882_v24 = vmov 0  ;;  %v1406_v28 = vsel %vm10126_vm15, %v10120_v52, %v10098_v59  ;;  %v4070_v15 = vpop.f32.mrf.mxu0 }
 0x289   : > { %vm10146_vm0 = vcmp.lt.s32.totalorder %v12881_v23, 16  ;;  %v568_v18 = vshll.u32 %v10114_v47, 16  ;;  %v4309_v19 = vadd.f32 %v4308_v5, %v4307_v8  ;;  %v3849_v34 = vadd.f32 %v3757_v60, %v3539_v63 }
 0x28a   : > { %v12883_v24 = vsel %vm10146_vm0, 4294967295, %v12882_v24  ;;  %v549_v1 = vadd.s32 %v548_v9, %v538_v36  ;;  %vm570_vm8 = vc.u32 %v562_v3, %v566_v44  ;;  %v4422_v57 = vsel %vm12704_vm1, %v4380_v61, 0.0  ;;  %8179 = vmatmul.msk.f32.gmra.mxu2 %vm12704_vm1, %v3282_v45  ;;  %8255 = vmatmul.msk.f32.gmra.mxu0 %vm12704_vm1, %v3902_v42 }
 0x28b   : > { %12884 = vst [vmem:[#allocation21_spill] sm:$0xff] %v12883_v24  ;;  %vm10159_vm13 = vcmp.lt.s32.totalorder %v1405_v26, 16  ;;  %v12885_v50 = vmov 0  ;;  %v571_v48 = vsel %vm570_vm8, 1, %v12859_v11  ;;  %v572_v54 = vadd.s32 %v566_v44, %v562_v3  ;;  %8217 = vmatmul.msk.f32.gmra.mxu3 %vm12704_vm1, %v3592_v14 }
 0x28c   : > { %v12886_v50 = vsel %vm10159_vm13, 4294967295, %v12885_v50  ;;  %v589_v46 = vshrl.u32 %v10069_v7, 16  ;;  %v4159_v59 = vadd.f32 %v4067_v12, %v3849_v34  ;;  %v550_v8 = vadd.s32 %v549_v1, %v540_v49 }
 0x28d   : > { %12887 = vst [vmem:[#allocation22_spill] sm:$0xff] %v12886_v50  ;;  %v573_v52 = vadd.s32 %v571_v48, %v565_v20  ;;  %v12888_v36 = vand.u32 65535, %v10069_v7  ;;  %v567_v61 = vshrl.u32 %v10112_v25, 16  ;;  %vm574_vm11 = vc.u32 %v572_v54, %v568_v18  ;;  %v3450_v9 = vpop.f32.mrf.mxu2  ;;  %v12891_v18 = vld [vmem:[#allocation32_spill] sm:$0xff] }
 0x28e   : > { %v10175_v60 = vmul.u32 14564, %v589_v46  ;;  %v10179_v12 = vsel %vm10146_vm0, %v4159_v59, 0.0  ;;  %v551_v26 = vshrl.u32 %v550_v8, 4  ;;  %v575_v55 = vsel %vm574_vm11, 1, %v12859_v11  ;;  %v3760_v25 = vpop.f32.mrf.mxu3 }
 0x28f   : > { %v10169_v5 = vmul.u32 58254, %v12888_v36  ;;  %v12889_v3 = vmov %v12888_v36  ;;  %12890 = vst [vmem:[#allocation3_spill] sm:$0xff] %v10179_v12  ;;  %v4423_v49 = vadd.f32 %v4422_v57, %v4421_v6  ;;  %v569_v20 = vshrl.u32 %v10114_v47, 16  ;;  %v3283_v6 = vld [vmem:[%s8697_s27 + $0xf4] sm:$0xff] }
 0x290   : > { %v591_v44 = vmul.u32 14564, %v12889_v3  ;;  %v577_v23 = vadd.s32 %v575_v55, %v573_v52  ;;  %v10185_v45 = vadd.s32 112, %v9460_v27  ;;  %v4310_v14 = vsel %vm12704_vm1, %v10179_v12, 0.0  ;;  %v3593_v57 = vld [vmem:[%s8697_s27 + $0xf5] sm:$0xff]  ;;  %v4073_v8 = vpop.f32.mrf.mxu0 }
 0x291   : > { %v595_v63 = vshll.u32 %v10169_v5, 16  ;;  %v3540_v34 = vadd.f32 %v3450_v9, %v12891_v18  ;;  %v552_v42 = vmul.u32 18, %v551_v26  ;;  %v594_v1 = vmul.u32 58254, %v589_v46  ;;  %v3903_v52 = vld [vmem:[%s8697_s27 + $0xf6] sm:$0xff] }
 0x292   : > { %v4381_v48 = vmul.f32 %v10179_v12, %v10179_v12  ;;  %v578_v54 = vadd.s32 %v577_v23, %v567_v61  ;;  %v597_v59 = vshll.u32 %v10175_v60, 16  ;;  %v596_v3 = vshrl.u32 %v10169_v5, 16  ;;  %8180 = vmatmul.msk.f32.gmra.mxu2 %vm12704_vm1, %v3283_v6  ;;  %8256 = vmatmul.msk.f32.gmra.mxu0 %vm12704_vm1, %v3903_v52 }
 0x293   : > { %vm599_vm12 = vc.u32 %v591_v44, %v595_v63  ;;  %v3850_v47 = vadd.f32 %v3760_v25, %v3540_v34  ;;  %v553_v36 = vsub.s32 %v10046_v2, %v552_v42  ;;  %v4311_v26 = vadd.f32 %v4310_v14, %v4309_v19  ;;  %8218 = vmatmul.msk.f32.gmra.mxu3 %vm12704_vm1, %v3593_v57  ;;  %v12897_v57 = vld [vmem:[#allocation33_spill] sm:$0xff] }
 0x294   : > { %v600_v55 = vsel %vm599_vm12, 1, %v12859_v11  ;;  %vm10199_vm15 = vcmp.lt.s32.totalorder %v1406_v28, 16  ;;  %v12892_v46 = vmov 0  ;;  %v579_v9 = vadd.s32 %v578_v54, %v569_v20 }
 0x295   : > { %v12893_v46 = vsel %vm10199_vm15, 4294967295, %v12892_v46  ;;  %v601_v18 = vadd.s32 %v595_v63, %v591_v44  ;;  %v617_v61 = vand.u32 65535, %v10185_v45  ;;  %v4160_v23 = vadd.f32 %v4070_v15, %v3850_v47  ;;  %v3453_v42 = vpop.f32.mrf.mxu2 }
 0x296   : > { %vm1263_vm4 = vcmp.ne.s32.totalorder %v553_v36, 0  ;;  %vm1299_vm8 = vcmp.lt.s32.totalorder %v553_v36, 0  ;;  %v602_v2 = vadd.s32 %v600_v55, %v594_v1  ;;  %v1371_v5 = vadd.s32 18, %v553_v36  ;;  %v3763_v1 = vpop.f32.mrf.mxu3 }
 0x297   : > { %v580_v19 = vshrl.u32 %v579_v9, 4  ;;  %vm603_vm11 = vc.u32 %v601_v18, %v597_v59  ;;  %v618_v28 = vshrl.u32 %v10185_v45, 16  ;;  %v4424_v25 = vsel %vm12704_vm1, %v4381_v48, 0.0  ;;  %vm10213_vm12 = vmand %vm1299_vm8, %vm1263_vm4  ;;  %v3284_v9 = vld [vmem:[%s8697_s27 + $0xfc] sm:$0xff] }
 0x298   : > { %v10211_v15 = vsel %vm10159_vm13, %v4160_v23, 0.0  ;;  %v604_v63 = vsel %vm603_vm11, 1, %v12859_v11  ;;  %v10218_v20 = vmul.u32 58254, %v617_v61  ;;  %v598_v6 = vshrl.u32 %v10175_v60, 16  ;;  %v3594_v18 = vld [vmem:[%s8697_s27 + $0xfd] sm:$0xff]  ;;  %v4076_v12 = vpop.f32.mrf.mxu0 }
 0x299   : > { %12894 = vst [vmem:[#allocation23_spill] sm:$0xff] %v10211_v15  ;;  %v4312_v14 = vsel %vm12704_vm1, %v10211_v15, 0.0  ;;  %v4382_v34 = vmul.f32 %v10211_v15, %v10211_v15  ;;  %v581_v48 = vmul.u32 18, %v580_v19  ;;  %v3541_v54 = vadd.f32 %v3453_v42, %v12897_v57  ;;  %v3904_v60 = vld [vmem:[%s8697_s27 + $0xfe] sm:$0xff] }
 0x29a   : > { %v606_v59 = vadd.s32 %v604_v63, %v602_v2  ;;  %v620_v47 = vmul.u32 14564, %v617_v61  ;;  %v10226_v52 = vmul.u32 14564, %v618_v28  ;;  %v4425_v55 = vadd.f32 %v4424_v25, %v4423_v49  ;;  %8181 = vmatmul.msk.f32.gmra.mxu2 %vm12704_vm1, %v3284_v9  ;;  %8257 = vmatmul.msk.f32.gmra.mxu0 %vm12704_vm1, %v3904_v60  ;;  %v3285_v9 = vld [vmem:[%s8697_s27 + $0x104] sm:$0xff] }
 0x29b   : > { %v1407_v23 = vsel %vm10213_vm12, %v1371_v5, %v553_v36  ;;  %v582_v50 = vsub.s32 %v10051_v0, %v581_v48  ;;  %v624_v24 = vshll.u32 %v10218_v20, 16  ;;  %v4313_v15 = vadd.f32 %v4312_v14, %v4311_v26  ;;  %8219 = vmatmul.msk.f32.gmra.mxu3 %vm12704_vm1, %v3594_v18  ;;  %v3595_v18 = vld [vmem:[%s8697_s27 + $0x105] sm:$0xff] }
 0x29c   : > { %v3851_v19 = vadd.f32 %v3763_v1, %v3541_v54  ;;  %v607_v37 = vadd.s32 %v606_v59, %v596_v3  ;;  %v623_v42 = vmul.u32 58254, %v618_v28  ;;  %v4426_v61 = vsel %vm12704_vm1, %v4382_v34, 0.0 }
 0x29d   : > { %vm1264_vm4 = vcmp.ne.s32.totalorder %v582_v50, 0  ;;  %vm1300_vm8 = vcmp.lt.s32.totalorder %v582_v50, 0  ;;  %v626_v49 = vshll.u32 %v10226_v52, 16  ;;  %vm10239_vm11 = vcmp.lt.s32.totalorder %v1407_v23, 16  ;;  %v3456_v14 = vpop.f32.mrf.mxu2 }
 0x29e   : > { %v4161_v2 = vadd.f32 %v4073_v8, %v3851_v19  ;;  %v12898_v0 = vmov 0  ;;  %v608_v36 = vadd.s32 %v607_v37, %v598_v6  ;;  %vm628_vm12 = vc.u32 %v620_v47, %v624_v24  ;;  %vm10254_vm13 = vmand %vm1300_vm8, %vm1264_vm4  ;;  %v3766_v34 = vpop.f32.mrf.mxu3  ;;  %v12902_v6 = vld [vmem:[#allocation34_spill] sm:$0xff] }
 0x29f   : > { %v12899_v0 = vsel %vm10239_vm11, 4294967295, %v12898_v0  ;;  %v1372_v3 = vadd.s32 18, %v582_v50  ;;  %v629_v26 = vsel %vm628_vm12, 1, %v12859_v11  ;;  %v630_v5 = vadd.s32 %v624_v24, %v620_v47 }
 0x2a0   : > { %v10246_v28 = vadd.s32 120, %v9460_v27  ;;  %v4427_v8 = vadd.f32 %v4426_v61, %v4425_v55  ;;  %v10250_v25 = vsel %vm10199_vm15, %v4161_v2, 0.0  ;;  %v609_v44 = vshrl.u32 %v608_v36, 4  ;;  %v4079_v61 = vpop.f32.mrf.mxu0 }
 0x2a1   : > { %v631_v63 = vadd.s32 %v629_v26, %v623_v42  ;;  %v4383_v24 = vmul.f32 %v10250_v25, %v10250_v25  ;;  %v625_v1 = vshrl.u32 %v10218_v20, 16  ;;  %vm632_vm12 = vc.u32 %v630_v5, %v626_v49  ;;  %v3905_v49 = vld [vmem:[%s8697_s27 + $0x106] sm:$0xff] }
 0x2a2   : > { %v646_v48 = vand.u32 65535, %v10246_v28  ;;  %v3542_v57 = vadd.f32 %v3456_v14, %v12902_v6  ;;  %v610_v54 = vmul.u32 18, %v609_v44  ;;  %v627_v59 = vshrl.u32 %v10226_v52, 16  ;;  %8182 = vmatmul.msk.f32.gmra.mxu2 %vm12704_vm1, %v3285_v9  ;;  %8258 = vmatmul.msk.f32.gmra.mxu0 %vm12704_vm1, %v3905_v49 }
 0x2a3   : > { %v633_v47 = vsel %vm632_vm12, 1, %v12859_v11  ;;  %v4314_v55 = vsel %vm12704_vm1, %v10250_v25, 0.0  ;;  %v1408_v23 = vsel %vm10254_vm13, %v1372_v3, %v582_v50  ;;  %v647_v19 = vshrl.u32 %v10246_v28, 16  ;;  %8220 = vmatmul.msk.f32.gmra.mxu3 %vm12704_vm1, %v3595_v18  ;;  %v3286_v18 = vld [vmem:[%s8697_s27 + $0x10c] sm:$0xff] }
 0x2a4   : > { %v635_v20 = vadd.s32 %v633_v47, %v631_v63  ;;  %v4428_v60 = vsel %vm12704_vm1, %v4383_v24, 0.0  ;;  %v3852_v42 = vadd.f32 %v3766_v34, %v3542_v57  ;;  %v611_v52 = vsub.s32 %v10069_v7, %v610_v54 }
 0x2a5   : > { %v10275_v2 = vmul.u32 58254, %v646_v48  ;;  %v649_v26 = vmul.u32 14564, %v646_v48  ;;  %v10277_v5 = vmul.u32 14564, %v647_v19  ;;  %v10280_v44 = vadd.s32 128, %v9460_v27  ;;  %v3459_v6 = vpop.f32.mrf.mxu2 }
 0x2a6   : > { %v636_v36 = vadd.s32 %v635_v20, %v625_v1  ;;  %v4162_v50 = vadd.f32 %v4076_v12, %v3852_v42  ;;  %vm1265_vm13 = vcmp.ne.s32.totalorder %v611_v52, 0  ;;  %vm1301_vm4 = vcmp.lt.s32.totalorder %v611_v52, 0  ;;  %v3769_v57 = vpop.f32.mrf.mxu3 }
 0x2a7   : > { %v1373_v3 = vadd.s32 18, %v611_v52  ;;  %v4315_v37 = vadd.f32 %v4314_v55, %v4313_v15  ;;  %vm10284_vm8 = vcmp.lt.s32.totalorder %v1408_v23, 16  ;;  %v12903_v7 = vmov 0  ;;  %vm10289_vm12 = vmand %vm1301_vm4, %vm1265_vm13  ;;  %v3596_v23 = vld [vmem:[%s8697_s27 + $0x10d] sm:$0xff] }
 0x2a8   : > { %v12904_v7 = vsel %vm10284_vm8, 4294967295, %v12903_v7  ;;  %v637_v24 = vadd.s32 %v636_v36, %v627_v59  ;;  %v653_v12 = vshll.u32 %v10275_v2, 16  ;;  %v4429_v14 = vadd.f32 %v4428_v60, %v4427_v8  ;;  %v4082_v36 = vpop.f32.mrf.mxu0 }
 0x2a9   : > { %12905 = vst [vmem:[#allocation24_spill] sm:$0xff] %v12904_v7  ;;  %v10296_v34 = vsel %vm10239_vm11, %v4162_v50, 0.0  ;;  %v652_v15 = vmul.u32 58254, %v647_v19  ;;  %v655_v1 = vshll.u32 %v10277_v5, 16  ;;  %v654_v59 = vshrl.u32 %v10275_v2, 16  ;;  %v3912_v7 = vld [vmem:[%s8697_s27 + $0x13e] sm:$0xff] }
 0x2aa   : > { %v4384_v48 = vmul.f32 %v10296_v34, %v10296_v34  ;;  %v638_v54 = vshrl.u32 %v637_v24, 4  ;;  %v675_v47 = vand.u32 65535, %v10280_v44  ;;  %v3543_v8 = vadd.f32 %v3459_v6, %v9518_v38  ;;  %v3906_v38 = vld [vmem:[%s8697_s27 + $0x10e] sm:$0xff]  ;;  %8183 = vmatmul.msk.f32.gmra.mxu2 %vm12704_vm1, %v3286_v18 }
 0x2ab   : > { %v1409_v55 = vsel %vm10289_vm12, %v1373_v3, %v611_v52  ;;  %vm657_vm13 = vc.u32 %v649_v26, %v653_v12  ;;  %v659_v9 = vadd.s32 %v653_v12, %v649_v26  ;;  %v656_v19 = vshrl.u32 %v10277_v5, 16  ;;  %8221 = vmatmul.msk.f32.gmra.mxu3 %vm12704_vm1, %v3596_v23  ;;  %8259 = vmatmul.msk.f32.gmra.mxu0 %vm12704_vm1, %v3906_v38 }
 0x2ac   : > { %v639_v20 = vmul.u32 18, %v638_v54  ;;  %v658_v60 = vsel %vm657_vm13, 1, %v12859_v11  ;;  %v676_v42 = vshrl.u32 %v10280_v44, 16  ;;  %v4316_v49 = vsel %vm12704_vm1, %v10296_v34, 0.0 }
 0x2ad   : > { %v3853_v2 = vadd.f32 %v3769_v57, %v3543_v8  ;;  %v660_v50 = vadd.s32 %v658_v60, %v652_v15  ;;  %vm661_vm4 = vc.u32 %v659_v9, %v655_v1  ;;  %v4430_v52 = vsel %vm12704_vm1, %v4384_v48, 0.0  ;;  %v3462_v8 = vpop.f32.mrf.mxu2 }
 0x2ae   : > { %v10316_v26 = vsub.s32 %v10185_v45, %v639_v20  ;;  %v662_v3 = vsel %vm661_vm4, 1, %v12859_v11  ;;  %v10319_v5 = vmul.u32 58254, %v675_v47  ;;  %v678_v12 = vmul.u32 14564, %v675_v47  ;;  %v3772_v9 = vpop.f32.mrf.mxu3 }
 0x2af   : > { %v4163_v63 = vadd.f32 %v4079_v61, %v3853_v2  ;;  %v664_v24 = vadd.s32 %v662_v3, %v660_v50  ;;  %v10323_v6 = vmul.u32 14564, %v676_v42  ;;  %v4317_v61 = vadd.f32 %v4316_v49, %v4315_v37  ;;  %v3287_v2 = vld [vmem:[%s8697_s27 + $0x114] sm:$0xff] }
 0x2b0   : > { %vm1266_vm12 = vcmp.ne.s32.totalorder %v10316_v26, 0  ;;  %vm1302_vm13 = vcmp.lt.s32.totalorder %v10316_v26, 0  ;;  %v1374_v45 = vadd.s32 18, %v10316_v26  ;;  %v682_v15 = vshll.u32 %v10319_v5, 16  ;;  %v3907_v3 = vld [vmem:[%s8697_s27 + $0x116] sm:$0xff] }
 0x2b1   : > { %v10332_v1 = vsel %vm10284_vm8, %v4163_v63, 0.0  ;;  %vm10334_vm4 = vcmp.lt.s32.totalorder %v1409_v55, 16  ;;  %v12908_v48 = vmov 0  ;;  %vm10338_vm1 = vmand %vm1302_vm13, %vm1266_vm12  ;;  %v665_v54 = vadd.s32 %v664_v24, %v654_v59  ;;  %v3597_v59 = vld [vmem:[%s8697_s27 + $0x115] sm:$0xff] }
 0x2b2   : > { %v12909_v48 = vsel %vm10334_vm4, 4294967295, %v12908_v48  ;;  %v4431_v47 = vadd.f32 %v4430_v52, %v4429_v14  ;;  %v681_v18 = vmul.u32 58254, %v676_v42  ;;  %v683_v37 = vshrl.u32 %v10319_v5, 16  ;;  %v4085_v52 = vpop.f32.mrf.mxu0 }
 0x2b3   : > { %12910 = vst [vmem:[#allocation25_spill] sm:$0xff] %v12909_v48  ;;  %v684_v23 = vshll.u32 %v10323_v6, 16  ;;  %vm12913_vm8 = vcmask 31744   ;;  %v4385_v20 = vmul.f32 %v10332_v1, %v10332_v1  ;;  %v3544_v60 = vadd.f32 %v3462_v8, %v9524_v10 }
 0x2b4   : > { %v4318_v55 = vsel %vm12913_vm8, %v10332_v1, 0.0  ;;  %v666_v49 = vadd.s32 %v665_v54, %v656_v19  ;;  %v1410_v14 = vsel %vm10338_vm1, %v1374_v45, %v10316_v26  ;;  %vm686_vm12 = vc.u32 %v678_v12, %v682_v15 }
 0x2b5   : > { %v688_v42 = vadd.s32 %v682_v15, %v678_v12  ;;  %v10355_v38 = vadd.s32 136, %v9460_v27  ;;  %v3854_v50 = vadd.f32 %v3772_v9, %v3544_v60  ;;  %v685_v63 = vshrl.u32 %v10323_v6, 16  ;;  %v3465_v60 = vpop.f32.mrf.mxu2 }
 0x2b6   : > { %v667_v5 = vshrl.u32 %v666_v49, 4  ;;  %v687_v10 = vsel %vm686_vm12, 1, %v12859_v11  ;;  %v4319_v26 = vadd.f32 %v4318_v55, %v4317_v61  ;;  %vm12914_vm1 = vcmask 31744   ;;  %v3775_v49 = vpop.f32.mrf.mxu3 }
 0x2b7   : > { %v689_v19 = vadd.s32 %v687_v10, %v681_v18  ;;  %vm690_vm8 = vc.u32 %v688_v42, %v684_v23  ;;  %v704_v24 = vand.u32 65535, %v10355_v38  ;;  %v705_v57 = vshrl.u32 %v10355_v38, 16  ;;  %8184 = vmatmul.msk.f32.gmra.mxu2 %vm12914_vm1, %v3287_v2  ;;  %vm12915_vm13 = vmmov %vm12914_vm1  ;;  %v3288_v10 = vld [vmem:[%s8697_s27 + $0x11c] sm:$0xff] }
 0x2b8   : > { %v4164_v45 = vadd.f32 %v4082_v36, %v3854_v50  ;;  %8222 = vmatmul.msk.f32.gmra.mxu3 %vm12915_vm13, %v3597_v59  ;;  %v668_v12 = vmul.u32 18, %v667_v5  ;;  %v691_v15 = vsel %vm690_vm8, 1, %v12859_v11  ;;  %vm12916_vm11 = vmmov %vm12914_vm1  ;;  %v10370_v9 = vadd.s32 144, %v9460_v27 }
 0x2b9   : > { %v4432_v54 = vsel %vm12916_vm11, %v4385_v20, 0.0  ;;  %vm12917_vm15 = vmmov %vm12914_vm1  ;;  %v693_v6 = vadd.s32 %v691_v15, %v689_v19  ;;  %v10367_v8 = vmul.u32 58254, %v704_v24  ;;  %v707_v18 = vmul.u32 14564, %v704_v24  ;;  %v3598_v19 = vld [vmem:[%s8697_s27 + $0x11d] sm:$0xff] }
 0x2ba   : > { %8260 = vmatmul.msk.f32.gmra.mxu0 %vm12917_vm15, %v3907_v3  ;;  %v10374_v36 = vsel %vm10334_vm4, %v4164_v45, 0.0  ;;  %v10377_v61 = vsub.s32 %v10246_v28, %v668_v12  ;;  %v10379_v23 = vmul.u32 14564, %v705_v57  ;;  %vm12918_vm15 = vmmov %vm12914_vm1  ;;  %v4433_v42 = vadd.f32 %v4432_v54, %v4431_v47  ;;  %v4088_v47 = vpop.f32.mrf.mxu0 }
 0x2bb   : > { %v4320_v55 = vsel %vm12918_vm15, %v10374_v36, 0.0  ;;  %v4386_v20 = vmul.f32 %v10374_v36, %v10374_v36  ;;  %v694_v2 = vadd.s32 %v693_v6, %v683_v37  ;;  %v711_v59 = vshll.u32 %v10367_v8, 16  ;;  %vm12922_vm8 = vmmov %vm12914_vm1 }
 0x2bc   : > { %v3545_v50 = vadd.f32 %v3465_v60, %v9531_v17  ;;  %vm10387_vm11 = vcmp.lt.s32.totalorder %v1410_v14, 16  ;;  %v12919_v28 = vmov 0  ;;  %v710_v3 = vmul.u32 58254, %v705_v57  ;;  %v3908_v17 = vld [vmem:[%s8697_s27 + $0x11e] sm:$0xff]  ;;  %vm12923_vm15 = vmmov %vm12922_vm8 }
 0x2bd   : > { %v12920_v28 = vsel %vm10387_vm11, 4294967295, %v12919_v28  ;;  %v4321_v5 = vadd.f32 %v4320_v55, %v4319_v26  ;;  %v695_v24 = vadd.s32 %v694_v2, %v685_v63  ;;  %v733_v45 = vand.u32 65535, %v10370_v9  ;;  %vm12924_vm12 = vmmov %vm12922_vm8 }
 0x2be   : > { %12921 = vst [vmem:[#allocation26_spill] sm:$0xff] %v12920_v28  ;;  %v4434_v37 = vsel %vm12922_vm8, %v4386_v20, 0.0  ;;  %v3855_v12 = vadd.f32 %v3775_v49, %v3545_v50  ;;  %vm1303_vm1 = vcmp.lt.s32.totalorder %v10377_v61, 0  ;;  %v713_v14 = vshll.u32 %v10379_v23, 16  ;;  %vm12928_vm0 = vmmov %vm12924_vm12 }
 0x2bf   : > { %v1375_v15 = vadd.s32 18, %v10377_v61  ;;  %v696_v57 = vshrl.u32 %v695_v24, 4  ;;  %vm715_vm13 = vc.u32 %v707_v18, %v711_v59  ;;  %v717_v26 = vadd.s32 %v711_v59, %v707_v18  ;;  %8185 = vmatmul.msk.f32.gmra.mxu2 %vm12923_vm15, %v3288_v10  ;;  %v3468_v10 = vpop.f32.mrf.mxu2  ;;  %vm12929_vm15 = vmmov %vm12928_vm0 }
 0x2c0   : > { %v4165_v54 = vadd.f32 %v4085_v52, %v3855_v12  ;;  %8223 = vmatmul.msk.f32.gmra.mxu3 %vm12924_vm12, %v3598_v19  ;;  %v712_v63 = vshrl.u32 %v10367_v8, 16  ;;  %v716_v6 = vsel %vm715_vm13, 1, %v12859_v11  ;;  %v734_v55 = vshrl.u32 %v10370_v9, 16  ;;  %v3778_v19 = vpop.f32.mrf.mxu3 }
 0x2c1   : > { %vm12925_vm8 = vcmp.ne.s32.totalorder %v10377_v61, 0  ;;  %v697_v18 = vmul.u32 18, %v696_v57  ;;  %v714_v52 = vshrl.u32 %v10379_v23, 16  ;;  %v718_v60 = vadd.s32 %v716_v6, %v710_v3  ;;  %v3289_v57 = vld [vmem:[%s8697_s27 + $0x124] sm:$0xff] }
 0x2c2   : > { %vm10407_vm4 = vmand %vm1303_vm1, %vm12925_vm8  ;;  %8261 = vmatmul.msk.f32.gmra.mxu0 %vm12928_vm0, %v3908_v17  ;;  %vm719_vm12 = vc.u32 %v717_v26, %v713_v14  ;;  %v10415_v8 = vsel %vm10387_vm11, %v4165_v54, 0.0  ;;  %v736_v2 = vmul.u32 14564, %v733_v45  ;;  %v10418_v59 = vmul.u32 58254, %v733_v45  ;;  %v3599_v26 = vld [vmem:[%s8697_s27 + $0x125] sm:$0xff] }
 0x2c3   : > { %v720_v49 = vsel %vm719_vm12, 1, %v12859_v11  ;;  %v4387_v50 = vmul.f32 %v10415_v8, %v10415_v8  ;;  %v698_v23 = vsub.s32 %v10280_v44, %v697_v18  ;;  %v10423_v24 = vmul.u32 14564, %v734_v55 }
 0x2c4   : > { %v722_v3 = vadd.s32 %v720_v49, %v718_v60  ;;  %v4322_v12 = vsel %vm12928_vm0, %v10415_v8, 0.0  ;;  %v3546_v17 = vadd.f32 %v3468_v10, %v9543_v43  ;;  %v1411_v45 = vsel %vm10407_vm4, %v1375_v15, %v10377_v61  ;;  %v4091_v43 = vpop.f32.mrf.mxu0  ;;  %v3909_v10 = vld [vmem:[%s8697_s27 + $0x126] sm:$0xff] }
 0x2c5   : > { %v740_v14 = vshll.u32 %v10418_v59, 16  ;;  %vm1268_vm1 = vcmp.ne.s32.totalorder %v698_v23, 0  ;;  %vm1304_vm13 = vcmp.lt.s32.totalorder %v698_v23, 0  ;;  %v1376_v44 = vadd.s32 18, %v698_v23 }
 0x2c6   : > { %v739_v54 = vmul.u32 58254, %v734_v55  ;;  %v4435_v6 = vadd.f32 %v4434_v37, %v4433_v42  ;;  %v4436_v18 = vsel %vm12929_vm15, %v4387_v50, 0.0  ;;  %v3856_v60 = vadd.f32 %v3778_v19, %v3546_v17  ;;  %vm10435_vm8 = vmand %vm1304_vm13, %vm1268_vm1 }
 0x2c7   : > { %v723_v20 = vadd.s32 %v722_v3, %v712_v63  ;;  %v4323_v61 = vadd.f32 %v4322_v12, %v4321_v5  ;;  %vm10440_vm4 = vcmp.lt.s32.totalorder %v1411_v45, 16  ;;  %v12932_v15 = vmov 0  ;;  %8186 = vmatmul.msk.f32.gmra.mxu2 %vm12928_vm0, %v3289_v57  ;;  %vm12935_vm15 = vmmov %vm12928_vm0  ;;  %v3471_v45 = vpop.f32.mrf.mxu2 }
 0x2c8   : > { %v12933_v15 = vsel %vm10440_vm4, 4294967295, %v12932_v15  ;;  %v742_v28 = vshll.u32 %v10423_v24, 16  ;;  %vm744_vm12 = vc.u32 %v736_v2, %v740_v14  ;;  %v4166_v55 = vadd.f32 %v4088_v47, %v3856_v60  ;;  %8224 = vmatmul.msk.f32.gmra.mxu3 %vm12935_vm15, %v3599_v26  ;;  %vm12936_vm1 = vmmov %vm12928_vm0 }
 0x2c9   : > { %12934 = vst [vmem:[#allocation27_spill] sm:$0xff] %v12933_v15  ;;  %v1412_v42 = vsel %vm10435_vm8, %v1376_v44, %v698_v23  ;;  %v724_v37 = vadd.s32 %v723_v20, %v714_v52  ;;  %v745_v50 = vsel %vm744_vm12, 1, %v12859_v11  ;;  %v4437_v63 = vadd.f32 %v4436_v18, %v4435_v6  ;;  %vm12940_vm12 = vmmov %vm12928_vm0  ;;  %v3290_v6 = vld [vmem:[%s8697_s27 + $0x12c] sm:$0xff] }
 0x2ca   : > { %8262 = vmatmul.msk.f32.gmra.mxu0 %vm12936_vm1, %v3909_v10  ;;  %v746_v5 = vadd.s32 %v740_v14, %v736_v2  ;;  %v747_v19 = vadd.s32 %v745_v50, %v739_v54  ;;  %v10452_v3 = vadd.s32 152, %v9460_v27  ;;  %v10456_v47 = vsel %vm10440_vm4, %v4166_v55, 0.0  ;;  %v3781_v2 = vpop.f32.mrf.mxu3  ;;  %v3600_v18 = vld [vmem:[%s8697_s27 + $0x12d] sm:$0xff]  ;;  %vm12941_vm15 = vmmov %vm12928_vm0 }
 0x2cb   : > { %v725_v12 = vshrl.u32 %v724_v37, 4  ;;  %v741_v23 = vshrl.u32 %v10418_v59, 16  ;;  %v743_v52 = vshrl.u32 %v10423_v24, 16  ;;  %v4388_v17 = vmul.f32 %v10456_v47, %v10456_v47  ;;  %vm12942_vm1 = vmmov %vm12928_vm0 }
 0x2cc   : > { %vm10462_vm13 = vcmp.lt.s32.totalorder %v1412_v42, 16  ;;  %v12937_v14 = vmov 0  ;;  %vm748_vm8 = vc.u32 %v746_v5, %v742_v28  ;;  %v762_v57 = vand.u32 65535, %v10452_v3  ;;  %v4094_v55 = vpop.f32.mrf.mxu0  ;;  %v3910_v42 = vld [vmem:[%s8697_s27 + $0x12e] sm:$0xff]  ;;  %vm12945_vm4 = vmmov %vm12942_vm1 }
 0x2cd   : > { %v12938_v14 = vsel %vm10462_vm13, 4294967295, %v12937_v14  ;;  %v3547_v26 = vadd.f32 %v3471_v45, %v9547_v56  ;;  %v726_v44 = vmul.u32 18, %v725_v12  ;;  %v749_v59 = vsel %vm748_vm8, 1, %v12859_v11 }
 0x2ce   : > { %12939 = vst [vmem:[#allocation28_spill] sm:$0xff] %v12938_v14  ;;  %v10470_v24 = vadd.s32 160, %v9460_v27  ;;  %v4324_v54 = vsel %vm12940_vm12, %v10456_v47, 0.0  ;;  %v751_v60 = vadd.s32 %v749_v59, %v747_v19  ;;  %v763_v49 = vshrl.u32 %v10452_v3, 16 }
 0x2cf   : > { %v10478_v28 = vadd.s32 168, %v9460_v27  ;;  %v4438_v10 = vsel %vm12928_vm0, %v4388_v17, 0.0  ;;  %v3857_v56 = vadd.f32 %v3781_v2, %v3547_v26  ;;  %v727_v20 = vsub.s32 %v10355_v38, %v726_v44  ;;  %8187 = vmatmul.msk.f32.gmra.mxu2 %vm12941_vm15, %v3290_v6  ;;  %vm12946_vm15 = vmmov %vm12942_vm1  ;;  %v3601_v26 = vld [vmem:[%s8697_s27 + $0x135] sm:$0xff] }
 0x2d0   : > { %v766_v37 = vmul.u32 58254, %v762_v57  ;;  %v752_v50 = vadd.s32 %v751_v60, %v741_v23  ;;  %v765_v5 = vmul.u32 14564, %v762_v57  ;;  %v10483_v12 = vmul.u32 14564, %v763_v49  ;;  %8225 = vmatmul.msk.f32.gmra.mxu3 %vm12942_vm1, %v3600_v18 }
 0x2d1   : > { %v10486_v45 = vadd.s32 176, %v9460_v27  ;;  %v4167_v19 = vadd.f32 %v4091_v43, %v3857_v56  ;;  %vm1269_vm8 = vcmp.ne.s32.totalorder %v727_v20, 0  ;;  %vm1305_vm12 = vcmp.lt.s32.totalorder %v727_v20, 0 }
 0x2d2   : > { %v1377_v17 = vadd.s32 18, %v727_v20  ;;  %v4325_v2 = vadd.f32 %v4324_v54, %v4323_v61  ;;  %v10490_v38 = vadd.f32 %v4438_v10, %v4437_v63  ;;  %vm10492_vm0 = vmand %vm1305_vm12, %vm1269_vm8  ;;  %8263 = vmatmul.msk.f32.gmra.mxu0 %vm12945_vm4, %v3910_v42  ;;  %v753_v23 = vadd.s32 %v752_v50, %v743_v52  ;;  %v3474_v63 = vpop.f32.mrf.mxu2  ;;  %v3784_v54 = vpop.f32.mrf.mxu3 }
 0x2d3   : > { %v769_v57 = vshll.u32 %v766_v37, 16  ;;  %v10499_v43 = vsel %vm10462_vm13, %v4167_v19, 0.0  ;;  %v768_v44 = vmul.u32 58254, %v763_v49  ;;  %v771_v59 = vshll.u32 %v10483_v12, 16  ;;  %v3291_v19 = vld [vmem:[%s8697_s27 + $0x134] sm:$0xff]  ;;  %vm12950_vm12 = vmmov %vm12946_vm15 }
 0x2d4   : > { %v791_v61 = vand.u32 65535, %v10470_v24  ;;  %v1413_v6 = vsel %vm10492_vm0, %v1377_v17, %v727_v20  ;;  %v754_v18 = vshrl.u32 %v753_v23, 4  ;;  %v770_v52 = vshrl.u32 %v766_v37, 16  ;;  %vm12951_vm0 = vmmov %vm12950_vm12 }
 0x2d5   : > { %v792_v60 = vshrl.u32 %v10470_v24, 16  ;;  %v3548_v10 = vadd.f32 %v3474_v63, %v9558_v62  ;;  %v772_v56 = vshrl.u32 %v10483_v12, 16  ;;  %vm773_vm4 = vc.u32 %v765_v5, %v769_v57  ;;  %v4097_v62 = vpop.f32.mrf.mxu0  ;;  %v3911_v12 = vld [vmem:[%s8697_s27 + $0x136] sm:$0xff]  ;;  %vm12952_vm13 = vmmov %vm12951_vm0 }
 0x2d6   : > { %v775_v49 = vadd.s32 %v769_v57, %v765_v5  ;;  %v4326_v42 = vsel %vm12946_vm15, %v10499_v43, 0.0  ;;  %v4389_v50 = vmul.f32 %v10499_v43, %v10499_v43  ;;  %v755_v20 = vmul.u32 18, %v754_v18 }
 0x2d7   : > { %v774_v17 = vsel %vm773_vm4, 1, %v12859_v11  ;;  %v3858_v37 = vadd.f32 %v3784_v54, %v3548_v10  ;;  %vm10515_vm1 = vcmp.lt.s32.totalorder %v1413_v6, 16  ;;  %v12947_v23 = vmov 0  ;;  %8188 = vmatmul.msk.f32.gmra.mxu2 %vm12950_vm12, %v3291_v19 }
 0x2d8   : > { %v12948_v23 = vsel %vm10515_vm1, 4294967295, %v12947_v23  ;;  %v776_v63 = vadd.s32 %v774_v17, %v768_v44  ;;  %vm777_vm8 = vc.u32 %v775_v49, %v771_v59  ;;  %v756_v5 = vsub.s32 %v10370_v9, %v755_v20  ;;  %8226 = vmatmul.msk.f32.gmra.mxu3 %vm12951_vm0, %v3601_v26 }
 0x2d9   : > { %12949 = vst [vmem:[#allocation29_spill] sm:$0xff] %v12948_v23  ;;  %v778_v57 = vsel %vm777_vm8, 1, %v12859_v11  ;;  %v10522_v14 = vmul.u32 58254, %v791_v61  ;;  %v10524_v15 = vmul.u32 14564, %v792_v60  ;;  %v4327_v18 = vadd.f32 %v4326_v42, %v4325_v2  ;;  %vm12953_vm8 = vmmov %vm12951_vm0 }
 0x2da   : > { %v4168_v48 = vadd.f32 %v4094_v55, %v3858_v37  ;;  %v780_v54 = vadd.s32 %v778_v57, %v776_v63  ;;  %v794_v6 = vmul.u32 14564, %v791_v61  ;;  %vm1270_vm4 = vcmp.ne.s32.totalorder %v756_v5, 0  ;;  %8264 = vmatmul.msk.f32.gmra.mxu0 %vm12952_vm13, %v3911_v12  ;;  %v3477_v49 = vpop.f32.mrf.mxu2  ;;  %v3787_v42 = vpop.f32.mrf.mxu3  ;;  %vm12954_vm13 = vmmov %vm12951_vm0  ;;  %v3292_v37 = vld [vmem:[%s8697_s27 + $0x13c] sm:$0xff] }
 0x2db   : > { %vm1306_vm15 = vcmp.lt.s32.totalorder %v756_v5, 0  ;;  %v1378_v44 = vadd.s32 18, %v756_v5  ;;  %v798_v9 = vshll.u32 %v10522_v14, 16  ;;  %v4440_v59 = vsel %vm12953_vm8, %v4389_v50, 0.0  ;;  %v3602_v12 = vld [vmem:[%s8697_s27 + $0x13d] sm:$0xff] }
 0x2dc   : > { %v10533_v2 = vsel %vm10515_vm1, %v4168_v48, 0.0  ;;  %vm1342_vm12 = vmand %vm1306_vm15, %vm1270_vm4  ;;  %v781_v55 = vadd.s32 %v780_v54, %v770_v52  ;;  %v797_v10 = vmul.u32 58254, %v792_v60  ;;  %v800_v26 = vshll.u32 %v10524_v15, 16 }
 0x2dd   : > { %v4390_v61 = vmul.f32 %v10533_v2, %v10533_v2  ;;  %v1414_v19 = vsel %vm1342_vm12, %v1378_v44, %v756_v5  ;;  %v820_v50 = vand.u32 65535, %v10478_v28  ;;  %v4328_v20 = vsel %vm12954_vm13, %v10533_v2, 0.0  ;;  %vm12958_vm15 = vmmov %vm12953_vm8  ;;  %v4100_v23 = vpop.f32.mrf.mxu0 }
 0x2de   : > { %v3549_v48 = vadd.f32 %v3477_v49, %v9562_v29  ;;  %v782_v17 = vadd.s32 %v781_v55, %v772_v56  ;;  %v799_v52 = vshrl.u32 %v10522_v14, 16  ;;  %vm10543_vm0 = vcmp.lt.s32.totalorder %v1414_v19, 16  ;;  %vm12959_vm12 = vmmov %vm12954_vm13 }
 0x2df   : > { %v12955_v60 = vmov 0  ;;  %vm802_vm4 = vc.u32 %v794_v6, %v798_v9  ;;  %v804_v63 = vadd.s32 %v798_v9, %v794_v6  ;;  %v821_v5 = vshrl.u32 %v10478_v28, 16  ;;  %8189 = vmatmul.msk.f32.gmra.mxu2 %vm12959_vm12, %v3292_v37  ;;  %vm12960_vm13 = vmmov %vm12959_vm12 }
 0x2e0   : > { %v12956_v60 = vsel %vm10543_vm0, 4294967295, %v12955_v60  ;;  %v4442_v57 = vsel %vm12958_vm15, %v4390_v61, 0.0  ;;  %v3859_v54 = vadd.f32 %v3787_v42, %v3549_v48  ;;  %v783_v44 = vshrl.u32 %v782_v17, 4  ;;  %8227 = vmatmul.msk.f32.gmra.mxu3 %vm12960_vm13, %v3602_v12  ;;  %vm12961_vm15 = vmmov %vm12959_vm12 }
 0x2e1   : > { %12957 = vst [vmem:[#allocation30_spill] sm:$0xff] %v12956_v60  ;;  %v803_v29 = vsel %vm802_vm4, 1, %v12859_v11  ;;  %vm806_vm8 = vc.u32 %v804_v63, %v800_v26  ;;  %v823_v14 = vmul.u32 14564, %v820_v50  ;;  %v824_v55 = vmul.u32 58254, %v820_v50 }
 0x2e2   : > { %v805_v56 = vadd.s32 %v803_v29, %v797_v10  ;;  %v4169_v49 = vadd.f32 %v4097_v62, %v3859_v54  ;;  %v784_v6 = vmul.u32 18, %v783_v44  ;;  %v807_v9 = vsel %vm806_vm8, 1, %v12859_v11  ;;  %8265 = vmatmul.msk.f32.gmra.mxu0 %vm12961_vm15, %v3912_v7  ;;  %v3480_v12 = vpop.f32.mrf.mxu2  ;;  %v3790_v63 = vpop.f32.mrf.mxu3 }
 0x2e3   : > { %v10556_v19 = vmul.u32 14564, %v821_v5  ;;  %v4441_v61 = vadd.f32 %v4440_v59, %v10490_v38  ;;  %v801_v42 = vshrl.u32 %v10524_v15, 16  ;;  %v827_v26 = vshll.u32 %v824_v55, 16 }
 0x2e4   : > { %v809_v10 = vadd.s32 %v807_v9, %v805_v56  ;;  %v4329_v48 = vadd.f32 %v4328_v20, %v4327_v18  ;;  %v10563_v62 = vsel %vm10543_vm0, %v4169_v49, 0.0  ;;  %v785_v50 = vsub.s32 %v10452_v3, %v784_v6  ;;  %vm12962_vm0 = vmmov %vm12961_vm15 }
 0x2e5   : > { %v826_v17 = vmul.u32 58254, %v821_v5  ;;  %v4443_v37 = vadd.f32 %v4442_v57, %v4441_v61  ;;  %v829_v38 = vshll.u32 %v10556_v19, 16  ;;  %vm831_vm4 = vc.u32 %v823_v14, %v827_v26  ;;  %v4103_v57 = vpop.f32.mrf.mxu0 }
 0x2e6   : > { %v810_v54 = vadd.s32 %v809_v10, %v799_v52  ;;  %v4391_v7 = vmul.f32 %v10563_v62, %v10563_v62  ;;  %v3550_v15 = vadd.f32 %v3480_v12, %v9568_v41  ;;  %vm1271_vm8 = vcmp.ne.s32.totalorder %v785_v50, 0 }
 0x2e7   : > { %vm1307_vm12 = vcmp.lt.s32.totalorder %v785_v50, 0  ;;  %v1379_v18 = vadd.s32 18, %v785_v50  ;;  %v828_v20 = vshrl.u32 %v824_v55, 16  ;;  %v832_v3 = vsel %vm831_vm4, 1, %v12859_v11 }
 0x2e8   : > { %vm1343_vm13 = vmand %vm1307_vm12, %vm1271_vm8  ;;  %v811_v59 = vadd.s32 %v810_v54, %v801_v42  ;;  %v4330_v5 = vsel %vm12961_vm15, %v10563_v62, 0.0  ;;  %v3860_v52 = vadd.f32 %v3790_v63, %v3550_v15  ;;  %v833_v44 = vadd.s32 %v827_v26, %v823_v14 }
 0x2e9   : > { %v834_v29 = vadd.s32 %v832_v3, %v826_v17  ;;  %v1415_v56 = vsel %vm1343_vm13, %v1379_v18, %v785_v50  ;;  %v849_v6 = vand.u32 65535, %v10486_v45  ;;  %v850_v41 = vshrl.u32 %v10486_v45, 16 }
 0x2ea   : > { %v812_v49 = vshrl.u32 %v811_v59, 4  ;;  %v4444_v9 = vsel %vm12962_vm0, %v4391_v7, 0.0  ;;  %vm10576_vm8 = vcmp.lt.s32.totalorder %v1415_v56, 16  ;;  %v12963_v61 = vmov 0  ;;  %v3483_v7 = vpop.f32.mrf.mxu2  ;;  %v3793_v15 = vpop.f32.mrf.mxu3 }
 0x2eb   : > { %v12964_v61 = vsel %vm10576_vm8, 4294967295, %v12963_v61  ;;  %v4170_v55 = vadd.f32 %v4100_v23, %v3860_v52  ;;  %vm835_vm4 = vc.u32 %v833_v44, %v829_v38  ;;  %v830_v10 = vshrl.u32 %v10556_v19, 16 }
 0x2ec   : > { %12965 = vst [vmem:[#allocation31_spill] sm:$0xff] %v12964_v61  ;;  %v813_v42 = vmul.u32 18, %v812_v49  ;;  %v836_v14 = vsel %vm835_vm4, 1, %v12859_v11  ;;  %v853_v26 = vmul.u32 58254, %v849_v6  ;;  %v4331_v50 = vadd.f32 %v4330_v5, %v4329_v48 }
 0x2ed   : > { %v10584_v17 = vsel %vm10576_vm8, %v4170_v55, 0.0  ;;  %v838_v12 = vadd.s32 %v836_v14, %v834_v29  ;;  %v854_v63 = vmul.u32 14564, %v850_v41  ;;  %v4445_v54 = vadd.f32 %v4444_v9, %v4443_v37  ;;  %v4106_v29 = vpop.f32.mrf.mxu0 }
 0x2ee   : > { %v814_v18 = vsub.s32 %v10470_v24, %v813_v42  ;;  %v852_v23 = vmul.u32 14564, %v849_v6  ;;  %v856_v38 = vshll.u32 %v853_v26, 16  ;;  %v3551_v59 = vadd.f32 %v3483_v7, %v9572_v33 }
 0x2ef   : > { %v839_v19 = vadd.s32 %v838_v12, %v828_v20  ;;  %v855_v3 = vmul.u32 58254, %v850_v41  ;;  %v10589_v52 = vadd.s32 184, %v9460_v27  ;;  %v4332_v48 = vsel %vm12962_vm0, %v10584_v17, 0.0 }
 0x2f0   : > { %vm1272_vm12 = vcmp.ne.s32.totalorder %v814_v18, 0  ;;  %vm1308_vm13 = vcmp.lt.s32.totalorder %v814_v18, 0  ;;  %v1380_v5 = vadd.s32 18, %v814_v18  ;;  %v4392_v37 = vmul.f32 %v10584_v17, %v10584_v17 }
 0x2f1   : > { %v3861_v44 = vadd.f32 %v3793_v15, %v3551_v59  ;;  %vm1344_vm15 = vmand %vm1308_vm13, %vm1272_vm12  ;;  %v840_v24 = vadd.s32 %v839_v19, %v830_v10  ;;  %v858_v56 = vshll.u32 %v854_v63, 16  ;;  %v857_v20 = vshrl.u32 %v853_v26, 16 }
 0x2f2   : > { %v1416_v33 = vsel %vm1344_vm15, %v1380_v5, %v814_v18  ;;  %vm860_vm4 = vc.u32 %v852_v23, %v856_v38  ;;  %v862_v49 = vadd.s32 %v856_v38, %v852_v23  ;;  %v12966_v6 = vmov 0  ;;  %v3796_v23 = vpop.f32.mrf.mxu3 }
 0x2f3   : > { %vm10595_vm8 = vcmp.lt.s32.totalorder %v1416_v33, 16  ;;  %v4171_v41 = vadd.f32 %v4103_v57, %v3861_v44  ;;  %v841_v9 = vshrl.u32 %v840_v24, 4  ;;  %v861_v55 = vsel %vm860_vm4, 1, %v12859_v11  ;;  %v3486_v57 = vpop.f32.mrf.mxu2 }
 0x2f4   : > { %v12967_v6 = vsel %vm10595_vm8, 4294967295, %v12966_v6  ;;  %v863_v42 = vadd.s32 %v861_v55, %v855_v3  ;;  %vm864_vm0 = vc.u32 %v862_v49, %v858_v56  ;;  %v878_v14 = vand.u32 65535, %v10589_v52 }
 0x2f5   : > { %12968 = vst [vmem:[#allocation32_spill] sm:$0xff] %v12967_v6  ;;  %v879_v10 = vshrl.u32 %v10589_v52, 16  ;;  %vm12969_vm12 = vcmask 31744   ;;  %v10605_v26 = vsel %vm10595_vm8, %v4171_v41, 0.0  ;;  %v842_v7 = vmul.u32 18, %v841_v9 }
 0x2f6   : > { %v4446_v12 = vsel %vm12969_vm12, %v4392_v37, 0.0  ;;  %v865_v15 = vsel %vm864_vm0, 1, %v12859_v11  ;;  %v4333_v18 = vadd.f32 %v4332_v48, %v4331_v50  ;;  %v859_v38 = vshrl.u32 %v854_v63, 16  ;;  %vm12970_vm13 = vmmov %vm12969_vm12  ;;  %v4109_v48 = vpop.f32.mrf.mxu0 }
 0x2f7   : > { %v867_v59 = vadd.s32 %v865_v15, %v863_v42  ;;  %v10609_v19 = vadd.s32 192, %v9460_v27  ;;  %v4393_v3 = vmul.f32 %v10605_v26, %v10605_v26  ;;  %v3552_v5 = vadd.f32 %v3486_v57, %v9576_v32 }
 0x2f8   : > { %v843_v37 = vsub.s32 %v10478_v28, %v842_v7  ;;  %v882_v44 = vmul.u32 58254, %v878_v14  ;;  %v4447_v24 = vadd.f32 %v4446_v12, %v4445_v54  ;;  %v881_v33 = vmul.u32 14564, %v878_v14 }
 0x2f9   : > { %v868_v56 = vadd.s32 %v867_v59, %v857_v20  ;;  %v883_v49 = vmul.u32 14564, %v879_v10  ;;  %v4334_v50 = vsel %vm12970_vm13, %v10605_v26, 0.0  ;;  %v3862_v63 = vadd.f32 %v3796_v23, %v3552_v5 }
 0x2fa   : > { %vm1273_vm15 = vcmp.ne.s32.totalorder %v843_v37, 0  ;;  %vm1309_vm4 = vcmp.lt.s32.totalorder %v843_v37, 0  ;;  %v1381_v41 = vadd.s32 18, %v843_v37  ;;  %v884_v55 = vmul.u32 58254, %v879_v10  ;;  %v3799_v59 = vpop.f32.mrf.mxu3 }
 0x2fb   : > { %vm1345_vm0 = vmand %vm1309_vm4, %vm1273_vm15  ;;  %v869_v9 = vadd.s32 %v868_v56, %v859_v38  ;;  %v885_v42 = vshll.u32 %v882_v44, 16  ;;  %v4448_v32 = vsel %vm12969_vm12, %v4393_v3, 0.0  ;;  %v4172_v28 = vadd.f32 %v4106_v29, %v3862_v63  ;;  %v3489_v29 = vpop.f32.mrf.mxu2 }
 0x2fc   : > { %v887_v7 = vshll.u32 %v883_v49, 16  ;;  %v907_v54 = vand.u32 65535, %v10609_v19  ;;  %v1417_v20 = vsel %vm1345_vm0, %v1381_v41, %v843_v37  ;;  %v4335_v15 = vadd.f32 %v4334_v50, %v4333_v18 }
 0x2fd   : > { %v870_v14 = vshrl.u32 %v869_v9, 4  ;;  %vm889_vm8 = vc.u32 %v881_v33, %v885_v42  ;;  %v891_v12 = vadd.s32 %v885_v42, %v881_v33  ;;  %vm10619_vm13 = vcmp.lt.s32.totalorder %v1417_v20, 16 }
 0x2fe   : > { %v12971_v57 = vmov 0  ;;  %v890_v23 = vsel %vm889_vm8, 1, %v12859_v11  ;;  %v908_v10 = vshrl.u32 %v10609_v19, 16  ;;  %v10627_v38 = vsel %vm10619_vm13, %v4172_v28, 0.0  ;;  %vm12974_vm8 = vmmov %vm12969_vm12  ;;  %v4112_v20 = vpop.f32.mrf.mxu0 }
 0x2ff   : > { %v12972_v57 = vsel %vm10619_vm13, 4294967295, %v12971_v57  ;;  %v871_v3 = vmul.u32 18, %v870_v14  ;;  %v892_v5 = vadd.s32 %v890_v23, %v884_v55  ;;  %vm893_vm15 = vc.u32 %v891_v12, %v887_v7 }
 0x300   : > { %12973 = vst [vmem:[#allocation33_spill] sm:$0xff] %v12972_v57  ;;  %v10629_v37 = vadd.f32 %v4448_v32, %v4447_v24  ;;  %v3553_v18 = vadd.f32 %v3489_v29, %v9583_v21  ;;  %v886_v56 = vshrl.u32 %v882_v44, 16  ;;  %v894_v33 = vsel %vm893_vm15, 1, %v12859_v11 }
 0x301   : > { %v4336_v50 = vsel %vm12974_vm8, %v10627_v38, 0.0  ;;  %v872_v63 = vsub.s32 %v10486_v45, %v871_v3  ;;  %v896_v41 = vadd.s32 %v894_v33, %v892_v5  ;;  %v911_v9 = vmul.u32 58254, %v907_v54 }
 0x302   : > { %v3863_v42 = vadd.f32 %v3799_v59, %v3553_v18  ;;  %v888_v28 = vshrl.u32 %v883_v49, 16  ;;  %v910_v14 = vmul.u32 14564, %v907_v54  ;;  %v912_v55 = vmul.u32 14564, %v908_v10  ;;  %v3802_v5 = vpop.f32.mrf.mxu3 }
 0x303   : > { %v4394_v24 = vmul.f32 %v10627_v38, %v10627_v38  ;;  %vm1274_vm4 = vcmp.ne.s32.totalorder %v872_v63, 0  ;;  %vm1310_vm0 = vcmp.lt.s32.totalorder %v872_v63, 0  ;;  %v1382_v21 = vadd.s32 18, %v872_v63 }
 0x304   : > { %v10638_v44 = vadd.f32 %v4336_v50, %v4335_v15  ;;  %vm1346_vm12 = vmand %vm1310_vm0, %vm1274_vm4  ;;  %v4173_v32 = vadd.f32 %v4109_v48, %v3863_v42  ;;  %v897_v7 = vadd.s32 %v896_v41, %v886_v56  ;;  %v914_v12 = vshll.u32 %v911_v9, 16  ;;  %v3492_v48 = vpop.f32.mrf.mxu2 }
 0x305   : > { %v1418_v45 = vsel %vm1346_vm12, %v1382_v21, %v872_v63  ;;  %v913_v23 = vmul.u32 58254, %v908_v10  ;;  %v916_v29 = vshll.u32 %v912_v55, 16  ;;  %v10641_v49 = vadd.s32 200, %v9460_v27 }
 0x306   : > { %vm10643_vm15 = vcmp.lt.s32.totalorder %v1418_v45, 16  ;;  %v12975_v54 = vmov 0  ;;  %v898_v59 = vadd.s32 %v897_v7, %v888_v28  ;;  %vm918_vm8 = vc.u32 %v910_v14, %v914_v12  ;;  %v4115_v45 = vpop.f32.mrf.mxu0 }
 0x307   : > { %v12976_v54 = vsel %vm10643_vm15, 4294967295, %v12975_v54  ;;  %v920_v3 = vadd.s32 %v914_v12, %v910_v14  ;;  %v10649_v15 = vsel %vm10643_vm15, %v4173_v32, 0.0  ;;  %v919_v18 = vsel %vm918_vm8, 1, %v12859_v11 }
 0x308   : > { %12977 = vst [vmem:[#allocation34_spill] sm:$0xff] %v12976_v54  ;;  %v936_v10 = vand.u32 65535, %v10641_v49  ;;  %v937_v56 = vshrl.u32 %v10641_v49, 16  ;;  %vm12978_vm4 = vcmask 31744   ;;  %v4395_v50 = vmul.f32 %v10649_v15, %v10649_v15 }
 0x309   : > { %v4450_v33 = vsel %vm12978_vm4, %v4394_v24, 0.0  ;;  %v3554_v63 = vadd.f32 %v3492_v48, %v9589_v16  ;;  %v899_v41 = vshrl.u32 %v898_v59, 4  ;;  %v915_v42 = vshrl.u32 %v911_v9, 16  ;;  %vm12979_vm12 = vmmov %vm12978_vm4 }
 0x30a   : > { %v917_v28 = vshrl.u32 %v912_v55, 16  ;;  %v921_v14 = vadd.s32 %v919_v18, %v913_v23  ;;  %vm922_vm0 = vc.u32 %v920_v3, %v916_v29  ;;  %v4338_v21 = vsel %vm12979_vm12, %v10649_v15, 0.0  ;;  %vm12980_vm8 = vmmov %vm12978_vm4 }
 0x30b   : > { %v3864_v32 = vadd.f32 %v3802_v5, %v3554_v63  ;;  %v900_v7 = vmul.u32 18, %v899_v41  ;;  %v923_v12 = vsel %vm922_vm0, 1, %v12859_v11  ;;  %v939_v24 = vmul.u32 14564, %v936_v10 }
 0x30c   : > { %v925_v54 = vadd.s32 %v923_v12, %v921_v14  ;;  %v940_v57 = vmul.u32 58254, %v936_v10  ;;  %v941_v6 = vmul.u32 14564, %v937_v56  ;;  %v4452_v61 = vsel %vm12980_vm8, %v4395_v50, 0.0  ;;  %v3495_v18 = vpop.f32.mrf.mxu2  ;;  %v3805_v10 = vpop.f32.mrf.mxu3 }
 0x30d   : > { %v901_v16 = vsub.s32 %v10589_v52, %v900_v7  ;;  %v4174_v9 = vadd.f32 %v4112_v20, %v3864_v32  ;;  %v10664_v55 = vadd.s32 208, %v9460_v27  ;;  %v942_v29 = vmul.u32 58254, %v937_v56 }
 0x30e   : > { %v926_v23 = vadd.s32 %v925_v54, %v915_v42  ;;  %v943_v59 = vshll.u32 %v940_v57, 16  ;;  %v945_v3 = vshll.u32 %v941_v6, 16  ;;  %v944_v5 = vshrl.u32 %v940_v57, 16  ;;  %v4118_v12 = vpop.f32.mrf.mxu0 }
 0x30f   : > { %vm1275_vm4 = vcmp.ne.s32.totalorder %v901_v16, 0  ;;  %vm1311_vm12 = vcmp.lt.s32.totalorder %v901_v16, 0  ;;  %v1383_v48 = vadd.s32 18, %v901_v16  ;;  %v965_v52 = vand.u32 65535, %v10664_v55 }
 0x310   : > { %vm1347_vm0 = vmand %vm1311_vm12, %vm1275_vm4  ;;  %v927_v63 = vadd.s32 %v926_v23, %v917_v28  ;;  %vm947_vm15 = vc.u32 %v939_v24, %v943_v59  ;;  %v949_v50 = vadd.s32 %v943_v59, %v939_v24  ;;  %v3555_v41 = vadd.f32 %v3495_v18, %v9600_v13 }
 0x311   : > { %v1419_v20 = vsel %vm1347_vm0, %v1383_v48, %v901_v16  ;;  %v948_v54 = vsel %vm947_vm15, 1, %v12859_v11  ;;  %v966_v56 = vshrl.u32 %v10664_v55, 16  ;;  %v12981_v42 = vmov 0 }
 0x312   : > { %vm10670_vm8 = vcmp.lt.s32.totalorder %v1419_v20, 16  ;;  %v928_v57 = vshrl.u32 %v927_v63, 4  ;;  %v950_v14 = vadd.s32 %v948_v54, %v942_v29  ;;  %vm951_vm4 = vc.u32 %v949_v50, %v945_v3 }
 0x313   : > { %v12982_v42 = vsel %vm10670_vm8, 4294967295, %v12981_v42  ;;  %v4451_v28 = vadd.f32 %v4450_v33, %v10629_v37  ;;  %v10677_v32 = vsel %vm10670_vm8, %v4174_v9, 0.0  ;;  %v3865_v7 = vadd.f32 %v3805_v10, %v3555_v41 }
 0x314   : > { %12983 = vst [vmem:[#allocation35_spill] sm:$0xff] %v12982_v42  ;;  %v952_v13 = vsel %vm951_vm4, 1, %v12859_v11  ;;  %v4339_v24 = vadd.f32 %v4338_v21, %v10638_v44  ;;  %v929_v16 = vmul.u32 18, %v928_v57  ;;  %v946_v23 = vshrl.u32 %v941_v6, 16  ;;  %v3808_v21 = vpop.f32.mrf.mxu3 }
 0x315   : > { %v954_v59 = vadd.s32 %v952_v13, %v950_v14  ;;  %v4453_v48 = vadd.f32 %v4452_v61, %v4451_v28  ;;  %v968_v18 = vmul.u32 14564, %v965_v52  ;;  %v969_v63 = vmul.u32 58254, %v965_v52  ;;  %v3498_v61 = vpop.f32.mrf.mxu2 }
 0x316   : > { %v970_v29 = vmul.u32 14564, %v966_v56  ;;  %vm12984_vm15 = vcmask 31744   ;;  %v4396_v33 = vmul.f32 %v10677_v32, %v10677_v32  ;;  %v930_v9 = vsub.s32 %v10609_v19, %v929_v16  ;;  %v4121_v13 = vpop.f32.mrf.mxu0 }
 0x317   : > { %v4340_v37 = vsel %vm12984_vm15, %v10677_v32, 0.0  ;;  %v955_v3 = vadd.s32 %v954_v59, %v944_v5  ;;  %v4175_v10 = vadd.f32 %v4115_v45, %v3865_v7  ;;  %v971_v50 = vmul.u32 58254, %v966_v56 }
 0x318   : > { %v972_v20 = vshll.u32 %v969_v63, 16  ;;  %v974_v44 = vshll.u32 %v970_v29, 16  ;;  %vm1276_vm12 = vcmp.ne.s32.totalorder %v930_v9, 0  ;;  %vm1312_vm0 = vcmp.lt.s32.totalorder %v930_v9, 0 }
 0x319   : > { %v1384_v6 = vadd.s32 18, %v930_v9  ;;  %v956_v52 = vadd.s32 %v955_v3, %v946_v23  ;;  %vm1348_vm4 = vmand %vm1312_vm0, %vm1276_vm12  ;;  %v3556_v41 = vadd.f32 %v3498_v61, %v9604_v4  ;;  %v973_v54 = vshrl.u32 %v969_v63, 16 }
 0x31a   : > { %vm976_vm15 = vc.u32 %v968_v18, %v972_v20  ;;  %v978_v57 = vadd.s32 %v972_v20, %v968_v18  ;;  %v10689_v45 = vadd.s32 216, %v9460_v27  ;;  %v12985_v5 = vmov 0 }
 0x31b   : > { %v1420_v14 = vsel %vm1348_vm4, %v1384_v6, %v930_v9  ;;  %v957_v28 = vshrl.u32 %v956_v52, 4  ;;  %v977_v19 = vsel %vm976_vm15, 1, %v12859_v11  ;;  %v3866_v56 = vadd.f32 %v3808_v21, %v3556_v41 }
 0x31c   : > { %vm10691_vm8 = vcmp.lt.s32.totalorder %v1420_v14, 16  ;;  %v979_v7 = vadd.s32 %v977_v19, %v971_v50  ;;  %vm980_vm13 = vc.u32 %v978_v57, %v974_v44  ;;  %v994_v59 = vand.u32 65535, %v10689_v45 }
 0x31d   : > { %v12986_v5 = vsel %vm10691_vm8, 4294967295, %v12985_v5  ;;  %v10697_v4 = vsel %vm10691_vm8, %v4175_v10, 0.0  ;;  %v958_v16 = vmul.u32 18, %v957_v28  ;;  %v981_v23 = vsel %vm980_vm13, 1, %v12859_v11 }
 0x31e   : > { %12987 = vst [vmem:[#allocation36_spill] sm:$0xff] %v12986_v5  ;;  %v4341_v18 = vadd.f32 %v4340_v37, %v4339_v24  ;;  %vm12988_vm12 = vcmask 31744   ;;  %v975_v9 = vshrl.u32 %v970_v29, 16  ;;  %v983_v3 = vadd.s32 %v981_v23, %v979_v7  ;;  %v3501_v37 = vpop.f32.mrf.mxu2  ;;  %v3811_v29 = vpop.f32.mrf.mxu3 }
 0x31f   : > { %v4454_v63 = vsel %vm12988_vm12, %v4396_v33, 0.0  ;;  %vm12989_vm0 = vmmov %vm12988_vm12  ;;  %v4397_v50 = vmul.f32 %v10697_v4, %v10697_v4  ;;  %v959_v44 = vsub.s32 %v10641_v49, %v958_v16  ;;  %v995_v10 = vshrl.u32 %v10689_v45, 16 }
 0x320   : > { %v4342_v20 = vsel %vm12989_vm0, %v10697_v4, 0.0  ;;  %v4176_v6 = vadd.f32 %v4118_v12, %v3866_v56  ;;  %v984_v61 = vadd.s32 %v983_v3, %v973_v54  ;;  %v997_v21 = vmul.u32 14564, %v994_v59  ;;  %vm12990_vm12 = vmmov %vm12989_vm0 }
 0x321   : > { %v998_v52 = vmul.u32 58254, %v994_v59  ;;  %vm1277_vm13 = vcmp.ne.s32.totalorder %v959_v44, 0  ;;  %vm1313_vm4 = vcmp.lt.s32.totalorder %v959_v44, 0  ;;  %v1385_v24 = vadd.s32 18, %v959_v44  ;;  %v10717_v59 = vpop.f32.mrf.mxu0 }
 0x322   : > { %v10709_v33 = vadd.s32 224, %v9460_v27  ;;  %v4455_v41 = vadd.f32 %v4454_v63, %v4453_v48  ;;  %vm1349_vm15 = vmand %vm1313_vm4, %vm1277_vm13  ;;  %v3557_v57 = vadd.f32 %v3501_v37, %v9615_v35  ;;  %v985_v14 = vadd.s32 %v984_v61, %v975_v9 }
 0x323   : > { %v999_v49 = vmul.u32 14564, %v995_v10  ;;  %v4343_v28 = vadd.f32 %v4342_v20, %v4341_v18  ;;  %v4456_v12 = vsel %vm12990_vm12, %v4397_v50, 0.0  ;;  %v1421_v54 = vsel %vm1349_vm15, %v1385_v24, %v959_v44  ;;  %vm12994_vm15 = vmmov %vm12990_vm12 }
 0x324   : > { %v1001_v19 = vshll.u32 %v998_v52, 16  ;;  %vm10713_vm0 = vcmp.lt.s32.totalorder %v1421_v54, 16  ;;  %v12991_v56 = vmov 0  ;;  %v986_v7 = vshrl.u32 %v985_v14, 4 }
 0x325   : > { %v12992_v56 = vsel %vm10713_vm0, 4294967295, %v12991_v56  ;;  %v1000_v16 = vmul.u32 58254, %v995_v10  ;;  %v1003_v23 = vshll.u32 %v999_v49, 16  ;;  %v10721_v48 = vsel %vm10713_vm0, %v4176_v6, 0.0 }
 0x326   : > { %12993 = vst [vmem:[#allocation37_spill] sm:$0xff] %v12992_v56  ;;  %vm1005_vm13 = vc.u32 %v997_v21, %v1001_v19  ;;  %v1007_v35 = vadd.s32 %v1001_v19, %v997_v21  ;;  %v1023_v18 = vand.u32 65535, %v10709_v33  ;;  %v4457_v63 = vadd.f32 %v4456_v12, %v4455_v41  ;;  %v3814_v41 = vpop.f32.mrf.mxu3 }
 0x327   : > { %v3867_v9 = vadd.f32 %v3811_v29, %v3557_v57  ;;  %v987_v3 = vmul.u32 18, %v986_v7  ;;  %v1002_v20 = vshrl.u32 %v998_v52, 16  ;;  %v4398_v50 = vmul.f32 %v10721_v48, %v10721_v48  ;;  %v3504_v29 = vpop.f32.mrf.mxu2 }
 0x328   : > { %v1006_v44 = vsel %vm1005_vm13, 1, %v12859_v11  ;;  %vm1009_vm4 = vc.u32 %v1007_v35, %v1003_v23  ;;  %v1024_v10 = vshrl.u32 %v10709_v33, 16  ;;  %v1004_v6 = vshrl.u32 %v999_v49, 16  ;;  %vm12995_vm13 = vmmov %vm12994_vm15 }
 0x329   : > { %v988_v61 = vsub.s32 %v10664_v55, %v987_v3  ;;  %v1008_v24 = vadd.s32 %v1006_v44, %v1000_v16  ;;  %v1010_v21 = vsel %vm1009_vm4, 1, %v12859_v11  ;;  %v4344_v37 = vsel %vm12994_vm15, %v10721_v48, 0.0 }
 0x32a   : > { %v1026_v52 = vmul.u32 14564, %v1023_v18  ;;  %v1027_v57 = vmul.u32 58254, %v1023_v18  ;;  %v1028_v14 = vmul.u32 14564, %v1024_v10  ;;  %v4177_v54 = vadd.f32 %v4121_v13, %v3867_v9 }
 0x32b   : > { %vm1278_vm12 = vcmp.ne.s32.totalorder %v988_v61, 0  ;;  %vm1314_vm0 = vcmp.lt.s32.totalorder %v988_v61, 0  ;;  %v1386_v12 = vadd.s32 18, %v988_v61  ;;  %v4458_v19 = vsel %vm12995_vm13, %v4398_v50, 0.0  ;;  %v4127_v50 = vpop.f32.mrf.mxu0 }
 0x32c   : > { %vm1350_vm8 = vmand %vm1314_vm0, %vm1278_vm12  ;;  %v1012_v55 = vadd.s32 %v1010_v21, %v1008_v24  ;;  %v1029_v49 = vmul.u32 58254, %v1024_v10  ;;  %v1030_v7 = vshll.u32 %v1027_v57, 16  ;;  %v4345_v16 = vadd.f32 %v4344_v37, %v4343_v28 }
 0x32d   : > { %v1422_v23 = vsel %vm1350_vm8, %v1386_v12, %v988_v61  ;;  %v3558_v35 = vadd.f32 %v3504_v29, %v9622_v30  ;;  %v1032_v3 = vshll.u32 %v1028_v14, 16  ;;  %v12996_v44 = vmov 0  ;;  %vm12999_vm0 = vmmov %vm12995_vm13 }
 0x32e   : > { %vm10734_vm4 = vcmp.lt.s32.totalorder %v1422_v23, 16  ;;  %v1013_v18 = vadd.s32 %v1012_v55, %v1002_v20  ;;  %vm1034_vm15 = vc.u32 %v1026_v52, %v1030_v7  ;;  %v1036_v56 = vadd.s32 %v1030_v7, %v1026_v52  ;;  %v3817_v12 = vpop.f32.mrf.mxu3  ;;  %vm13000_vm12 = vmmov %vm12999_vm0 }
 0x32f   : > { %v12997_v44 = vsel %vm10734_vm4, 4294967295, %v12996_v44  ;;  %v4459_v5 = vadd.f32 %v4458_v19, %v4457_v63  ;;  %v10740_v13 = vsel %vm10734_vm4, %v4177_v54, 0.0  ;;  %v1035_v9 = vsel %vm1034_vm15, 1, %v12859_v11  ;;  %v3507_v52 = vpop.f32.mrf.mxu2 }
 0x330   : > { %12998 = vst [vmem:[#allocation38_spill] sm:$0xff] %v12997_v44  ;;  %v10744_v28 = vadd.s32 232, %v9460_v27  ;;  %v4399_v30 = vmul.f32 %v10740_v13, %v10740_v13  ;;  %v1014_v10 = vadd.s32 %v1013_v18, %v1004_v6  ;;  %v1031_v61 = vshrl.u32 %v1027_v57, 16 }
 0x331   : > { %v1037_v24 = vadd.s32 %v1035_v9, %v1029_v49  ;;  %v3868_v20 = vadd.f32 %v3814_v41, %v3558_v35  ;;  %vm1038_vm8 = vc.u32 %v1036_v56, %v1032_v3  ;;  %v4346_v37 = vsel %vm12999_vm0, %v10740_v13, 0.0 }
 0x332   : > { %v1052_v63 = vand.u32 65535, %v10744_v28  ;;  %v1053_v21 = vshrl.u32 %v10744_v28, 16  ;;  %v1015_v29 = vshrl.u32 %v1014_v10, 4  ;;  %v1039_v54 = vsel %vm1038_vm8, 1, %v12859_v11 }
 0x333   : > { %v10754_v19 = vadd.s32 240, %v9460_v27  ;;  %v4460_v6 = vsel %vm13000_vm12, %v4399_v30, 0.0  ;;  %v3559_v41 = vadd.f32 %v3507_v52, %v9653_v51  ;;  %v1033_v56 = vshrl.u32 %v1028_v14, 16 }
 0x334   : > { %v1041_v57 = vadd.s32 %v1039_v54, %v1037_v24  ;;  %v1016_v55 = vmul.u32 18, %v1015_v29  ;;  %v1055_v49 = vmul.u32 14564, %v1052_v63  ;;  %v1056_v7 = vmul.u32 58254, %v1052_v63 }
 0x335   : > { %v1057_v23 = vmul.u32 14564, %v1053_v21  ;;  %v4347_v35 = vadd.f32 %v4346_v37, %v4345_v16  ;;  %v4178_v3 = vadd.f32 %v10717_v59, %v3868_v20  ;;  %v1081_v9 = vand.u32 65535, %v10754_v19 }
 0x336   : > { %v1042_v18 = vadd.s32 %v1041_v57, %v1031_v61  ;;  %v10760_v10 = vadd.f32 %v4460_v6, %v4459_v5  ;;  %v1017_v44 = vsub.s32 %v10689_v45, %v1016_v55  ;;  %v1058_v42 = vmul.u32 58254, %v1053_v21  ;;  %v4130_v5 = vpop.f32.mrf.mxu0  ;;  %v3820_v21 = vpop.f32.mrf.mxu3 }
 0x337   : > { %v1059_v30 = vshll.u32 %v1056_v7, 16  ;;  %v3869_v60 = vadd.f32 %v3817_v12, %v3559_v41  ;;  %v1061_v14 = vshll.u32 %v1057_v23, 16  ;;  %v1082_v24 = vshrl.u32 %v10754_v19, 16  ;;  %v3510_v45 = vpop.f32.mrf.mxu2 }
 0x338   : > { %v1043_v51 = vadd.s32 %v1042_v18, %v1033_v56  ;;  %vm1279_vm13 = vcmp.ne.s32.totalorder %v1017_v44, 0  ;;  %vm1315_vm15 = vcmp.lt.s32.totalorder %v1017_v44, 0  ;;  %v1387_v63 = vadd.s32 18, %v1017_v44 }
 0x339   : > { %vm1063_vm8 = vc.u32 %v1055_v49, %v1059_v30  ;;  %vm1351_vm0 = vmand %vm1315_vm15, %vm1279_vm13  ;;  %v1065_v61 = vadd.s32 %v1059_v30, %v1055_v49  ;;  %v1085_v20 = vmul.u32 58254, %v1081_v9  ;;  %v1060_v29 = vshrl.u32 %v1056_v7, 16 }
 0x33a   : > { %v1044_v59 = vshrl.u32 %v1043_v51, 4  ;;  %v1064_v16 = vsel %vm1063_vm8, 1, %v12859_v11  ;;  %v1423_v37 = vsel %vm1351_vm0, %v1387_v63, %v1017_v44  ;;  %v1084_v12 = vmul.u32 14564, %v1081_v9 }
 0x33b   : > { %v1066_v52 = vadd.s32 %v1064_v16, %v1058_v42  ;;  %vm10765_vm12 = vcmp.lt.s32.totalorder %v1423_v37, 16  ;;  %v13001_v54 = vmov 0  ;;  %vm1067_vm4 = vc.u32 %v1065_v61, %v1061_v14 }
 0x33c   : > { %v13002_v54 = vsel %vm10765_vm12, 4294967295, %v13001_v54  ;;  %v1045_v6 = vmul.u32 18, %v1044_v59  ;;  %v1086_v41 = vmul.u32 14564, %v1082_v24  ;;  %v10771_v56 = vsel %vm10765_vm12, %v4178_v3, 0.0 }
 0x33d   : > { %13003 = vst [vmem:[#allocation39_spill] sm:$0xff] %v13002_v54  ;;  %v3560_v57 = vadd.f32 %v3510_v45, %v9673_v53  ;;  %v1068_v44 = vsel %vm1067_vm4, 1, %v12859_v11  ;;  %v1088_v55 = vshll.u32 %v1085_v20, 16  ;;  %vm13004_vm13 = vcmask 31744  }
 0x33e   : > { %v4348_v42 = vsel %vm13004_vm13, %v10771_v56, 0.0  ;;  %v1046_v49 = vsub.s32 %v10709_v33, %v1045_v6  ;;  %v4179_v7 = vadd.f32 %v4127_v50, %v3869_v60  ;;  %v1062_v18 = vshrl.u32 %v1057_v23, 16  ;;  %v3823_v37 = vpop.f32.mrf.mxu3 }
 0x33f   : > { %v4400_v9 = vmul.f32 %v10771_v56, %v10771_v56  ;;  %v1070_v30 = vadd.s32 %v1068_v44, %v1066_v52  ;;  %v1087_v51 = vmul.u32 58254, %v1082_v24  ;;  %v1089_v14 = vshrl.u32 %v1085_v20, 16  ;;  %v3513_v20 = vpop.f32.mrf.mxu2 }
 0x340   : > { %vm1280_vm15 = vcmp.ne.s32.totalorder %v1046_v49, 0  ;;  %vm1316_vm8 = vcmp.lt.s32.totalorder %v1046_v49, 0  ;;  %v1388_v3 = vadd.s32 18, %v1046_v49  ;;  %v1090_v53 = vshll.u32 %v1086_v41, 16 }
 0x341   : > { %v4349_v63 = vadd.f32 %v4348_v42, %v4347_v35  ;;  %vm1352_vm4 = vmand %vm1316_vm8, %vm1280_vm15  ;;  %v3870_v59 = vadd.f32 %v3820_v21, %v3560_v57  ;;  %v1071_v16 = vadd.s32 %v1070_v30, %v1060_v29  ;;  %vm1092_vm0 = vc.u32 %v1084_v12, %v1088_v55 }
 0x342   : > { %v1424_v61 = vsel %vm1352_vm4, %v1388_v3, %v1046_v49  ;;  %v1093_v33 = vsel %vm1092_vm0, 1, %v12859_v11  ;;  %v1094_v60 = vadd.s32 %v1088_v55, %v1084_v12  ;;  %v10782_v50 = vadd.s32 248, %v9460_v27  ;;  %v4133_v55 = vpop.f32.mrf.mxu0 }
 0x343   : > { %vm10784_vm13 = vcmp.lt.s32.totalorder %v1424_v61, 16  ;;  %v13005_v23 = vmov 0  ;;  %v1072_v24 = vadd.s32 %v1071_v16, %v1062_v18  ;;  %v1091_v45 = vshrl.u32 %v1086_v41, 16 }
 0x344   : > { %v13006_v23 = vsel %vm10784_vm13, 4294967295, %v13005_v23  ;;  %v1095_v35 = vadd.s32 %v1093_v33, %v1087_v51  ;;  %vm13008_vm15 = vcmask 31744   ;;  %v10791_v29 = vsel %vm10784_vm13, %v4179_v7, 0.0 }
 0x345   : > { %13007 = vst [vmem:[#allocation40_spill] sm:$0xff] %v13006_v23  ;;  %v4462_v21 = vsel %vm13008_vm15, %v4400_v9, 0.0  ;;  %vm1096_vm8 = vc.u32 %v1094_v60, %v1090_v53  ;;  %v1110_v52 = vand.u32 65535, %v10782_v50  ;;  %vm13009_vm4 = vmmov %vm13008_vm15  ;;  %v1073_v6 = vshrl.u32 %v1072_v24, 4 }
 0x346   : > { %v4350_v12 = vsel %vm13009_vm4, %v10791_v29, 0.0  ;;  %v3561_v57 = vadd.f32 %v3513_v20, %v9691_v58  ;;  %v1097_v44 = vsel %vm1096_vm8, 1, %v12859_v11  ;;  %v4401_v41 = vmul.f32 %v10791_v29, %v10791_v29  ;;  %vm13010_vm0 = vmmov %vm13009_vm4 }
 0x347   : > { %v1099_v42 = vadd.s32 %v1097_v44, %v1095_v35  ;;  %v1111_v49 = vshrl.u32 %v10782_v50, 16  ;;  %v10802_v7 = vadd.s32 256, %v9460_v27  ;;  %v4463_v18 = vadd.f32 %v4462_v21, %v10760_v10  ;;  %v3516_v21 = vpop.f32.mrf.mxu2 }
 0x348   : > { %v1074_v9 = vmul.u32 18, %v1073_v6  ;;  %v1113_v30 = vmul.u32 14564, %v1110_v52  ;;  %v1114_v51 = vmul.u32 58254, %v1110_v52  ;;  %v4351_v3 = vadd.f32 %v4350_v12, %v4349_v63  ;;  %v3826_v52 = vpop.f32.mrf.mxu3 }
 0x349   : > { %v4180_v53 = vadd.f32 %v4130_v5, %v3870_v59  ;;  %v1100_v58 = vadd.s32 %v1099_v42, %v1089_v14  ;;  %v1115_v16 = vmul.u32 14564, %v1111_v49  ;;  %v3871_v33 = vadd.f32 %v3823_v37, %v3561_v57 }
 0x34a   : > { %v1075_v61 = vsub.s32 %v10744_v28, %v1074_v9  ;;  %v1116_v60 = vmul.u32 58254, %v1111_v49  ;;  %v1117_v24 = vshll.u32 %v1114_v51, 16  ;;  %v4464_v20 = vsel %vm13010_vm0, %v4401_v41, 0.0  ;;  %v4136_v49 = vpop.f32.mrf.mxu0 }
 0x34b   : > { %v1101_v35 = vadd.s32 %v1100_v58, %v1091_v45  ;;  %v1119_v44 = vshll.u32 %v1115_v16, 16  ;;  %v1139_v23 = vand.u32 65535, %v10802_v7  ;;  %v3562_v14 = vadd.f32 %v3516_v21, %v9708_v31 }
 0x34c   : > { %vm1281_vm15 = vcmp.ne.s32.totalorder %v1075_v61, 0  ;;  %vm1317_vm8 = vcmp.lt.s32.totalorder %v1075_v61, 0  ;;  %v1389_v10 = vadd.s32 18, %v1075_v61  ;;  %vm1121_vm4 = vc.u32 %v1113_v30, %v1117_v24 }
 0x34d   : > { %vm1353_vm13 = vmand %vm1317_vm8, %vm1281_vm15  ;;  %v1102_v5 = vshrl.u32 %v1101_v35, 4  ;;  %v1122_v28 = vsel %vm1121_vm4, 1, %v12859_v11  ;;  %v1123_v63 = vadd.s32 %v1117_v24, %v1113_v30  ;;  %v1118_v37 = vshrl.u32 %v1114_v51, 16 }
 0x34e   : > { %v1425_v59 = vsel %vm1353_vm13, %v1389_v10, %v1075_v61  ;;  %v1124_v12 = vadd.s32 %v1122_v28, %v1116_v60  ;;  %v1140_v45 = vshrl.u32 %v10802_v7, 16  ;;  %v13011_v6 = vmov 0 }
 0x34f   : > { %vm10811_vm0 = vcmp.lt.s32.totalorder %v1425_v59, 16  ;;  %v1103_v57 = vmul.u32 18, %v1102_v5  ;;  %vm1125_vm12 = vc.u32 %v1123_v63, %v1119_v44  ;;  %v1142_v41 = vmul.u32 14564, %v1139_v23  ;;  %v3519_v63 = vpop.f32.mrf.mxu2 }
 0x350   : > { %v13012_v6 = vsel %vm10811_vm0, 4294967295, %v13011_v6  ;;  %v10817_v42 = vsel %vm10811_vm0, %v4180_v53, 0.0  ;;  %v1126_v31 = vsel %vm1125_vm12, 1, %v12859_v11  ;;  %v1143_v9 = vmul.u32 58254, %v1139_v23 }
 0x351   : > { %13013 = vst [vmem:[#allocation41_spill] sm:$0xff] %v13012_v6  ;;  %v1144_v30 = vmul.u32 14564, %v1140_v45  ;;  %vm13014_vm13 = vcmask 31744   ;;  %v1104_v58 = vsub.s32 %v10754_v19, %v1103_v57  ;;  %v3872_v61 = vadd.f32 %v3826_v52, %v3562_v14 }
 0x352   : > { %v4352_v51 = vsel %vm13014_vm13, %v10817_v42, 0.0  ;;  %v1128_v60 = vadd.s32 %v1126_v31, %v1124_v12  ;;  %v4402_v24 = vmul.f32 %v10817_v42, %v10817_v42  ;;  %v4181_v35 = vadd.f32 %v4133_v55, %v3871_v33 }
 0x353   : > { %v1120_v44 = vshrl.u32 %v1115_v16, 16  ;;  %v1146_v10 = vshll.u32 %v1143_v9, 16  ;;  %vm1282_vm15 = vcmp.ne.s32.totalorder %v1104_v58, 0  ;;  %vm1318_vm8 = vcmp.lt.s32.totalorder %v1104_v58, 0  ;;  %v3829_v16 = vpop.f32.mrf.mxu3 }
 0x354   : > { %v1390_v53 = vadd.s32 18, %v1104_v58  ;;  %v1145_v21 = vmul.u32 58254, %v1140_v45  ;;  %v4465_v5 = vadd.f32 %v4464_v20, %v4463_v18  ;;  %v4353_v23 = vadd.f32 %v4352_v51, %v4351_v3  ;;  %vm1354_vm12 = vmand %vm1318_vm8, %vm1282_vm15 }
 0x355   : > { %v1129_v28 = vadd.s32 %v1128_v60, %v1118_v37  ;;  %v1148_v59 = vshll.u32 %v1144_v30, 16  ;;  %v4182_v19 = vadd.f32 %v4136_v49, %v3872_v61  ;;  %v3563_v52 = vadd.f32 %v3519_v63, %v9716_v22  ;;  %v4139_v60 = vpop.f32.mrf.mxu0 }
 0x356   : > { %v1426_v6 = vsel %vm1354_vm12, %v1390_v53, %v1104_v58  ;;  %vm1150_vm4 = vc.u32 %v1142_v41, %v1146_v10  ;;  %v13015_v14 = vmov 0  ;;  %v1152_v12 = vadd.s32 %v1146_v10, %v1142_v41 }
 0x357   : > { %vm10826_vm13 = vcmp.lt.s32.totalorder %v1426_v6, 16  ;;  %v1130_v55 = vadd.s32 %v1129_v28, %v1120_v44  ;;  %v1151_v33 = vsel %vm1150_vm4, 1, %v12859_v11  ;;  %vm13018_vm0 = vcmask 31744  }
 0x358   : > { %v13016_v14 = vsel %vm10826_vm13, 4294967295, %v13015_v14  ;;  %v4466_v18 = vsel %vm13018_vm0, %v4402_v24, 0.0  ;;  %v10834_v3 = vsel %vm10826_vm13, %v4181_v35, 0.0  ;;  %v1153_v20 = vadd.s32 %v1151_v33, %v1145_v21  ;;  %vm13019_vm8 = vmmov %vm13018_vm0 }
 0x359   : > { %13017 = vst [vmem:[#allocation42_spill] sm:$0xff] %v13016_v14  ;;  %v10837_v37 = vadd.s32 264, %v9460_v27  ;;  %v4403_v22 = vmul.f32 %v10834_v3, %v10834_v3  ;;  %v1131_v45 = vshrl.u32 %v1130_v55, 4  ;;  %v1147_v6 = vshrl.u32 %v1143_v9, 16 }
 0x35a   : > { %vm1154_vm15 = vc.u32 %v1152_v12, %v1148_v59  ;;  %v3873_v57 = vadd.f32 %v3829_v16, %v3563_v52  ;;  %v1149_v31 = vshrl.u32 %v1144_v30, 16  ;;  %v4354_v51 = vsel %vm13018_vm0, %v10834_v3, 0.0 }
 0x35b   : > { %v1155_v41 = vsel %vm1154_vm15, 1, %v12859_v11  ;;  %v1168_v49 = vand.u32 65535, %v10837_v37  ;;  %v1132_v58 = vmul.u32 18, %v1131_v45  ;;  %v1169_v24 = vshrl.u32 %v10837_v37, 16 }
 0x35c   : > { %v1157_v61 = vadd.s32 %v1155_v41, %v1153_v20  ;;  %v4467_v35 = vadd.f32 %v4466_v18, %v4465_v5  ;;  %v10847_v9 = vadd.s32 272, %v9460_v27  ;;  %v4468_v30 = vsel %vm13019_vm8, %v4403_v22, 0.0  ;;  %v3522_v5 = vpop.f32.mrf.mxu2 }
 0x35d   : > { %v1171_v44 = vmul.u32 14564, %v1168_v49  ;;  %v1172_v10 = vmul.u32 58254, %v1168_v49  ;;  %v1133_v53 = vsub.s32 %v10782_v50, %v1132_v58  ;;  %v1173_v28 = vmul.u32 14564, %v1169_v24  ;;  %v3832_v58 = vpop.f32.mrf.mxu3 }
 0x35e   : > { %v1158_v21 = vadd.s32 %v1157_v61, %v1147_v6  ;;  %v4355_v63 = vadd.f32 %v4354_v51, %v4353_v23  ;;  %v4183_v59 = vadd.f32 %v4139_v60, %v3873_v57  ;;  %v1174_v52 = vmul.u32 58254, %v1169_v24 }
 0x35f   : > { %v1175_v55 = vshll.u32 %v1172_v10, 16  ;;  %vm1283_vm12 = vcmp.ne.s32.totalorder %v1133_v53, 0  ;;  %vm1319_vm4 = vcmp.lt.s32.totalorder %v1133_v53, 0  ;;  %v1391_v16 = vadd.s32 18, %v1133_v53 }
 0x360   : > { %v1159_v33 = vadd.s32 %v1158_v21, %v1149_v31  ;;  %v4469_v12 = vadd.f32 %v4468_v30, %v4467_v35  ;;  %vm1355_vm15 = vmand %vm1319_vm4, %vm1283_vm12  ;;  %v1177_v18 = vshll.u32 %v1173_v28, 16  ;;  %v1197_v20 = vand.u32 65535, %v10847_v9 }
 0x361   : > { %vm1179_vm0 = vc.u32 %v1171_v44, %v1175_v55  ;;  %v1427_v22 = vsel %vm1355_vm15, %v1391_v16, %v1133_v53  ;;  %v1181_v6 = vadd.s32 %v1175_v55, %v1171_v44  ;;  %v13020_v23 = vmov 0 }
 0x362   : > { %v1160_v45 = vshrl.u32 %v1159_v33, 4  ;;  %v1180_v50 = vsel %vm1179_vm0, 1, %v12859_v11  ;;  %vm10853_vm8 = vcmp.lt.s32.totalorder %v1427_v22, 16  ;;  %v3564_v57 = vadd.f32 %v3522_v5, %v9811_v40 }
 0x363   : > { %v13021_v23 = vsel %vm10853_vm8, 4294967295, %v13020_v23  ;;  %v1182_v41 = vadd.s32 %v1180_v50, %v1174_v52  ;;  %v1198_v31 = vshrl.u32 %v10847_v9, 16  ;;  %v10861_v49 = vsel %vm10853_vm8, %v4182_v19, 0.0 }
 0x364   : > { %13022 = vst [vmem:[#allocation43_spill] sm:$0xff] %v13021_v23  ;;  %v1161_v51 = vmul.u32 18, %v1160_v45  ;;  %v1176_v61 = vshrl.u32 %v1172_v10, 16  ;;  %vm1183_vm12 = vc.u32 %v1181_v6, %v1177_v18  ;;  %v4404_v60 = vmul.f32 %v10861_v49, %v10861_v49 }
 0x365   : > { %v1184_v24 = vsel %vm1183_vm12, 1, %v12859_v11  ;;  %v1200_v35 = vmul.u32 14564, %v1197_v20  ;;  %v1201_v44 = vmul.u32 58254, %v1197_v20  ;;  %vm13023_vm4 = vcmask 31744  }
 0x366   : > { %v4356_v40 = vsel %vm13023_vm4, %v10861_v49, 0.0  ;;  %v1162_v30 = vsub.s32 %v10802_v7, %v1161_v51  ;;  %v1186_v53 = vadd.s32 %v1184_v24, %v1182_v41  ;;  %v1202_v21 = vmul.u32 14564, %v1198_v31  ;;  %vm13024_vm15 = vmmov %vm13023_vm4  ;;  %v3215_v51 = vpop.f32.mrf.mxu1 }
 0x367   : > { %v4470_v19 = vsel %vm13024_vm15, %v4404_v60, 0.0  ;;  %v3874_v52 = vadd.f32 %v3832_v58, %v3564_v57  ;;  %v1178_v55 = vshrl.u32 %v1173_v28, 16  ;;  %v1204_v10 = vshll.u32 %v1201_v44, 16 }
 0x368   : > { %vm1284_vm0 = vcmp.ne.s32.totalorder %v1162_v30, 0  ;;  %vm1320_vm8 = vcmp.lt.s32.totalorder %v1162_v30, 0  ;;  %v1392_v16 = vadd.s32 18, %v1162_v30  ;;  %v1203_v33 = vmul.u32 58254, %v1198_v31 }
 0x369   : > { %v4357_v5 = vadd.f32 %v4356_v40, %v4355_v63  ;;  %v4471_v18 = vadd.f32 %v4470_v19, %v4469_v12  ;;  %vm1356_vm12 = vmand %vm1320_vm8, %vm1284_vm0  ;;  %v1187_v20 = vadd.s32 %v1186_v53, %v1176_v61  ;;  %v1206_v22 = vshll.u32 %v1202_v21, 16  ;;  %v4142_v12 = vpop.f32.mrf.mxu0  ;;  %v3525_v40 = vpop.f32.mrf.mxu2 }
 0x36a   : > { %v1428_v45 = vsel %vm1356_vm12, %v1392_v16, %v1162_v30  ;;  %v1205_v50 = vshrl.u32 %v1201_v44, 16  ;;  %vm1208_vm4 = vc.u32 %v1200_v35, %v1204_v10  ;;  %v1210_v7 = vadd.s32 %v1204_v10, %v1200_v35  ;;  %vm13028_vm0 = vmmov %vm13024_vm15 }
 0x36b   : > { %vm10870_vm13 = vcmp.lt.s32.totalorder %v1428_v45, 16  ;;  %v13025_v6 = vmov 0  ;;  %v1188_v57 = vadd.s32 %v1187_v20, %v1178_v55  ;;  %v1207_v28 = vshrl.u32 %v1202_v21, 16 }
 0x36c   : > { %v13026_v6 = vsel %vm10870_vm13, 4294967295, %v13025_v6  ;;  %v1209_v41 = vsel %vm1208_vm4, 1, %v12859_v11  ;;  %v10877_v63 = vsel %vm10870_vm13, %v4183_v59, 0.0  ;;  %vm1212_vm8 = vc.u32 %v1210_v7, %v1206_v22  ;;  %v3835_v7 = vpop.f32.mrf.mxu3 }
 0x36d   : > { %13027 = vst [vmem:[#allocation44_spill] sm:$0xff] %v13026_v6  ;;  %v1211_v31 = vadd.s32 %v1209_v41, %v1203_v33  ;;  %v10880_v58 = vadd.s32 280, %v9460_v27  ;;  %v4358_v61 = vsel %vm13024_vm15, %v10877_v63, 0.0  ;;  %v4405_v60 = vmul.f32 %v10877_v63, %v10877_v63 }
 0x36e   : > { %v1189_v24 = vshrl.u32 %v1188_v57, 4  ;;  %v1213_v35 = vsel %vm1212_vm8, 1, %v12859_v11  ;;  %v4359_v44 = vadd.f32 %v4358_v61, %v4357_v5  ;;  %v3255_v21 = vadd.f32 %v3215_v51, %v9645_v39 }
 0x36f   : > { %v1215_v30 = vadd.s32 %v1213_v35, %v1211_v31  ;;  %v1226_v59 = vand.u32 65535, %v10880_v58  ;;  %v1227_v53 = vshrl.u32 %v10880_v58, 16  ;;  %v4472_v27 = vsel %vm13028_vm0, %v4405_v60, 0.0 }
 0x370   : > { %v1190_v19 = vmul.u32 18, %v1189_v24  ;;  %v4473_v55 = vadd.f32 %v4472_v27, %v4471_v18  ;;  %v3565_v22 = vadd.f32 %v3525_v40, %v3255_v21  ;;  %v4184_v5 = vadd.f32 %v4142_v12, %v3874_v52 }
 0x371   : > { %v1216_v10 = vadd.s32 %v1215_v30, %v1205_v50  ;;  %v1229_v16 = vmul.u32 14564, %v1226_v59  ;;  %v1230_v33 = vmul.u32 58254, %v1226_v59  ;;  %v1231_v45 = vmul.u32 14564, %v1227_v53  ;;  %v3218_v59 = vpop.f32.mrf.mxu1 }
 0x372   : > { %v1191_v20 = vsub.s32 %v10837_v37, %v1190_v19  ;;  %v1232_v41 = vmul.u32 58254, %v1227_v53  ;;  %v3875_v60 = vadd.f32 %v3835_v7, %v3565_v22  ;;  %v13029_v37 = vmov 0 }
 0x373   : > { %v1217_v57 = vadd.s32 %v1216_v10, %v1207_v28  ;;  %v1233_v31 = vshll.u32 %v1230_v33, 16  ;;  %v1235_v39 = vshll.u32 %v1231_v45, 16  ;;  %v4145_v28 = vpop.f32.mrf.mxu0  ;;  %v1234_v40 = vshrl.u32 %v1230_v33, 16 }
 0x374   : > { %vm1285_vm12 = vcmp.ne.s32.totalorder %v1191_v20, 0  ;;  %vm1321_vm4 = vcmp.lt.s32.totalorder %v1191_v20, 0  ;;  %v1393_v61 = vadd.s32 18, %v1191_v20 }
 0x375   : > { %vm1357_vm8 = vmand %vm1321_vm4, %vm1285_vm12  ;;  %v1218_v51 = vshrl.u32 %v1217_v57, 4  ;;  %vm1237_vm15 = vc.u32 %v1229_v16, %v1233_v31  ;;  %v1239_v18 = vadd.s32 %v1233_v31, %v1229_v16  ;;  %vm13032_vm12 = vcmask 31744  }
 0x376   : > { %v1429_v50 = vsel %vm1357_vm8, %v1393_v61, %v1191_v20  ;;  %v1238_v24 = vsel %vm1237_vm15, 1, %v12859_v11  ;;  %v4185_v16 = vadd.f32 %v4145_v28, %v3875_v60  ;;  %v1236_v20 = vshrl.u32 %v1231_v45, 16  ;;  %vm13033_vm4 = vmmov %vm13032_vm12 }
 0x377   : > { %vm10893_vm0 = vcmp.lt.s32.totalorder %v1429_v50, 16  ;;  %v1219_v52 = vmul.u32 18, %v1218_v51  ;;  %v1240_v12 = vadd.s32 %v1238_v24, %v1232_v41  ;;  %vm1241_vm13 = vc.u32 %v1239_v18, %v1235_v39  ;;  %v3838_v39 = vpop.f32.mrf.mxu3 }
 0x378   : > { %v13030_v37 = vsel %vm10893_vm0, 4294967295, %v13029_v37  ;;  %v10899_v35 = vsel %vm10893_vm0, %v4184_v5, 0.0  ;;  %v1242_v30 = vsel %vm1241_vm13, 1, %v12859_v11  ;;  %v3528_v5 = vpop.f32.mrf.mxu2  ;;  %v13034_v11 = vld [vmem:[#allocation6_spill] sm:$0xff]  ;;  %v13035_v61 = vmov 0 }
 0x379   : > { %13031 = vst [vmem:[#allocation45_spill] sm:$0xff] %v13030_v37  ;;  %v4360_v53 = vsel %vm13032_vm12, %v10899_v35, 0.0  ;;  %v4406_v21 = vmul.f32 %v10899_v35, %v10899_v35  ;;  %v1220_v27 = vsub.s32 %v10847_v9, %v1219_v52  ;;  %v1244_v19 = vadd.s32 %v1242_v30, %v1240_v12 }
 0x37a   : > { %v4361_v10 = vadd.f32 %v4360_v53, %v4359_v44  ;;  %v3256_v7 = vadd.f32 %v3218_v59, %v13034_v11 }
 0x37b   : > { %v4474_v22 = vsel %vm13033_vm4, %v4406_v21, 0.0  ;;  %vm1286_vm8 = vcmp.ne.s32.totalorder %v1220_v27, 0  ;;  %vm1322_vm15 = vcmp.lt.s32.totalorder %v1220_v27, 0  ;;  %v1394_v33 = vadd.s32 18, %v1220_v27  ;;  %v4148_v12 = vpop.f32.mrf.mxu0 }
 0x37c   : > { %v4475_v57 = vadd.f32 %v4474_v22, %v4473_v55  ;;  %vm1358_vm13 = vmand %vm1322_vm15, %vm1286_vm8  ;;  %v1245_v41 = vadd.s32 %v1244_v19, %v1234_v40  ;;  %v3566_v9 = vadd.f32 %v3528_v5, %v3256_v7  ;;  %v13039_v21 = vmov 0 }
 0x37d   : > { %v1430_v31 = vsel %vm1358_vm13, %v1394_v33, %v1220_v27  ;;  %vm13038_vm8 = vmmov %vm13033_vm4 }
 0x37e   : > { %vm10909_vm12 = vcmp.lt.s32.totalorder %v1430_v31, 16  ;;  %v1246_v44 = vadd.s32 %v1245_v41, %v1236_v20  ;;  %v3876_v24 = vadd.f32 %v3838_v39, %v3566_v9  ;;  %vm13042_vm0 = vmmov %vm13038_vm8 }
 0x37f   : > { %v13036_v61 = vsel %vm10909_vm12, 4294967295, %v13035_v61  ;;  %v10915_v45 = vsel %vm10909_vm12, %v4185_v16, 0.0 }
 0x380   : > { %13037 = vst [vmem:[#allocation6_spill] sm:$0xff] %v13036_v61  ;;  %v4362_v51 = vsel %vm13033_vm4, %v10915_v45, 0.0  ;;  %v4407_v55 = vmul.f32 %v10915_v45, %v10915_v45  ;;  %v1247_v18 = vshrl.u32 %v1246_v44, 4  ;;  %v4186_v59 = vadd.f32 %v4148_v12, %v3876_v24 }
 0x381   : > { %v4363_v50 = vadd.f32 %v4362_v51, %v4361_v10 }
 0x382   : > { %v4476_v60 = vsel %vm13038_vm8, %v4407_v55, 0.0  ;;  %v1248_v52 = vmul.u32 18, %v1247_v18  ;;  %v4760_v18 = vld [vmem:[%s12670_s2] sm:$0xf] }
 0x383   : > { %v4477_v28 = vadd.f32 %v4476_v60, %v4475_v57 }
 0x384   : > { %v1249_v40 = vsub.s32 %v10880_v58, %v1248_v52 }
 0x386   : > { %vm1287_vm15 = vcmp.ne.s32.totalorder %v1249_v40, 0  ;;  %vm1323_vm13 = vcmp.lt.s32.totalorder %v1249_v40, 0  ;;  %v1395_v30 = vadd.s32 18, %v1249_v40 }
 0x387   : > { %vm1359_vm12 = vmand %vm1323_vm13, %vm1287_vm15 }
 0x388   : > { %v1431_v53 = vsel %vm1359_vm12, %v1395_v30, %v1249_v40 }
 0x389   : > { %vm10923_vm4 = vcmp.lt.s32.totalorder %v1431_v53, 16 }
 0x38a   : > { %v13040_v21 = vsel %vm10923_vm4, 4294967295, %v13039_v21  ;;  %v10929_v27 = vsel %vm10923_vm4, %v4186_v59, 0.0 }
 0x38b   : > { %13041 = vst [vmem:[#allocation46_spill] sm:$0xff] %v13040_v21  ;;  %v4364_v19 = vsel %vm13038_vm8, %v10929_v27, 0.0  ;;  %v4408_v58 = vmul.f32 %v10929_v27, %v10929_v27 }
 0x38c   : > { %v4365_v10 = vadd.f32 %v4364_v19, %v4363_v50  ;;  %v8379_v19 = vld [vmem:[%s12670_s2 + $0xc] sm:$0xf] }
 0x38d   : > { %v4478_v16 = vsel %vm13042_vm0, %v4408_v58, 0.0  ;;  %vm13043_vm0 = vcmask 1043456  }
 0x38e   : > { %v4366_v20 = vrot.slane %v4365_v10, 4  ;;  %v4479_v22 = vadd.f32 %v4478_v16, %v4477_v28  ;;  %8304 = vmatpush.msk.msrb.mxu2 %vm13043_vm0, %v4760_v18  ;;  %v8341_v28 = vld [vmem:[%s12670_s2 + $0x8] sm:$0xf]  ;;  %vm13044_vm12 = vmmov %vm13043_vm0  ;;  %v13046_v16 = vld [vmem:[#allocation5_spill] sm:$0xff] }
 0x38f   : > { %8342 = vmatpush.msk.msrb.mxu3 %vm13044_vm12, %v8341_v28  ;;  %vm13045_vm15 = vmmov %vm13043_vm0  ;;  %vm13056_vm12 = vcmask 31744  }
 0x390   : > { %v4367_v33 = vadd.f32 %v4366_v20, %v4365_v10  ;;  %v4480_v5 = vrot.slane %v4479_v22, 4  ;;  %8380 = vmatpush.msk.msrb.mxu0 %vm13045_vm15, %v8379_v19  ;;  %v13055_v19 = vld [vmem:[#allocation23_spill] sm:$0xff]  ;;  %vm13061_vm15 = vmmov %vm13056_vm12 }
 0x392   : > { %v4368_v11 = vrot.slane %v4367_v33, 2  ;;  %v4481_v7 = vadd.f32 %v4480_v5, %v4479_v22  ;;  %v13047_v22 = vld [vmem:[#allocation10_spill] sm:$0xff] }
 0x394   : > { %v4369_v57 = vadd.f32 %v4368_v11, %v4367_v33  ;;  %v4482_v41 = vrot.slane %v4481_v7, 2  ;;  %v13048_v11 = vld [vmem:[#allocation9_spill] sm:$0xff] }
 0x396   : > { %v4370_v31 = vrot.slane %v4369_v57, 1  ;;  %v4483_v9 = vadd.f32 %v4482_v41, %v4481_v7 }
 0x398   : > { %v4371_v44 = vadd.f32 %v4370_v31, %v4369_v57  ;;  %v4484_v39 = vrot.slane %v4483_v9, 1  ;;  %v13049_v57 = vld [vmem:[#allocation11_spill] sm:$0xff]  ;;  %v13050_v31 = vld [vmem:[#allocation13_spill] sm:$0xff] }
 0x39a   : > { %v10936_v51 = vmul.f32 0.00390625, %v4371_v44  ;;  %v4485_v55 = vadd.f32 %v4484_v39, %v4483_v9  ;;  %v13051_v44 = vld [vmem:[#allocation15_spill] sm:$0xff] }
 0x39c   : > { %v4486_v50 = vmul.f32 0.00390625, %v4485_v55  ;;  %v4487_v60 = vmul.f32 %v10936_v51, %v10936_v51  ;;  %v4525_v24 = vsub.f32 %v10929_v27, %v10936_v51  ;;  %v4490_v20 = vsub.f32 %v13046_v16, %v10936_v51  ;;  %v13052_v55 = vld [vmem:[#allocation17_spill] sm:$0xff] }
 0x39d   : > { %v4491_v33 = vsub.f32 %v13047_v22, %v10936_v51  ;;  %v4492_v7 = vsub.f32 %v13048_v11, %v10936_v51  ;;  %v4493_v41 = vsub.f32 %v13049_v57, %v10936_v51  ;;  %v4494_v9 = vsub.f32 %v13050_v31, %v10936_v51 }
 0x39e   : > { %v4488_v52 = vsub.f32 %v4486_v50, %v4487_v60  ;;  %v4495_v39 = vsub.f32 %v13051_v44, %v10936_v51  ;;  %v4496_v18 = vsub.f32 %v13052_v55, %v10936_v51  ;;  %v13053_v50 = vld [vmem:[#allocation19_spill] sm:$0xff]  ;;  %v4500_v16 = vsub.f32 %v10250_v25, %v10936_v51 }
 0x39f   : > { %v4497_v60 = vsub.f32 %v13053_v50, %v10936_v51  ;;  %v4501_v22 = vsub.f32 %v10296_v34, %v10936_v51  ;;  %v4502_v11 = vsub.f32 %v10332_v1, %v10936_v51  ;;  %v4503_v57 = vsub.f32 %v10374_v36, %v10936_v51 }
 0x3a0   : > { %v4489_v12 = vmax.f32 %v4488_v52, 0.0  ;;  %v13054_v52 = vld [vmem:[#allocation3_spill] sm:$0xff]  ;;  %v4504_v31 = vsub.f32 %v10415_v8, %v10936_v51  ;;  %v4506_v25 = vsub.f32 %v10499_v43, %v10936_v51  ;;  %v4507_v34 = vsub.f32 %v10533_v2, %v10936_v51 }
 0x3a1   : > { %v4498_v28 = vsub.f32 %v13054_v52, %v10936_v51  ;;  %v4508_v1 = vsub.f32 %v10563_v62, %v10936_v51  ;;  %v4509_v36 = vsub.f32 %v10584_v17, %v10936_v51  ;;  %v4510_v8 = vsub.f32 %v10605_v26, %v10936_v51 }
 0x3a2   : > { %v4526_v40 = vadd.f32 1e-05, %v4489_v12  ;;  %v4512_v43 = vsub.f32 %v10649_v15, %v10936_v51  ;;  %v4513_v2 = vsub.f32 %v10677_v32, %v10936_v51  ;;  %v4514_v62 = vsub.f32 %v10697_v4, %v10936_v51 }
 0x3a3   : > { %v4515_v17 = vsub.f32 %v10721_v48, %v10936_v51  ;;  %v4516_v26 = vsub.f32 %v10740_v13, %v10936_v51  ;;  %v4518_v15 = vsub.f32 %v10791_v29, %v10936_v51  ;;  %v4519_v32 = vsub.f32 %v10817_v42, %v10936_v51 }
 0x3a4   : > { %8623 = vrsqrt.f32 %v4526_v40  ;;  %vm4533_vm8 = vweird.f32 %v4526_v40  ;;  %v4520_v50 = vsub.f32 %v10834_v3, %v10936_v51 }
 0x3aa   : > { %v8624_v58 = vpop.eup %8623 }
 0x3ab   : > { %v4528_v10 = vmul.f32 %v8624_v58, %v4526_v40  ;;  %vm4534_vm13 = vweird.f32 %v8624_v58 }
 0x3ac   : > { %vm4535_vm0 = vmor %vm4533_vm8, %vm4534_vm13 }
 0x3ad   : > { %v4529_v5 = vmul.f32 %v8624_v58, %v4528_v10  ;;  %v4499_v10 = vsub.f32 %v13055_v19, %v10936_v51  ;;  %vm13062_vm13 = vmmov %vm13056_vm12 }
 0x3ae   : > { %vm13063_vm8 = vmmov %vm13056_vm12 }
 0x3af   : > { %v4530_v12 = vmul.f32 0.5, %v4529_v5  ;;  %v4505_v5 = vsub.f32 %v10456_v47, %v10936_v51  ;;  %v4511_v47 = vsub.f32 %v10627_v38, %v10936_v51  ;;  %v4517_v38 = vsub.f32 %v10771_v56, %v10936_v51 }
 0x3b1   : > { %v4531_v44 = vsub.f32 1.5, %v4530_v12 }
 0x3b3   : > { %v4532_v55 = vmul.f32 %v8624_v58, %v4531_v44 }
 0x3b5   : > { %v4536_v40 = vsel %vm4535_vm0, %v8624_v58, %v4532_v55  ;;  %vm13064_vm0 = vmmov %vm13063_vm8 }
 0x3b6   : > { %v4572_v4 = vmul.f32 %v4536_v40, %v4525_v24  ;;  %v4537_v52 = vmul.f32 %v4536_v40, %v4490_v20  ;;  %v4538_v12 = vmul.f32 %v4536_v40, %v4491_v33  ;;  %v4539_v48 = vmul.f32 %v4536_v40, %v4492_v7  ;;  %vm13066_vm4 = vmmov %vm13064_vm0 }
 0x3b7   : > { %v4540_v19 = vmul.f32 %v4536_v40, %v4493_v41  ;;  %v4541_v44 = vmul.f32 %v4536_v40, %v4494_v9  ;;  %v4542_v13 = vmul.f32 %v4536_v40, %v4495_v39  ;;  %v4543_v27 = vmul.f32 %v4536_v40, %v4496_v18  ;;  %vm13067_vm1 = vmmov %vm13064_vm0 }
 0x3b8   : > { %v4608_v53 = vmax.f32 %v4572_v4, 0.0  ;;  %v4544_v56 = vmul.f32 %v4536_v40, %v4497_v60  ;;  %v4545_v58 = vmul.f32 %v4536_v40, %v4498_v28  ;;  %v4546_v55 = vmul.f32 %v4536_v40, %v4499_v10  ;;  %vm13091_vm11 = vmmov %vm13064_vm0 }
 0x3b9   : > { %v4547_v59 = vmul.f32 %v4536_v40, %v4500_v16  ;;  %v4548_v29 = vmul.f32 %v4536_v40, %v4501_v22  ;;  %v4549_v30 = vmul.f32 %v4536_v40, %v4502_v11  ;;  %v4550_v21 = vmul.f32 %v4536_v40, %v4503_v57 }
 0x3ba   : > { %4646 = vst.msk [vmem:[#allocation2 + $0x12b] sm:$0xff] %vm13056_vm12, %v4608_v53  ;;  %v4551_v42 = vmul.f32 %v4536_v40, %v4504_v31  ;;  %v4552_v3 = vmul.f32 %v4536_v40, %v4505_v5  ;;  %v4553_v24 = vmul.f32 %v4536_v40, %v4506_v25  ;;  %v4554_v20 = vmul.f32 %v4536_v40, %v4507_v34  ;;  %vm13065_vm12 = vmmov %vm13064_vm0 }
 0x3bb   : > { %v4555_v33 = vmul.f32 %v4536_v40, %v4508_v1  ;;  %v4556_v7 = vmul.f32 %v4536_v40, %v4509_v36  ;;  %v4557_v41 = vmul.f32 %v4536_v40, %v4510_v8  ;;  %v4558_v9 = vmul.f32 %v4536_v40, %v4511_v47 }
 0x3bc   : > { %v11025_v39 = vmul.f32 %v4536_v40, %v4512_v43  ;;  %v11027_v18 = vmul.f32 %v4536_v40, %v4513_v2  ;;  %v11029_v60 = vmul.f32 %v4536_v40, %v4514_v62  ;;  %v11031_v28 = vmul.f32 %v4536_v40, %v4515_v17 }
 0x3bd   : > { %v11033_v10 = vmul.f32 %v4536_v40, %v4516_v26  ;;  %v11035_v16 = vmul.f32 %v4536_v40, %v4517_v38  ;;  %v11037_v53 = vmul.f32 %v4536_v40, %v4518_v15  ;;  %v11039_v22 = vmul.f32 %v4536_v40, %v4519_v32 }
 0x3be   : > { %v11041_v11 = vmul.f32 %v4536_v40, %v4520_v50  ;;  %v13057_v57 = vsub.f32 %v10861_v49, %v10936_v51  ;;  %v13058_v5 = vsub.f32 %v10877_v63, %v10936_v51  ;;  %v13059_v34 = vsub.f32 %v10899_v35, %v10936_v51 }
 0x3bf   : > { %v13060_v36 = vsub.f32 %v10915_v45, %v10936_v51  ;;  %v4573_v47 = vmax.f32 %v4537_v52, 0.0  ;;  %v4574_v43 = vmax.f32 %v4538_v12, 0.0  ;;  %v4575_v49 = vmax.f32 %v4539_v48, 0.0 }
 0x3c0   : > { %v11046_v31 = vmul.f32 %v4536_v40, %v13057_v57  ;;  %v11051_v25 = vmul.f32 %v4536_v40, %v13058_v5  ;;  %v11056_v1 = vmul.f32 %v4536_v40, %v13059_v34  ;;  %v4576_v2 = vmax.f32 %v4540_v19, 0.0 }
 0x3c1   : > { %v11061_v8 = vmul.f32 %v4536_v40, %v13060_v36  ;;  %v4577_v62 = vmax.f32 %v4541_v44, 0.0  ;;  %4611 = vst.msk [vmem:[#allocation2 + $0x13] sm:$0xff] %vm13061_vm15, %v4573_v47  ;;  %v4578_v63 = vmax.f32 %v4542_v13, 0.0  ;;  %v4579_v17 = vmax.f32 %v4543_v27, 0.0  ;;  %vm13068_vm15 = vmmov %vm13064_vm0  ;;  %v8417_v13 = vld [vmem:[%s12670_s2 + $0x10] sm:$0xf] }
 0x3c2   : > { %4612 = vst.msk [vmem:[#allocation2 + $0x1b] sm:$0xff] %vm13062_vm13, %v4574_v43  ;;  %v4580_v35 = vmax.f32 %v4544_v56, 0.0  ;;  %v4581_v26 = vmax.f32 %v4545_v58, 0.0  ;;  %v4582_v45 = vmax.f32 %v4546_v55, 0.0  ;;  %v4583_v51 = vmax.f32 %v4547_v59, 0.0  ;;  %vm13069_vm13 = vmmov %vm13064_vm0 }
 0x3c3   : > { %4613 = vst.msk [vmem:[#allocation2 + $0x23] sm:$0xff] %vm13063_vm8, %v4575_v49  ;;  %v4584_v38 = vmax.f32 %v4548_v29, 0.0  ;;  %v4585_v40 = vmax.f32 %v4549_v30, 0.0  ;;  %v4586_v27 = vmax.f32 %v4550_v21, 0.0  ;;  %vm13070_vm8 = vmmov %vm13064_vm0  ;;  %v4587_v15 = vmax.f32 %v4551_v42, 0.0 }
 0x3c4   : > { %4614 = vst.msk [vmem:[#allocation2 + $0x2b] sm:$0xff] %vm13064_vm0, %v4576_v2  ;;  %v4588_v32 = vmax.f32 %v4552_v3, 0.0  ;;  %v4589_v50 = vmax.f32 %v4553_v24, 0.0  ;;  %v4590_v59 = vmax.f32 %v4554_v20, 0.0  ;;  %v4591_v4 = vmax.f32 %v4555_v33, 0.0 }
 0x3c5   : > { %4615 = vst.msk [vmem:[#allocation2 + $0x33] sm:$0xff] %vm13065_vm12, %v4577_v62  ;;  %vm13071_vm12 = vmmov %vm13064_vm0  ;;  %v4592_v30 = vmax.f32 %v4556_v7, 0.0  ;;  %v4593_v21 = vmax.f32 %v4557_v41, 0.0  ;;  %v4594_v52 = vmax.f32 %v4558_v9, 0.0  ;;  %v4595_v12 = vmax.f32 %v11025_v39, 0.0 }
 0x3c6   : > { %4616 = vst.msk [vmem:[#allocation2 + $0x3b] sm:$0xff] %vm13066_vm4, %v4578_v63  ;;  %vm13072_vm4 = vmmov %vm13064_vm0  ;;  %v4596_v48 = vmax.f32 %v11027_v18, 0.0  ;;  %v4597_v19 = vmax.f32 %v11029_v60, 0.0  ;;  %v4598_v44 = vmax.f32 %v11031_v28, 0.0  ;;  %v4599_v56 = vmax.f32 %v11033_v10, 0.0 }
 0x3c7   : > { %4617 = vst.msk [vmem:[#allocation2 + $0x43] sm:$0xff] %vm13067_vm1, %v4579_v17  ;;  %vm13073_vm1 = vmmov %vm13064_vm0  ;;  %v4600_v58 = vmax.f32 %v11035_v16, 0.0  ;;  %v4601_v55 = vmax.f32 %v11037_v53, 0.0  ;;  %v4602_v29 = vmax.f32 %v11039_v22, 0.0  ;;  %v4603_v42 = vmax.f32 %v11041_v11, 0.0 }
 0x3c8   : > { %4618 = vst.msk [vmem:[#allocation2 + $0x4b] sm:$0xff] %vm13068_vm15, %v4580_v35  ;;  %vm13074_vm15 = vmmov %vm13064_vm0  ;;  %v4604_v3 = vmax.f32 %v11046_v31, 0.0  ;;  %v4605_v24 = vmax.f32 %v11051_v25, 0.0  ;;  %v4606_v20 = vmax.f32 %v11056_v1, 0.0  ;;  %v4607_v33 = vmax.f32 %v11061_v8, 0.0 }
 0x3c9   : > { %4619 = vst.msk [vmem:[#allocation2 + $0x53] sm:$0xff] %vm13069_vm13, %v4581_v26  ;;  %vm13075_vm13 = vmmov %vm13064_vm0  ;;  %v4647_v7 = vld [vmem:[#allocation2 + $0x14] sm:$0x1]  ;;  %v4650_v18 = vld [vmem:[#allocation2 + $0x21] sm:$0x1] }
 0x3ca   : > { %4620 = vst.msk [vmem:[#allocation2 + $0x5b] sm:$0xff] %vm13070_vm8, %v4582_v45  ;;  %vm13076_vm8 = vmmov %vm13064_vm0  ;;  %v4652_v41 = vld [vmem:[#allocation2 + $0x26] sm:$0x1]  ;;  %v11139_v36 = vld [vmem:[#allocation2 + $0x1a] sm:$0xff] }
 0x3cb   : > { %4621 = vst.msk [vmem:[#allocation2 + $0x63] sm:$0xff] %vm13064_vm0, %v4583_v51 }
 0x3cc   : > { %4622 = vst.msk [vmem:[#allocation2 + $0x6b] sm:$0xff] %vm13071_vm12, %v4584_v38  ;;  %vm13077_vm12 = vmmov %vm13064_vm0  ;;  %v4654_v9 = vld [vmem:[#allocation2 + $0x33] sm:$0x1]  ;;  %v4656_v60 = vld [vmem:[#allocation2 + $0x38] sm:$0x1] }
 0x3cd   : > { %4623 = vst.msk [vmem:[#allocation2 + $0x73] sm:$0xff] %vm13072_vm4, %v4585_v40  ;;  %vm13078_vm4 = vmmov %vm13064_vm0  ;;  %v11116_v39 = vld [vmem:[#allocation2 + $0x2c] sm:$0xff] }
 0x3ce   : > { %4624 = vst.msk [vmem:[#allocation2 + $0x7b] sm:$0xff] %vm13073_vm1, %v4586_v27  ;;  %vm13079_vm1 = vmmov %vm13064_vm0  ;;  %v4658_v28 = vld [vmem:[#allocation2 + $0x45] sm:$0x1]  ;;  %v4660_v10 = vld [vmem:[#allocation2 + $0x4a] sm:$0x1] }
 0x3cf   : > { %4625 = vst.msk [vmem:[#allocation2 + $0x83] sm:$0xff] %vm13074_vm15, %v4587_v15  ;;  %vm13080_vm15 = vmmov %vm13064_vm0 }
 0x3d0   : > { %4626 = vst.msk [vmem:[#allocation2 + $0x8b] sm:$0xff] %vm13075_vm13, %v4588_v32  ;;  %vm13081_vm13 = vmmov %vm13064_vm0  ;;  %v4662_v16 = vld [vmem:[#allocation2 + $0x57] sm:$0x1] }
 0x3d1   : > { %4627 = vst.msk [vmem:[#allocation2 + $0x93] sm:$0xff] %vm13076_vm8, %v4589_v50  ;;  %vm13082_vm8 = vcmask 1043456   ;;  %v4664_v11 = vld [vmem:[#allocation2 + $0x5c] sm:$0x1] }
 0x3d2   : > { %4628 = vst.msk [vmem:[#allocation2 + $0x9b] sm:$0xff] %vm13064_vm0, %v4590_v59  ;;  %8418 = vmatpush.msk.msrb.mxu1 %vm13082_vm8, %v8417_v13  ;;  %vm13088_vm8 = vmmov %vm13064_vm0  ;;  %v4666_v31 = vld [vmem:[#allocation2 + $0x69] sm:$0x1] }
 0x3d3   : > { %4629 = vst.msk [vmem:[#allocation2 + $0xa3] sm:$0xff] %vm13077_vm12, %v4591_v4  ;;  %vm13083_vm12 = vmmov %vm13064_vm0  ;;  %v4668_v5 = vld [vmem:[#allocation2 + $0x6e] sm:$0x1] }
 0x3d4   : > { %4630 = vst.msk [vmem:[#allocation2 + $0xab] sm:$0xff] %vm13078_vm4, %v4592_v30  ;;  %vm13084_vm4 = vmmov %vm13064_vm0 }
 0x3d5   : > { %4631 = vst.msk [vmem:[#allocation2 + $0xb3] sm:$0xff] %vm13079_vm1, %v4593_v21  ;;  %vm13085_vm1 = vmmov %vm13064_vm0  ;;  %v4670_v25 = vld [vmem:[#allocation2 + $0x7b] sm:$0x1]  ;;  %v4672_v34 = vld [vmem:[#allocation2 + $0x80] sm:$0x1] }
 0x3d6   : > { %4632 = vst.msk [vmem:[#allocation2 + $0xbb] sm:$0xff] %vm13080_vm15, %v4594_v52  ;;  %vm13086_vm15 = vmmov %vm13064_vm0 }
 0x3d7   : > { %4633 = vst.msk [vmem:[#allocation2 + $0xc3] sm:$0xff] %vm13081_vm13, %v4595_v12  ;;  %vm13087_vm13 = vmmov %vm13064_vm0  ;;  %v4674_v1 = vld [vmem:[#allocation2 + $0x8d] sm:$0x1]  ;;  %v4676_v8 = vld [vmem:[#allocation2 + $0x92] sm:$0x1] }
 0x3d8   : > { %4634 = vst.msk [vmem:[#allocation2 + $0xcb] sm:$0xff] %vm13064_vm0, %v4596_v48  ;;  %v5584_v48 = vld [vmem:[#allocation2 + $0x2a] sm:$0xff]  ;;  %v5907_v61 = vld [vmem:[#allocation2 + $0x93] sm:$0xff] }
 0x3d9   : > { %4635 = vst.msk [vmem:[#allocation2 + $0xd3] sm:$0xff] %vm13083_vm12, %v4597_v19  ;;  %vm13089_vm12 = vmmov %vm13064_vm0  ;;  %v4678_v47 = vld [vmem:[#allocation2 + $0x9f] sm:$0x1]  ;;  %v4710_v19 = vld [vmem:[#allocation2 + $0x12f] sm:$0x1] }
 0x3da   : > { %4636 = vst.msk [vmem:[#allocation2 + $0xdb] sm:$0xff] %vm13084_vm4, %v4598_v44  ;;  %vm4648_vm4 = vcmask 24576   ;;  %v4680_v43 = vld [vmem:[#allocation2 + $0xa4] sm:$0x1] }
 0x3db   : > { %4637 = vst.msk [vmem:[#allocation2 + $0xe3] sm:$0xff] %vm13085_vm1, %v4599_v56  ;;  %vm13090_vm1 = vmmov %vm13064_vm0  ;;  %v4682_v63 = vld [vmem:[#allocation2 + $0xb1] sm:$0x1]  ;;  %v8640_v56 = vmov 0.0  }
 0x3dc   : > { %4638 = vst.msk [vmem:[#allocation2 + $0xeb] sm:$0xff] %vm13086_vm15, %v4600_v58  ;;  %vm13092_vm15 = vmmov %vm13064_vm0  ;;  %v4684_v17 = vld [vmem:[#allocation2 + $0xb6] sm:$0x1] }
 0x3dd   : > { %4639 = vst.msk [vmem:[#allocation2 + $0xf3] sm:$0xff] %vm13087_vm13, %v4601_v55  ;;  %vm13093_vm13 = vmmov %vm13064_vm0  ;;  %v4764_v55 = vld [vmem:[#allocation2 + $0x19] sm:$0xff] }
 0x3de   : > { %4640 = vst.msk [vmem:[#allocation2 + $0xfb] sm:$0xff] %vm13088_vm8, %v4602_v29  ;;  %vm13094_vm8 = vmmov %vm13064_vm0  ;;  %v4686_v35 = vld [vmem:[#allocation2 + $0xc3] sm:$0x1]  ;;  %v4688_v26 = vld [vmem:[#allocation2 + $0xc8] sm:$0x1] }
 0x3df   : > { %4641 = vst.msk [vmem:[#allocation2 + $0x103] sm:$0xff] %vm13064_vm0, %v4603_v42  ;;  %v4727_v29 = vld [vmem:[#allocation2 + $0x18] sm:$0xff] }
 0x3e0   : > { %4642 = vst.msk [vmem:[#allocation2 + $0x10b] sm:$0xff] %vm13089_vm12, %v4604_v3  ;;  %vm13095_vm12 = vmmov %vm13064_vm0  ;;  %v4690_v45 = vld [vmem:[#allocation2 + $0xd5] sm:$0x1]  ;;  %v4692_v51 = vld [vmem:[#allocation2 + $0xda] sm:$0x1] }
 0x3e1   : > { %4643 = vst.msk [vmem:[#allocation2 + $0x113] sm:$0xff] %vm13090_vm1, %v4605_v24  ;;  %vm13096_vm1 = vmmov %vm13064_vm0  ;;  %v5586_v42 = vld [vmem:[#allocation2 + $0x3a] sm:$0xff]  ;;  %v7152_v37 = vld [vmem:[#allocation2 + $0xce] sm:$0xff] }
 0x3e2   : > { %4644 = vst.msk [vmem:[#allocation2 + $0x11b] sm:$0xff] %vm13091_vm11, %v4606_v20  ;;  %vm12750_vm11 = vcmask 25600   ;;  %v4694_v40 = vld [vmem:[#allocation2 + $0xe7] sm:$0x1] }
 0x3e3   : > { %4645 = vst.msk [vmem:[#allocation2 + $0x123] sm:$0xff] %vm13092_vm15, %v4607_v33  ;;  %vm13097_vm15 = vmmov %vm13064_vm0  ;;  %v4696_v32 = vld [vmem:[#allocation2 + $0xec] sm:$0x1] }
 0x3e4   : > { %4649 = vst.msk [vmem:[#allocation2 + $0x12] sm:$0x1] %vm4648_vm4, %v4647_v7  ;;  %v4698_v59 = vld [vmem:[#allocation2 + $0xf9] sm:$0x1]  ;;  %v4766_v33 = vld [vmem:[#allocation2 + $0x29] sm:$0xff] }
 0x3e5   : > { %4653 = vst.msk [vmem:[#allocation2 + $0x24] sm:$0x1] %vm4648_vm4, %v4652_v41  ;;  %v4700_v4 = vld [vmem:[#allocation2 + $0xfe] sm:$0x1]  ;;  %v4729_v7 = vld [vmem:[#allocation2 + $0x28] sm:$0xff] }
 0x3e6   : > { %4655 = vst.msk [vmem:[#allocation2 + $0x35] sm:$0x1] %vm4648_vm4, %v4654_v9  ;;  %v7158_v23 = vld [vmem:[#allocation2 + $0xfe] sm:$0xff] }
 0x3e7   : > { %4716 = vst.msk [vmem:[#allocation2 + $0x8] sm:$0xff] %vm13093_vm13, %v11116_v39  ;;  %vm13098_vm13 = vmmov %vm13064_vm0  ;;  %v4702_v30 = vld [vmem:[#allocation2 + $0x10b] sm:$0x1]  ;;  %v4704_v21 = vld [vmem:[#allocation2 + $0x110] sm:$0x1] }
 0x3e8   : > { %4651 = vst.msk [vmem:[#allocation2 + $0x23] sm:$0x1] %vm4648_vm4, %v4650_v18 }
 0x3e9   : > { %4657 = vst.msk [vmem:[#allocation2 + $0x36] sm:$0x1] %vm4648_vm4, %v4656_v60  ;;  %v4706_v52 = vld [vmem:[#allocation2 + $0x11d] sm:$0x1]  ;;  %v4708_v12 = vld [vmem:[#allocation2 + $0x122] sm:$0x1] }
 0x3ea   : > { %4659 = vst.msk [vmem:[#allocation2 + $0x47] sm:$0x1] %vm4648_vm4, %v4658_v28  ;;  %v11194_v9 = vld [vmem:[#allocation2 + $0x116] sm:$0xff]  ;;  %v5588_v60 = vld [vmem:[#allocation2 + $0x4a] sm:$0xff] }
 0x3eb   : > { %v11125_v53 = vld [vmem:[#allocation2 + $0x12] sm:$0xff]  ;;  %4661 = vst.msk [vmem:[#allocation2 + $0x48] sm:$0x1] %vm4648_vm4, %v4660_v10 }
 0x3ec   : > { %8381 = vmatmul.msk.f32.vlgmr.msrb.gmra.mxu0 %vm13094_vm8, %v11125_v53  ;;  %v11130_v22 = vld [vmem:[#allocation2 + $0x24] sm:$0xff]  ;;  %4663 = vst.msk [vmem:[#allocation2 + $0x59] sm:$0x1] %vm4648_vm4, %v4662_v16  ;;  %vm13099_vm8 = vmmov %vm13064_vm0 }
 0x3ed   : > { %4715 = vst.msk [vmem:[#allocation2] sm:$0xff] %vm13064_vm0, %v11130_v22  ;;  %v4714_v57 = vld [vmem:[#allocation2 + $0x34] sm:$0x3] }
 0x3ee   : > { %4717 = vst.msk [vmem:[#allocation2 + $0x10] sm:$0x3] %vm12750_vm11, %v4714_v57  ;;  %v4725_v15 = vld [vmem:[#allocation2 + $0x8] sm:$0xff] }
 0x3ef   : > { %4665 = vst.msk [vmem:[#allocation2 + $0x5a] sm:$0x1] %vm4648_vm4, %v4664_v11  ;;  %v5583_v38 = vld [vmem:[#allocation2 + $0x22] sm:$0xff]  ;;  %v4731_v11 = vld [vmem:[#allocation2 + $0x38] sm:$0xff] }
 0x3f0   : > { %4667 = vst.msk [vmem:[#allocation2 + $0x6b] sm:$0x1] %vm4648_vm4, %v4666_v31  ;;  %v5585_v58 = vld [vmem:[#allocation2 + $0x32] sm:$0xff]  ;;  %v4765_v3 = vld [vmem:[#allocation2 + $0x21] sm:$0xff] }
 0x3f1   : > { %4669 = vst.msk [vmem:[#allocation2 + $0x6c] sm:$0x1] %vm4648_vm4, %v4668_v5  ;;  %v4728_v24 = vld [vmem:[#allocation2 + $0x20] sm:$0xff]  ;;  %v4767_v28 = vld [vmem:[#allocation2 + $0x31] sm:$0xff] }
 0x3f2   : > { %4671 = vst.msk [vmem:[#allocation2 + $0x7d] sm:$0x1] %vm4648_vm4, %v4670_v25  ;;  %v5587_v20 = vld [vmem:[#allocation2 + $0x42] sm:$0xff]  ;;  %v4730_v10 = vld [vmem:[#allocation2 + $0x30] sm:$0xff] }
 0x3f3   : > { %4673 = vst.msk [vmem:[#allocation2 + $0x7e] sm:$0x1] %vm4648_vm4, %v4672_v34  ;;  %v5589_v16 = vld [vmem:[#allocation2 + $0x52] sm:$0xff]  ;;  %v4769_v31 = vld [vmem:[#allocation2 + $0x41] sm:$0xff]  ;;  %v4770_v34 = vld [vmem:[#allocation2 + $0x49] sm:$0xff] }
 0x3f4   : > { %v4761_v49 = vld [vmem:[#allocation2 + $0x1] sm:$0xff]  ;;  %8382 = vmatmul.msk.f32.gmra.mxu0 %vm13095_vm12, %v11139_v36  ;;  %4675 = vst.msk [vmem:[#allocation2 + $0x8f] sm:$0x1] %vm4648_vm4, %v4674_v1  ;;  %vm13100_vm12 = vmmov %vm13064_vm0 }
 0x3f5   : > { %v4724_v2 = vld [vmem:[#allocation2] sm:$0xff]  ;;  %8268 = vmatmul.msk.f32.vlgmr.msra.gmra.mxu1 %vm13096_vm1, %v4761_v49  ;;  %4677 = vst.msk [vmem:[#allocation2 + $0x90] sm:$0x1] %vm4648_vm4, %v4676_v8  ;;  %v4762_v27 = vld [vmem:[#allocation2 + $0x9] sm:$0xff]  ;;  %vm13101_vm1 = vmmov %vm13064_vm0 }
 0x3f6   : > { %v5271_v62 = vld [vmem:[#allocation2 + $0x2] sm:$0xff]  ;;  %8305 = vmatmul.msk.f32.vlgmr.msrb.gmra.mxu2 %vm13097_vm15, %v4724_v2  ;;  %4679 = vst.msk [vmem:[#allocation2 + $0xa1] sm:$0x1] %vm4648_vm4, %v4678_v47  ;;  %v5272_v50 = vld [vmem:[#allocation2 + $0xa] sm:$0xff]  ;;  %vm13102_vm15 = vmmov %vm13064_vm0 }
 0x3f7   : > { %8343 = vmatmul.msk.f32.vlgmr.msrb.gmra.mxu3 %vm13098_vm13, %v5271_v62  ;;  %4681 = vst.msk [vmem:[#allocation2 + $0xa2] sm:$0x1] %vm4648_vm4, %v4680_v43  ;;  %v4763_v44 = vld [vmem:[#allocation2 + $0x11] sm:$0xff]  ;;  %vm13103_vm13 = vmmov %vm13064_vm0  ;;  %v5590_v57 = vld [vmem:[#allocation2 + $0x5a] sm:$0xff] }
 0x3f8   : > { %4683 = vst.msk [vmem:[#allocation2 + $0xb3] sm:$0x1] %vm4648_vm4, %v4682_v63  ;;  %v4726_v13 = vld [vmem:[#allocation2 + $0x10] sm:$0xff]  ;;  %v4732_v5 = vld [vmem:[#allocation2 + $0x40] sm:$0xff]  ;;  %v4733_v1 = vld [vmem:[#allocation2 + $0x48] sm:$0xff] }
 0x3f9   : > { %4685 = vst.msk [vmem:[#allocation2 + $0xb4] sm:$0x1] %vm4648_vm4, %v4684_v17  ;;  %v5591_v25 = vld [vmem:[#allocation2 + $0x62] sm:$0xff]  ;;  %v4771_v8 = vld [vmem:[#allocation2 + $0x51] sm:$0xff]  ;;  %v4772_v49 = vld [vmem:[#allocation2 + $0x59] sm:$0xff] }
 0x3fa   : > { %4687 = vst.msk [vmem:[#allocation2 + $0xc5] sm:$0x1] %vm4648_vm4, %v4686_v35  ;;  %v4734_v47 = vld [vmem:[#allocation2 + $0x50] sm:$0xff]  ;;  %v4735_v2 = vld [vmem:[#allocation2 + $0x58] sm:$0xff]  ;;  %v4773_v63 = vld [vmem:[#allocation2 + $0x61] sm:$0xff] }
 0x3fb   : > { %4689 = vst.msk [vmem:[#allocation2 + $0xc6] sm:$0x1] %vm4648_vm4, %v4688_v26  ;;  %v5593_v43 = vld [vmem:[#allocation2 + $0x72] sm:$0xff]  ;;  %v5594_v62 = vld [vmem:[#allocation2 + $0x7a] sm:$0xff]  ;;  %v5595_v35 = vld [vmem:[#allocation2 + $0x82] sm:$0xff] }
 0x3fc   : > { %8383 = vmatmul.msk.f32.gmra.mxu0 %vm13099_vm8, %v5583_v38  ;;  %4691 = vst.msk [vmem:[#allocation2 + $0xd7] sm:$0x1] %vm4648_vm4, %v4690_v45  ;;  %vm13104_vm8 = vmmov %vm13064_vm0  ;;  %v4736_v17 = vld [vmem:[#allocation2 + $0x60] sm:$0xff]  ;;  %v4774_v26 = vld [vmem:[#allocation2 + $0x69] sm:$0xff] }
 0x3fd   : > { %8269 = vmatmul.msk.f32.gmra.mxu1 %vm13064_vm0, %v4762_v27  ;;  %4693 = vst.msk [vmem:[#allocation2 + $0xd8] sm:$0x1] %vm4648_vm4, %v4692_v51  ;;  %v4737_v45 = vld [vmem:[#allocation2 + $0x68] sm:$0xff] }
 0x3fe   : > { %8306 = vmatmul.msk.f32.gmra.mxu2 %vm13100_vm12, %v4725_v15  ;;  %4695 = vst.msk [vmem:[#allocation2 + $0xe9] sm:$0x1] %vm4648_vm4, %v4694_v40  ;;  %vm13105_vm12 = vmmov %vm13064_vm0  ;;  %v5596_v51 = vld [vmem:[#allocation2 + $0x8a] sm:$0xff]  ;;  %v5597_v15 = vld [vmem:[#allocation2 + $0x92] sm:$0xff] }
 0x3ff   : > { %8344 = vmatmul.msk.f32.gmra.mxu3 %vm13101_vm1, %v5272_v50  ;;  %4697 = vst.msk [vmem:[#allocation2 + $0xea] sm:$0x1] %vm4648_vm4, %v4696_v32  ;;  %vm13106_vm1 = vmmov %vm13064_vm0  ;;  %v4738_v40 = vld [vmem:[#allocation2 + $0x70] sm:$0xff]  ;;  %v4776_v32 = vld [vmem:[#allocation2 + $0x79] sm:$0xff] }
 0x400   : > { %4699 = vst.msk [vmem:[#allocation2 + $0xfb] sm:$0x1] %vm4648_vm4, %v4698_v59  ;;  %v4739_v50 = vld [vmem:[#allocation2 + $0x78] sm:$0xff] }
 0x401   : > { %4701 = vst.msk [vmem:[#allocation2 + $0xfc] sm:$0x1] %vm4648_vm4, %v4700_v4 }
 0x402   : > { %4703 = vst.msk [vmem:[#allocation2 + $0x10d] sm:$0x1] %vm4648_vm4, %v4702_v30  ;;  %v5598_v30 = vld [vmem:[#allocation2 + $0x9a] sm:$0xff] }
 0x403   : > { %4705 = vst.msk [vmem:[#allocation2 + $0x10e] sm:$0x1] %vm4648_vm4, %v4704_v21  ;;  %v4777_v21 = vld [vmem:[#allocation2 + $0x81] sm:$0xff] }
 0x404   : > { %8384 = vmatmul.msk.f32.gmra.mxu0 %vm13102_vm15, %v5584_v48  ;;  %4707 = vst.msk [vmem:[#allocation2 + $0x11f] sm:$0x1] %vm4648_vm4, %v4706_v52  ;;  %vm13107_vm15 = vmmov %vm13064_vm0  ;;  %v4740_v52 = vld [vmem:[#allocation2 + $0x80] sm:$0xff] }
 0x405   : > { %8270 = vmatmul.msk.f32.gmra.mxu1 %vm13103_vm13, %v4763_v44  ;;  %4709 = vst.msk [vmem:[#allocation2 + $0x120] sm:$0x1] %vm4648_vm4, %v4708_v12  ;;  %vm13108_vm13 = vmmov %vm13064_vm0 }
 0x406   : > { %8307 = vmatmul.msk.f32.gmra.mxu2 %vm13104_vm8, %v4726_v13  ;;  %4711 = vst.msk [vmem:[#allocation2 + $0x131] sm:$0x1] %vm4648_vm4, %v4710_v19  ;;  %vm13109_vm8 = vmmov %vm13064_vm0  ;;  %v7155_v6 = vld [vmem:[#allocation2 + $0xe6] sm:$0xff] }
 0x407   : > { %8345 = vmatmul.msk.f32.gmra.mxu3 %vm13064_vm0, %v11125_v53  ;;  %4610 = vst.msk [vmem:[#allocation2 + $0x144] sm:$0x3] %vm12750_vm11, %v8640_v56  ;;  %vm13110_vm4 = vmmov %vm13064_vm0  ;;  %v4768_v53 = vld [vmem:[#allocation2 + $0x39] sm:$0xff] }
 0x408   : > { %vm13111_vm11 = vmmov %vm13064_vm0 }
 0x40a   : > { %v11190_v41 = vld [vmem:[#allocation2 + $0x10e] sm:$0xff] }
 0x40b   : > { %v4720_v18 = vld [vmem:[#allocation2 + $0x11e] sm:$0x3] }
 0x40c   : > { %8385 = vmatmul.msk.f32.gmra.mxu0 %vm13105_vm12, %v5585_v58  ;;  %vm13112_vm12 = vmmov %vm13064_vm0 }
 0x40d   : > { %8271 = vmatmul.msk.f32.gmra.mxu1 %vm13106_vm1, %v4764_v55  ;;  %vm13113_vm1 = vmmov %vm13064_vm0  ;;  %v4778_v55 = vld [vmem:[#allocation2 + $0x89] sm:$0xff] }
 0x40e   : > { %8308 = vmatmul.msk.f32.gmra.mxu2 %vm13107_vm15, %v4727_v29  ;;  %vm13114_vm15 = vmmov %vm13064_vm0  ;;  %v4741_v29 = vld [vmem:[#allocation2 + $0x88] sm:$0xff] }
 0x40f   : > { %8346 = vmatmul.msk.f32.gmra.mxu3 %vm13108_vm13, %v11139_v36  ;;  %vm13115_vm13 = vmmov %vm13064_vm0  ;;  %v5592_v36 = vld [vmem:[#allocation2 + $0x6a] sm:$0xff] }
 0x414   : > { %8386 = vmatmul.msk.f32.gmra.mxu0 %vm13109_vm8, %v5586_v42  ;;  %vm13116_vm8 = vmmov %vm13064_vm0 }
 0x415   : > { %8272 = vmatmul.msk.f32.gmra.mxu1 %vm13110_vm4, %v4765_v3  ;;  %4721 = vst.msk [vmem:[#allocation2 + $0x132] sm:$0xff] %vm13116_vm8, %v11190_v41  ;;  %vm13118_vm4 = vcmask 25600   ;;  %vm13123_vm8 = vmmov %vm13064_vm0 }
 0x416   : > { %8309 = vmatmul.msk.f32.gmra.mxu2 %vm13064_vm0, %v4728_v24  ;;  %4723 = vst.msk [vmem:[#allocation2 + $0x142] sm:$0x3] %vm13118_vm4, %v4720_v18  ;;  %vm13125_vm4 = vmmov %vm13064_vm0  ;;  %v5600_v18 = vld [vmem:[#allocation2 + $0xaa] sm:$0xff] }
 0x417   : > { %8347 = vmatmul.msk.f32.gmra.mxu3 %vm13111_vm11, %v5583_v38  ;;  %vm13117_vm11 = vmmov %vm13064_vm0  ;;  %v4775_v38 = vld [vmem:[#allocation2 + $0x71] sm:$0xff] }
 0x418   : > { %4722 = vst.msk [vmem:[#allocation2 + $0x13a] sm:$0xff] %vm13117_vm11, %v11194_v9  ;;  %vm13124_vm11 = vmmov %vm13064_vm0 }
 0x41c   : > { %8387 = vmatmul.msk.f32.gmra.mxu0 %vm13112_vm12, %v5587_v20  ;;  %vm13119_vm12 = vmmov %vm13064_vm0 }
 0x41d   : > { %8273 = vmatmul.msk.f32.gmra.mxu1 %vm13113_vm1, %v4766_v33  ;;  %vm13120_vm1 = vmmov %vm13064_vm0 }
 0x41e   : > { %8310 = vmatmul.msk.f32.gmra.mxu2 %vm13114_vm15, %v4729_v7  ;;  %vm13121_vm15 = vmmov %vm13064_vm0 }
 0x41f   : > { %8348 = vmatmul.msk.f32.gmra.mxu3 %vm13115_vm13, %v5584_v48  ;;  %vm13122_vm13 = vmmov %vm13064_vm0 }
 0x424   : > { %8388 = vmatmul.msk.f32.gmra.mxu0 %vm13064_vm0, %v5588_v60 }
 0x425   : > { %8274 = vmatmul.msk.f32.gmra.mxu1 %vm13119_vm12, %v4767_v28  ;;  %vm13126_vm12 = vmmov %vm13064_vm0  ;;  %v4742_v28 = vld [vmem:[#allocation2 + $0x90] sm:$0xff] }
 0x426   : > { %8311 = vmatmul.msk.f32.gmra.mxu2 %vm13120_vm1, %v4730_v10  ;;  %vm13127_vm1 = vmmov %vm13064_vm0 }
 0x427   : > { %8349 = vmatmul.msk.f32.gmra.mxu3 %vm13121_vm15, %v5585_v58  ;;  %vm13128_vm15 = vmmov %vm13064_vm0  ;;  %v5599_v58 = vld [vmem:[#allocation2 + $0xa2] sm:$0xff] }
 0x42c   : > { %8389 = vmatmul.msk.f32.gmra.mxu0 %vm13122_vm13, %v5589_v16  ;;  %vm13129_vm13 = vmmov %vm13064_vm0 }
 0x42d   : > { %8275 = vmatmul.msk.f32.gmra.mxu1 %vm13123_vm8, %v4768_v53  ;;  %vm13130_vm8 = vmmov %vm13064_vm0 }
 0x42e   : > { %8312 = vmatmul.msk.f32.gmra.mxu2 %vm13124_vm11, %v4731_v11  ;;  %vm13131_vm11 = vmmov %vm13064_vm0 }
 0x42f   : > { %8350 = vmatmul.msk.f32.gmra.mxu3 %vm13125_vm4, %v5586_v42  ;;  %vm13132_vm4 = vmmov %vm13064_vm0 }
 0x434   : > { %8390 = vmatmul.msk.f32.gmra.mxu0 %vm13064_vm0, %v5590_v57 }
 0x435   : > { %8276 = vmatmul.msk.f32.gmra.mxu1 %vm13126_vm12, %v4769_v31  ;;  %vm13133_vm12 = vmmov %vm13064_vm0 }
 0x436   : > { %8313 = vmatmul.msk.f32.gmra.mxu2 %vm13127_vm1, %v4732_v5  ;;  %vm13134_vm1 = vmmov %vm13064_vm0 }
 0x437   : > { %8351 = vmatmul.msk.f32.gmra.mxu3 %vm13128_vm15, %v5587_v20  ;;  %vm13135_vm15 = vmmov %vm13064_vm0 }
 0x43c   : > { %8391 = vmatmul.msk.f32.gmra.mxu0 %vm13129_vm13, %v5591_v25  ;;  %vm13136_vm13 = vmmov %vm13064_vm0 }
 0x43d   : > { %8277 = vmatmul.msk.f32.gmra.mxu1 %vm13130_vm8, %v4770_v34  ;;  %vm13137_vm8 = vmmov %vm13064_vm0  ;;  %v4780_v34 = vld [vmem:[#allocation2 + $0x99] sm:$0xff] }
 0x43e   : > { %8314 = vmatmul.msk.f32.gmra.mxu2 %vm13131_vm11, %v4733_v1  ;;  %vm13138_vm11 = vmmov %vm13064_vm0  ;;  %v4743_v1 = vld [vmem:[#allocation2 + $0x98] sm:$0xff] }
 0x43f   : > { %8352 = vmatmul.msk.f32.gmra.mxu3 %vm13132_vm4, %v5588_v60  ;;  %vm13139_vm4 = vmmov %vm13064_vm0  ;;  %v4779_v60 = vld [vmem:[#allocation2 + $0x91] sm:$0xff] }
 0x444   : > { %8392 = vmatmul.msk.f32.gmra.mxu0 %vm13064_vm0, %v5592_v36 }
 0x445   : > { %8278 = vmatmul.msk.f32.gmra.mxu1 %vm13133_vm12, %v4771_v8  ;;  %vm13140_vm12 = vmmov %vm13064_vm0 }
 0x446   : > { %8315 = vmatmul.msk.f32.gmra.mxu2 %vm13134_vm1, %v4734_v47  ;;  %vm13141_vm1 = vmmov %vm13064_vm0 }
 0x447   : > { %8353 = vmatmul.msk.f32.gmra.mxu3 %vm13135_vm15, %v5589_v16  ;;  %vm13142_vm15 = vmmov %vm13064_vm0 }
 0x44c   : > { %8393 = vmatmul.msk.f32.gmra.mxu0 %vm13136_vm13, %v5593_v43  ;;  %vm13143_vm13 = vmmov %vm13064_vm0 }
 0x44d   : > { %8279 = vmatmul.msk.f32.gmra.mxu1 %vm13137_vm8, %v4772_v49  ;;  %vm13144_vm8 = vmmov %vm13064_vm0 }
 0x44e   : > { %8316 = vmatmul.msk.f32.gmra.mxu2 %vm13138_vm11, %v4735_v2  ;;  %vm13145_vm11 = vmmov %vm13064_vm0 }
 0x44f   : > { %8354 = vmatmul.msk.f32.gmra.mxu3 %vm13139_vm4, %v5590_v57  ;;  %vm13146_vm4 = vmmov %vm13064_vm0 }
 0x454   : > { %8394 = vmatmul.msk.f32.gmra.mxu0 %vm13064_vm0, %v5594_v62 }
 0x455   : > { %8280 = vmatmul.msk.f32.gmra.mxu1 %vm13140_vm12, %v4773_v63  ;;  %vm13147_vm12 = vmmov %vm13064_vm0  ;;  %v5602_v63 = vld [vmem:[#allocation2 + $0xba] sm:$0xff] }
 0x456   : > { %8317 = vmatmul.msk.f32.gmra.mxu2 %vm13141_vm1, %v4736_v17  ;;  %vm13148_vm1 = vmmov %vm13064_vm0  ;;  %v4781_v17 = vld [vmem:[#allocation2 + $0xa1] sm:$0xff] }
 0x457   : > { %8355 = vmatmul.msk.f32.gmra.mxu3 %vm13142_vm15, %v5591_v25  ;;  %vm13149_vm15 = vmmov %vm13064_vm0  ;;  %v5601_v25 = vld [vmem:[#allocation2 + $0xb2] sm:$0xff] }
 0x45c   : > { %8395 = vmatmul.msk.f32.gmra.mxu0 %vm13143_vm13, %v5595_v35  ;;  %vm13150_vm13 = vmmov %vm13064_vm0 }
 0x45d   : > { %8281 = vmatmul.msk.f32.gmra.mxu1 %vm13144_vm8, %v4774_v26  ;;  %vm13151_vm8 = vmmov %vm13064_vm0 }
 0x45e   : > { %8318 = vmatmul.msk.f32.gmra.mxu2 %vm13145_vm11, %v4737_v45  ;;  %vm13152_vm11 = vmmov %vm13064_vm0 }
 0x45f   : > { %8356 = vmatmul.msk.f32.gmra.mxu3 %vm13146_vm4, %v5592_v36  ;;  %vm13153_vm4 = vmmov %vm13064_vm0 }
 0x464   : > { %8396 = vmatmul.msk.f32.gmra.mxu0 %vm13064_vm0, %v5596_v51 }
 0x465   : > { %8282 = vmatmul.msk.f32.gmra.mxu1 %vm13147_vm12, %v4775_v38  ;;  %vm13154_vm12 = vmmov %vm13064_vm0 }
 0x466   : > { %8319 = vmatmul.msk.f32.gmra.mxu2 %vm13148_vm1, %v4738_v40  ;;  %vm13155_vm1 = vmmov %vm13064_vm0 }
 0x467   : > { %8357 = vmatmul.msk.f32.gmra.mxu3 %vm13149_vm15, %v5593_v43  ;;  %vm13156_vm15 = vmmov %vm13064_vm0 }
 0x469   : > { %v5747_v27 = vpop.f32.mrf.mxu0 }
 0x46c   : > { %8397 = vmatmul.msk.f32.gmra.mxu0 %vm13150_vm13, %v5597_v15  ;;  %vm13157_vm13 = vmmov %vm13064_vm0 }
 0x46d   : > { %8283 = vmatmul.msk.f32.gmra.mxu1 %vm13151_vm8, %v4776_v32  ;;  %vm13158_vm8 = vmmov %vm13064_vm0  ;;  %v5603_v32 = vld [vmem:[#allocation2 + $0xc2] sm:$0xff] }
 0x46e   : > { %8320 = vmatmul.msk.f32.gmra.mxu2 %vm13152_vm11, %v4739_v50  ;;  %vm13159_vm11 = vmmov %vm13064_vm0  ;;  %v4782_v50 = vld [vmem:[#allocation2 + $0xa9] sm:$0xff] }
 0x46f   : > { %8358 = vmatmul.msk.f32.gmra.mxu3 %vm13153_vm4, %v5594_v62  ;;  %vm13160_vm4 = vmmov %vm13064_vm0 }
 0x471   : > { %v5750_v59 = vpop.f32.mrf.mxu0 }
 0x472   : > { %v4927_v4 = vpop.f32.mrf.mxu1 }
 0x474   : > { %8398 = vmatmul.msk.f32.gmra.mxu0 %vm13064_vm0, %v5598_v30 }
 0x475   : > { %8284 = vmatmul.msk.f32.gmra.mxu1 %vm13154_vm12, %v4777_v21  ;;  %vm13161_vm12 = vmmov %vm13064_vm0 }
 0x476   : > { %8321 = vmatmul.msk.f32.gmra.mxu2 %vm13155_vm1, %v4740_v52  ;;  %vm13162_vm1 = vmmov %vm13064_vm0 }
 0x477   : > { %8359 = vmatmul.msk.f32.gmra.mxu3 %vm13156_vm15, %v5595_v35  ;;  %vm13163_vm15 = vmmov %vm13064_vm0  ;;  %v4744_v35 = vld [vmem:[#allocation2 + $0xa0] sm:$0xff] }
 0x479   : > { %v5163_v12 = vpop.f32.mrf.mxu2  ;;  %v5753_v44 = vpop.f32.mrf.mxu0 }
 0x47a   : > { %v5164_v48 = vadd.f32 %v5163_v12, %v4927_v4  ;;  %v5437_v19 = vpop.f32.mrf.mxu3  ;;  %v4930_v13 = vpop.f32.mrf.mxu1 }
 0x47c   : > { %v5545_v56 = vadd.f32 %v5437_v19, %v5164_v48  ;;  %8399 = vmatmul.msk.f32.gmra.mxu0 %vm13157_vm13, %v5599_v58  ;;  %vm13164_vm13 = vmmov %vm13064_vm0  ;;  %v5604_v19 = vld [vmem:[#allocation2 + $0xca] sm:$0xff] }
 0x47d   : > { %8285 = vmatmul.msk.f32.gmra.mxu1 %vm13158_vm8, %v4778_v55  ;;  %vm13165_vm8 = vmmov %vm13064_vm0 }
 0x47e   : > { %8322 = vmatmul.msk.f32.gmra.mxu2 %vm13159_vm11, %v4741_v29  ;;  %v11251_v16 = vadd.f32 %v5747_v27, %v5545_v56  ;;  %vm13166_vm11 = vmmov %vm13064_vm0  ;;  %v4746_v56 = vld [vmem:[#allocation2 + $0xb0] sm:$0xff] }
 0x47f   : > { %8360 = vmatmul.msk.f32.gmra.mxu3 %vm13160_vm4, %v5596_v51  ;;  %vm13167_vm4 = vmmov %vm13064_vm0 }
 0x481   : > { %v5166_v42 = vpop.f32.mrf.mxu2  ;;  %v5756_v20 = vpop.f32.mrf.mxu0 }
 0x482   : > { %v5167_v3 = vadd.f32 %v5166_v42, %v4930_v13  ;;  %v5440_v24 = vpop.f32.mrf.mxu3  ;;  %v4933_v33 = vpop.f32.mrf.mxu1  ;;  %v4783_v13 = vld [vmem:[#allocation2 + $0xb1] sm:$0xff] }
 0x484   : > { %v5546_v7 = vadd.f32 %v5440_v24, %v5167_v3  ;;  %8400 = vmatmul.msk.f32.gmra.mxu0 %vm13064_vm0, %v5600_v18 }
 0x485   : > { %8286 = vmatmul.msk.f32.gmra.mxu1 %vm13161_vm12, %v4779_v60  ;;  %vm13168_vm12 = vmmov %vm13064_vm0 }
 0x486   : > { %8323 = vmatmul.msk.f32.gmra.mxu2 %vm13162_vm1, %v4742_v28  ;;  %v11259_v49 = vadd.f32 %v5750_v59, %v5546_v7  ;;  %vm13169_vm1 = vmmov %vm13064_vm0  ;;  %v4745_v59 = vld [vmem:[#allocation2 + $0xa8] sm:$0xff]  ;;  %v4747_v7 = vld [vmem:[#allocation2 + $0xb8] sm:$0xff] }
 0x487   : > { %8361 = vmatmul.msk.f32.gmra.mxu3 %vm13163_vm15, %v5597_v15  ;;  %vm13170_vm15 = vmmov %vm13064_vm0 }
 0x489   : > { %v5169_v10 = vpop.f32.mrf.mxu2  ;;  %v5759_v57 = vpop.f32.mrf.mxu0 }
 0x48a   : > { %v5170_v53 = vadd.f32 %v5169_v10, %v4933_v33  ;;  %v5443_v11 = vpop.f32.mrf.mxu3  ;;  %v4936_v31 = vpop.f32.mrf.mxu1  ;;  %v5605_v33 = vld [vmem:[#allocation2 + $0xd2] sm:$0xff] }
 0x48c   : > { %v5547_v5 = vadd.f32 %v5443_v11, %v5170_v53  ;;  %8401 = vmatmul.msk.f32.gmra.mxu0 %vm13164_vm13, %v5601_v25  ;;  %vm13171_vm13 = vmmov %vm13064_vm0 }
 0x48d   : > { %8287 = vmatmul.msk.f32.gmra.mxu1 %vm13165_vm8, %v4780_v34  ;;  %vm13172_vm8 = vmmov %vm13064_vm0  ;;  %v4748_v34 = vld [vmem:[#allocation2 + $0xc0] sm:$0xff] }
 0x48e   : > { %8324 = vmatmul.msk.f32.gmra.mxu2 %vm13166_vm11, %v4743_v1  ;;  %v11267_v27 = vadd.f32 %v5753_v44, %v5547_v5  ;;  %vm13173_vm11 = vmmov %vm13064_vm0  ;;  %v5606_v5 = vld [vmem:[#allocation2 + $0xda] sm:$0xff] }
 0x48f   : > { %8362 = vmatmul.msk.f32.gmra.mxu3 %vm13167_vm4, %v5598_v30  ;;  %vm13174_vm4 = vmmov %vm13064_vm0 }
 0x491   : > { %v5172_v36 = vpop.f32.mrf.mxu2  ;;  %v11257_v43 = vpop.f32.mrf.mxu0 }
 0x492   : > { %v5173_v8 = vadd.f32 %v5172_v36, %v4936_v31  ;;  %v5446_v47 = vpop.f32.mrf.mxu3  ;;  %v4939_v2 = vpop.f32.mrf.mxu1 }
 0x494   : > { %v5548_v62 = vadd.f32 %v5446_v47, %v5173_v8  ;;  %8402 = vmatmul.msk.f32.gmra.mxu0 %vm13064_vm0, %v5602_v63 }
 0x495   : > { %8288 = vmatmul.msk.f32.gmra.mxu1 %vm13168_vm12, %v4781_v17  ;;  %vm13175_vm12 = vmmov %vm13064_vm0  ;;  %v4786_v17 = vld [vmem:[#allocation2 + $0xc9] sm:$0xff] }
 0x496   : > { %8325 = vmatmul.msk.f32.gmra.mxu2 %vm13169_vm1, %v4744_v35  ;;  %v11275_v44 = vadd.f32 %v5756_v20, %v5548_v62  ;;  %vm13176_vm1 = vmmov %vm13064_vm0  ;;  %v4784_v20 = vld [vmem:[#allocation2 + $0xb9] sm:$0xff]  ;;  %v4749_v35 = vld [vmem:[#allocation2 + $0xc8] sm:$0xff] }
 0x497   : > { %8363 = vmatmul.msk.f32.gmra.mxu3 %vm13170_vm15, %v5599_v58  ;;  %vm13177_vm15 = vmmov %vm13064_vm0 }
 0x499   : > { %v5175_v26 = vpop.f32.mrf.mxu2  ;;  %v11265_v38 = vpop.f32.mrf.mxu0 }
 0x49a   : > { %v5176_v45 = vadd.f32 %v5175_v26, %v4939_v2  ;;  %v5449_v51 = vpop.f32.mrf.mxu3  ;;  %v4942_v40 = vpop.f32.mrf.mxu1 }
 0x49c   : > { %v5549_v15 = vadd.f32 %v5449_v51, %v5176_v45  ;;  %8403 = vmatmul.msk.f32.gmra.mxu0 %vm13171_vm13, %v5603_v32  ;;  %vm13178_vm13 = vmmov %vm13064_vm0 }
 0x49d   : > { %8289 = vmatmul.msk.f32.gmra.mxu1 %vm13172_vm8, %v4782_v50  ;;  %vm13179_vm8 = vmmov %vm13064_vm0  ;;  %v5608_v50 = vld [vmem:[#allocation2 + $0xea] sm:$0xff] }
 0x49e   : > { %8326 = vmatmul.msk.f32.gmra.mxu2 %vm13173_vm11, %v4745_v59  ;;  %vm13180_vm11 = vmmov %vm13064_vm0  ;;  %v4787_v59 = vld [vmem:[#allocation2 + $0xd1] sm:$0xff] }
 0x49f   : > { %8364 = vmatmul.msk.f32.gmra.mxu3 %vm13174_vm4, %v5600_v18  ;;  %v11284_v18 = vadd.f32 %v5759_v57, %v5549_v15  ;;  %vm13181_vm4 = vmmov %vm13064_vm0 }
 0x4a1   : > { %v5178_v4 = vpop.f32.mrf.mxu2  ;;  %v11273_v52 = vpop.f32.mrf.mxu0 }
 0x4a2   : > { %v5179_v30 = vadd.f32 %v5178_v4, %v4942_v40  ;;  %v5452_v21 = vpop.f32.mrf.mxu3  ;;  %v4945_v12 = vpop.f32.mrf.mxu1  ;;  %v4750_v4 = vld [vmem:[#allocation2 + $0xd0] sm:$0xff] }
 0x4a4   : > { %v5550_v48 = vadd.f32 %v5452_v21, %v5179_v30  ;;  %8404 = vmatmul.msk.f32.gmra.mxu0 %vm13064_vm0, %v5604_v19 }
 0x4a5   : > { %8290 = vmatmul.msk.f32.gmra.mxu1 %vm13175_vm12, %v4783_v13  ;;  %vm13182_vm12 = vmmov %vm13064_vm0 }
 0x4a6   : > { %8327 = vmatmul.msk.f32.gmra.mxu2 %vm13176_vm1, %v4746_v56  ;;  %vm13183_vm1 = vmmov %vm13064_vm0  ;;  %v11295_v57 = vadd.f32 %v11257_v43, %v5550_v48  ;;  %v5609_v56 = vld [vmem:[#allocation2 + $0xf2] sm:$0xff] }
 0x4a7   : > { %8365 = vmatmul.msk.f32.gmra.mxu3 %vm13177_vm15, %v5601_v25  ;;  %v4785_v25 = vld [vmem:[#allocation2 + $0xc1] sm:$0xff]  ;;  %vm13184_vm15 = vmmov %vm13064_vm0 }
 0x4a9   : > { %v5181_v58 = vpop.f32.mrf.mxu2  ;;  %v11281_v42 = vpop.f32.mrf.mxu0 }
 0x4aa   : > { %v5182_v55 = vadd.f32 %v5181_v58, %v4945_v12  ;;  %v5455_v29 = vpop.f32.mrf.mxu3  ;;  %v4948_v3 = vpop.f32.mrf.mxu1  ;;  %v4788_v58 = vld [vmem:[#allocation2 + $0xd9] sm:$0xff] }
 0x4ac   : > { %v5551_v24 = vadd.f32 %v5455_v29, %v5182_v55  ;;  %8405 = vmatmul.msk.f32.gmra.mxu0 %vm13178_vm13, %v5605_v33  ;;  %vm13185_vm13 = vmmov %vm13064_vm0  ;;  %v4751_v55 = vld [vmem:[#allocation2 + $0xd8] sm:$0xff] }
 0x4ad   : > { %8291 = vmatmul.msk.f32.gmra.mxu1 %vm13179_vm8, %v4784_v20  ;;  %vm13186_vm8 = vmmov %vm13064_vm0 }
 0x4ae   : > { %8328 = vmatmul.msk.f32.gmra.mxu2 %vm13180_vm11, %v4747_v7  ;;  %vm13187_vm11 = vmmov %vm13064_vm0  ;;  %v11305_v43 = vadd.f32 %v11265_v38, %v5551_v24 }
 0x4af   : > { %8366 = vmatmul.msk.f32.gmra.mxu3 %vm13181_vm4, %v5602_v63  ;;  %v5607_v63 = vld [vmem:[#allocation2 + $0xe2] sm:$0xff]  ;;  %vm13188_vm4 = vmmov %vm13064_vm0 }
 0x4b1   : > { %v5184_v60 = vpop.f32.mrf.mxu2  ;;  %v11289_v53 = vpop.f32.mrf.mxu0 }
 0x4b2   : > { %v5185_v28 = vadd.f32 %v5184_v60, %v4948_v3  ;;  %v5458_v10 = vpop.f32.mrf.mxu3  ;;  %v4951_v11 = vpop.f32.mrf.mxu1  ;;  %v5610_v60 = vld [vmem:[#allocation2 + $0xfa] sm:$0xff] }
 0x4b4   : > { %v5552_v31 = vadd.f32 %v5458_v10, %v5185_v28  ;;  %8406 = vmatmul.msk.f32.gmra.mxu0 %vm13064_vm0, %v5606_v5  ;;  %v4789_v28 = vld [vmem:[#allocation2 + $0xe1] sm:$0xff] }
 0x4b5   : > { %8292 = vmatmul.msk.f32.gmra.mxu1 %vm13182_vm12, %v4785_v25  ;;  %vm13189_vm12 = vmmov %vm13064_vm0  ;;  %v4752_v10 = vld [vmem:[#allocation2 + $0xe0] sm:$0xff] }
 0x4b6   : > { %8329 = vmatmul.msk.f32.gmra.mxu2 %vm13183_vm1, %v4748_v34  ;;  %vm13190_vm1 = vmmov %vm13064_vm0  ;;  %v11314_v38 = vadd.f32 %v11273_v52, %v5552_v31 }
 0x4b7   : > { %8367 = vmatmul.msk.f32.gmra.mxu3 %vm13184_vm15, %v5603_v32  ;;  %vm13191_vm15 = vmmov %vm13064_vm0 }
 0x4b9   : > { %v5187_v1 = vpop.f32.mrf.mxu2  ;;  %v11298_v47 = vpop.f32.mrf.mxu0 }
 0x4ba   : > { %v5188_v36 = vadd.f32 %v5187_v1, %v4951_v11  ;;  %v5461_v8 = vpop.f32.mrf.mxu3  ;;  %v4954_v2 = vpop.f32.mrf.mxu1 }
 0x4bc   : > { %v5553_v62 = vadd.f32 %v5461_v8, %v5188_v36  ;;  %8407 = vmatmul.msk.f32.gmra.mxu0 %vm13185_vm13, %v5607_v63  ;;  %vm13192_vm13 = vmmov %vm13064_vm0  ;;  %v5611_v36 = vld [vmem:[#allocation2 + $0x102] sm:$0xff] }
 0x4bd   : > { %8293 = vmatmul.msk.f32.gmra.mxu1 %vm13186_vm8, %v4786_v17  ;;  %vm13193_vm8 = vmmov %vm13064_vm0  ;;  %v4790_v8 = vld [vmem:[#allocation2 + $0xe9] sm:$0xff] }
 0x4be   : > { %8330 = vmatmul.msk.f32.gmra.mxu2 %vm13187_vm11, %v4749_v35  ;;  %vm13194_vm11 = vmmov %vm13064_vm0  ;;  %v11323_v29 = vadd.f32 %v11281_v42, %v5553_v62 }
 0x4bf   : > { %8368 = vmatmul.msk.f32.gmra.mxu3 %vm13188_vm4, %v5604_v19  ;;  %vm13195_vm4 = vmmov %vm13064_vm0 }
 0x4c1   : > { %v5190_v26 = vpop.f32.mrf.mxu2  ;;  %v11307_v40 = vpop.f32.mrf.mxu0 }
 0x4c2   : > { %v5191_v45 = vadd.f32 %v5190_v26, %v4954_v2  ;;  %v5464_v51 = vpop.f32.mrf.mxu3  ;;  %v4957_v15 = vpop.f32.mrf.mxu1  ;;  %v4753_v2 = vld [vmem:[#allocation2 + $0xe8] sm:$0xff] }
 0x4c4   : > { %v5554_v32 = vadd.f32 %v5464_v51, %v5191_v45  ;;  %8408 = vmatmul.msk.f32.gmra.mxu0 %vm13064_vm0, %v5608_v50  ;;  %v5612_v51 = vld [vmem:[#allocation2 + $0x10a] sm:$0xff] }
 0x4c5   : > { %8294 = vmatmul.msk.f32.gmra.mxu1 %vm13189_vm12, %v4787_v59  ;;  %vm13196_vm12 = vmmov %vm13064_vm0 }
 0x4c6   : > { %8331 = vmatmul.msk.f32.gmra.mxu2 %vm13190_vm1, %v4750_v4  ;;  %vm13197_vm1 = vmmov %vm13064_vm0  ;;  %v11334_v25 = vadd.f32 %v11289_v53, %v5554_v32  ;;  %v4754_v32 = vld [vmem:[#allocation2 + $0xf0] sm:$0xff] }
 0x4c7   : > { %8369 = vmatmul.msk.f32.gmra.mxu3 %vm13191_vm15, %v5605_v33  ;;  %vm13198_vm15 = vmmov %vm13064_vm0 }
 0x4c9   : > { %v5193_v30 = vpop.f32.mrf.mxu2  ;;  %v11316_v48 = vpop.f32.mrf.mxu0 }
 0x4ca   : > { %v5194_v21 = vadd.f32 %v5193_v30, %v4957_v15  ;;  %v5467_v12 = vpop.f32.mrf.mxu3  ;;  %v4960_v19 = vpop.f32.mrf.mxu1  ;;  %v4791_v15 = vld [vmem:[#allocation2 + $0xf1] sm:$0xff] }
 0x4cc   : > { %v5555_v13 = vadd.f32 %v5467_v12, %v5194_v21  ;;  %8409 = vmatmul.msk.f32.gmra.mxu0 %vm13192_vm13, %v5609_v56  ;;  %vm13199_vm13 = vmmov %vm13064_vm0  ;;  %v5613_v12 = vld [vmem:[#allocation2 + $0x112] sm:$0xff] }
 0x4cd   : > { %8295 = vmatmul.msk.f32.gmra.mxu1 %vm13193_vm8, %v4788_v58  ;;  %vm13200_vm8 = vmmov %vm13064_vm0 }
 0x4ce   : > { %8332 = vmatmul.msk.f32.gmra.mxu2 %vm13194_vm11, %v4751_v55  ;;  %vm13201_vm11 = vmmov %vm13064_vm0  ;;  %v11343_v26 = vadd.f32 %v11298_v47, %v5555_v13  ;;  %v8531_v13 = vld [vmem:[%s12670_s2 + $0x1c] sm:$0xf] }
 0x4cf   : > { %8370 = vmatmul.msk.f32.gmra.mxu3 %vm13195_vm4, %v5606_v5  ;;  %vm13202_vm4 = vmmov %vm13064_vm0  ;;  %v4755_v55 = vld [vmem:[#allocation2 + $0xf8] sm:$0xff] }
 0x4d1   : > { %v5196_v52 = vpop.f32.mrf.mxu2  ;;  %v11325_v33 = vpop.f32.mrf.mxu0 }
 0x4d2   : > { %v5197_v3 = vadd.f32 %v5196_v52, %v4960_v19  ;;  %v5470_v24 = vpop.f32.mrf.mxu3  ;;  %v4963_v20 = vpop.f32.mrf.mxu1  ;;  %v8455_v19 = vld [vmem:[%s12670_s2 + $0x14] sm:$0xf]  ;;  %v8493_v52 = vld [vmem:[%s12670_s2 + $0x18] sm:$0xf] }
 0x4d4   : > { %v5556_v7 = vadd.f32 %v5470_v24, %v5197_v3  ;;  %8410 = vmatmul.msk.f32.gmra.mxu0 %vm13064_vm0, %v5610_v60 }
 0x4d5   : > { %8296 = vmatmul.msk.f32.gmra.mxu1 %vm13196_vm12, %v4789_v28  ;;  %vm13203_vm12 = vmmov %vm13064_vm0 }
 0x4d6   : > { %8333 = vmatmul.msk.f32.gmra.mxu2 %vm13197_vm1, %v4752_v10  ;;  %vm13204_vm1 = vmmov %vm13064_vm0  ;;  %v11358_v58 = vadd.f32 %v11307_v40, %v5556_v7  ;;  %v5614_v10 = vld [vmem:[#allocation2 + $0x11a] sm:$0xff] }
 0x4d7   : > { %8371 = vmatmul.msk.f32.gmra.mxu3 %vm13198_vm15, %v5607_v63  ;;  %vm13205_vm15 = vmmov %vm13064_vm0 }
 0x4d9   : > { %v5199_v11 = vpop.f32.mrf.mxu2  ;;  %v11331_v5 = vpop.f32.mrf.mxu0 }
 0x4da   : > { %v5200_v42 = vadd.f32 %v5199_v11, %v4963_v20  ;;  %v5473_v31 = vpop.f32.mrf.mxu3  ;;  %v4966_v34 = vpop.f32.mrf.mxu1  ;;  %v4793_v11 = vld [vmem:[#allocation2 + $0x101] sm:$0xff] }
 0x4dc   : > { %v5557_v1 = vadd.f32 %v5473_v31, %v5200_v42  ;;  %8411 = vmatmul.msk.f32.gmra.mxu0 %vm13199_vm13, %v5611_v36  ;;  %vm13206_vm13 = vmmov %vm13064_vm0  ;;  %v4756_v42 = vld [vmem:[#allocation2 + $0x100] sm:$0xff] }
 0x4dd   : > { %8297 = vmatmul.msk.f32.gmra.mxu1 %vm13200_vm8, %v4790_v8  ;;  %vm13207_vm8 = vcmask 1043456  }
 0x4de   : > { %8334 = vmatmul.msk.f32.gmra.mxu2 %vm13201_vm11, %v4753_v2  ;;  %vm13208_vm11 = vmmov %vm13064_vm0  ;;  %v11374_v31 = vadd.f32 %v11316_v48, %v5557_v1  ;;  %v5615_v1 = vld [vmem:[#allocation2 + $0x122] sm:$0xff] }
 0x4df   : > { %8372 = vmatmul.msk.f32.gmra.mxu3 %vm13202_vm4, %v5608_v50  ;;  %8456 = vmatpush.msk.msra.mxu2 %vm13207_vm8, %v8455_v19  ;;  %vm13209_vm4 = vmmov %vm13064_vm0  ;;  %v5616_v19 = vld [vmem:[#allocation2 + $0x12a] sm:$0xff] }
 0x4e1   : > { %v5202_v62 = vpop.f32.mrf.mxu2  ;;  %v11340_v35 = vpop.f32.mrf.mxu0 }
 0x4e2   : > { %v5203_v63 = vadd.f32 %v5202_v62, %v4966_v34  ;;  %v5476_v17 = vpop.f32.mrf.mxu3  ;;  %v4969_v53 = vpop.f32.mrf.mxu1 }
 0x4e4   : > { %v5558_v45 = vadd.f32 %v5476_v17, %v5203_v63  ;;  %8412 = vmatmul.msk.f32.gmra.mxu0 %vm13064_vm0, %v5612_v51  ;;  %v4794_v17 = vld [vmem:[#allocation2 + $0x109] sm:$0xff] }
 0x4e5   : > { %8298 = vmatmul.msk.f32.gmra.mxu1 %vm13203_vm12, %v4791_v15  ;;  %vm13210_vm12 = vmmov %vm13207_vm8 }
 0x4e6   : > { %8335 = vmatmul.msk.f32.gmra.mxu2 %vm13204_vm1, %v4754_v32  ;;  %8532 = vmatpush.msk.msra.mxu0 %vm13210_vm12, %v8531_v13  ;;  %vm13211_vm1 = vmmov %vm13207_vm8  ;;  %v4795_v13 = vld [vmem:[#allocation2 + $0x111] sm:$0xff] }
 0x4e7   : > { %8373 = vmatmul.msk.f32.gmra.mxu3 %vm13205_vm15, %v5609_v56  ;;  %v4792_v56 = vld [vmem:[#allocation2 + $0xf9] sm:$0xff]  ;;  %vm13212_vm15 = vmmov %vm13064_vm0 }
 0x4e8   : > { %8494 = vmatpush.msk.msra.mxu3 %vm13211_vm1, %v8493_v52  ;;  %vm13214_vm8 = vmmov %vm13064_vm0 }
 0x4e9   : > { %v5205_v50 = vpop.f32.mrf.mxu2  ;;  %v11349_v30 = vpop.f32.mrf.mxu0  ;;  %vm13217_vm12 = vmmov %vm13064_vm0 }
 0x4ea   : > { %v5206_v59 = vadd.f32 %v5205_v50, %v4969_v53  ;;  %v5479_v4 = vpop.f32.mrf.mxu3  ;;  %v4972_v21 = vpop.f32.mrf.mxu1  ;;  %v4757_v53 = vld [vmem:[#allocation2 + $0x108] sm:$0xff] }
 0x4ec   : > { %v5559_v47 = vadd.f32 %v5479_v4, %v5206_v59  ;;  %8413 = vmatmul.msk.f32.gmra.mxu0 %vm13206_vm13, %v5613_v12  ;;  %vm13213_vm13 = vmmov %vm13064_vm0 }
 0x4ed   : > { %8299 = vmatmul.msk.f32.gmra.mxu1 %vm13208_vm11, %v4792_v56  ;;  %vm13215_vm11 = vmmov %vm13064_vm0  ;;  %v4758_v56 = vld [vmem:[#allocation2 + $0x110] sm:$0xff] }
 0x4ee   : > { %8336 = vmatmul.msk.f32.gmra.mxu2 %vm13209_vm4, %v4755_v55  ;;  %vm13216_vm4 = vmmov %vm13211_vm1 }
 0x4ef   : > { %8374 = vmatmul.msk.f32.gmra.mxu3 %vm13064_vm0, %v5610_v60  ;;  %v8569_v60 = vld [vmem:[%s12670_s2 + $0x20] sm:$0xf]  ;;  %vm13218_vm1 = vmmov %vm13064_vm0 }
 0x4f0   : > { %8570 = vmatpush.msk.msra.mxu1 %vm13216_vm4, %v8569_v60  ;;  %vm13223_vm4 = vmmov %vm13064_vm0 }
 0x4f1   : > { %v5208_v40 = vpop.f32.mrf.mxu2  ;;  %v11370_v20 = vpop.f32.mrf.mxu0 }
 0x4f2   : > { %v5209_v3 = vadd.f32 %v5208_v40, %v4972_v21  ;;  %v5482_v24 = vpop.f32.mrf.mxu3  ;;  %v4975_v7 = vpop.f32.mrf.mxu1 }
 0x4f4   : > { %v5560_v28 = vadd.f32 %v5482_v24, %v5209_v3  ;;  %8414 = vmatmul.msk.f32.gmra.mxu0 %vm13212_vm15, %v5614_v10  ;;  %vm13219_vm15 = vmmov %vm13064_vm0  ;;  %v6821_v24 = vld [vmem:[#allocation2 + $0x25] sm:$0xff] }
 0x4f5   : > { %8300 = vmatmul.msk.f32.gmra.mxu1 %vm13213_vm13, %v4793_v11  ;;  %vm13220_vm13 = vmmov %vm13064_vm0  ;;  %v4759_v11 = vld [vmem:[#allocation2 + $0x118] sm:$0xff] }
 0x4f6   : > { %8337 = vmatmul.msk.f32.gmra.mxu2 %vm13214_vm8, %v4756_v42  ;;  %vm13221_vm8 = vmmov %vm13064_vm0 }
 0x4f7   : > { %8375 = vmatmul.msk.f32.gmra.mxu3 %vm13215_vm11, %v5611_v36  ;;  %v11389_v36 = vadd.f32 %v11325_v33, %v5558_v45  ;;  %vm13222_vm11 = vmmov %vm13064_vm0  ;;  %v11399_v33 = vadd.f32 %v11331_v5, %v5559_v47  ;;  %v11408_v5 = vadd.f32 %v11340_v35, %v5560_v28 }
 0x4f9   : > { %v5211_v34 = vpop.f32.mrf.mxu2  ;;  %v11383_v62 = vpop.f32.mrf.mxu0 }
 0x4fa   : > { %v5212_v8 = vadd.f32 %v5211_v34, %v4975_v7  ;;  %v5485_v2 = vpop.f32.mrf.mxu3  ;;  %v4978_v63 = vpop.f32.mrf.mxu1  ;;  %v4796_v7 = vld [vmem:[#allocation2 + $0x119] sm:$0xff] }
 0x4fc   : > { %v5561_v48 = vadd.f32 %v5485_v2, %v5212_v8  ;;  %8415 = vmatmul.msk.f32.gmra.mxu0 %vm13064_vm0, %v5615_v1  ;;  %v6822_v2 = vld [vmem:[#allocation2 + $0x2d] sm:$0xff] }
 0x4fd   : > { %8301 = vmatmul.msk.f32.gmra.mxu1 %vm13217_vm12, %v4794_v17  ;;  %vm13224_vm12 = vmmov %vm13064_vm0  ;;  %v6201_v1 = vld [vmem:[#allocation2 + $0x14] sm:$0xff] }
 0x4fe   : > { %8338 = vmatmul.msk.f32.gmra.mxu2 %vm13218_vm1, %v4757_v53  ;;  %vm13225_vm1 = vmmov %vm13064_vm0  ;;  %v11418_v28 = vadd.f32 %v11349_v30, %v5561_v48 }
 0x4ff   : > { %8376 = vmatmul.msk.f32.gmra.mxu3 %vm13219_vm15, %v5612_v51  ;;  %vm13226_vm15 = vmmov %vm13064_vm0 }
 0x501   : > { %v5214_v15 = vpop.f32.mrf.mxu2  ;;  %v11392_v59 = vpop.f32.mrf.mxu0 }
 0x502   : > { %v5215_v32 = vadd.f32 %v5214_v15, %v4978_v63  ;;  %v5488_v50 = vpop.f32.mrf.mxu3  ;;  %v4981_v4 = vpop.f32.mrf.mxu1  ;;  %v5891_v63 = vld [vmem:[#allocation2 + $0x13] sm:$0xff] }
 0x504   : > { %v5562_v21 = vadd.f32 %v5488_v50, %v5215_v32  ;;  %8416 = vmatmul.msk.f32.gmra.mxu0 %vm13220_vm13, %v5616_v19  ;;  %vm13227_vm13 = vmmov %vm13064_vm0  ;;  %v6823_v50 = vld [vmem:[#allocation2 + $0x35] sm:$0xff] }
 0x505   : > { %8302 = vmatmul.msk.f32.gmra.mxu1 %vm13221_vm8, %v4795_v13  ;;  %vm13228_vm8 = vmmov %vm13064_vm0  ;;  %v6202_v19 = vld [vmem:[#allocation2 + $0x1c] sm:$0xff] }
 0x506   : > { %8339 = vmatmul.msk.f32.gmra.mxu2 %vm13222_vm11, %v4758_v56  ;;  %vm13229_vm11 = vmmov %vm13064_vm0  ;;  %v11430_v56 = vadd.f32 %v11370_v20, %v5562_v21 }
 0x507   : > { %8377 = vmatmul.msk.f32.gmra.mxu3 %vm13223_vm4, %v5613_v12  ;;  %vm13230_vm4 = vmmov %vm13064_vm0 }
 0x509   : > { %v5217_v45 = vpop.f32.mrf.mxu2  ;;  %v11401_v52 = vpop.f32.mrf.mxu0 }
 0x50a   : > { %v5218_v51 = vadd.f32 %v5217_v45, %v4981_v4  ;;  %v5491_v55 = vpop.f32.mrf.mxu3  ;;  %v4984_v40 = vpop.f32.mrf.mxu1  ;;  %v5892_v4 = vld [vmem:[#allocation2 + $0x1b] sm:$0xff] }
 0x50c   : > { %v5563_v3 = vadd.f32 %v5491_v55, %v5218_v51  ;;  %8533 = vmatmul.msk.f32.vlgmr.msra.gmra.mxu0 %vm13064_vm0, %v6821_v24  ;;  %v6824_v55 = vld [vmem:[#allocation2 + $0x3d] sm:$0xff] }
 0x50d   : > { %8303 = vmatmul.msk.f32.gmra.mxu1 %vm13224_vm12, %v4796_v7  ;;  %vm13231_vm12 = vmmov %vm13064_vm0  ;;  %v6203_v24 = vld [vmem:[#allocation2 + $0x24] sm:$0xff] }
 0x50e   : > { %8340 = vmatmul.msk.f32.gmra.mxu2 %vm13225_vm1, %v4759_v11  ;;  %vm13232_vm1 = vmmov %vm13064_vm0  ;;  %v11439_v21 = vadd.f32 %v11383_v62, %v5563_v3 }
 0x50f   : > { %8378 = vmatmul.msk.f32.gmra.mxu3 %vm13226_vm15, %v5614_v10  ;;  %vm13233_vm15 = vmmov %vm13064_vm0 }
 0x511   : > { %v5220_v47 = vpop.f32.mrf.mxu2  ;;  %v11410_v60 = vpop.f32.mrf.mxu0 }
 0x512   : > { %v5221_v12 = vadd.f32 %v5220_v47, %v4984_v40  ;;  %v5494_v42 = vpop.f32.mrf.mxu3  ;;  %v4987_v34 = vpop.f32.mrf.mxu1  ;;  %v5893_v40 = vld [vmem:[#allocation2 + $0x23] sm:$0xff] }
 0x514   : > { %v5564_v8 = vadd.f32 %v5494_v42, %v5221_v12  ;;  %8534 = vmatmul.msk.f32.gmra.mxu0 %vm13227_vm13, %v6822_v2  ;;  %vm13234_vm13 = vmmov %vm13064_vm0  ;;  %v5894_v2 = vld [vmem:[#allocation2 + $0x2b] sm:$0xff] }
 0x515   : > { %8419 = vmatmul.msk.f32.vlgmr.msrb.gmra.mxu1 %vm13228_vm8, %v5891_v63  ;;  %vm13235_vm8 = vmmov %vm13064_vm0  ;;  %v6204_v63 = vld [vmem:[#allocation2 + $0x2c] sm:$0xff] }
 0x516   : > { %8457 = vmatmul.msk.f32.vlgmr.msra.gmra.mxu2 %vm13229_vm11, %v6201_v1  ;;  %vm13236_vm11 = vmmov %vm13064_vm0  ;;  %v6514_v1 = vld [vmem:[#allocation2 + $0x3c] sm:$0xff]  ;;  %v11448_v3 = vadd.f32 %v11392_v59, %v5564_v8 }
 0x517   : > { %8495 = vmatmul.msk.f32.vlgmr.msra.gmra.mxu3 %vm13230_vm4, %v11130_v22  ;;  %vm13237_vm4 = vmmov %vm13064_vm0 }
 0x519   : > { %v5223_v35 = vpop.f32.mrf.mxu2  ;;  %v11420_v53 = vpop.f32.mrf.mxu0 }
 0x51a   : > { %v5224_v10 = vadd.f32 %v5223_v35, %v4987_v34  ;;  %v5497_v17 = vpop.f32.mrf.mxu3  ;;  %v4990_v15 = vpop.f32.mrf.mxu1  ;;  %v6825_v34 = vld [vmem:[#allocation2 + $0x45] sm:$0xff] }
 0x51c   : > { %v5565_v32 = vadd.f32 %v5497_v17, %v5224_v10  ;;  %8535 = vmatmul.msk.f32.gmra.mxu0 %vm13064_vm0, %v6823_v50 }
 0x51d   : > { %8420 = vmatmul.msk.f32.gmra.mxu1 %vm13231_vm12, %v5892_v4  ;;  %vm13238_vm12 = vmmov %vm13064_vm0  ;;  %v6826_v4 = vld [vmem:[#allocation2 + $0x4d] sm:$0xff] }
 0x51e   : > { %8458 = vmatmul.msk.f32.gmra.mxu2 %vm13232_vm1, %v6202_v19  ;;  %vm13239_vm1 = vmmov %vm13064_vm0  ;;  %v5895_v19 = vld [vmem:[#allocation2 + $0x33] sm:$0xff]  ;;  %v11457_v59 = vadd.f32 %v11401_v52, %v5565_v32  ;;  %v6828_v32 = vld [vmem:[#allocation2 + $0x5d] sm:$0xff] }
 0x51f   : > { %8496 = vmatmul.msk.f32.gmra.mxu3 %vm13233_vm15, %v11116_v39  ;;  %v6513_v39 = vld [vmem:[#allocation2 + $0x34] sm:$0xff]  ;;  %vm13240_vm15 = vmmov %vm13064_vm0 }
 0x521   : > { %v5226_v22 = vpop.f32.mrf.mxu2  ;;  %v11427_v13 = vpop.f32.mrf.mxu0 }
 0x522   : > { %v5227_v30 = vadd.f32 %v5226_v22, %v4990_v15  ;;  %v5500_v48 = vpop.f32.mrf.mxu3  ;;  %v4993_v45 = vpop.f32.mrf.mxu1  ;;  %v6515_v22 = vld [vmem:[#allocation2 + $0x44] sm:$0xff] }
 0x524   : > { %v5566_v51 = vadd.f32 %v5500_v48, %v5227_v30  ;;  %8536 = vmatmul.msk.f32.gmra.mxu0 %vm13234_vm13, %v6824_v55  ;;  %vm13241_vm13 = vmmov %vm13064_vm0 }
 0x525   : > { %8421 = vmatmul.msk.f32.gmra.mxu1 %vm13235_vm8, %v5893_v40  ;;  %vm13242_vm8 = vmmov %vm13064_vm0 }
 0x526   : > { %8459 = vmatmul.msk.f32.gmra.mxu2 %vm13236_vm11, %v6203_v24  ;;  %vm13243_vm11 = vmmov %vm13064_vm0  ;;  %v6827_v24 = vld [vmem:[#allocation2 + $0x55] sm:$0xff] }
 0x527   : > { %8497 = vmatmul.msk.f32.gmra.mxu3 %vm13237_vm4, %v6513_v39  ;;  %vm13244_vm4 = vmmov %vm13064_vm0 }
 0x529   : > { %v5229_v7 = vpop.f32.mrf.mxu2  ;;  %v11436_v12 = vpop.f32.mrf.mxu0 }
 0x52a   : > { %v5230_v11 = vadd.f32 %v5229_v7, %v4993_v45  ;;  %v5503_v47 = vpop.f32.mrf.mxu3  ;;  %v4996_v20 = vpop.f32.mrf.mxu1  ;;  %v5896_v7 = vld [vmem:[#allocation2 + $0x3b] sm:$0xff] }
 0x52c   : > { %v5567_v42 = vadd.f32 %v5503_v47, %v5230_v11  ;;  %8537 = vmatmul.msk.f32.gmra.mxu0 %vm13064_vm0, %v6825_v34 }
 0x52d   : > { %8422 = vmatmul.msk.f32.gmra.mxu1 %vm13238_vm12, %v5894_v2  ;;  %vm13245_vm12 = vmmov %vm13064_vm0 }
 0x52e   : > { %8460 = vmatmul.msk.f32.gmra.mxu2 %vm13239_vm1, %v6204_v63  ;;  %vm13246_vm1 = vmmov %vm13064_vm0  ;;  %v11466_v63 = vadd.f32 %v11410_v60, %v5566_v51  ;;  %v11475_v60 = vadd.f32 %v11420_v53, %v5567_v42  ;;  %v5898_v51 = vld [vmem:[#allocation2 + $0x4b] sm:$0xff]  ;;  %v5899_v42 = vld [vmem:[#allocation2 + $0x53] sm:$0xff] }
 0x52f   : > { %8498 = vmatmul.msk.f32.gmra.mxu3 %vm13240_vm15, %v6514_v1  ;;  %vm13247_vm15 = vmmov %vm13064_vm0 }
 0x531   : > { %v5232_v35 = vpop.f32.mrf.mxu2  ;;  %v11445_v15 = vpop.f32.mrf.mxu0 }
 0x532   : > { %v5233_v10 = vadd.f32 %v5232_v35, %v4996_v20  ;;  %v5506_v17 = vpop.f32.mrf.mxu3  ;;  %v4999_v62 = vpop.f32.mrf.mxu1  ;;  %v5897_v35 = vld [vmem:[#allocation2 + $0x43] sm:$0xff] }
 0x534   : > { %v5568_v50 = vadd.f32 %v5506_v17, %v5233_v10  ;;  %8538 = vmatmul.msk.f32.gmra.mxu0 %vm13241_vm13, %v6826_v4  ;;  %vm13248_vm13 = vmmov %vm13064_vm0 }
 0x535   : > { %8423 = vmatmul.msk.f32.gmra.mxu1 %vm13242_vm8, %v5895_v19  ;;  %vm13249_vm8 = vmmov %vm13064_vm0 }
 0x536   : > { %8461 = vmatmul.msk.f32.gmra.mxu2 %vm13243_vm11, %v6513_v39  ;;  %v6516_v39 = vld [vmem:[#allocation2 + $0x4c] sm:$0xff]  ;;  %vm13250_vm11 = vmmov %vm13064_vm0  ;;  %v11484_v53 = vadd.f32 %v11427_v13, %v5568_v50  ;;  %v5900_v13 = vld [vmem:[#allocation2 + $0x5b] sm:$0xff] }
 0x537   : > { %8499 = vmatmul.msk.f32.gmra.mxu3 %vm13244_vm4, %v6515_v22  ;;  %vm13251_vm4 = vmmov %vm13064_vm0 }
 0x539   : > { %v5235_v30 = vpop.f32.mrf.mxu2  ;;  %v11454_v55 = vpop.f32.mrf.mxu0 }
 0x53a   : > { %v5236_v48 = vadd.f32 %v5235_v30, %v4999_v62  ;;  %v5509_v45 = vpop.f32.mrf.mxu3  ;;  %v5002_v40 = vpop.f32.mrf.mxu1 }
 0x53c   : > { %v5569_v8 = vadd.f32 %v5509_v45, %v5236_v48  ;;  %8539 = vmatmul.msk.f32.gmra.mxu0 %vm13064_vm0, %v6827_v24  ;;  %v6829_v48 = vld [vmem:[#allocation2 + $0x65] sm:$0xff] }
 0x53d   : > { %8424 = vmatmul.msk.f32.gmra.mxu1 %vm13245_vm12, %v5896_v7  ;;  %vm13252_vm12 = vmmov %vm13064_vm0 }
 0x53e   : > { %8462 = vmatmul.msk.f32.gmra.mxu2 %vm13246_vm1, %v6514_v1  ;;  %v6517_v1 = vld [vmem:[#allocation2 + $0x54] sm:$0xff]  ;;  %vm13253_vm1 = vmmov %vm13064_vm0  ;;  %v11494_v50 = vadd.f32 %v11436_v12, %v5569_v8 }
 0x53f   : > { %8500 = vmatmul.msk.f32.gmra.mxu3 %vm13247_vm15, %v6516_v39  ;;  %vm13254_vm15 = vmmov %vm13064_vm0  ;;  %v6521_v8 = vld [vmem:[#allocation2 + $0x74] sm:$0xff] }
 0x541   : > { %v5238_v11 = vpop.f32.mrf.mxu2  ;;  %v11463_v34 = vpop.f32.mrf.mxu0 }
 0x542   : > { %v5239_v47 = vadd.f32 %v5238_v11, %v5002_v40  ;;  %v5512_v20 = vpop.f32.mrf.mxu3  ;;  %v5005_v2 = vpop.f32.mrf.mxu1 }
 0x544   : > { %v5570_v52 = vadd.f32 %v5512_v20, %v5239_v47  ;;  %8540 = vmatmul.msk.f32.gmra.mxu0 %vm13248_vm13, %v6828_v32  ;;  %v6830_v20 = vld [vmem:[#allocation2 + $0x6d] sm:$0xff]  ;;  %vm13255_vm13 = vmmov %vm13064_vm0 }
 0x545   : > { %8425 = vmatmul.msk.f32.gmra.mxu1 %vm13249_vm8, %v5897_v35  ;;  %vm13256_vm8 = vmmov %vm13064_vm0 }
 0x546   : > { %8463 = vmatmul.msk.f32.gmra.mxu2 %vm13250_vm11, %v6515_v22  ;;  %v6518_v22 = vld [vmem:[#allocation2 + $0x5c] sm:$0xff]  ;;  %vm13257_vm11 = vmmov %vm13064_vm0  ;;  %v11505_v12 = vadd.f32 %v11445_v15, %v5570_v52 }
 0x547   : > { %8501 = vmatmul.msk.f32.gmra.mxu3 %vm13251_vm4, %v6517_v1  ;;  %vm13258_vm4 = vmmov %vm13064_vm0  ;;  %v6522_v15 = vld [vmem:[#allocation2 + $0x7c] sm:$0xff] }
 0x549   : > { %v5241_v10 = vpop.f32.mrf.mxu2  ;;  %v11472_v4 = vpop.f32.mrf.mxu0 }
 0x54a   : > { %v5242_v17 = vadd.f32 %v5241_v10, %v5005_v2  ;;  %v5515_v62 = vpop.f32.mrf.mxu3  ;;  %v5008_v19 = vpop.f32.mrf.mxu1 }
 0x54c   : > { %v5571_v30 = vadd.f32 %v5515_v62, %v5242_v17  ;;  %8541 = vmatmul.msk.f32.gmra.mxu0 %vm13064_vm0, %v6829_v48 }
 0x54d   : > { %8426 = vmatmul.msk.f32.gmra.mxu1 %vm13252_vm12, %v5898_v51  ;;  %vm13259_vm12 = vmmov %vm13064_vm0 }
 0x54e   : > { %8464 = vmatmul.msk.f32.gmra.mxu2 %vm13253_vm1, %v6516_v39  ;;  %v6519_v39 = vld [vmem:[#allocation2 + $0x64] sm:$0xff]  ;;  %vm13260_vm1 = vmmov %vm13064_vm0  ;;  %v11516_v52 = vadd.f32 %v11454_v55, %v5571_v30 }
 0x54f   : > { %8502 = vmatmul.msk.f32.gmra.mxu3 %vm13254_vm15, %v6518_v22  ;;  %vm13261_vm15 = vmmov %vm13064_vm0  ;;  %v6523_v55 = vld [vmem:[#allocation2 + $0x84] sm:$0xff] }
 0x551   : > { %v5244_v45 = vpop.f32.mrf.mxu2  ;;  %v11481_v7 = vpop.f32.mrf.mxu0 }
 0x552   : > { %v5245_v40 = vadd.f32 %v5244_v45, %v5008_v19  ;;  %v5518_v24 = vpop.f32.mrf.mxu3  ;;  %v5011_v11 = vpop.f32.mrf.mxu1  ;;  %v6831_v19 = vld [vmem:[#allocation2 + $0x75] sm:$0xff] }
 0x554   : > { %v5572_v47 = vadd.f32 %v5518_v24, %v5245_v40  ;;  %8542 = vmatmul.msk.f32.gmra.mxu0 %vm13255_vm13, %v6830_v20  ;;  %vm13262_vm13 = vmmov %vm13064_vm0 }
 0x555   : > { %8427 = vmatmul.msk.f32.gmra.mxu1 %vm13256_vm8, %v5899_v42  ;;  %v5901_v42 = vld [vmem:[#allocation2 + $0x63] sm:$0xff]  ;;  %vm13263_vm8 = vmmov %vm13064_vm0 }
 0x556   : > { %8465 = vmatmul.msk.f32.gmra.mxu2 %vm13257_vm11, %v6517_v1  ;;  %v6520_v1 = vld [vmem:[#allocation2 + $0x6c] sm:$0xff]  ;;  %vm13264_vm11 = vmmov %vm13064_vm0  ;;  %v11527_v30 = vadd.f32 %v11463_v34, %v5572_v47 }
 0x557   : > { %8503 = vmatmul.msk.f32.gmra.mxu3 %vm13258_vm4, %v6519_v39  ;;  %vm13265_vm4 = vmmov %vm13064_vm0  ;;  %v6524_v34 = vld [vmem:[#allocation2 + $0x8c] sm:$0xff] }
 0x559   : > { %v5247_v2 = vpop.f32.mrf.mxu2  ;;  %v11490_v17 = vpop.f32.mrf.mxu0 }
 0x55a   : > { %v5248_v32 = vadd.f32 %v5247_v2, %v5011_v11  ;;  %v5521_v35 = vpop.f32.mrf.mxu3  ;;  %v5014_v10 = vpop.f32.mrf.mxu1  ;;  %v6832_v11 = vld [vmem:[#allocation2 + $0x7d] sm:$0xff] }
 0x55c   : > { %v5573_v62 = vadd.f32 %v5521_v35, %v5248_v32  ;;  %8543 = vmatmul.msk.f32.gmra.mxu0 %vm13064_vm0, %v6831_v19  ;;  %v6833_v19 = vld [vmem:[#allocation2 + $0x85] sm:$0xff] }
 0x55d   : > { %8428 = vmatmul.msk.f32.gmra.mxu1 %vm13259_vm12, %v5900_v13  ;;  %v5902_v13 = vld [vmem:[#allocation2 + $0x6b] sm:$0xff]  ;;  %vm13266_vm12 = vmmov %vm13064_vm0 }
 0x55e   : > { %8466 = vmatmul.msk.f32.gmra.mxu2 %vm13260_vm1, %v6518_v22  ;;  %vm13267_vm1 = vmmov %vm13064_vm0  ;;  %v11538_v47 = vadd.f32 %v11472_v4, %v5573_v62  ;;  %v6525_v4 = vld [vmem:[#allocation2 + $0x94] sm:$0xff] }
 0x55f   : > { %8504 = vmatmul.msk.f32.gmra.mxu3 %vm13261_vm15, %v6520_v1  ;;  %vm13268_vm15 = vmmov %vm13064_vm0 }
 0x561   : > { %v5250_v48 = vpop.f32.mrf.mxu2  ;;  %v11501_v20 = vpop.f32.mrf.mxu0 }
 0x562   : > { %v5251_v51 = vadd.f32 %v5250_v48, %v5014_v10  ;;  %v5524_v45 = vpop.f32.mrf.mxu3  ;;  %v5017_v40 = vpop.f32.mrf.mxu1 }
 0x564   : > { %v11499_v24 = vadd.f32 %v5524_v45, %v5251_v51  ;;  %8544 = vmatmul.msk.f32.gmra.mxu0 %vm13262_vm13, %v6832_v11  ;;  %vm13269_vm13 = vmmov %vm13064_vm0 }
 0x565   : > { %8429 = vmatmul.msk.f32.gmra.mxu1 %vm13263_vm8, %v5901_v42  ;;  %v6834_v42 = vld [vmem:[#allocation2 + $0x8d] sm:$0xff]  ;;  %vm13270_vm8 = vmmov %vm13064_vm0 }
 0x566   : > { %8467 = vmatmul.msk.f32.gmra.mxu2 %vm13264_vm11, %v6519_v39  ;;  %vm13271_vm11 = vmmov %vm13064_vm0  ;;  %v11550_v62 = vadd.f32 %v11481_v7, %v11499_v24  ;;  %v6526_v7 = vld [vmem:[#allocation2 + $0x9c] sm:$0xff] }
 0x567   : > { %8505 = vmatmul.msk.f32.gmra.mxu3 %vm13265_vm4, %v6521_v8  ;;  %vm13272_vm4 = vmmov %vm13064_vm0 }
 0x569   : > { %v5253_v22 = vpop.f32.mrf.mxu2  ;;  %v11518_v39 = vpop.f32.mrf.mxu0 }
 0x56a   : > { %v5254_v2 = vadd.f32 %v5253_v22, %v5017_v40  ;;  %v5527_v32 = vpop.f32.mrf.mxu3  ;;  %v5020_v35 = vpop.f32.mrf.mxu1  ;;  %v5903_v22 = vld [vmem:[#allocation2 + $0x73] sm:$0xff] }
 0x56c   : > { %v11510_v10 = vadd.f32 %v5527_v32, %v5254_v2  ;;  %8545 = vmatmul.msk.f32.gmra.mxu0 %vm13064_vm0, %v6833_v19 }
 0x56d   : > { %8430 = vmatmul.msk.f32.gmra.mxu1 %vm13266_vm12, %v5902_v13  ;;  %vm13273_vm12 = vmmov %vm13064_vm0 }
 0x56e   : > { %8468 = vmatmul.msk.f32.gmra.mxu2 %vm13267_vm1, %v6520_v1  ;;  %vm13274_vm1 = vmmov %vm13064_vm0  ;;  %v11563_v24 = vadd.f32 %v11490_v17, %v11510_v10 }
 0x56f   : > { %8506 = vmatmul.msk.f32.gmra.mxu3 %vm13268_vm15, %v6522_v15  ;;  %vm13275_vm15 = vmmov %vm13064_vm0 }
 0x571   : > { %v5256_v48 = vpop.f32.mrf.mxu2  ;;  %v11530_v1 = vpop.f32.mrf.mxu0 }
 0x572   : > { %v5257_v51 = vadd.f32 %v5256_v48, %v5020_v35  ;;  %v5530_v45 = vpop.f32.mrf.mxu3  ;;  %v5023_v40 = vpop.f32.mrf.mxu1  ;;  %v6835_v48 = vld [vmem:[#allocation2 + $0x95] sm:$0xff] }
 0x574   : > { %v11521_v11 = vadd.f32 %v5530_v45, %v5257_v51  ;;  %8546 = vmatmul.msk.f32.gmra.mxu0 %vm13269_vm13, %v6834_v42  ;;  %v5904_v51 = vld [vmem:[#allocation2 + $0x7b] sm:$0xff]  ;;  %vm13276_vm13 = vmmov %vm13064_vm0 }
 0x575   : > { %8431 = vmatmul.msk.f32.gmra.mxu1 %vm13270_vm8, %v5903_v22  ;;  %vm13277_vm8 = vmmov %vm13064_vm0 }
 0x576   : > { %8469 = vmatmul.msk.f32.gmra.mxu2 %vm13271_vm11, %v6521_v8  ;;  %vm13278_vm11 = vmmov %vm13064_vm0  ;;  %v11575_v17 = vadd.f32 %v11501_v20, %v11521_v11 }
 0x577   : > { %8507 = vmatmul.msk.f32.gmra.mxu3 %vm13272_vm4, %v6523_v55  ;;  %vm13279_vm4 = vmmov %vm13064_vm0 }
 0x579   : > { %v5259_v2 = vpop.f32.mrf.mxu2  ;;  %v11541_v42 = vpop.f32.mrf.mxu0 }
 0x57a   : > { %v5260_v32 = vadd.f32 %v5259_v2, %v5023_v40  ;;  %v5533_v35 = vpop.f32.mrf.mxu3  ;;  %v5026_v19 = vpop.f32.mrf.mxu1 }
 0x57c   : > { %v11532_v13 = vadd.f32 %v5533_v35, %v5260_v32  ;;  %8547 = vmatmul.msk.f32.gmra.mxu0 %vm13064_vm0, %v6835_v48  ;;  %v6836_v32 = vld [vmem:[#allocation2 + $0x9d] sm:$0xff] }
 0x57d   : > { %8432 = vmatmul.msk.f32.gmra.mxu1 %vm13273_vm12, %v5904_v51  ;;  %v5905_v35 = vld [vmem:[#allocation2 + $0x83] sm:$0xff]  ;;  %vm13280_vm12 = vmmov %vm13064_vm0 }
 0x57e   : > { %8470 = vmatmul.msk.f32.gmra.mxu2 %vm13274_vm1, %v6522_v15  ;;  %vm13281_vm1 = vmmov %vm13064_vm0 }
 0x57f   : > { %8508 = vmatmul.msk.f32.gmra.mxu3 %vm13275_vm15, %v6524_v34  ;;  %vm13282_vm15 = vmmov %vm13064_vm0 }
 0x581   : > { %v5262_v8 = vpop.f32.mrf.mxu2 }
 0x582   : > { %v5263_v45 = vadd.f32 %v5262_v8, %v5026_v19  ;;  %v5536_v40 = vpop.f32.mrf.mxu3  ;;  %v5029_v22 = vpop.f32.mrf.mxu1 }
 0x584   : > { %v11543_v2 = vadd.f32 %v5536_v40, %v5263_v45  ;;  %8548 = vmatmul.msk.f32.gmra.mxu0 %vm13276_vm13, %v6836_v32  ;;  %v6837_v45 = vld [vmem:[#allocation2 + $0xa5] sm:$0xff]  ;;  %v11555_v40 = vpop.f32.mrf.mxu0  ;;  %vm13283_vm13 = vmmov %vm13064_vm0 }
 0x585   : > { %8433 = vmatmul.msk.f32.gmra.mxu1 %vm13277_vm8, %v5905_v35  ;;  %v5906_v32 = vld [vmem:[#allocation2 + $0x8b] sm:$0xff]  ;;  %vm13284_vm8 = vmmov %vm13064_vm0 }
 0x586   : > { %8471 = vmatmul.msk.f32.gmra.mxu2 %vm13278_vm11, %v6523_v55  ;;  %vm13285_vm11 = vmmov %vm13064_vm0 }
 0x587   : > { %8509 = vmatmul.msk.f32.gmra.mxu3 %vm13279_vm4, %v6525_v4  ;;  %vm13286_vm4 = vmmov %vm13064_vm0 }
 0x589   : > { %v5265_v15 = vpop.f32.mrf.mxu2 }
 0x58a   : > { %v5266_v19 = vadd.f32 %v5265_v15, %v5029_v22  ;;  %v5539_v48 = vpop.f32.mrf.mxu3  ;;  %v5032_v51 = vpop.f32.mrf.mxu1 }
 0x58c   : > { %v11553_v8 = vadd.f32 %v5539_v48, %v5266_v19  ;;  %8549 = vmatmul.msk.f32.gmra.mxu0 %vm13064_vm0, %v6837_v45  ;;  %v6838_v48 = vld [vmem:[#allocation2 + $0xad] sm:$0xff]  ;;  %v11570_v45 = vpop.f32.mrf.mxu0 }
 0x58d   : > { %8434 = vmatmul.msk.f32.gmra.mxu1 %vm13280_vm12, %v5906_v32  ;;  %vm13287_vm12 = vmmov %vm13064_vm0 }
 0x58e   : > { %8472 = vmatmul.msk.f32.gmra.mxu2 %vm13281_vm1, %v6524_v34  ;;  %v6527_v34 = vld [vmem:[#allocation2 + $0xa4] sm:$0xff]  ;;  %vm13288_vm1 = vmmov %vm13064_vm0 }
 0x58f   : > { %8510 = vmatmul.msk.f32.gmra.mxu3 %vm13282_vm15, %v6526_v7  ;;  %vm13289_vm15 = vmmov %vm13064_vm0 }
 0x591   : > { %v5268_v55 = vpop.f32.mrf.mxu2 }
 0x592   : > { %v5269_v22 = vadd.f32 %v5268_v55, %v5032_v51  ;;  %v5542_v35 = vpop.f32.mrf.mxu3  ;;  %v6057_v15 = vpop.f32.mrf.mxu1 }
 0x593   : > { %v6165_v10 = vadd.f32 %v6057_v15, %v11251_v16  ;;  %v11586_v16 = vadd.f32 %v11518_v39, %v11532_v13  ;;  %v6529_v39 = vld [vmem:[#allocation2 + $0xb4] sm:$0xff]  ;;  %v11600_v13 = vadd.f32 %v11530_v1, %v11543_v2  ;;  %v11613_v2 = vadd.f32 %v11541_v42, %v11553_v8 }
 0x594   : > { %v11565_v19 = vadd.f32 %v5542_v35, %v5269_v22  ;;  %8550 = vmatmul.msk.f32.gmra.mxu0 %vm13283_vm13, %v6838_v48  ;;  %v5908_v48 = vld [vmem:[#allocation2 + $0x9b] sm:$0xff]  ;;  %v11589_v11 = vpop.f32.mrf.mxu0  ;;  %vm13291_vm13 = vmmov %vm13064_vm0 }
 0x595   : > { %8435 = vmatmul.msk.f32.gmra.mxu1 %vm13284_vm8, %v5907_v61  ;;  %v6839_v61 = vld [vmem:[#allocation2 + $0xb5] sm:$0xff]  ;;  %13290 = vst [vmem:[#allocation5_spill] sm:$0xff] %v11586_v16  ;;  %vm13292_vm8 = vmmov %vm13064_vm0 }
 0x596   : > { %8473 = vmatmul.msk.f32.gmra.mxu2 %vm13285_vm11, %v6525_v4  ;;  %v6528_v4 = vld [vmem:[#allocation2 + $0xac] sm:$0xff]  ;;  %vm13293_vm11 = vmmov %vm13064_vm0  ;;  %13295 = vst [vmem:[#allocation10_spill] sm:$0xff] %v11600_v13  ;;  %v7157_v13 = vld [vmem:[#allocation2 + $0xf6] sm:$0xff] }
 0x597   : > { %8511 = vmatmul.msk.f32.gmra.mxu3 %vm13286_vm4, %v6527_v34  ;;  %vm13294_vm4 = vmmov %vm13064_vm0  ;;  %13299 = vst [vmem:[#allocation9_spill] sm:$0xff] %v11613_v2  ;;  %v7154_v2 = vld [vmem:[#allocation2 + $0xde] sm:$0xff] }
 0x599   : > { %v6367_v51 = vpop.f32.mrf.mxu2 }
 0x59a   : > { %v6475_v32 = vadd.f32 %v6367_v51, %v6165_v10  ;;  %v6677_v55 = vpop.f32.mrf.mxu3  ;;  %v6060_v22 = vpop.f32.mrf.mxu1 }
 0x59b   : > { %v6166_v20 = vadd.f32 %v6060_v22, %v11259_v49 }
 0x59c   : > { %v11578_v35 = vadd.f32 %v6677_v55, %v6475_v32  ;;  %8551 = vmatmul.msk.f32.gmra.mxu0 %vm13064_vm0, %v6839_v61  ;;  %v6840_v61 = vld [vmem:[#allocation2 + $0xbd] sm:$0xff] }
 0x59d   : > { %8436 = vmatmul.msk.f32.gmra.mxu1 %vm13287_vm12, %v5908_v48  ;;  %v5909_v48 = vld [vmem:[#allocation2 + $0xa3] sm:$0xff]  ;;  %vm13296_vm12 = vmmov %vm13064_vm0 }
 0x59e   : > { %8474 = vmatmul.msk.f32.gmra.mxu2 %vm13288_vm1, %v6526_v7  ;;  %vm13297_vm1 = vmmov %vm13064_vm0 }
 0x59f   : > { %8512 = vmatmul.msk.f32.gmra.mxu3 %vm13289_vm15, %v6528_v4  ;;  %vm13298_vm15 = vmmov %vm13064_vm0 }
 0x5a1   : > { %v6370_v15 = vpop.f32.mrf.mxu2 }
 0x5a2   : > { %v6476_v10 = vadd.f32 %v6370_v15, %v6166_v20  ;;  %v6680_v51 = vpop.f32.mrf.mxu3  ;;  %v6063_v32 = vpop.f32.mrf.mxu1 }
 0x5a3   : > { %v6167_v49 = vadd.f32 %v6063_v32, %v11267_v27  ;;  %v11602_v15 = vpop.f32.mrf.mxu0  ;;  %v6530_v27 = vld [vmem:[#allocation2 + $0xbc] sm:$0xff] }
 0x5a4   : > { %v11591_v55 = vadd.f32 %v6680_v51, %v6476_v10  ;;  %8552 = vmatmul.msk.f32.gmra.mxu0 %vm13291_vm13, %v6840_v61  ;;  %v6841_v61 = vld [vmem:[#allocation2 + $0xc5] sm:$0xff]  ;;  %vm13300_vm13 = vmmov %vm13064_vm0 }
 0x5a5   : > { %8437 = vmatmul.msk.f32.gmra.mxu1 %vm13292_vm8, %v5909_v48  ;;  %v5910_v48 = vld [vmem:[#allocation2 + $0xab] sm:$0xff]  ;;  %vm13301_vm8 = vmmov %vm13064_vm0 }
 0x5a6   : > { %8475 = vmatmul.msk.f32.gmra.mxu2 %vm13293_vm11, %v6527_v34  ;;  %vm13302_vm11 = vmmov %vm13064_vm0 }
 0x5a7   : > { %8513 = vmatmul.msk.f32.gmra.mxu3 %vm13294_vm4, %v6529_v39  ;;  %vm13303_vm4 = vmmov %vm13064_vm0 }
 0x5a9   : > { %v6373_v7 = vpop.f32.mrf.mxu2 }
 0x5aa   : > { %v6477_v22 = vadd.f32 %v6373_v7, %v6167_v49  ;;  %v6683_v20 = vpop.f32.mrf.mxu3  ;;  %v6066_v10 = vpop.f32.mrf.mxu1 }
 0x5ab   : > { %v6168_v1 = vadd.f32 %v6066_v10, %v11275_v44  ;;  %v6531_v44 = vld [vmem:[#allocation2 + $0xc4] sm:$0xff] }
 0x5ac   : > { %v11604_v51 = vadd.f32 %v6683_v20, %v6477_v22  ;;  %8553 = vmatmul.msk.f32.gmra.mxu0 %vm13064_vm0, %v6841_v61  ;;  %v6842_v20 = vld [vmem:[#allocation2 + $0xcd] sm:$0xff]  ;;  %v11617_v61 = vpop.f32.mrf.mxu0 }
 0x5ad   : > { %8438 = vmatmul.msk.f32.gmra.mxu1 %vm13296_vm12, %v5910_v48  ;;  %v5911_v48 = vld [vmem:[#allocation2 + $0xb3] sm:$0xff]  ;;  %vm13305_vm12 = vmmov %vm13064_vm0 }
 0x5ae   : > { %8476 = vmatmul.msk.f32.gmra.mxu2 %vm13297_vm1, %v6528_v4  ;;  %v11626_v4 = vadd.f32 %v11555_v40, %v11565_v19  ;;  %vm13306_vm1 = vmmov %vm13064_vm0 }
 0x5af   : > { %8514 = vmatmul.msk.f32.gmra.mxu3 %vm13298_vm15, %v6530_v27  ;;  %vm13307_vm15 = vmmov %vm13064_vm0 }
 0x5b0   : > { %13304 = vst [vmem:[#allocation11_spill] sm:$0xff] %v11626_v4  ;;  %v7151_v4 = vld [vmem:[#allocation2 + $0xc6] sm:$0xff] }
 0x5b1   : > { %v6376_v34 = vpop.f32.mrf.mxu2 }
 0x5b2   : > { %v6478_v32 = vadd.f32 %v6376_v34, %v6168_v1  ;;  %v6686_v49 = vpop.f32.mrf.mxu3  ;;  %v6069_v7 = vpop.f32.mrf.mxu1 }
 0x5b3   : > { %v6169_v42 = vadd.f32 %v6069_v7, %v11284_v18  ;;  %v11639_v7 = vadd.f32 %v11570_v45, %v11578_v35 }
 0x5b4   : > { %v11615_v22 = vadd.f32 %v6686_v49, %v6478_v32  ;;  %8554 = vmatmul.msk.f32.gmra.mxu0 %vm13300_vm13, %v6842_v20  ;;  %v6843_v49 = vld [vmem:[#allocation2 + $0xd5] sm:$0xff]  ;;  %v11633_v18 = vpop.f32.mrf.mxu0  ;;  %vm13308_vm13 = vmmov %vm13064_vm0 }
 0x5b5   : > { %8439 = vmatmul.msk.f32.gmra.mxu1 %vm13301_vm8, %v5911_v48  ;;  %v5912_v20 = vld [vmem:[#allocation2 + $0xbb] sm:$0xff]  ;;  %vm13309_vm8 = vmmov %vm13064_vm0 }
 0x5b6   : > { %8477 = vmatmul.msk.f32.gmra.mxu2 %vm13302_vm11, %v6529_v39  ;;  %v6532_v39 = vld [vmem:[#allocation2 + $0xcc] sm:$0xff]  ;;  %vm13310_vm11 = vmmov %vm13064_vm0 }
 0x5b7   : > { %8515 = vmatmul.msk.f32.gmra.mxu3 %vm13303_vm4, %v6531_v44  ;;  %vm13311_vm4 = vmmov %vm13064_vm0 }
 0x5b9   : > { %v6379_v8 = vpop.f32.mrf.mxu2 }
 0x5ba   : > { %v6479_v10 = vadd.f32 %v6379_v8, %v6169_v42  ;;  %v6689_v1 = vpop.f32.mrf.mxu3  ;;  %v6072_v34 = vpop.f32.mrf.mxu1 }
 0x5bb   : > { %v6170_v40 = vadd.f32 %v6072_v34, %v11295_v57  ;;  %v11652_v34 = vadd.f32 %v11589_v11, %v11591_v55  ;;  %v11663_v55 = vadd.f32 %v11602_v15, %v11604_v51 }
 0x5bc   : > { %v11628_v32 = vadd.f32 %v6689_v1, %v6479_v10  ;;  %8555 = vmatmul.msk.f32.gmra.mxu0 %vm13064_vm0, %v6843_v49  ;;  %v6844_v1 = vld [vmem:[#allocation2 + $0xdd] sm:$0xff]  ;;  %v11648_v45 = vpop.f32.mrf.mxu0 }
 0x5bd   : > { %8440 = vmatmul.msk.f32.gmra.mxu1 %vm13305_vm12, %v5912_v20  ;;  %v5913_v49 = vld [vmem:[#allocation2 + $0xc3] sm:$0xff]  ;;  %vm13312_vm12 = vmmov %vm13064_vm0 }
 0x5be   : > { %8478 = vmatmul.msk.f32.gmra.mxu2 %vm13306_vm1, %v6530_v27  ;;  %v6533_v27 = vld [vmem:[#allocation2 + $0xd4] sm:$0xff]  ;;  %vm13313_vm1 = vmmov %vm13064_vm0 }
 0x5bf   : > { %8516 = vmatmul.msk.f32.gmra.mxu3 %vm13307_vm15, %v6532_v39  ;;  %vm13314_vm15 = vmmov %vm13064_vm0 }
 0x5c1   : > { %v6382_v19 = vpop.f32.mrf.mxu2 }
 0x5c2   : > { %v6480_v48 = vadd.f32 %v6382_v19, %v6170_v40  ;;  %v6692_v42 = vpop.f32.mrf.mxu3  ;;  %v6075_v8 = vpop.f32.mrf.mxu1 }
 0x5c3   : > { %v6171_v57 = vadd.f32 %v6075_v8, %v11305_v43  ;;  %v6534_v43 = vld [vmem:[#allocation2 + $0xdc] sm:$0xff] }
 0x5c4   : > { %v11641_v10 = vadd.f32 %v6692_v42, %v6480_v48  ;;  %8556 = vmatmul.msk.f32.gmra.mxu0 %vm13308_vm13, %v6844_v1  ;;  %v6845_v42 = vld [vmem:[#allocation2 + $0xe5] sm:$0xff]  ;;  %vm13315_vm13 = vmmov %vm13064_vm0 }
 0x5c5   : > { %8441 = vmatmul.msk.f32.gmra.mxu1 %vm13309_vm8, %v5913_v49  ;;  %v5914_v1 = vld [vmem:[#allocation2 + $0xcb] sm:$0xff]  ;;  %vm13316_vm8 = vmmov %vm13064_vm0 }
 0x5c6   : > { %8479 = vmatmul.msk.f32.gmra.mxu2 %vm13310_vm11, %v6531_v44  ;;  %vm13317_vm11 = vmmov %vm13064_vm0 }
 0x5c7   : > { %8517 = vmatmul.msk.f32.gmra.mxu3 %vm13311_vm4, %v6533_v27  ;;  %vm13318_vm4 = vmmov %vm13064_vm0 }
 0x5c9   : > { %v6385_v35 = vpop.f32.mrf.mxu2 }
 0x5ca   : > { %v6481_v20 = vadd.f32 %v6385_v35, %v6171_v57  ;;  %v6695_v40 = vpop.f32.mrf.mxu3  ;;  %v6078_v19 = vpop.f32.mrf.mxu1 }
 0x5cb   : > { %v6172_v44 = vadd.f32 %v6078_v19, %v11314_v38  ;;  %v11665_v57 = vpop.f32.mrf.mxu0  ;;  %v6535_v38 = vld [vmem:[#allocation2 + $0xe4] sm:$0xff] }
 0x5cc   : > { %v11654_v48 = vadd.f32 %v6695_v40, %v6481_v20  ;;  %8557 = vmatmul.msk.f32.gmra.mxu0 %vm13064_vm0, %v6845_v42  ;;  %v6846_v40 = vld [vmem:[#allocation2 + $0xed] sm:$0xff] }
 0x5cd   : > { %8442 = vmatmul.msk.f32.gmra.mxu1 %vm13312_vm12, %v5914_v1  ;;  %v5915_v42 = vld [vmem:[#allocation2 + $0xd3] sm:$0xff]  ;;  %vm13319_vm12 = vmmov %vm13064_vm0 }
 0x5ce   : > { %8480 = vmatmul.msk.f32.gmra.mxu2 %vm13313_vm1, %v6532_v39  ;;  %vm13320_vm1 = vmmov %vm13064_vm0 }
 0x5cf   : > { %8518 = vmatmul.msk.f32.gmra.mxu3 %vm13314_vm15, %v6534_v43  ;;  %vm13321_vm15 = vmmov %vm13064_vm0 }
 0x5d1   : > { %v6388_v11 = vpop.f32.mrf.mxu2 }
 0x5d2   : > { %v6482_v8 = vadd.f32 %v6388_v11, %v6172_v44  ;;  %v6698_v49 = vpop.f32.mrf.mxu3  ;;  %v6081_v35 = vpop.f32.mrf.mxu1  ;;  %v6847_v11 = vld [vmem:[#allocation2 + $0xf5] sm:$0xff] }
 0x5d3   : > { %v6173_v15 = vadd.f32 %v6081_v35, %v11323_v29  ;;  %v6536_v29 = vld [vmem:[#allocation2 + $0xec] sm:$0xff] }
 0x5d4   : > { %v11667_v20 = vadd.f32 %v6698_v49, %v6482_v8  ;;  %8558 = vmatmul.msk.f32.gmra.mxu0 %vm13315_vm13, %v6846_v40  ;;  %v11678_v8 = vadd.f32 %v11617_v61, %v11615_v22  ;;  %v7008_v49 = vpop.f32.mrf.mxu0  ;;  %v5916_v40 = vld [vmem:[#allocation2 + $0xdb] sm:$0xff]  ;;  %v11689_v61 = vadd.f32 %v11633_v18, %v11628_v32  ;;  %vm13322_vm13 = vmmov %vm13064_vm0  ;;  %v6849_v32 = vld [vmem:[#allocation2 + $0x105] sm:$0xff]  ;;  %v11700_v18 = vadd.f32 %v11648_v45, %v11641_v10 }
 0x5d5   : > { %8443 = vmatmul.msk.f32.gmra.mxu1 %vm13316_vm8, %v5915_v42  ;;  %v6848_v22 = vld [vmem:[#allocation2 + $0xfd] sm:$0xff]  ;;  %vm13323_vm8 = vmmov %vm13064_vm0  ;;  %v6850_v10 = vld [vmem:[#allocation2 + $0x10d] sm:$0xff] }
 0x5d6   : > { %8481 = vmatmul.msk.f32.gmra.mxu2 %vm13317_vm11, %v6533_v27  ;;  %vm13324_vm11 = vmmov %vm13064_vm0  ;;  %v5919_v45 = vld [vmem:[#allocation2 + $0xf3] sm:$0xff] }
 0x5d7   : > { %8519 = vmatmul.msk.f32.gmra.mxu3 %vm13318_vm4, %v6535_v38  ;;  %vm13325_vm4 = vmmov %vm13064_vm0 }
 0x5d9   : > { %v6391_v51 = vpop.f32.mrf.mxu2 }
 0x5da   : > { %v6483_v39 = vadd.f32 %v6391_v51, %v6173_v15  ;;  %v6701_v19 = vpop.f32.mrf.mxu3  ;;  %v6084_v1 = vpop.f32.mrf.mxu1 }
 0x5db   : > { %v6174_v27 = vadd.f32 %v6084_v1, %v11334_v25 }
 0x5dc   : > { %v11674_v44 = vadd.f32 %v6701_v19, %v6483_v39  ;;  %8559 = vmatmul.msk.f32.gmra.mxu0 %vm13064_vm0, %v6847_v11  ;;  %v5917_v19 = vld [vmem:[#allocation2 + $0xe3] sm:$0xff]  ;;  %v7011_v25 = vpop.f32.mrf.mxu0 }
 0x5dd   : > { %8444 = vmatmul.msk.f32.gmra.mxu1 %vm13319_vm12, %v5916_v40  ;;  %vm13326_vm12 = vmmov %vm13064_vm0 }
 0x5de   : > { %8482 = vmatmul.msk.f32.gmra.mxu2 %vm13320_vm1, %v6534_v43  ;;  %v6537_v43 = vld [vmem:[#allocation2 + $0xf4] sm:$0xff]  ;;  %vm13327_vm1 = vmmov %vm13064_vm0 }
 0x5df   : > { %8520 = vmatmul.msk.f32.gmra.mxu3 %vm13321_vm15, %v6536_v29  ;;  %vm13328_vm15 = vmmov %vm13064_vm0 }
 0x5e1   : > { %v6394_v35 = vpop.f32.mrf.mxu2 }
 0x5e2   : > { %v6484_v42 = vadd.f32 %v6394_v35, %v6174_v27  ;;  %v6704_v15 = vpop.f32.mrf.mxu3  ;;  %v6087_v51 = vpop.f32.mrf.mxu1 }
 0x5e3   : > { %v6175_v1 = vadd.f32 %v6087_v51, %v11343_v26 }
 0x5e4   : > { %v11685_v39 = vadd.f32 %v6704_v15, %v6484_v42  ;;  %8560 = vmatmul.msk.f32.gmra.mxu0 %vm13322_vm13, %v6848_v22  ;;  %v5918_v15 = vld [vmem:[#allocation2 + $0xeb] sm:$0xff]  ;;  %v7014_v51 = vpop.f32.mrf.mxu0  ;;  %vm13329_vm13 = vmmov %vm13064_vm0 }
 0x5e5   : > { %8445 = vmatmul.msk.f32.gmra.mxu1 %vm13323_vm8, %v5917_v19  ;;  %vm13330_vm8 = vmmov %vm13064_vm0 }
 0x5e6   : > { %8483 = vmatmul.msk.f32.gmra.mxu2 %vm13324_vm11, %v6535_v38  ;;  %v6538_v38 = vld [vmem:[#allocation2 + $0xfc] sm:$0xff]  ;;  %vm13331_vm11 = vmmov %vm13064_vm0 }
 0x5e7   : > { %8521 = vmatmul.msk.f32.gmra.mxu3 %vm13325_vm4, %v6537_v43  ;;  %vm13332_vm4 = vmmov %vm13064_vm0 }
 0x5e9   : > { %v6397_v11 = vpop.f32.mrf.mxu2 }
 0x5ea   : > { %v6485_v40 = vadd.f32 %v6397_v11, %v6175_v1  ;;  %v6707_v27 = vpop.f32.mrf.mxu3  ;;  %v6090_v35 = vpop.f32.mrf.mxu1 }
 0x5eb   : > { %v6176_v26 = vadd.f32 %v6090_v35, %v11358_v58  ;;  %v6539_v58 = vld [vmem:[#allocation2 + $0x104] sm:$0xff] }
 0x5ec   : > { %v11696_v42 = vadd.f32 %v6707_v27, %v6485_v40  ;;  %8561 = vmatmul.msk.f32.gmra.mxu0 %vm13064_vm0, %v6849_v32  ;;  %v11712_v27 = vadd.f32 %v11665_v57, %v11654_v48  ;;  %v11722_v48 = vadd.f32 %v7008_v49, %v11667_v20  ;;  %v6540_v57 = vld [vmem:[#allocation2 + $0x10c] sm:$0xff]  ;;  %v6541_v20 = vld [vmem:[#allocation2 + $0x114] sm:$0xff]  ;;  %v11734_v49 = vadd.f32 %v7011_v25, %v11674_v44  ;;  %v6542_v44 = vld [vmem:[#allocation2 + $0x11c] sm:$0xff] }
 0x5ed   : > { %8446 = vmatmul.msk.f32.gmra.mxu1 %vm13326_vm12, %v5918_v15  ;;  %vm13333_vm12 = vmmov %vm13064_vm0  ;;  %v11744_v25 = vadd.f32 %v7014_v51, %v11685_v39  ;;  %v6543_v39 = vld [vmem:[#allocation2 + $0x124] sm:$0xff] }
 0x5ee   : > { %8484 = vmatmul.msk.f32.gmra.mxu2 %vm13327_vm1, %v6536_v29  ;;  %vm13334_vm1 = vmmov %vm13064_vm0 }
 0x5ef   : > { %8522 = vmatmul.msk.f32.gmra.mxu3 %vm13328_vm15, %v6538_v38  ;;  %vm13335_vm15 = vmmov %vm13064_vm0 }
 0x5f1   : > { %v6400_v22 = vpop.f32.mrf.mxu2 }
 0x5f2   : > { %v6486_v19 = vadd.f32 %v6400_v22, %v6176_v26  ;;  %v6710_v1 = vpop.f32.mrf.mxu3  ;;  %v6093_v11 = vpop.f32.mrf.mxu1 }
 0x5f3   : > { %v6177_v29 = vadd.f32 %v6093_v11, %v11374_v31  ;;  %v7017_v26 = vpop.f32.mrf.mxu0 }
 0x5f4   : > { %v11707_v40 = vadd.f32 %v6710_v1, %v6486_v19  ;;  %8562 = vmatmul.msk.f32.gmra.mxu0 %vm13329_vm13, %v6850_v10  ;;  %v6851_v1 = vld [vmem:[#allocation2 + $0x115] sm:$0xff]  ;;  %vm13336_vm13 = vmmov %vm13064_vm0  ;;  %v11755_v51 = vadd.f32 %v7017_v26, %v11696_v42 }
 0x5f5   : > { %8447 = vmatmul.msk.f32.gmra.mxu1 %vm13330_vm8, %v5919_v45  ;;  %v5920_v10 = vld [vmem:[#allocation2 + $0xfb] sm:$0xff]  ;;  %vm13337_vm8 = vmmov %vm13064_vm0 }
 0x5f6   : > { %8485 = vmatmul.msk.f32.gmra.mxu2 %vm13331_vm11, %v6537_v43  ;;  %vm13338_vm11 = vmmov %vm13064_vm0 }
 0x5f7   : > { %8523 = vmatmul.msk.f32.gmra.mxu3 %vm13332_vm4, %v6539_v58  ;;  %vm13339_vm4 = vmmov %vm13064_vm0 }
 0x5f9   : > { %v6403_v35 = vpop.f32.mrf.mxu2 }
 0x5fa   : > { %v6487_v32 = vadd.f32 %v6403_v35, %v6177_v29  ;;  %v6713_v15 = vpop.f32.mrf.mxu3  ;;  %v6096_v22 = vpop.f32.mrf.mxu1 }
 0x5fb   : > { %v6178_v31 = vadd.f32 %v6096_v22, %v11389_v36 }
 0x5fc   : > { %v11718_v19 = vadd.f32 %v6713_v15, %v6487_v32  ;;  %8563 = vmatmul.msk.f32.gmra.mxu0 %vm13064_vm0, %v6851_v1  ;;  %v6852_v32 = vld [vmem:[#allocation2 + $0x11d] sm:$0xff]  ;;  %v7020_v15 = vpop.f32.mrf.mxu0 }
 0x5fd   : > { %8448 = vmatmul.msk.f32.gmra.mxu1 %vm13333_vm12, %v5920_v10  ;;  %v5921_v1 = vld [vmem:[#allocation2 + $0x103] sm:$0xff]  ;;  %vm13340_vm12 = vmmov %vm13064_vm0 }
 0x5fe   : > { %8486 = vmatmul.msk.f32.gmra.mxu2 %vm13334_vm1, %v6538_v38  ;;  %vm13341_vm1 = vmmov %vm13064_vm0 }
 0x5ff   : > { %8524 = vmatmul.msk.f32.gmra.mxu3 %vm13335_vm15, %v6540_v57  ;;  %vm13342_vm15 = vmmov %vm13064_vm0 }
 0x601   : > { %v6406_v43 = vpop.f32.mrf.mxu2 }
 0x602   : > { %v6488_v11 = vadd.f32 %v6406_v43, %v6178_v31  ;;  %v6716_v45 = vpop.f32.mrf.mxu3  ;;  %v6099_v29 = vpop.f32.mrf.mxu1 }
 0x603   : > { %v6179_v36 = vadd.f32 %v6099_v29, %v11399_v33 }
 0x604   : > { %v11728_v35 = vadd.f32 %v6716_v45, %v6488_v11  ;;  %8564 = vmatmul.msk.f32.gmra.mxu0 %vm13336_vm13, %v6852_v32  ;;  %v6853_v11 = vld [vmem:[#allocation2 + $0x125] sm:$0xff]  ;;  %vm13343_vm13 = vmmov %vm13064_vm0 }
 0x605   : > { %8449 = vmatmul.msk.f32.gmra.mxu1 %vm13337_vm8, %v5921_v1  ;;  %v5922_v45 = vld [vmem:[#allocation2 + $0x10b] sm:$0xff]  ;;  %vm13344_vm8 = vmmov %vm13064_vm0 }
 0x606   : > { %8487 = vmatmul.msk.f32.gmra.mxu2 %vm13338_vm11, %v6539_v58  ;;  %v7023_v58 = vpop.f32.mrf.mxu0  ;;  %vm13345_vm11 = vmmov %vm13064_vm0 }
 0x607   : > { %8525 = vmatmul.msk.f32.gmra.mxu3 %vm13339_vm4, %v6541_v20  ;;  %vm13346_vm4 = vmmov %vm13064_vm0 }
 0x609   : > { %v6409_v38 = vpop.f32.mrf.mxu2 }
 0x60a   : > { %v6489_v22 = vadd.f32 %v6409_v38, %v6179_v36  ;;  %v6719_v10 = vpop.f32.mrf.mxu3  ;;  %v6102_v31 = vpop.f32.mrf.mxu1 }
 0x60b   : > { %v6180_v33 = vadd.f32 %v6102_v31, %v11408_v5 }
 0x60c   : > { %v11738_v43 = vadd.f32 %v6719_v10, %v6489_v22  ;;  %8565 = vmatmul.msk.f32.gmra.mxu0 %vm13064_vm0, %v6853_v11  ;;  %v6854_v22 = vld [vmem:[#allocation2 + $0x12d] sm:$0xff] }
 0x60d   : > { %8450 = vmatmul.msk.f32.gmra.mxu1 %vm13340_vm12, %v5922_v45  ;;  %v5923_v10 = vld [vmem:[#allocation2 + $0x113] sm:$0xff]  ;;  %vm13347_vm12 = vmmov %vm13064_vm0 }
 0x60e   : > { %8488 = vmatmul.msk.f32.gmra.mxu2 %vm13341_vm1, %v6540_v57  ;;  %v7026_v57 = vpop.f32.mrf.mxu0  ;;  %vm13348_vm1 = vmmov %vm13064_vm0 }
 0x60f   : > { %8526 = vmatmul.msk.f32.gmra.mxu3 %vm13342_vm15, %v6542_v44  ;;  %vm13349_vm15 = vmmov %vm13064_vm0 }
 0x611   : > { %v6412_v29 = vpop.f32.mrf.mxu2 }
 0x612   : > { %v6490_v32 = vadd.f32 %v6412_v29, %v6180_v33  ;;  %v6722_v1 = vpop.f32.mrf.mxu3  ;;  %v6105_v36 = vpop.f32.mrf.mxu1 }
 0x613   : > { %v6181_v5 = vadd.f32 %v6105_v36, %v11418_v28  ;;  %v11765_v28 = vadd.f32 %v7020_v15, %v11707_v40  ;;  %v11773_v40 = vadd.f32 %v7023_v58, %v11718_v19 }
 0x614   : > { %v11748_v38 = vadd.f32 %v6722_v1, %v6490_v32  ;;  %8566 = vmatmul.msk.f32.gmra.mxu0 %vm13343_vm13, %v6854_v22  ;;  %v6855_v32 = vld [vmem:[#allocation2 + $0x135] sm:$0xff]  ;;  %vm13350_vm13 = vmmov %vm13064_vm0 }
 0x615   : > { %8451 = vmatmul.msk.f32.gmra.mxu1 %vm13344_vm8, %v5923_v10  ;;  %v5924_v1 = vld [vmem:[#allocation2 + $0x11b] sm:$0xff]  ;;  %vm13351_vm8 = vmmov %vm13064_vm0 }
 0x616   : > { %8489 = vmatmul.msk.f32.gmra.mxu2 %vm13345_vm11, %v6541_v20  ;;  %v6544_v20 = vld [vmem:[#allocation2 + $0x12c] sm:$0xff]  ;;  %v7029_v10 = vpop.f32.mrf.mxu0  ;;  %vm13352_vm11 = vmmov %vm13064_vm0 }
 0x617   : > { %8527 = vmatmul.msk.f32.gmra.mxu3 %vm13346_vm4, %v6543_v39  ;;  %vm13353_vm4 = vmmov %vm13064_vm0 }
 0x619   : > { %v6415_v31 = vpop.f32.mrf.mxu2 }
 0x61a   : > { %v6491_v11 = vadd.f32 %v6415_v31, %v6181_v5  ;;  %v6725_v45 = vpop.f32.mrf.mxu3  ;;  %v6108_v33 = vpop.f32.mrf.mxu1 }
 0x61b   : > { %v6182_v42 = vadd.f32 %v6108_v33, %v11430_v56 }
 0x61c   : > { %v11758_v29 = vadd.f32 %v6725_v45, %v6491_v11  ;;  %8567 = vmatmul.msk.f32.gmra.mxu0 %vm13064_vm0, %v6855_v32  ;;  %v6856_v11 = vld [vmem:[#allocation2 + $0x13d] sm:$0xff] }
 0x61d   : > { %8452 = vmatmul.msk.f32.gmra.mxu1 %vm13347_vm12, %v5924_v1  ;;  %v5925_v45 = vld [vmem:[#allocation2 + $0x123] sm:$0xff]  ;;  %vm13354_vm12 = vmmov %vm13064_vm0 }
 0x61e   : > { %8490 = vmatmul.msk.f32.gmra.mxu2 %vm13348_vm1, %v6542_v44  ;;  %v6545_v44 = vld [vmem:[#allocation2 + $0x134] sm:$0xff]  ;;  %vm13355_vm1 = vmmov %vm13064_vm0 }
 0x61f   : > { %8528 = vmatmul.msk.f32.gmra.mxu3 %vm13349_vm15, %v6544_v20  ;;  %vm13356_vm15 = vmmov %vm13064_vm0 }
 0x621   : > { %v6418_v26 = vpop.f32.mrf.mxu2 }
 0x622   : > { %v6492_v36 = vadd.f32 %v6418_v26, %v6182_v42  ;;  %v6728_v22 = vpop.f32.mrf.mxu3  ;;  %v6111_v5 = vpop.f32.mrf.mxu1 }
 0x623   : > { %v6183_v56 = vadd.f32 %v6111_v5, %v11439_v21  ;;  %v7032_v26 = vpop.f32.mrf.mxu0 }
 0x624   : > { %v6802_v31 = vadd.f32 %v6728_v22, %v6492_v36  ;;  %8568 = vmatmul.msk.f32.gmra.mxu0 %vm13350_vm13, %v6856_v11  ;;  %v5926_v36 = vld [vmem:[#allocation2 + $0x12b] sm:$0xff]  ;;  %v11780_v22 = vadd.f32 %v7026_v57, %v11728_v35  ;;  %vm13357_vm13 = vmmov %vm13064_vm0 }
 0x625   : > { %8453 = vmatmul.msk.f32.gmra.mxu1 %vm13351_vm8, %v5925_v45  ;;  %vm13358_vm8 = vmmov %vm13064_vm0 }
 0x626   : > { %8491 = vmatmul.msk.f32.gmra.mxu2 %vm13352_vm11, %v6543_v39  ;;  %v6546_v39 = vld [vmem:[#allocation2 + $0x13c] sm:$0xff]  ;;  %vm13359_vm11 = vmmov %vm13064_vm0 }
 0x627   : > { %8529 = vmatmul.msk.f32.gmra.mxu3 %vm13353_vm4, %v6545_v44  ;;  %v7131_v44 = vld [vmem:[#allocation2 + $0x26] sm:$0xff]  ;;  %vm13360_vm4 = vmmov %vm13064_vm0 }
 0x629   : > { %v6421_v15 = vpop.f32.mrf.mxu2 }
 0x62a   : > { %v6493_v33 = vadd.f32 %v6421_v15, %v6183_v56  ;;  %v6731_v32 = vpop.f32.mrf.mxu3  ;;  %v6114_v1 = vpop.f32.mrf.mxu1  ;;  %v11785_v15 = vadd.f32 %v7029_v10, %v11738_v43 }
 0x62b   : > { %v6184_v19 = vadd.f32 %v6114_v1, %v11448_v3  ;;  %v7035_v56 = vpop.f32.mrf.mxu0  ;;  %v7132_v3 = vld [vmem:[#allocation2 + $0x2e] sm:$0xff]  ;;  %v11790_v1 = vadd.f32 %v7032_v26, %v11748_v38 }
 0x62c   : > { %v6803_v42 = vadd.f32 %v6731_v32, %v6493_v33 }
 0x62d   : > { %8454 = vmatmul.msk.f32.gmra.mxu1 %vm13064_vm0, %v5926_v36 }
 0x62e   : > { %8492 = vmatmul.msk.f32.gmra.mxu2 %vm13354_vm12, %v6544_v20  ;;  %vm13361_vm12 = vmmov %vm13064_vm0 }
 0x62f   : > { %8530 = vmatmul.msk.f32.gmra.mxu3 %vm13355_vm1, %v6546_v39  ;;  %vm13362_vm1 = vmmov %vm13064_vm0 }
 0x631   : > { %v6424_v21 = vpop.f32.mrf.mxu2 }
 0x632   : > { %v6494_v58 = vadd.f32 %v6424_v21, %v6184_v19  ;;  %v6734_v5 = vpop.f32.mrf.mxu3  ;;  %v6117_v11 = vpop.f32.mrf.mxu1 }
 0x633   : > { %v6185_v20 = vadd.f32 %v6117_v11, %v11457_v59  ;;  %v7038_v19 = vpop.f32.mrf.mxu0  ;;  %v7133_v59 = vld [vmem:[#allocation2 + $0x36] sm:$0xff]  ;;  %v11795_v11 = vadd.f32 %v7035_v56, %v11758_v29 }
 0x634   : > { %v6804_v45 = vadd.f32 %v6734_v5, %v6494_v58 }
 0x635   : > { %8571 = vmatmul.msk.f32.vlgmr.msra.gmra.mxu1 %vm13356_vm15, %v7131_v44  ;;  %vm13363_vm15 = vmmov %vm13064_vm0 }
 0x639   : > { %v6427_v33 = vpop.f32.mrf.mxu2 }
 0x63a   : > { %v6495_v32 = vadd.f32 %v6427_v33, %v6185_v20  ;;  %v6737_v35 = vpop.f32.mrf.mxu3  ;;  %v6120_v57 = vpop.f32.mrf.mxu1 }
 0x63b   : > { %v6186_v39 = vadd.f32 %v6120_v57, %v11466_v63  ;;  %v7041_v26 = vpop.f32.mrf.mxu0 }
 0x63c   : > { %v6805_v36 = vadd.f32 %v6737_v35, %v6495_v32  ;;  %v7134_v35 = vld [vmem:[#allocation2 + $0x3e] sm:$0xff] }
 0x63d   : > { %8572 = vmatmul.msk.f32.gmra.mxu1 %vm13357_vm13, %v7132_v3  ;;  %v11800_v3 = vadd.f32 %v7038_v19, %v6802_v31  ;;  %v7136_v31 = vld [vmem:[#allocation2 + $0x4e] sm:$0xff]  ;;  %vm13364_vm13 = vmmov %vm13064_vm0 }
 0x641   : > { %v6430_v21 = vpop.f32.mrf.mxu2 }
 0x642   : > { %v6496_v58 = vadd.f32 %v6430_v21, %v6186_v39  ;;  %v6740_v43 = vpop.f32.mrf.mxu3  ;;  %v6123_v10 = vpop.f32.mrf.mxu1 }
 0x643   : > { %v6187_v44 = vadd.f32 %v6123_v10, %v11475_v60  ;;  %v7135_v60 = vld [vmem:[#allocation2 + $0x46] sm:$0xff] }
 0x644   : > { %v6806_v5 = vadd.f32 %v6740_v43, %v6496_v58  ;;  %v7044_v43 = vpop.f32.mrf.mxu0 }
 0x645   : > { %8573 = vmatmul.msk.f32.gmra.mxu1 %vm13358_vm8, %v7133_v59  ;;  %v11804_v59 = vadd.f32 %v7041_v26, %v6803_v42  ;;  %vm13365_vm8 = vmmov %vm13064_vm0 }
 0x649   : > { %v6433_v20 = vpop.f32.mrf.mxu2 }
 0x64a   : > { %v6497_v33 = vadd.f32 %v6433_v20, %v6187_v44  ;;  %v6743_v38 = vpop.f32.mrf.mxu3  ;;  %v6126_v32 = vpop.f32.mrf.mxu1 }
 0x64b   : > { %v6188_v57 = vadd.f32 %v6126_v32, %v11484_v53  ;;  %v11809_v32 = vadd.f32 %v7044_v43, %v6804_v45  ;;  %v7139_v45 = vld [vmem:[#allocation2 + $0x66] sm:$0xff] }
 0x64c   : > { %v6807_v63 = vadd.f32 %v6743_v38, %v6497_v33  ;;  %v7047_v19 = vpop.f32.mrf.mxu0 }
 0x64d   : > { %8574 = vmatmul.msk.f32.gmra.mxu1 %vm13359_vm11, %v7134_v35  ;;  %vm13366_vm11 = vmmov %vm13064_vm0 }
 0x651   : > { %v6436_v39 = vpop.f32.mrf.mxu2 }
 0x652   : > { %v6498_v21 = vadd.f32 %v6436_v39, %v6188_v57  ;;  %v6746_v58 = vpop.f32.mrf.mxu3  ;;  %v6129_v29 = vpop.f32.mrf.mxu1  ;;  %v7137_v57 = vld [vmem:[#allocation2 + $0x56] sm:$0xff]  ;;  %v7138_v39 = vld [vmem:[#allocation2 + $0x5e] sm:$0xff] }
 0x653   : > { %v6189_v10 = vadd.f32 %v6129_v29, %v11494_v50  ;;  %v11814_v50 = vadd.f32 %v7047_v19, %v6805_v36 }
 0x654   : > { %v6808_v56 = vadd.f32 %v6746_v58, %v6498_v21  ;;  %v7050_v42 = vpop.f32.mrf.mxu0 }
 0x655   : > { %8575 = vmatmul.msk.f32.gmra.mxu1 %vm13360_vm4, %v7135_v60  ;;  %v11819_v21 = vadd.f32 %v7050_v42, %v6806_v5  ;;  %v7141_v5 = vld [vmem:[#allocation2 + $0x76] sm:$0xff]  ;;  %v7143_v42 = vld [vmem:[#allocation2 + $0x86] sm:$0xff]  ;;  %vm13368_vm4 = vmmov %vm13064_vm0 }
 0x659   : > { %v6439_v44 = vpop.f32.mrf.mxu2 }
 0x65a   : > { %v6499_v20 = vadd.f32 %v6439_v44, %v6189_v10  ;;  %v6749_v33 = vpop.f32.mrf.mxu3  ;;  %v11806_v38 = vpop.f32.mrf.mxu1  ;;  %v7140_v10 = vld [vmem:[#allocation2 + $0x6e] sm:$0xff] }
 0x65c   : > { %v6809_v53 = vadd.f32 %v6749_v33, %v6499_v20  ;;  %v7053_v58 = vpop.f32.mrf.mxu0 }
 0x65d   : > { %8576 = vmatmul.msk.f32.gmra.mxu1 %vm13064_vm0, %v7136_v31  ;;  %v11824_v43 = vadd.f32 %v7053_v58, %v6807_v63  ;;  %v7142_v63 = vld [vmem:[#allocation2 + $0x7e] sm:$0xff] }
 0x662   : > { %v11811_v35 = vpop.f32.mrf.mxu1 }
 0x664   : > { %v7056_v36 = vpop.f32.mrf.mxu0 }
 0x665   : > { %8577 = vmatmul.msk.f32.gmra.mxu1 %vm13361_vm12, %v7137_v57  ;;  %v11829_v44 = vadd.f32 %v7056_v36, %v6808_v56  ;;  %vm13371_vm12 = vmmov %vm13064_vm0  ;;  %v7146_v36 = vld [vmem:[#allocation2 + $0x9e] sm:$0xff] }
 0x66a   : > { %v11816_v26 = vpop.f32.mrf.mxu1 }
 0x66c   : > { %v7059_v33 = vpop.f32.mrf.mxu0 }
 0x66d   : > { %8578 = vmatmul.msk.f32.gmra.mxu1 %vm13362_vm1, %v7138_v39  ;;  %v11834_v31 = vadd.f32 %v7059_v33, %v6809_v53  ;;  %v7144_v39 = vld [vmem:[#allocation2 + $0x8e] sm:$0xff]  ;;  %vm13373_vm1 = vmmov %vm13064_vm0 }
 0x672   : > { %v11821_v29 = vpop.f32.mrf.mxu1 }
 0x675   : > { %8579 = vmatmul.msk.f32.gmra.mxu1 %vm13363_vm15, %v7139_v45  ;;  %v7145_v45 = vld [vmem:[#allocation2 + $0x96] sm:$0xff]  ;;  %vm13374_vm15 = vmmov %vm13064_vm0 }
 0x67a   : > { %v11826_v60 = vpop.f32.mrf.mxu1 }
 0x67d   : > { %8580 = vmatmul.msk.f32.gmra.mxu1 %vm13364_vm13, %v7140_v10  ;;  %vm13375_vm13 = vmmov %vm13064_vm0 }
 0x682   : > { %v11831_v20 = vpop.f32.mrf.mxu1 }
 0x685   : > { %8581 = vmatmul.msk.f32.gmra.mxu1 %vm13365_vm8, %v7141_v5  ;;  %v7147_v5 = vld [vmem:[#allocation2 + $0xa6] sm:$0xff]  ;;  %vm13376_vm8 = vmmov %vm13064_vm0 }
 0x68a   : > { %v11836_v19 = vpop.f32.mrf.mxu1 }
 0x68d   : > { %8582 = vmatmul.msk.f32.gmra.mxu1 %vm13366_vm11, %v7142_v63  ;;  %v7148_v63 = vld [vmem:[#allocation2 + $0xae] sm:$0xff]  ;;  %vm13377_vm11 = vmmov %vm13064_vm0 }
 0x692   : > { %v11839_v57 = vpop.f32.mrf.mxu1 }
 0x693   : > { %13367 = vst [vmem:[#allocation13_spill] sm:$0xff] %v11839_v57 }
 0x695   : > { %8583 = vmatmul.msk.f32.gmra.mxu1 %vm13368_vm4, %v7143_v42  ;;  %vm13378_vm4 = vmmov %vm13064_vm0 }
 0x69a   : > { %v11842_v56 = vpop.f32.mrf.mxu1 }
 0x69b   : > { %13369 = vst [vmem:[#allocation15_spill] sm:$0xff] %v11842_v56  ;;  %v7156_v56 = vld [vmem:[#allocation2 + $0xee] sm:$0xff] }
 0x69d   : > { %8584 = vmatmul.msk.f32.gmra.mxu1 %vm13064_vm0, %v7144_v39  ;;  %v7149_v39 = vld [vmem:[#allocation2 + $0xb6] sm:$0xff] }
 0x6a2   : > { %v11845_v58 = vpop.f32.mrf.mxu1 }
 0x6a3   : > { %13370 = vst [vmem:[#allocation17_spill] sm:$0xff] %v11845_v58  ;;  %v7153_v58 = vld [vmem:[#allocation2 + $0xd6] sm:$0xff] }
 0x6a5   : > { %8585 = vmatmul.msk.f32.gmra.mxu1 %vm13371_vm12, %v7145_v45  ;;  %vm13379_vm12 = vmmov %vm13064_vm0 }
 0x6aa   : > { %v11848_v53 = vpop.f32.mrf.mxu1 }
 0x6ab   : > { %13372 = vst [vmem:[#allocation19_spill] sm:$0xff] %v11848_v53  ;;  %v7150_v53 = vld [vmem:[#allocation2 + $0xbe] sm:$0xff] }
 0x6ad   : > { %8586 = vmatmul.msk.f32.gmra.mxu1 %vm13373_vm1, %v7146_v36  ;;  %vm13380_vm1 = vmmov %vm13064_vm0 }
 0x6b2   : > { %v11851_v10 = vpop.f32.mrf.mxu1 }
 0x6b5   : > { %8587 = vmatmul.msk.f32.gmra.mxu1 %vm13374_vm15, %v7147_v5  ;;  %vm13381_vm15 = vmmov %vm13064_vm0 }
 0x6ba   : > { %v11854_v33 = vpop.f32.mrf.mxu1 }
 0x6bd   : > { %8588 = vmatmul.msk.f32.gmra.mxu1 %vm13375_vm13, %v7148_v63  ;;  %vm13382_vm13 = vmmov %vm13064_vm0 }
 0x6c2   : > { %v11857_v42 = vpop.f32.mrf.mxu1 }
 0x6c5   : > { %8589 = vmatmul.msk.f32.gmra.mxu1 %vm13376_vm8, %v7149_v39  ;;  %vm13383_vm8 = vmmov %vm13064_vm0 }
 0x6ca   : > { %v11860_v45 = vpop.f32.mrf.mxu1 }
 0x6cd   : > { %8590 = vmatmul.msk.f32.gmra.mxu1 %vm13377_vm11, %v7150_v53  ;;  %vm13384_vm11 = vmmov %vm13064_vm0 }
 0x6d2   : > { %v11863_v36 = vpop.f32.mrf.mxu1 }
 0x6d5   : > { %8591 = vmatmul.msk.f32.gmra.mxu1 %vm13378_vm4, %v7151_v4  ;;  %vm13385_vm4 = vmmov %vm13064_vm0 }
 0x6da   : > { %v11866_v5 = vpop.f32.mrf.mxu1 }
 0x6dd   : > { %8592 = vmatmul.msk.f32.gmra.mxu1 %vm13064_vm0, %v7152_v37 }
 0x6e2   : > { %v11869_v63 = vpop.f32.mrf.mxu1 }
 0x6e5   : > { %8593 = vmatmul.msk.f32.gmra.mxu1 %vm13379_vm12, %v7153_v58  ;;  %vm13386_vm12 = vmmov %vm13064_vm0 }
 0x6ea   : > { %v11872_v39 = vpop.f32.mrf.mxu1 }
 0x6ed   : > { %8594 = vmatmul.msk.f32.gmra.mxu1 %vm13380_vm1, %v7154_v2  ;;  %vm13387_vm1 = vmmov %vm13064_vm0 }
 0x6f2   : > { %v11875_v53 = vpop.f32.mrf.mxu1 }
 0x6f5   : > { %8595 = vmatmul.msk.f32.gmra.mxu1 %vm13381_vm15, %v7155_v6  ;;  %v7159_v6 = vld [vmem:[#allocation2 + $0x106] sm:$0xff]  ;;  %vm13388_vm15 = vmmov %vm13064_vm0 }
 0x6fa   : > { %v11878_v4 = vpop.f32.mrf.mxu1 }
 0x6fd   : > { %8596 = vmatmul.msk.f32.gmra.mxu1 %vm13382_vm13, %v7156_v56  ;;  %vm13389_vm13 = vmmov %vm13064_vm0 }
 0x702   : > { %v11881_v37 = vpop.f32.mrf.mxu1 }
 0x705   : > { %8597 = vmatmul.msk.f32.gmra.mxu1 %vm13383_vm8, %v7157_v13  ;;  %vm13390_vm8 = vmmov %vm13064_vm0 }
 0x70a   : > { %v11884_v58 = vpop.f32.mrf.mxu1 }
 0x70d   : > { %8598 = vmatmul.msk.f32.gmra.mxu1 %vm13384_vm11, %v7158_v23  ;;  %vm13391_vm11 = vmmov %vm13064_vm0 }
 0x712   : > { %v7333_v2 = vpop.f32.mrf.mxu1 }
 0x713   : > { %v11888_v14 = vadd.f32 %v7333_v2, %v11773_v40  ;;  %v7162_v2 = vld [vmem:[#allocation2 + $0x11e] sm:$0xff] }
 0x715   : > { %8599 = vmatmul.msk.f32.gmra.mxu1 %vm13385_vm4, %v7159_v6  ;;  %vm13414_vm4 = vmmov %vm13064_vm0 }
 0x71a   : > { %v7336_v57 = vpop.f32.mrf.mxu1 }
 0x71b   : > { %v11892_v56 = vadd.f32 %v7336_v57, %v11780_v22  ;;  %v7163_v57 = vld [vmem:[#allocation2 + $0x126] sm:$0xff] }
 0x71d   : > { %8600 = vmatmul.msk.f32.gmra.mxu1 %vm13064_vm0, %v11190_v41 }
 0x722   : > { %v7339_v13 = vpop.f32.mrf.mxu1 }
 0x723   : > { %v11897_v16 = vadd.f32 %v7339_v13, %v11785_v15  ;;  %v7164_v13 = vld [vmem:[#allocation2 + $0x12e] sm:$0xff] }
 0x725   : > { %8601 = vmatmul.msk.f32.gmra.mxu1 %vm13386_vm12, %v11194_v9  ;;  %vm13417_vm12 = vmmov %vm13064_vm0 }
 0x72a   : > { %v7342_v23 = vpop.f32.mrf.mxu1 }
 0x72b   : > { %v11902_v40 = vadd.f32 %v7342_v23, %v11790_v1  ;;  %v7165_v23 = vld [vmem:[#allocation2 + $0x136] sm:$0xff] }
 0x72d   : > { %8602 = vmatmul.msk.f32.gmra.mxu1 %vm13387_vm1, %v7162_v2  ;;  %vm13420_vm1 = vmmov %vm13064_vm0 }
 0x732   : > { %v7345_v6 = vpop.f32.mrf.mxu1 }
 0x733   : > { %v11906_v22 = vadd.f32 %v7345_v6, %v11795_v11  ;;  %v7166_v6 = vld [vmem:[#allocation2 + $0x13e] sm:$0xff] }
 0x735   : > { %8603 = vmatmul.msk.f32.gmra.mxu1 %vm13388_vm15, %v7163_v57 }
 0x73a   : > { %v7348_v41 = vpop.f32.mrf.mxu1 }
 0x73b   : > { %v11910_v15 = vadd.f32 %v7348_v41, %v11800_v3  ;;  %v11924_v41 = vpop.f32.mrf.mxu2 }
 0x73d   : > { %8604 = vmatmul.msk.f32.gmra.mxu1 %vm13389_vm13, %v7164_v13  ;;  %vm13424_vm13 = vmmov %vm13064_vm0 }
 0x742   : > { %v7351_v9 = vpop.f32.mrf.mxu1 }
 0x743   : > { %v11914_v1 = vadd.f32 %v7351_v9, %v11804_v59  ;;  %v11929_v9 = vpop.f32.mrf.mxu3 }
 0x745   : > { %8605 = vmatmul.msk.f32.gmra.mxu1 %vm13390_vm8, %v7165_v23  ;;  %v11931_v23 = vpop.f32.mrf.mxu2 }
 0x74a   : > { %v7354_v2 = vpop.f32.mrf.mxu1 }
 0x74b   : > { %v11918_v11 = vadd.f32 %v7354_v2, %v11809_v32  ;;  %v11933_v32 = vpop.f32.mrf.mxu0 }
 0x74c   : > { %13394 = vst [vmem:[#allocation47_spill] sm:$0xff] %v11933_v32 }
 0x74d   : > { %8606 = vmatmul.msk.f32.gmra.mxu1 %vm13391_vm11, %v7166_v6  ;;  %v11938_v6 = vpop.f32.mrf.mxu3  ;;  %vm13427_vm11 = vmmov %vm13064_vm0 }
 0x752   : > { %v7357_v57 = vpop.f32.mrf.mxu1 }
 0x753   : > { %v11922_v3 = vadd.f32 %v7357_v57, %v11814_v50 }
 0x755   : > { %13392 = vst [vmem:[#allocation3_spill] sm:$0xff] %v11922_v3  ;;  %v11943_v3 = vpop.f32.mrf.mxu2 }
 0x75a   : > { %v7360_v13 = vpop.f32.mrf.mxu1 }
 0x75b   : > { %v11927_v59 = vadd.f32 %v7360_v13, %v11819_v21  ;;  %v11945_v21 = vpop.f32.mrf.mxu0  ;;  %v7406_v13 = vadd.f32 %v11854_v33, %v11652_v34 }
 0x75c   : > { %13397 = vst [vmem:[#allocation50_spill] sm:$0xff] %v11945_v21 }
 0x75d   : > { %13393 = vst [vmem:[#allocation23_spill] sm:$0xff] %v11927_v59  ;;  %v7405_v59 = vadd.f32 %v11851_v10, %v11639_v7 }
 0x75f   : > { %v11963_v32 = vsel %vm9724_vm5, %v7405_v59, 0.0  ;;  %v11982_v59 = vpop.f32.mrf.mxu2  ;;  %vm13406_vm5 = vmmov %vm13064_vm0 }
 0x760   : > { %13401 = vst [vmem:[#allocation4_spill] sm:$0xff] %v11963_v32  ;;  %v7555_v21 = vmul.f32 %v11963_v32, %v11963_v32 }
 0x762   : > { %v7363_v54 = vpop.f32.mrf.mxu1 }
 0x763   : > { %v11936_v2 = vadd.f32 %v7363_v54, %v11824_v43  ;;  %v7407_v54 = vadd.f32 %v11857_v42, %v11663_v55  ;;  %v7409_v55 = vadd.f32 %v11863_v36, %v11689_v61  ;;  %v11990_v36 = vpop.f32.mrf.mxu0 }
 0x765   : > { %13395 = vst [vmem:[#allocation48_spill] sm:$0xff] %v11936_v2  ;;  %v11955_v2 = vsel %vm9746_vm7, %v7406_v13, 0.0  ;;  %v11967_v7 = vsel %vm9824_vm6, %v7407_v54, 0.0  ;;  %v11994_v13 = vsel %vm9891_vm2, %v7409_v55, 0.0  ;;  %vm13409_vm7 = vmmov %vm13064_vm0  ;;  %v7412_v55 = vadd.f32 %v11872_v39, %v11722_v48 }
 0x766   : > { %13399 = vst [vmem:[#allocation8_spill] sm:$0xff] %v11955_v2  ;;  %v7478_v61 = vsel %vm13406_vm5, %v11955_v2, 0.0  ;;  %vm13410_vm6 = vmmov %vm13064_vm0  ;;  %v7413_v48 = vadd.f32 %v11875_v53, %v11734_v49 }
 0x767   : > { %13403 = vst [vmem:[#allocation7_spill] sm:$0xff] %v11967_v7  ;;  %vm13413_vm2 = vmmov %vm13064_vm0 }
 0x768   : > { %13408 = vst [vmem:[#allocation14_spill] sm:$0xff] %v11994_v13  ;;  %vm13428_vm5 = vmmov %vm13064_vm0 }
 0x76a   : > { %v7366_v50 = vpop.f32.mrf.mxu1 }
 0x76b   : > { %v11941_v57 = vadd.f32 %v7366_v50, %v11829_v44  ;;  %v7408_v44 = vadd.f32 %v11860_v45, %v11678_v8  ;;  %v11959_v50 = vpop.f32.mrf.mxu3  ;;  %v7556_v8 = vmul.f32 %v11955_v2, %v11955_v2  ;;  %v7410_v45 = vadd.f32 %v11866_v5, %v11700_v18 }
 0x76c   : > { %v7411_v18 = vadd.f32 %v11869_v63, %v11712_v27  ;;  %v7477_v5 = vsel %vm13409_vm7, %v11963_v32, 0.0  ;;  %v7591_v27 = vsel %vm13413_vm2, %v7555_v21, 0.0  ;;  %vm13429_vm7 = vnez %v12893_v46 }
 0x76d   : > { %13396 = vst [vmem:[#allocation49_spill] sm:$0xff] %v11941_v57  ;;  %v11978_v42 = vsel %vm9855_vm10, %v7408_v44, 0.0  ;;  %v7592_v54 = vsel %vm13410_vm6, %v7556_v8, 0.0  ;;  %vm13411_vm10 = vmmov %vm13064_vm0  ;;  %v7479_v34 = vadd.f32 %v7478_v61, %v7477_v5  ;;  %vm13432_vm2 = vnez %v12899_v0  ;;  %v13434_v0 = vld [vmem:[#allocation24_spill] sm:$0xff] }
 0x76e   : > { %13405 = vst [vmem:[#allocation12_spill] sm:$0xff] %v11978_v42  ;;  %v7480_v43 = vsel %vm13411_vm10, %v11967_v7, 0.0  ;;  %v7558_v44 = vmul.f32 %v11978_v42, %v11978_v42  ;;  %v7482_v8 = vsel %vm13064_vm0, %v11978_v42, 0.0  ;;  %v7593_v61 = vadd.f32 %v7592_v54, %v7591_v27  ;;  %vm13430_vm6 = vmmov %vm13064_vm0 }
 0x76f   : > { %v7481_v5 = vadd.f32 %v7480_v43, %v7479_v34  ;;  %v12034_v34 = vsel %vm10053_vm14, %v7412_v55, 0.0  ;;  %v7415_v55 = vadd.f32 %v11881_v37, %v11755_v51  ;;  %vm13423_vm14 = vmmov %vm13064_vm0  ;;  %v7416_v51 = vadd.f32 %v11884_v58, %v11765_v28 }
 0x770   : > { %vm13431_vm10 = vmmov %vm13064_vm0  ;;  %v6191_v46 = vadd.f32 %v11811_v35, %v11516_v52 }
 0x771   : > { %v7483_v54 = vadd.f32 %v7482_v8, %v7481_v5  ;;  %v12049_v8 = vpop.f32.mrf.mxu2 }
 0x772   : > { %v7369_v57 = vpop.f32.mrf.mxu1  ;;  %v6501_v52 = vadd.f32 %v11931_v23, %v6191_v46 }
 0x773   : > { %v11972_v10 = vadd.f32 %v7369_v57, %v11834_v31  ;;  %v7557_v31 = vmul.f32 %v11967_v7, %v11967_v7  ;;  %v12007_v57 = vsel %vm9954_vm9, %v7410_v45, 0.0  ;;  %v7559_v7 = vmul.f32 %v11994_v13, %v11994_v13  ;;  %v12025_v39 = vpop.f32.mrf.mxu3  ;;  %vm13416_vm9 = vmmov %vm13064_vm0 }
 0x774   : > { %v12021_v45 = vsel %vm10004_vm3, %v7411_v18, 0.0  ;;  %v7596_v21 = vsel %vm13416_vm9, %v7558_v44, 0.0  ;;  %v7560_v42 = vmul.f32 %v12007_v57, %v12007_v57  ;;  %v7414_v18 = vadd.f32 %v11878_v4, %v11744_v25  ;;  %vm13419_vm3 = vmmov %vm13064_vm0 }
 0x775   : > { %v7594_v63 = vsel %vm13414_vm4, %v7557_v31, 0.0  ;;  %v7484_v31 = vsel %vm13417_vm12, %v11994_v13, 0.0  ;;  %v7598_v49 = vsel %vm13419_vm3, %v7559_v7, 0.0  ;;  %v7486_v53 = vsel %vm13420_vm1, %v12007_v57, 0.0  ;;  %v13421_v13 = vld [vmem:[#allocation21_spill] sm:$0xff]  ;;  %vm13433_vm4 = vmmov %vm13064_vm0 }
 0x776   : > { %v7595_v32 = vadd.f32 %v7594_v63, %v7593_v61  ;;  %v7561_v44 = vmul.f32 %v12021_v45, %v12021_v45  ;;  %v7485_v33 = vadd.f32 %v7484_v31, %v7483_v54  ;;  %vm13422_vm15 = vnez %v13421_v13  ;;  %v12056_v61 = vpop.f32.mrf.mxu0  ;;  %v13425_v13 = vld [vmem:[#allocation22_spill] sm:$0xff]  ;;  %vm13436_vm12 = vmmov %vm13064_vm0 }
 0x777   : > { %v12045_v63 = vsel %vm13422_vm15, %v7413_v48, 0.0  ;;  %v7600_v25 = vsel %vm13423_vm14, %v7560_v42, 0.0  ;;  %v7488_v4 = vsel %vm13424_vm13, %v12021_v45, 0.0  ;;  %v7562_v7 = vmul.f32 %v12034_v34, %v12034_v34  ;;  %vm13437_vm3 = vmmov %vm13064_vm0 }
 0x778   : > { %v7597_v27 = vadd.f32 %v7596_v21, %v7595_v32  ;;  %v7487_v5 = vadd.f32 %v7486_v53, %v7485_v33  ;;  %vm13426_vm8 = vnez %v13425_v13  ;;  %v7602_v37 = vsel %vm13427_vm11, %v7561_v44, 0.0  ;;  %vm13440_vm15 = vmmov %vm13064_vm0 }
 0x779   : > { %v12060_v48 = vsel %vm13426_vm8, %v7414_v18, 0.0  ;;  %v7490_v42 = vsel %vm13428_vm5, %v12034_v34, 0.0  ;;  %v7563_v21 = vmul.f32 %v12045_v63, %v12045_v63  ;;  %v7604_v18 = vsel %vm13430_vm6, %v7562_v7, 0.0  ;;  %vm13441_vm14 = vmmov %vm13064_vm0 }
 0x77a   : > { %v12017_v2 = vpop.f32.mrf.mxu1  ;;  %v7599_v32 = vadd.f32 %v7598_v49, %v7597_v27  ;;  %v7489_v43 = vadd.f32 %v7488_v4, %v7487_v5  ;;  %v12073_v49 = vsel %vm13429_vm7, %v7415_v55, 0.0  ;;  %v7492_v28 = vsel %vm13431_vm10, %v12045_v63, 0.0  ;;  %vm13444_vm8 = vmmov %vm13064_vm0 }
 0x77b   : > { %v7564_v58 = vmul.f32 %v12060_v48, %v12060_v48  ;;  %v6190_v53 = vadd.f32 %v11806_v38, %v11505_v12  ;;  %v12084_v33 = vsel %vm13432_vm2, %v7416_v51, 0.0  ;;  %v12088_v55 = vpop.f32.mrf.mxu3  ;;  %v7494_v4 = vsel %vm13064_vm0, %v12060_v48, 0.0  ;;  %vm13445_vm11 = vmmov %vm13064_vm0 }
 0x77c   : > { %v7601_v54 = vadd.f32 %v7600_v25, %v7599_v32  ;;  %v7491_v27 = vadd.f32 %v7490_v42, %v7489_v43  ;;  %v7606_v25 = vsel %vm13433_vm4, %v7563_v21, 0.0  ;;  %v7565_v7 = vmul.f32 %v12073_v49, %v12073_v49  ;;  %v13438_v21 = vld [vmem:[#allocation25_spill] sm:$0xff]  ;;  %vm13448_vm7 = vmmov %vm13064_vm0 }
 0x77d   : > { %v6500_v12 = vadd.f32 %v11924_v41, %v6190_v53  ;;  %vm13435_vm9 = vnez %v13434_v0  ;;  %v7608_v35 = vsel %vm13436_vm12, %v7564_v58, 0.0  ;;  %v7496_v13 = vsel %vm13437_vm3, %v12073_v49, 0.0  ;;  %vm13449_vm6 = vmmov %vm13064_vm0 }
 0x77e   : > { %v7603_v44 = vadd.f32 %v7602_v37, %v7601_v54  ;;  %v7493_v32 = vadd.f32 %v7492_v28, %v7491_v27  ;;  %v12099_v5 = vsel %vm13435_vm9, %v11888_v14, 0.0  ;;  %v7566_v51 = vmul.f32 %v12084_v33, %v12084_v33  ;;  %v6457_v54 = vpop.f32.mrf.mxu2  ;;  %vm13452_vm2 = vmmov %vm13064_vm0 }
 0x77f   : > { %v6192_v41 = vadd.f32 %v11816_v26, %v11527_v30  ;;  %vm13439_vm1 = vnez %v13438_v21  ;;  %v7610_v23 = vsel %vm13440_vm15, %v7565_v7, 0.0  ;;  %v7498_v43 = vsel %vm13441_vm14, %v12084_v33, 0.0  ;;  %v12122_v26 = vpop.f32.mrf.mxu0  ;;  %vm13453_vm4 = vmmov %vm13064_vm0 }
 0x780   : > { %v7605_v38 = vadd.f32 %v7604_v18, %v7603_v44  ;;  %v7495_v42 = vadd.f32 %v7494_v4, %v7493_v32  ;;  %v12112_v14 = vsel %vm13439_vm1, %v11892_v56, 0.0  ;;  %v7567_v18 = vmul.f32 %v12099_v5, %v12099_v5  ;;  %v13442_v56 = vld [vmem:[#allocation26_spill] sm:$0xff]  ;;  %v13446_v32 = vld [vmem:[#allocation27_spill] sm:$0xff]  ;;  %vm13456_vm9 = vmmov %vm13452_vm2 }
 0x781   : > { %v6502_v30 = vadd.f32 %v11943_v3, %v6192_v41  ;;  %vm13443_vm13 = vnez %v13442_v56  ;;  %v12130_v27 = vadd.f32 %v11929_v9, %v6500_v12  ;;  %v7612_v46 = vsel %vm13444_vm8, %v7566_v51, 0.0  ;;  %v13450_v51 = vld [vmem:[#allocation28_spill] sm:$0xff]  ;;  %vm13457_vm12 = vmmov %vm13452_vm2 }
 0x782   : > { %v12069_v31 = vpop.f32.mrf.mxu1  ;;  %v7607_v37 = vadd.f32 %v7606_v25, %v7605_v38  ;;  %v7497_v53 = vadd.f32 %v7496_v13, %v7495_v42  ;;  %v12127_v44 = vsel %vm13443_vm13, %v11897_v16, 0.0  ;;  %v7500_v25 = vsel %vm13445_vm11, %v12099_v5, 0.0  ;;  %vm13460_vm1 = vmmov %vm13452_vm2 }
 0x783   : > { %v7568_v3 = vmul.f32 %v12112_v14, %v12112_v14  ;;  %v12138_v4 = vadd.f32 %v11938_v6, %v6501_v52  ;;  %vm13447_vm5 = vnez %v13446_v32  ;;  %v6193_v9 = vadd.f32 %v11821_v29, %v11538_v47  ;;  %v6767_v29 = vpop.f32.mrf.mxu3  ;;  %vm13461_vm15 = vmmov %vm13460_vm1 }
 0x784   : > { %v7609_v58 = vadd.f32 %v7608_v35, %v7607_v37  ;;  %v7499_v38 = vadd.f32 %v7498_v43, %v7497_v53  ;;  %v12143_v16 = vsel %vm13447_vm5, %v11902_v40, 0.0  ;;  %v7614_v12 = vsel %vm13448_vm7, %v7567_v18, 0.0  ;;  %v13454_v43 = vld [vmem:[#allocation29_spill] sm:$0xff]  ;;  %vm13464_vm13 = vmmov %vm13460_vm1 }
 0x785   : > { %v7502_v0 = vsel %vm13449_vm6, %v12112_v14, 0.0  ;;  %v7569_v35 = vmul.f32 %v12127_v44, %v12127_v44  ;;  %v12153_v6 = vadd.f32 %v11959_v50, %v6502_v30  ;;  %vm13451_vm10 = vnez %v13450_v51  ;;  %vm13465_vm8 = vmmov %vm13460_vm1 }
 0x786   : > { %v7611_v7 = vadd.f32 %v7610_v23, %v7609_v58  ;;  %v7501_v13 = vadd.f32 %v7500_v25, %v7499_v38  ;;  %v12158_v40 = vsel %vm13451_vm10, %v11906_v22, 0.0  ;;  %v6503_v47 = vadd.f32 %v11982_v59, %v6193_v9  ;;  %vm13469_vm5 = vmmov %vm13460_vm1 }
 0x787   : > { %v7616_v41 = vsel %vm13452_vm2, %v7568_v3, 0.0  ;;  %v7504_v37 = vsel %vm13453_vm4, %v12127_v44, 0.0  ;;  %v7570_v42 = vmul.f32 %v12143_v16, %v12143_v16  ;;  %v6194_v50 = vadd.f32 %v11826_v60, %v11550_v62  ;;  %v12193_v38 = vpop.f32.mrf.mxu0  ;;  %vm13470_vm7 = vmmov %vm13460_vm1 }
 0x788   : > { %v7613_v52 = vadd.f32 %v7612_v46, %v7611_v7  ;;  %v7503_v23 = vadd.f32 %v7502_v0, %v7501_v13  ;;  %vm13455_vm0 = vnez %v13454_v43  ;;  %v6195_v59 = vadd.f32 %v11831_v20, %v11563_v24  ;;  %v6460_v20 = vpop.f32.mrf.mxu2  ;;  %v13471_v43 = vld [vmem:[#allocation23_spill] sm:$0xff]  ;;  %vm13474_vm10 = vmmov %vm13460_vm1 }
 0x789   : > { %v12171_v22 = vsel %vm13455_vm0, %v11910_v15, 0.0  ;;  %v7618_v18 = vsel %vm13456_vm9, %v7569_v35, 0.0  ;;  %v7506_v30 = vsel %vm13457_vm12, %v12143_v16, 0.0  ;;  %v7571_v58 = vmul.f32 %v12158_v40, %v12158_v40  ;;  %v13458_v15 = vld [vmem:[#allocation30_spill] sm:$0xff]  ;;  %vm13475_vm2 = vmmov %vm13460_vm1 }
 0x78a   : > { %v12119_v28 = vpop.f32.mrf.mxu1  ;;  %v7615_v21 = vadd.f32 %v7614_v12, %v7613_v52  ;;  %v6504_v62 = vadd.f32 %v12049_v8, %v6194_v50  ;;  %v7505_v56 = vadd.f32 %v7504_v37, %v7503_v23  ;;  %vm13459_vm3 = vnez %v13458_v15  ;;  %vm13480_vm0 = vmmov %vm13460_vm1 }
 0x78b   : > { %v12186_v46 = vsel %vm13459_vm3, %v11914_v1, 0.0  ;;  %v6505_v24 = vadd.f32 %v6457_v54, %v6195_v59  ;;  %v7620_v25 = vsel %vm13460_vm1, %v7570_v42, 0.0  ;;  %v7508_v3 = vsel %vm13461_vm15, %v12158_v40, 0.0  ;;  %v13462_v1 = vld [vmem:[#allocation31_spill] sm:$0xff]  ;;  %v13472_v59 = vld [vmem:[#allocation33_spill] sm:$0xff]  ;;  %vm13481_vm9 = vmmov %vm13480_vm0 }
 0x78c   : > { %v7617_v60 = vadd.f32 %v7616_v41, %v7615_v21  ;;  %v7572_v7 = vmul.f32 %v12171_v22, %v12171_v22  ;;  %v6196_v8 = vadd.f32 %v11836_v19, %v11575_v17  ;;  %v7507_v9 = vadd.f32 %v7506_v30, %v7505_v56  ;;  %v13466_v19 = vld [vmem:[#allocation3_spill] sm:$0xff]  ;;  %v13467_v41 = vld [vmem:[#allocation32_spill] sm:$0xff]  ;;  %v6770_v30 = vpop.f32.mrf.mxu3  ;;  %vm13486_vm3 = vmmov %vm13480_vm0 }
 0x78d   : > { %vm13463_vm14 = vnez %v13462_v1  ;;  %v6813_v12 = vadd.f32 %v12025_v39, %v6503_v47  ;;  %v7622_v0 = vsel %vm13464_vm13, %v7571_v58, 0.0  ;;  %v7510_v35 = vsel %vm13465_vm8, %v12171_v22, 0.0  ;;  %vm13487_vm1 = vmmov %vm13480_vm0 }
 0x78e   : > { %v7619_v32 = vadd.f32 %v7618_v18, %v7617_v60  ;;  %v12200_v54 = vsel %vm13463_vm14, %v11918_v11, 0.0  ;;  %v7573_v52 = vmul.f32 %v12186_v46, %v12186_v46  ;;  %v6506_v13 = vadd.f32 %v6460_v20, %v6196_v8  ;;  %v13476_v60 = vld [vmem:[#allocation47_spill] sm:$0xff]  ;;  %vm13490_vm14 = vmmov %vm13480_vm0 }
 0x78f   : > { %v7509_v17 = vadd.f32 %v7508_v3, %v7507_v9  ;;  %vm13468_vm11 = vnez %v13467_v41  ;;  %v6814_v11 = vadd.f32 %v12088_v55, %v6504_v62  ;;  %v7624_v39 = vsel %vm13469_vm5, %v7572_v7, 0.0  ;;  %v13478_v3 = vld [vmem:[#allocation34_spill] sm:$0xff]  ;;  %vm13491_vm13 = vmmov %vm13480_vm0 }
 0x790   : > { %v7621_v51 = vadd.f32 %v7620_v25, %v7619_v32  ;;  %v12211_v37 = vsel %vm13468_vm11, %v13466_v19, 0.0  ;;  %v7512_v47 = vsel %vm13470_vm7, %v12186_v46, 0.0  ;;  %v7574_v42 = vmul.f32 %v12200_v54, %v12200_v54  ;;  %v13477_v25 = vld [vmem:[#allocation48_spill] sm:$0xff]  ;;  %vm13494_vm11 = vmmov %vm13480_vm0 }
 0x791   : > { %v6815_v50 = vadd.f32 %v6767_v29, %v6505_v24  ;;  %v7511_v23 = vadd.f32 %v7510_v35, %v7509_v17  ;;  %vm13473_vm6 = vnez %v13472_v59  ;;  %v7626_v58 = vsel %vm13474_vm10, %v7573_v52, 0.0  ;;  %v13483_v52 = vld [vmem:[#allocation49_spill] sm:$0xff]  ;;  %v6463_v59 = vpop.f32.mrf.mxu2  ;;  %vm13495_vm5 = vmmov %vm13480_vm0 }
 0x792   : > { %v12180_v53 = vpop.f32.mrf.mxu1  ;;  %v7623_v21 = vadd.f32 %v7622_v0, %v7621_v51  ;;  %v12222_v18 = vsel %vm13473_vm6, %v13471_v43, 0.0  ;;  %v7514_v55 = vsel %vm13475_vm2, %v12200_v54, 0.0  ;;  %v7575_v62 = vmul.f32 %v12211_v37, %v12211_v37  ;;  %vm13498_vm6 = vmmov %vm13480_vm0 }
 0x793   : > { %v7120_v56 = vadd.f32 %v13476_v60, %v12130_v27  ;;  %v12231_v15 = vadd.f32 %v6770_v30, %v6506_v13  ;;  %v7513_v20 = vadd.f32 %v7512_v47, %v7511_v23  ;;  %vm13479_vm4 = vnez %v13478_v3  ;;  %v13482_v27 = vld [vmem:[#allocation50_spill] sm:$0xff]  ;;  %v13484_v13 = vld [vmem:[#allocation35_spill] sm:$0xff]  ;;  %v7080_v47 = vpop.f32.mrf.mxu0  ;;  %v13488_v23 = vld [vmem:[#allocation36_spill] sm:$0xff] }
 0x794   : > { %v7625_v24 = vadd.f32 %v7624_v39, %v7623_v21  ;;  %v12236_v7 = vsel %vm13479_vm4, %v13477_v25, 0.0  ;;  %v7628_v8 = vsel %vm13480_vm0, %v7574_v42, 0.0  ;;  %v7516_v32 = vsel %vm13481_vm9, %v12211_v37, 0.0  ;;  %v13492_v60 = vld [vmem:[#allocation37_spill] sm:$0xff]  ;;  %vm13499_vm10 = vmmov %vm13480_vm0 }
 0x795   : > { %v7576_v9 = vmul.f32 %v12222_v18, %v12222_v18  ;;  %v7121_v1 = vadd.f32 %v13482_v27, %v12138_v4  ;;  %v7515_v35 = vadd.f32 %v7514_v55, %v7513_v20  ;;  %vm13485_vm12 = vnez %v13484_v13  ;;  %vm13504_vm4 = vmmov %vm13480_vm0 }
 0x796   : > { %v7627_v0 = vadd.f32 %v7626_v58, %v7625_v24  ;;  %v12248_v51 = vsel %vm13485_vm12, %v13483_v52, 0.0  ;;  %v7430_v17 = vadd.f32 %v12017_v2, %v7120_v56  ;;  %v7630_v19 = vsel %vm13486_vm3, %v7575_v62, 0.0  ;;  %vm13507_vm12 = vmmov %vm13480_vm0 }
 0x797   : > { %v7518_v41 = vsel %vm13487_vm1, %v12222_v18, 0.0  ;;  %v7577_v39 = vmul.f32 %v12236_v7, %v12236_v7  ;;  %v7122_v4 = vadd.f32 %v11990_v36, %v12153_v6  ;;  %v7517_v21 = vadd.f32 %v7516_v32, %v7515_v35  ;;  %v13500_v35 = vld [vmem:[#allocation39_spill] sm:$0xff]  ;;  %vm13508_vm3 = vmmov %vm13480_vm0 }
 0x798   : > { %v7629_v42 = vadd.f32 %v7628_v8, %v7627_v0  ;;  %vm13489_vm15 = vnez %v13488_v23  ;;  %v7431_v2 = vadd.f32 %v12069_v31, %v7121_v1  ;;  %v7632_v30 = vsel %vm13490_vm14, %v7576_v9, 0.0  ;;  %v13496_v8 = vld [vmem:[#allocation38_spill] sm:$0xff]  ;;  %vm13512_vm14 = vmmov %vm13480_vm0 }
 0x799   : > { %v12261_v43 = vsel %vm13489_vm15, %v11972_v10, 0.0  ;;  %v7520_v58 = vsel %vm13491_vm13, %v12236_v7, 0.0  ;;  %v7578_v55 = vmul.f32 %v12248_v51, %v12248_v51  ;;  %v7123_v36 = vadd.f32 %v12056_v61, %v6813_v12  ;;  %vm13511_vm15 = vmmov %vm13480_vm0 }
 0x79a   : > { %v7384_v29 = vpop.f32.mrf.mxu1  ;;  %v7631_v6 = vadd.f32 %v7630_v19, %v7629_v42  ;;  %v7519_v62 = vadd.f32 %v7518_v41, %v7517_v21  ;;  %vm13493_vm8 = vnez %v13492_v60  ;;  %v7432_v10 = vadd.f32 %v12119_v28, %v7122_v4  ;;  %v13503_v19 = vld [vmem:[#allocation13_spill] sm:$0xff]  ;;  %v6773_v41 = vpop.f32.mrf.mxu3  ;;  %v13505_v21 = vld [vmem:[#allocation40_spill] sm:$0xff] }
 0x79b   : > { %v12272_v56 = vsel %vm13493_vm8, %v7430_v17, 0.0  ;;  %v7634_v31 = vsel %vm13494_vm11, %v7577_v39, 0.0  ;;  %v7522_v24 = vsel %vm13495_vm5, %v12248_v51, 0.0  ;;  %v7579_v20 = vmul.f32 %v12261_v43, %v12261_v43  ;;  %v13502_v17 = vld [vmem:[#allocation5_spill] sm:$0xff]  ;;  %vm13515_vm8 = vmmov %vm13480_vm0 }
 0x79c   : > { %v7124_v25 = vadd.f32 %v12122_v26, %v6814_v11  ;;  %v7633_v61 = vadd.f32 %v7632_v30, %v7631_v6  ;;  %v7521_v12 = vadd.f32 %v7520_v58, %v7519_v62  ;;  %vm13497_vm7 = vnez %v13496_v8  ;;  %v13509_v60 = vld [vmem:[#allocation41_spill] sm:$0xff]  ;;  %v13513_v8 = vld [vmem:[#allocation42_spill] sm:$0xff]  ;;  %vm13516_vm11 = vmmov %vm13480_vm0 }
 0x79d   : > { %v12283_v32 = vsel %vm13497_vm7, %v7431_v2, 0.0  ;;  %v7433_v9 = vadd.f32 %v12180_v53, %v7123_v36  ;;  %v7636_v28 = vsel %vm13498_vm6, %v7578_v55, 0.0  ;;  %v7524_v27 = vsel %vm13499_vm10, %v12261_v43, 0.0  ;;  %v7083_v36 = vpop.f32.mrf.mxu0  ;;  %vm13519_vm7 = vmmov %vm13480_vm0 }
 0x79e   : > { %v7580_v1 = vmul.f32 %v12272_v56, %v12272_v56  ;;  %v7125_v0 = vadd.f32 %v12193_v38, %v6815_v50  ;;  %v7635_v26 = vadd.f32 %v7634_v31, %v7633_v61  ;;  %v7523_v11 = vadd.f32 %v7522_v24, %v7521_v12  ;;  %v6466_v24 = vpop.f32.mrf.mxu2  ;;  %vm13520_vm6 = vmmov %vm13480_vm0 }
 0x79f   : > { %vm13501_vm2 = vnez %v13500_v35  ;;  %v7434_v13 = vadd.f32 %v7384_v29, %v7124_v25  ;;  %v6197_v53 = vadd.f32 %v13503_v19, %v13502_v17  ;;  %v7638_v39 = vsel %vm13504_vm4, %v7579_v20, 0.0  ;;  %vm13523_vm10 = vmmov %vm13480_vm0 }
 0x7a0   : > { %v12294_v52 = vsel %vm13501_vm2, %v7432_v10, 0.0  ;;  %v7526_v4 = vsel %vm13480_vm0, %v12272_v56, 0.0  ;;  %v7581_v42 = vmul.f32 %v12283_v32, %v12283_v32  ;;  %v7637_v38 = vadd.f32 %v7636_v28, %v7635_v26  ;;  %vm13524_vm2 = vmmov %vm13480_vm0 }
 0x7a1   : > { %v7525_v50 = vadd.f32 %v7524_v27, %v7523_v11  ;;  %vm13506_vm9 = vnez %v13505_v21  ;;  %v6507_v29 = vadd.f32 %v6463_v59, %v6197_v53  ;;  %v7640_v30 = vsel %vm13507_vm12, %v7580_v1, 0.0  ;;  %v13517_v11 = vld [vmem:[#allocation43_spill] sm:$0xff]  ;;  %v13521_v53 = vld [vmem:[#allocation10_spill] sm:$0xff]  ;;  %vm13525_vm4 = vmmov %vm13480_vm0 }
 0x7a2   : > { %v7387_v3 = vpop.f32.mrf.mxu1  ;;  %v12305_v23 = vsel %vm13506_vm9, %v7433_v9, 0.0  ;;  %v7528_v58 = vsel %vm13508_vm3, %v12283_v32, 0.0  ;;  %v7582_v55 = vmul.f32 %v12294_v52, %v12294_v52  ;;  %v7639_v6 = vadd.f32 %v7638_v39, %v7637_v38  ;;  %v13522_v39 = vld [vmem:[#allocation15_spill] sm:$0xff]  ;;  %vm13526_vm9 = vmmov %vm13480_vm0 }
 0x7a3   : > { %v7435_v2 = vadd.f32 %v7387_v3, %v7125_v0  ;;  %v7527_v62 = vadd.f32 %v7526_v4, %v7525_v50  ;;  %vm13510_vm1 = vnez %v13509_v60  ;;  %v7126_v31 = vadd.f32 %v7080_v47, %v12231_v15  ;;  %vm13529_vm3 = vmmov %vm13480_vm0 }
 0x7a4   : > { %v12314_v10 = vsel %vm13510_vm1, %v7434_v13, 0.0  ;;  %v7642_v59 = vsel %vm13511_vm15, %v7581_v42, 0.0  ;;  %v7530_v20 = vsel %vm13512_vm14, %v12294_v52, 0.0  ;;  %v7583_v25 = vmul.f32 %v12305_v23, %v12305_v23  ;;  %vm13532_vm1 = vmmov %vm13480_vm0 }
 0x7a5   : > { %v7641_v61 = vadd.f32 %v7640_v30, %v7639_v6  ;;  %v7529_v12 = vadd.f32 %v7528_v58, %v7527_v62  ;;  %vm13514_vm13 = vnez %v13513_v8  ;;  %v7644_v27 = vsel %vm13515_vm8, %v7582_v55, 0.0  ;;  %vm13535_vm14 = vmmov %vm13480_vm0 }
 0x7a6   : > { %v12324_v9 = vsel %vm13514_vm13, %v7435_v2, 0.0  ;;  %v7532_v15 = vsel %vm13516_vm11, %v12305_v23, 0.0  ;;  %v7584_v47 = vmul.f32 %v12314_v10, %v12314_v10  ;;  %v6817_v1 = vadd.f32 %v6773_v41, %v6507_v29  ;;  %v6776_v41 = vpop.f32.mrf.mxu3  ;;  %vm13538_vm13 = vmmov %vm13480_vm0 }
 0x7a7   : > { %v7643_v0 = vadd.f32 %v7642_v59, %v7641_v61  ;;  %v7531_v26 = vadd.f32 %v7530_v20, %v7529_v12  ;;  %vm13518_vm5 = vnez %v13517_v11  ;;  %v7646_v13 = vsel %vm13519_vm7, %v7583_v25, 0.0  ;;  %v7086_v25 = vpop.f32.mrf.mxu0  ;;  %vm13541_vm11 = vmmov %vm13480_vm0 }
 0x7a8   : > { %v7534_v17 = vsel %vm13520_vm6, %v12314_v10, 0.0  ;;  %v7585_v19 = vmul.f32 %v12324_v9, %v12324_v9  ;;  %v6198_v4 = vadd.f32 %v13522_v39, %v13521_v53  ;;  %v7648_v50 = vsel %vm13523_vm10, %v7584_v47, 0.0  ;;  %v13530_v47 = vld [vmem:[#allocation9_spill] sm:$0xff]  ;;  %vm13545_vm6 = vmmov %vm13480_vm0 }
 0x7a9   : > { %v7645_v42 = vadd.f32 %v7644_v27, %v7643_v0  ;;  %v7533_v38 = vadd.f32 %v7532_v15, %v7531_v26  ;;  %v7536_v21 = vsel %vm13524_vm2, %v12324_v9, 0.0  ;;  %v7127_v55 = vadd.f32 %v7083_v36, %v6817_v1  ;;  %v13531_v1 = vld [vmem:[#allocation17_spill] sm:$0xff]  ;;  %vm13546_vm10 = vmmov %vm13480_vm0 }
 0x7aa   : > { %v7390_v3 = vpop.f32.mrf.mxu1  ;;  %v6508_v29 = vadd.f32 %v6466_v24, %v6198_v4  ;;  %v7650_v6 = vsel %vm13525_vm4, %v7585_v19, 0.0  ;;  %v13527_v24 = vld [vmem:[#allocation44_spill] sm:$0xff]  ;;  %v6199_v0 = vadd.f32 %v13531_v1, %v13530_v47 }
 0x7ab   : > { %v7436_v28 = vadd.f32 %v7390_v3, %v7126_v31  ;;  %v7647_v30 = vadd.f32 %v7646_v13, %v7645_v42  ;;  %v7535_v58 = vadd.f32 %v7534_v17, %v7533_v38  ;;  %v6469_v3 = vpop.f32.mrf.mxu2  ;;  %vm13528_vm12 = vnez %v13527_v24 }
 0x7ac   : > { %v6818_v12 = vadd.f32 %v6776_v41, %v6508_v29  ;;  %v6509_v17 = vadd.f32 %v6469_v3, %v6199_v0  ;;  %v13533_v41 = vld [vmem:[#allocation45_spill] sm:$0xff] }
 0x7ad   : > { %v12333_v35 = vsel %vm13518_vm5, %v7436_v28, 0.0  ;;  %v7649_v31 = vadd.f32 %v7648_v50, %v7647_v30  ;;  %v7537_v59 = vadd.f32 %v7536_v21, %v7535_v58  ;;  %vm13534_vm15 = vnez %v13533_v41  ;;  %v13536_v58 = vld [vmem:[#allocation11_spill] sm:$0xff]  ;;  %vm13542_vm5 = vmmov %vm13480_vm0 }
 0x7ae   : > { %v7586_v2 = vmul.f32 %v12333_v35, %v12333_v35  ;;  %v7538_v62 = vsel %vm13480_vm0, %v12333_v35, 0.0  ;;  %v7128_v53 = vadd.f32 %v7086_v25, %v6818_v12  ;;  %v6779_v39 = vpop.f32.mrf.mxu3 }
 0x7af   : > { %v7651_v8 = vadd.f32 %v7650_v6, %v7649_v31  ;;  %v7539_v28 = vadd.f32 %v7538_v62, %v7537_v59  ;;  %v6819_v38 = vadd.f32 %v6779_v39, %v6509_v17  ;;  %v7089_v21 = vpop.f32.mrf.mxu0  ;;  %v13543_v17 = vld [vmem:[#allocation46_spill] sm:$0xff] }
 0x7b0   : > { %v7652_v61 = vsel %vm13526_vm9, %v7586_v2, 0.0  ;;  %vm13544_vm7 = vnez %v13543_v17  ;;  %v13548_v17 = vld [vmem:[#allocation8_spill] sm:$0xff]  ;;  %vm13552_vm9 = vmmov %vm13532_vm1 }
 0x7b1   : > { %v7653_v26 = vadd.f32 %v7652_v61, %v7651_v8  ;;  %v13539_v8 = vld [vmem:[#allocation6_spill] sm:$0xff] }
 0x7b2   : > { %v7393_v60 = vpop.f32.mrf.mxu1  ;;  %vm13540_vm8 = vnez %v13539_v8 }
 0x7b3   : > { %v7437_v20 = vadd.f32 %v7393_v60, %v7127_v55  ;;  %v6472_v2 = vpop.f32.mrf.mxu2  ;;  %v13537_v55 = vld [vmem:[#allocation19_spill] sm:$0xff] }
 0x7b4   : > { %v6200_v6 = vadd.f32 %v13537_v55, %v13536_v58 }
 0x7b5   : > { %v12353_v27 = vsel %vm13528_vm12, %v7437_v20, 0.0  ;;  %v7129_v20 = vadd.f32 %v7089_v21, %v6819_v38  ;;  %vm13553_vm12 = vmmov %vm13532_vm1 }
 0x7b6   : > { %v7540_v36 = vsel %vm13529_vm3, %v12353_v27, 0.0  ;;  %v7587_v15 = vmul.f32 %v12353_v27, %v12353_v27  ;;  %v6510_v31 = vadd.f32 %v6472_v2, %v6200_v6  ;;  %v6782_v61 = vpop.f32.mrf.mxu3  ;;  %vm13554_vm3 = vmmov %vm13532_vm1 }
 0x7b7   : > { %v7541_v11 = vadd.f32 %v7540_v36, %v7539_v28  ;;  %v7092_v47 = vpop.f32.mrf.mxu0 }
 0x7b8   : > { %v7654_v13 = vsel %vm13532_vm1, %v7587_v15, 0.0  ;;  %v6820_v12 = vadd.f32 %v6782_v61, %v6510_v31 }
 0x7b9   : > { %v7655_v19 = vadd.f32 %v7654_v13, %v7653_v26 }
 0x7ba   : > { %v7396_v4 = vpop.f32.mrf.mxu1  ;;  %v7130_v26 = vadd.f32 %v7092_v47, %v6820_v12 }
 0x7bb   : > { %v7438_v42 = vadd.f32 %v7396_v4, %v7128_v53 }
 0x7bd   : > { %v12364_v50 = vsel %vm13534_vm15, %v7438_v42, 0.0  ;;  %vm13555_vm15 = vmmov %vm13532_vm1 }
 0x7be   : > { %v7542_v29 = vsel %vm13535_vm14, %v12364_v50, 0.0  ;;  %v7588_v30 = vmul.f32 %v12364_v50, %v12364_v50  ;;  %vm13556_vm14 = vmmov %vm13532_vm1 }
 0x7bf   : > { %v7543_v62 = vadd.f32 %v7542_v29, %v7541_v11 }
 0x7c0   : > { %v7656_v60 = vsel %vm13538_vm13, %v7588_v30, 0.0  ;;  %vm13557_vm13 = vmmov %vm13532_vm1 }
 0x7c1   : > { %v7657_v59 = vadd.f32 %v7656_v60, %v7655_v19 }
 0x7c2   : > { %v7399_v25 = vpop.f32.mrf.mxu1 }
 0x7c3   : > { %v7439_v3 = vadd.f32 %v7399_v25, %v7129_v20 }
 0x7c5   : > { %v12375_v28 = vsel %vm13540_vm8, %v7439_v3, 0.0  ;;  %vm13558_vm8 = vmmov %vm13532_vm1 }
 0x7c6   : > { %v7544_v24 = vsel %vm13541_vm11, %v12375_v28, 0.0  ;;  %v7589_v36 = vmul.f32 %v12375_v28, %v12375_v28  ;;  %vm13559_vm11 = vmmov %vm13532_vm1 }
 0x7c7   : > { %v7545_v15 = vadd.f32 %v7544_v24, %v7543_v62 }
 0x7c8   : > { %v7658_v1 = vsel %vm13542_vm5, %v7589_v36, 0.0  ;;  %vm13560_vm5 = vmmov %vm13532_vm1 }
 0x7c9   : > { %v7659_v0 = vadd.f32 %v7658_v1, %v7657_v59 }
 0x7ca   : > { %v7402_v11 = vpop.f32.mrf.mxu1 }
 0x7cb   : > { %v7440_v13 = vadd.f32 %v7402_v11, %v7130_v26  ;;  %v13547_v11 = vld [vmem:[#allocation4_spill] sm:$0xff] }
 0x7cd   : > { %v12384_v19 = vsel %vm13544_vm7, %v7440_v13, 0.0  ;;  %vm13561_vm7 = vmmov %vm13532_vm1 }
 0x7ce   : > { %v7546_v53 = vsel %vm13545_vm6, %v12384_v19, 0.0  ;;  %v7590_v39 = vmul.f32 %v12384_v19, %v12384_v19  ;;  %vm13562_vm6 = vmmov %vm13532_vm1 }
 0x7cf   : > { %v7547_v4 = vadd.f32 %v7546_v53, %v7545_v15 }
 0x7d0   : > { %v7660_v42 = vsel %vm13546_vm10, %v7590_v39, 0.0  ;;  %v13549_v39 = vld [vmem:[#allocation7_spill] sm:$0xff]  ;;  %vm13563_vm10 = vmmov %vm13532_vm1 }
 0x7d1   : > { %v7548_v38 = vrot.slane %v7547_v4, 4  ;;  %v7661_v41 = vadd.f32 %v7660_v42, %v7659_v0  ;;  %v13550_v42 = vld [vmem:[#allocation12_spill] sm:$0xff] }
 0x7d3   : > { %v7549_v21 = vadd.f32 %v7548_v38, %v7547_v4  ;;  %v7662_v2 = vrot.slane %v7661_v41, 4 }
 0x7d5   : > { %v7550_v29 = vrot.slane %v7549_v21, 2  ;;  %v7663_v30 = vadd.f32 %v7662_v2, %v7661_v41  ;;  %v13551_v41 = vld [vmem:[#allocation14_spill] sm:$0xff] }
 0x7d7   : > { %v7551_v58 = vadd.f32 %v7550_v29, %v7549_v21  ;;  %v7664_v55 = vrot.slane %v7663_v30, 2 }
 0x7d9   : > { %v7552_v6 = vrot.slane %v7551_v58, 1  ;;  %v7665_v62 = vadd.f32 %v7664_v55, %v7663_v30 }
 0x7db   : > { %v7553_v60 = vadd.f32 %v7552_v6, %v7551_v58  ;;  %v7666_v31 = vrot.slane %v7665_v62, 1 }
 0x7dd   : > { %v12391_v59 = vmul.f32 0.00390625, %v7553_v60  ;;  %v7667_v20 = vadd.f32 %v7666_v31, %v7665_v62 }
 0x7df   : > { %v7668_v25 = vmul.f32 0.00390625, %v7667_v20  ;;  %v7669_v3 = vmul.f32 %v12391_v59, %v12391_v59  ;;  %v7703_v8 = vsub.f32 %v12333_v35, %v12391_v59  ;;  %v7704_v24 = vsub.f32 %v12353_v27, %v12391_v59  ;;  %v7759_v27 = vld [vmem:[%s8697_s27 + $0x33] sm:$0xff] }
 0x7e0   : > { %v7705_v36 = vsub.f32 %v12364_v50, %v12391_v59  ;;  %v7706_v15 = vsub.f32 %v12375_v28, %v12391_v59  ;;  %v7707_v47 = vsub.f32 %v12384_v19, %v12391_v59  ;;  %v7672_v13 = vsub.f32 %v13547_v11, %v12391_v59  ;;  %v7763_v19 = vld [vmem:[%s8697_s27 + $0x53] sm:$0xff] }
 0x7e1   : > { %v7670_v61 = vsub.f32 %v7668_v25, %v7669_v3  ;;  %v7673_v53 = vsub.f32 %v13548_v17, %v12391_v59  ;;  %v7674_v4 = vsub.f32 %v13549_v39, %v12391_v59  ;;  %v7675_v38 = vsub.f32 %v13550_v42, %v12391_v59 }
 0x7e2   : > { %v7676_v21 = vsub.f32 %v13551_v41, %v12391_v59  ;;  %v7677_v29 = vsub.f32 %v12007_v57, %v12391_v59  ;;  %v7678_v30 = vsub.f32 %v12021_v45, %v12391_v59  ;;  %v7679_v58 = vsub.f32 %v12034_v34, %v12391_v59 }
 0x7e3   : > { %v7671_v12 = vmax.f32 %v7670_v61, 0.0  ;;  %v7680_v55 = vsub.f32 %v12045_v63, %v12391_v59  ;;  %v7681_v6 = vsub.f32 %v12060_v48, %v12391_v59  ;;  %v7682_v62 = vsub.f32 %v12073_v49, %v12391_v59 }
 0x7e4   : > { %v7683_v60 = vsub.f32 %v12084_v33, %v12391_v59  ;;  %v7684_v57 = vsub.f32 %v12099_v5, %v12391_v59  ;;  %v7685_v45 = vsub.f32 %v12112_v14, %v12391_v59  ;;  %v7686_v34 = vsub.f32 %v12127_v44, %v12391_v59 }
 0x7e5   : > { %v7708_v1 = vadd.f32 1e-05, %v7671_v12  ;;  %v7687_v63 = vsub.f32 %v12143_v16, %v12391_v59  ;;  %v7688_v48 = vsub.f32 %v12158_v40, %v12391_v59  ;;  %v7689_v49 = vsub.f32 %v12171_v22, %v12391_v59 }
 0x7e6   : > { %v7690_v5 = vsub.f32 %v12186_v46, %v12391_v59  ;;  %v7691_v14 = vsub.f32 %v12200_v54, %v12391_v59  ;;  %v7692_v44 = vsub.f32 %v12211_v37, %v12391_v59  ;;  %v7693_v16 = vsub.f32 %v12222_v18, %v12391_v59 }
 0x7e7   : > { %8625 = vrsqrt.f32 %v7708_v1  ;;  %v7694_v40 = vsub.f32 %v12236_v7, %v12391_v59  ;;  %v7695_v22 = vsub.f32 %v12248_v51, %v12391_v59  ;;  %vm7715_vm4 = vweird.f32 %v7708_v1 }
 0x7e8   : > { %v7696_v46 = vsub.f32 %v12261_v43, %v12391_v59  ;;  %v7697_v54 = vsub.f32 %v12272_v56, %v12391_v59  ;;  %v7698_v37 = vsub.f32 %v12283_v32, %v12391_v59  ;;  %v7699_v18 = vsub.f32 %v12294_v52, %v12391_v59 }
 0x7e9   : > { %v7700_v7 = vsub.f32 %v12305_v23, %v12391_v59  ;;  %v7701_v51 = vsub.f32 %v12314_v10, %v12391_v59  ;;  %v7702_v25 = vsub.f32 %v12324_v9, %v12391_v59 }
 0x7ed   : > { %v8626_v0 = vpop.eup %8625 }
 0x7ee   : > { %v7710_v26 = vmul.f32 %v8626_v0, %v7708_v1  ;;  %vm7716_vm2 = vweird.f32 %v8626_v0 }
 0x7ef   : > { %vm7717_vm0 = vmor %vm7715_vm4, %vm7716_vm2 }
 0x7f0   : > { %v7711_v2 = vmul.f32 %v8626_v0, %v7710_v26  ;;  %vm13564_vm2 = vmmov %vm13532_vm1 }
 0x7f1   : > { %vm13565_vm4 = vmmov %vm13532_vm1 }
 0x7f2   : > { %v7712_v31 = vmul.f32 0.5, %v7711_v2 }
 0x7f4   : > { %v7713_v33 = vsub.f32 1.5, %v7712_v31  ;;  %v7757_v31 = vld [vmem:[%s8697_s27 + $0x23] sm:$0xff] }
 0x7f6   : > { %v7714_v20 = vmul.f32 %v8626_v0, %v7713_v33 }
 0x7f8   : > { %v7718_v43 = vsel %vm7717_vm0, %v8626_v0, %v7714_v20  ;;  %v7766_v20 = vld [vmem:[%s8697_s27 + $0x6b] sm:$0xff]  ;;  %vm13566_vm0 = vmmov %vm13532_vm1 }
 0x7f9   : > { %v7719_v3 = vmul.f32 %v7718_v43, %v7672_v13  ;;  %v7720_v56 = vmul.f32 %v7718_v43, %v7673_v53  ;;  %v7721_v61 = vmul.f32 %v7718_v43, %v7674_v4  ;;  %v7722_v12 = vmul.f32 %v7718_v43, %v7675_v38 }
 0x7fa   : > { %v7723_v32 = vmul.f32 %v7718_v43, %v7676_v21  ;;  %v7724_v1 = vmul.f32 %v7718_v43, %v7677_v29  ;;  %v7725_v26 = vmul.f32 %v7718_v43, %v7678_v30  ;;  %v7726_v52 = vmul.f32 %v7718_v43, %v7679_v58 }
 0x7fb   : > { %v7727_v11 = vmul.f32 %v7718_v43, %v7680_v55  ;;  %v7728_v17 = vmul.f32 %v7718_v43, %v7681_v6  ;;  %v7729_v39 = vmul.f32 %v7718_v43, %v7682_v62  ;;  %v7730_v23 = vmul.f32 %v7718_v43, %v7683_v60  ;;  %v7755_v62 = vld [vmem:[%s8697_s27 + $0x13] sm:$0xff]  ;;  %v7756_v60 = vld [vmem:[%s8697_s27 + $0x1b] sm:$0xff] }
 0x7fc   : > { %v7731_v42 = vmul.f32 %v7718_v43, %v7684_v57  ;;  %v12467_v41 = vmul.f32 %v7718_v43, %v7685_v45  ;;  %v12469_v10 = vmul.f32 %v7718_v43, %v7686_v34  ;;  %v12471_v9 = vmul.f32 %v7718_v43, %v7687_v63 }
 0x7fd   : > { %v12474_v0 = vmul.f32 %v7718_v43, %v7688_v48  ;;  %v12476_v13 = vmul.f32 %v7718_v43, %v7689_v49  ;;  %v12478_v53 = vmul.f32 %v7718_v43, %v7690_v5  ;;  %v12480_v4 = vmul.f32 %v7718_v43, %v7691_v14  ;;  %v7758_v48 = vld [vmem:[%s8697_s27 + $0x2b] sm:$0xff]  ;;  %v7761_v14 = vld [vmem:[%s8697_s27 + $0x43] sm:$0xff] }
 0x7fe   : > { %v12482_v38 = vmul.f32 %v7718_v43, %v7692_v44  ;;  %v12484_v21 = vmul.f32 %v7718_v43, %v7693_v16  ;;  %v12486_v2 = vmul.f32 %v7718_v43, %v7694_v40  ;;  %v12488_v29 = vmul.f32 %v7718_v43, %v7695_v22  ;;  %v7765_v40 = vld [vmem:[%s8697_s27 + $0x63] sm:$0xff] }
 0x7ff   : > { %v12490_v30 = vmul.f32 %v7718_v43, %v7696_v46  ;;  %v12492_v58 = vmul.f32 %v7718_v43, %v7697_v54  ;;  %v12494_v55 = vmul.f32 %v7718_v43, %v7698_v37  ;;  %v12496_v6 = vmul.f32 %v7718_v43, %v7699_v18  ;;  %v7767_v54 = vld [vmem:[%s8697_s27 + $0x73] sm:$0xff]  ;;  %v7768_v18 = vld [vmem:[%s8697_s27 + $0x7b] sm:$0xff] }
 0x800   : > { %v12501_v57 = vmul.f32 %v7718_v43, %v7700_v7  ;;  %v12503_v45 = vmul.f32 %v7718_v43, %v7701_v51  ;;  %v12505_v34 = vmul.f32 %v7718_v43, %v7702_v25  ;;  %v12510_v63 = vmul.f32 %v7718_v43, %v7703_v8  ;;  %v7769_v51 = vld [vmem:[%s8697_s27 + $0x83] sm:$0xff] }
 0x801   : > { %v12521_v49 = vmul.f32 %v7718_v43, %v7704_v24  ;;  %v12526_v35 = vmul.f32 %v7718_v43, %v7705_v36  ;;  %v12531_v8 = vmul.f32 %v7718_v43, %v7706_v15  ;;  %v12536_v33 = vmul.f32 %v7718_v43, %v7707_v47  ;;  %v7760_v24 = vld [vmem:[%s8697_s27 + $0x3b] sm:$0xff]  ;;  %v7762_v15 = vld [vmem:[%s8697_s27 + $0x4b] sm:$0xff] }
 0x802   : > { %v7791_v5 = vadd.f32 %v7755_v62, %v7719_v3  ;;  %v7792_v50 = vadd.f32 %v7756_v60, %v7720_v56  ;;  %v7793_v36 = vadd.f32 %v7757_v31, %v7721_v61  ;;  %v7794_v28 = vadd.f32 %v7758_v48, %v7722_v12  ;;  %v7764_v47 = vld [vmem:[%s8697_s27 + $0x5b] sm:$0xff]  ;;  %v7770_v43 = vld [vmem:[%s8697_s27 + $0x8b] sm:$0xff]  ;;  %v7771_v56 = vld [vmem:[%s8697_s27 + $0x93] sm:$0xff] }
 0x803   : > { %v7795_v44 = vadd.f32 %v7759_v27, %v7723_v32  ;;  %v7796_v59 = vadd.f32 %v7760_v24, %v7724_v1  ;;  %v7797_v16 = vadd.f32 %v7761_v14, %v7725_v26  ;;  %v7798_v22 = vadd.f32 %v7762_v15, %v7726_v52  ;;  %v7772_v12 = vld [vmem:[%s8697_s27 + $0x9b] sm:$0xff]  ;;  %v7773_v1 = vld [vmem:[%s8697_s27 + $0xa3] sm:$0xff]  ;;  %v7774_v52 = vld [vmem:[%s8697_s27 + $0xab] sm:$0xff] }
 0x804   : > { %7827 = vst.msk [vmem:[%s12516_s5] sm:$0xff] %vm13552_vm9, %v7791_v5  ;;  %v7799_v46 = vadd.f32 %v7763_v19, %v7727_v11  ;;  %v7800_v37 = vadd.f32 %v7764_v47, %v7728_v17  ;;  %v7801_v7 = vadd.f32 %v7765_v40, %v7729_v39  ;;  %v7802_v25 = vadd.f32 %v7766_v20, %v7730_v23  ;;  %v7775_v17 = vld [vmem:[%s8697_s27 + $0xb3] sm:$0xff]  ;;  %v7776_v23 = vld [vmem:[%s8697_s27 + $0xbb] sm:$0xff]  ;;  %vm13567_vm9 = vmmov %vm13566_vm0 }
 0x805   : > { %7828 = vst.msk [vmem:[%s12516_s5 + $0x8] sm:$0xff] %vm13553_vm12, %v7792_v50  ;;  %v7803_v3 = vadd.f32 %v7767_v54, %v7731_v42  ;;  %v7804_v61 = vadd.f32 %v7768_v18, %v12467_v41  ;;  %v7805_v32 = vadd.f32 %v7769_v51, %v12469_v10  ;;  %v7806_v26 = vadd.f32 %v7770_v43, %v12471_v9  ;;  %v7777_v41 = vld [vmem:[%s8697_s27 + $0xc3] sm:$0xff]  ;;  %v7778_v9 = vld [vmem:[%s8697_s27 + $0xcb] sm:$0xff]  ;;  %vm13568_vm12 = vmmov %vm13566_vm0 }
 0x806   : > { %7829 = vst.msk [vmem:[%s12516_s5 + $0x10] sm:$0xff] %vm13554_vm3, %v7793_v36  ;;  %v7807_v11 = vadd.f32 %v7771_v56, %v12474_v0  ;;  %v7808_v39 = vadd.f32 %v7772_v12, %v12476_v13  ;;  %v7809_v42 = vadd.f32 %v7773_v1, %v12478_v53  ;;  %v7810_v10 = vadd.f32 %v7774_v52, %v12480_v4  ;;  %v7779_v13 = vld [vmem:[%s8697_s27 + $0xd3] sm:$0xff]  ;;  %v7780_v62 = vld [vmem:[%s8697_s27 + $0xdb] sm:$0xff]  ;;  %vm13569_vm3 = vmmov %vm13566_vm0 }
 0x807   : > { %7830 = vst.msk [vmem:[%s12516_s5 + $0x18] sm:$0xff] %vm13532_vm1, %v7794_v28  ;;  %v7811_v0 = vadd.f32 %v7775_v17, %v12482_v38  ;;  %v7812_v53 = vadd.f32 %v7776_v23, %v12484_v21  ;;  %v7813_v4 = vadd.f32 %v7777_v41, %v12486_v2  ;;  %v7781_v60 = vld [vmem:[%s8697_s27 + $0xe3] sm:$0xff]  ;;  %v7814_v38 = vadd.f32 %v7778_v9, %v12488_v29  ;;  %vm13570_vm1 = vmmov %vm13566_vm0  ;;  %v7782_v31 = vld [vmem:[%s8697_s27 + $0xeb] sm:$0xff] }
 0x808   : > { %7831 = vst.msk [vmem:[%s12516_s5 + $0x20] sm:$0xff] %vm13555_vm15, %v7795_v44  ;;  %v7815_v21 = vadd.f32 %v7779_v13, %v12490_v30  ;;  %vm13571_vm15 = vmmov %vm13566_vm0  ;;  %v7783_v48 = vld [vmem:[%s8697_s27 + $0xf3] sm:$0xff]  ;;  %v7816_v2 = vadd.f32 %v7780_v62, %v12492_v58  ;;  %v7784_v27 = vld [vmem:[%s8697_s27 + $0xfb] sm:$0xff]  ;;  %v7817_v29 = vadd.f32 %v7781_v60, %v12494_v55  ;;  %v7818_v30 = vadd.f32 %v7782_v31, %v12496_v6 }
 0x809   : > { %7832 = vst.msk [vmem:[%s12516_s5 + $0x28] sm:$0xff] %vm13556_vm14, %v7796_v59  ;;  %vm13572_vm14 = vmmov %vm13566_vm0  ;;  %v7785_v24 = vld [vmem:[%s8697_s27 + $0x103] sm:$0xff]  ;;  %v7786_v5 = vld [vmem:[%s8697_s27 + $0x10b] sm:$0xff]  ;;  %v7819_v58 = vadd.f32 %v7783_v48, %v12501_v57  ;;  %v7820_v55 = vadd.f32 %v7784_v27, %v12503_v45 }
 0x80a   : > { %7833 = vst.msk [vmem:[%s12516_s5 + $0x30] sm:$0xff] %vm13557_vm13, %v7797_v16  ;;  %vm13573_vm13 = vmmov %vm13566_vm0  ;;  %v7787_v50 = vld [vmem:[%s8697_s27 + $0x113] sm:$0xff]  ;;  %v7788_v36 = vld [vmem:[%s8697_s27 + $0x11b] sm:$0xff]  ;;  %v7821_v6 = vadd.f32 %v7785_v24, %v12505_v34  ;;  %v7822_v57 = vadd.f32 %v7786_v5, %v12510_v63 }
 0x80b   : > { %7834 = vst.msk [vmem:[%s12516_s5 + $0x38] sm:$0xff] %vm13558_vm8, %v7798_v22  ;;  %vm13574_vm8 = vmmov %vm13566_vm0  ;;  %v7789_v14 = vld [vmem:[%s8697_s27 + $0x123] sm:$0xff]  ;;  %v7790_v28 = vld [vmem:[%s8697_s27 + $0x12b] sm:$0xff]  ;;  %v7823_v45 = vadd.f32 %v7787_v50, %v12521_v49  ;;  %v7824_v15 = vadd.f32 %v7788_v36, %v12526_v35 }
 0x80c   : > { %7835 = vst.msk [vmem:[%s12516_s5 + $0x40] sm:$0xff] %vm13559_vm11, %v7799_v46  ;;  %vm13575_vm11 = vmmov %vm13566_vm0  ;;  %v7825_v34 = vadd.f32 %v7789_v14, %v12531_v8  ;;  %v7826_v44 = vadd.f32 %v7790_v28, %v12536_v33 }
 0x80d   : > { %7836 = vst.msk [vmem:[%s12516_s5 + $0x48] sm:$0xff] %vm13560_vm5, %v7800_v37  ;;  %vm13576_vm5 = vmmov %vm13566_vm0 }
 0x80e   : > { %7837 = vst.msk [vmem:[%s12516_s5 + $0x50] sm:$0xff] %vm13561_vm7, %v7801_v7  ;;  %vm13577_vm7 = vmmov %vm13566_vm0 }
 0x80f   : > { %7838 = vst.msk [vmem:[%s12516_s5 + $0x58] sm:$0xff] %vm13562_vm6, %v7802_v25  ;;  %vm13578_vm6 = vmmov %vm13566_vm0 }
 0x810   : > { %7839 = vst.msk [vmem:[%s12516_s5 + $0x60] sm:$0xff] %vm13563_vm10, %v7803_v3  ;;  %vm13579_vm10 = vmmov %vm13566_vm0 }
 0x811   : > { %7840 = vst.msk [vmem:[%s12516_s5 + $0x68] sm:$0xff] %vm13564_vm2, %v7804_v61  ;;  %vm13580_vm2 = vmmov %vm13566_vm0 }
 0x812   : > { %7841 = vst.msk [vmem:[%s12516_s5 + $0x70] sm:$0xff] %vm13565_vm4, %v7805_v32  ;;  %vm13581_vm4 = vmmov %vm13566_vm0 }
 0x813   : > { %7842 = vst.msk [vmem:[%s12516_s5 + $0x78] sm:$0xff] %vm13566_vm0, %v7806_v26 }
 0x814   : > { %7843 = vst.msk [vmem:[%s12516_s5 + $0x80] sm:$0xff] %vm13567_vm9, %v7807_v11  ;;  %vm13582_vm9 = vmmov %vm13566_vm0 }
 0x815   : > { %7844 = vst.msk [vmem:[%s12516_s5 + $0x88] sm:$0xff] %vm13568_vm12, %v7808_v39  ;;  %vm13583_vm12 = vmmov %vm13566_vm0 }
 0x816   : > { %7845 = vst.msk [vmem:[%s12516_s5 + $0x90] sm:$0xff] %vm13569_vm3, %v7809_v42  ;;  %vm13584_vm3 = vmmov %vm13566_vm0 }
 0x817   : > { %7846 = vst.msk [vmem:[%s12516_s5 + $0x98] sm:$0xff] %vm13570_vm1, %v7810_v10  ;;  %vm13585_vm1 = vmmov %vm13566_vm0 }
 0x818   : > { %7847 = vst.msk [vmem:[%s12516_s5 + $0xa0] sm:$0xff] %vm13571_vm15, %v7811_v0 }
 0x819   : > { %7848 = vst.msk [vmem:[%s12516_s5 + $0xa8] sm:$0xff] %vm13572_vm14, %v7812_v53 }
 0x81a   : > { %7849 = vst.msk [vmem:[%s12516_s5 + $0xb0] sm:$0xff] %vm13573_vm13, %v7813_v4 }
 0x81b   : > { %7850 = vst.msk [vmem:[%s12516_s5 + $0xb8] sm:$0xff] %vm13574_vm8, %v7814_v38 }
 0x81c   : > { %7851 = vst.msk [vmem:[%s12516_s5 + $0xc0] sm:$0xff] %vm13575_vm11, %v7815_v21 }
 0x81d   : > { %7852 = vst.msk [vmem:[%s12516_s5 + $0xc8] sm:$0xff] %vm13576_vm5, %v7816_v2 }
 0x81e   : > { %7853 = vst.msk [vmem:[%s12516_s5 + $0xd0] sm:$0xff] %vm13577_vm7, %v7817_v29 }
 0x81f   : > { %7854 = vst.msk [vmem:[%s12516_s5 + $0xd8] sm:$0xff] %vm13578_vm6, %v7818_v30 }
 0x820   : > { %7855 = vst.msk [vmem:[%s12516_s5 + $0xe0] sm:$0xff] %vm13579_vm10, %v7819_v58 }
 0x821   : > { %7856 = vst.msk [vmem:[%s12516_s5 + $0xe8] sm:$0xff] %vm13580_vm2, %v7820_v55 }
 0x822   : > { %7857 = vst.msk [vmem:[%s12516_s5 + $0xf0] sm:$0xff] %vm13581_vm4, %v7821_v6 }
 0x823   : > { %7858 = vst.msk [vmem:[%s12516_s5 + $0xf8] sm:$0xff] %vm13566_vm0, %v7822_v57 }
 0x824   : > { %7859 = vst.msk [vmem:[%s12516_s5 + $0x100] sm:$0xff] %vm13582_vm9, %v7823_v45 }
 0x825   : > { %7860 = vst.msk [vmem:[%s12516_s5 + $0x108] sm:$0xff] %vm13583_vm12, %v7824_v15 }
 0x826   : > { %7861 = vst.msk [vmem:[%s12516_s5 + $0x110] sm:$0xff] %vm13584_vm3, %v7825_v34 }
 0x827   : > { %7862 = vst.msk [vmem:[%s12516_s5 + $0x118] sm:$0xff] %vm13585_vm1, %v7826_v44 }
 0x828 PF: > { %s13_s12 = sadd.s32 1, %s8637_s12  }
 0x829   : > { %p10_p4 = scmp.ge.s32.totalorder %s13_s12, 4  }
 0x82b   :  { %12 = sbr.rel (!%p10_p4) target bundleno = 1 (0x1), region = 78 }

</bundles_post_ra>
